<compile_context>
chip_gen: v7x
topology: tpu7x:2x2x1
jax: 0.10.0
libtpu: 0.0.40
codegen_flags: <defaults>
</compile_context>

<pallas_src>
import jax
import jax.numpy as jnp
from jax.experimental import pallas as pl
from jax.experimental.pallas import tpu as pltpu


# --------------------------------------------------------------------------- #
# helpers
# --------------------------------------------------------------------------- #
def _round_up(x, m):
    return -(-x // m) * m


def _default_vmem_limit_bytes():
    """Generation-dependent VMEM budget: v7x has 64 MiB/TC, v5e/v6e have 128 MiB."""
    try:
        kind = jax.devices()[0].device_kind.lower()
    except Exception:  # pragma: no cover - defensive, never expected on TPU
        kind = ""
    if "v7" in kind or "tpu7" in kind:
        return 48 * 1024 * 1024
    if "v5" in kind or "v6" in kind:
        return 100 * 1024 * 1024
    return 64 * 1024 * 1024  # unknown generation: conservative


def _single_buffered_spec(block_shape, index_map):
    """BlockSpec with single-buffering for vocab-invariant inputs (halves their
    VMEM residency); gracefully falls back to the default pipeline mode."""
    buffered = getattr(pl, "Buffered", None)
    if buffered is not None:
        try:
            return pl.BlockSpec(block_shape, index_map, pipeline_mode=buffered(1))
        except TypeError:
            pass
    return pl.BlockSpec(block_shape, index_map)


# --------------------------------------------------------------------------- #
# kernel
# --------------------------------------------------------------------------- #
def _make_kernel(num_heads):
    H = num_heads

    def kernel(x_ref, wqkv_ref, w2_ref, c_ref, sim_ref, osum_ref):
        # ---- attention front-end: once per (vocab-split, batch-tile) -------- #
        @pl.when(pl.program_id(2) == 0)
        def _attention_frontend():
            x = x_ref[...]                                   # (Bt, L, D) compute dtype
            Bt, L, D = x.shape
            Dh = D // H
            cdt = x.dtype

            # QKV projection as one (Bt*L, D) @ (D, 3D) matmul, f32 accumulation.
            # TODO(synk): at production Bt*L*D (v7x, Bt=128) process this in
            # sub-chunks of rows via lax.fori_loop to bound the f32 temporary.
            x2 = x.reshape(Bt * L, D)
            qkv = jnp.dot(x2, wqkv_ref[...],
                          preferred_element_type=jnp.float32)       # (Bt*L, 3D) f32

            for h in range(H):
                lo = h * Dh
                q = qkv[:, lo:lo + Dh].astype(cdt).reshape(Bt, L, Dh)
                k = qkv[:, D + lo:D + lo + Dh].astype(cdt).reshape(Bt, L, Dh)
                v = qkv[:, 2 * D + lo:2 * D + lo + Dh].reshape(Bt, L, Dh)   # f32

                # Transposed scores sT[b, k, q] = <q[b,q,:], k[b,k,:]>
                # (attention scale pre-folded into the Q weight columns).
                sT = jnp.einsum("bkd,bqd->bkq", k, q,
                                preferred_element_type=jnp.float32)  # (Bt, Lk, Lq)
                # softmax over keys (axis=1 in this layout), max-subtracted.
                sT = sT - jnp.max(sT, axis=1, keepdims=True)
                e = jnp.exp(sT)                                      # EUP (f32; bf16
                                                                     # possible on v6e+)
                inv = pl.reciprocal(jnp.sum(e, axis=1, keepdims=True),
                                    approx=True)                     # EUP slot
                p = e * inv                                          # (Bt, Lk, Lq)
                # Per-key weight = sum_q attn[q, k]  (column-sum of the softmax).
                colw = jnp.sum(p, axis=2, keepdims=True)             # (Bt, Lk, 1)
                # sum_l (attn @ v)[l, :] == sum_k colw[k] * v[k, :]   (VPU + XLU)
                # Stored directly in the epilogue's compute dtype (cast cached).
                osum_ref[:, lo:lo + Dh] = (
                    jnp.sum(colw * v, axis=1).astype(osum_ref.dtype))

        # ---- epilogue: every vocab tile, lane-dense (Bt, Nt) store ---------- #
        sim_ref[...] = (
            jnp.dot(osum_ref[...], w2_ref[...],
                    preferred_element_type=jnp.float32)
            + c_ref[...])

    return kernel


# --------------------------------------------------------------------------- #
# weight pre-folds (hoist out of the per-call path; weights are static)
# --------------------------------------------------------------------------- #
def fold_prompt_cross_attention_weights(w_qkv, w_proj, b_proj, word_emd, seq_len,
                                        num_heads, compute_dtype=jnp.bfloat16):
    """Returns (wqkv_c, w2_c, c_f32), computed once:
       wqkv_c : (D, 3D) qkv weight with the attention scale folded into Q cols.
       w2_c   : (D, N)  = w_proj @ word_emd.T, cast to compute dtype once.
       c_f32  : (1, N)  = seq_len * (b_proj @ word_emd.T), kept in f32.
    """
    D = w_qkv.shape[0]
    Dh = D // num_heads
    f32 = jnp.float32
    wqkv = w_qkv.astype(f32)
    wqkv = wqkv.at[:, :D].multiply(Dh ** -0.5)
    word_f32 = word_emd.astype(f32)
    w2 = w_proj.astype(f32) @ word_f32.T                   # (D, N)
    c = float(seq_len) * (b_proj.astype(f32) @ word_f32.T)  # (N,)
    return (wqkv.astype(compute_dtype), w2.astype(compute_dtype),
            c.reshape(1, -1).astype(f32))


# --------------------------------------------------------------------------- #
# wrapper
# --------------------------------------------------------------------------- #
def prompt_cross_attention(prompt, enc_emd, word_emd, w_qkv, w_proj, b_proj,
                           num_heads=8, K=10, compute_dtype=jnp.bfloat16,
                           batch_tile=64, vocab_tile=1024, vocab_splits=1,
                           vmem_limit_bytes=None, folded_weights=None):
    """Forward of Prompt_CrossAttention (qkv_bias=False, qk_norm=False, dropout =
    identity).  Returns (top-K gathered word embeddings (B,K,D), sim (B,N)).

    `folded_weights` = fold_prompt_cross_attention_weights(...) lets callers
    hoist the (D,N) W2 pre-fold out of the per-call path.
    `vocab_splits > 1` adds a leading parallel grid axis that splits the vocab
    range across TensorCores (useful on v7x when there are < 2 batch tiles).
    """
    B, LP, D = prompt.shape
    LS = enc_emd.shape[1]
    N = word_emd.shape[0]
    L = LP + LS
    H = num_heads
    assert D % H == 0, "dim must be divisible by num_heads"
    f32 = jnp.float32

    if folded_weights is None:
        folded_weights = fold_prompt_cross_attention_weights(
            w_qkv, w_proj, b_proj, word_emd, L, H, compute_dtype)
    wqkv_c, w2_c, c = folded_weights

    # ---- hardware-friendly tiles ------------------------------------------ #
    Bt = max(8, min((batch_tile // 8) * 8, _round_up(B, 8)))   # multiple of 8
    Bp = _round_up(B, Bt)
    Nt = max(128, (vocab_tile // 128) * 128)                   # multiple of 128
    Nt = min(Nt, _round_up(N, 128))
    Np = _round_up(N, Nt * vocab_splits)
    n_tiles_per_split = (Np // vocab_splits) // Nt

    # activations concatenated / padded directly in the compute dtype
    x_c = jnp.concatenate([prompt, enc_emd], axis=1).astype(compute_dtype)
    if Bp != B:
        x_c = jnp.pad(x_c, ((0, Bp - B), (0, 0), (0, 0)))
    if Np != N:
        w2_c = jnp.pad(w2_c, ((0, 0), (0, Np - N)))
        c = jnp.pad(c, ((0, 0), (0, Np - N)))

    if vmem_limit_bytes is None:
        vmem_limit_bytes = _default_vmem_limit_bytes()

    grid = (vocab_splits, Bp // Bt, n_tiles_per_split)
    nps = n_tiles_per_split  # captured by the index maps below

    sim_padded = pl.pallas_call(
        _make_kernel(H),
        out_shape=jax.ShapeDtypeStruct((Bp, Np), f32),
        grid_spec=pltpu.PrefetchScalarGridSpec(
            num_scalar_prefetch=0,
            grid=grid,
            in_specs=[
                # vocab-invariant inputs: single-buffered (only read at n == 0)
                _single_buffered_spec((Bt, L, D), lambda s, b, n: (b, 0, 0)),
                _single_buffered_spec((D, 3 * D), lambda s, b, n: (0, 0)),
                # streamed vocab tiles (double-buffered by default)
                pl.BlockSpec((D, Nt), lambda s, b, n: (0, s * nps + n)),
                pl.BlockSpec((1, Nt), lambda s, b, n: (0, s * nps + n)),
            ],
            out_specs=pl.BlockSpec((Bt, Nt), lambda s, b, n: (b, s * nps + n)),
            # cached sum_l(o), already in the epilogue matmul's compute dtype
            scratch_shapes=[pltpu.VMEM((Bt, D), compute_dtype)],
        ),
        compiler_params=pltpu.CompilerParams(
            # vocab-split and batch-tile axes are independent (megacore-shardable);
            # the inner vocab axis reuses the scratch filled at n == 0, so it
            # must stay sequential.
            dimension_semantics=("parallel", "parallel", "arbitrary"),
            vmem_limit_bytes=vmem_limit_bytes,
        ),
    )(x_c, wqkv_c, w2_c, c)

    sim = sim_padded[:B, :N]

    # Glue: top-k over the vocab + gather of the word embeddings (plain JAX).
    _, topk_idx = jax.lax.top_k(sim, K)          # (B, K)
    output = word_emd[topk_idx]                  # (B, K, D)
    return output, sim


# --------------------------------------------------------------------------- #
# pure-JAX reference (matches the PyTorch module) + self-test
# --------------------------------------------------------------------------- #
def _reference(prompt, enc_emd, word_emd, w_qkv, w_proj, b_proj, num_heads):
    B, LP, D = prompt.shape
    LS = enc_emd.shape[1]
    H = num_heads
    Dh = D // H
    L = LP + LS
    x = jnp.concatenate([prompt, enc_emd], axis=1)
    qkv = x @ w_qkv                                          # (B, L, 3D)
    qkv = qkv.reshape(B, L, 3, H, Dh).transpose(2, 0, 3, 1, 4)
    q, k, v = qkv[0], qkv[1], qkv[2]                         # (B, H, L, Dh)
    attn = jnp.einsum("bhld,bhmd->bhlm", q, k) * (Dh ** -0.5)
    attn = jax.nn.softmax(attn, axis=-1)
    o = jnp.einsum("bhlm,bhmd->bhld", attn, v)
    o = o.transpose(0, 2, 1, 3).reshape(B, L, D)
    xp = o @ w_proj + b_proj
    return jnp.einsum("bld,vd->bv", xp, word_emd)


if __name__ == "__main__":
    B, LP, LS, D, H, N, K = 2, 8, 8, 32, 8, 200, 10

    key = jax.random.PRNGKey(0)
    k1, k2, k3, k4, k5, k6 = jax.random.split(key, 6)
    prompt = jax.random.normal(k1, (B, LP, D), dtype=jnp.float32)
    enc_emd = jax.random.normal(k2, (B, LS, D), dtype=jnp.float32)
    word_emd = jax.random.normal(k3, (N, D), dtype=jnp.float32)
    # nn.Linear(dim, 3*dim, bias=False) / nn.Linear(dim, dim), stored as (in, out).
    w_qkv = jax.random.normal(k4, (D, 3 * D), dtype=jnp.float32) * 0.05
    w_proj = jax.random.normal(k5, (D, D), dtype=jnp.float32) * 0.05
    b_proj = jax.random.normal(k6, (D,), dtype=jnp.float32) * 0.01

    ref_sim = _reference(prompt, enc_emd, word_emd, w_qkv, w_proj, b_proj, H)
    ref_kth = jnp.sort(ref_sim, axis=-1)[:, -K]              # K-th largest per row

    def check(out, sim, atol, rtol, tie_tol):
        assert sim.shape == (B, N) and out.shape == (B, K, D)
        max_err = float(jnp.max(jnp.abs(sim - ref_sim)))
        assert jnp.allclose(sim, ref_sim, atol=atol, rtol=rtol), max_err
        _, idx = jax.lax.top_k(sim, K)
        # gather path: every returned row is the selected word embedding, exactly.
        assert jnp.array_equal(out, word_emd[idx])
        # top-k selection is correct up to numerical near-ties.
        sel = jnp.take_along_axis(ref_sim, idx, axis=-1)
        assert bool(jnp.all(sel >= ref_kth[:, None] - tie_tol))

    # float32 compute path: tighter numerical check (weights folded once, reused).
    folded_f32 = fold_prompt_cross_attention_weights(
        w_qkv, w_proj, b_proj, word_emd, LP + LS, H, jnp.float32)
    out32, sim32 = prompt_cross_attention(
        prompt, enc_emd, word_emd, w_qkv, w_proj, b_proj,
        num_heads=H, K=K, compute_dtype=jnp.float32,
        vocab_tile=128, folded_weights=folded_f32)
    jax.block_until_ready(out32)
    check(out32, sim32, atol=1e-2, rtol=1e-2, tie_tol=5e-2)

    # bfloat16 compute path (production default) with the vocab-split parallel
    # axis exercised (v7x megacore path when batch tiles < 2).
    folded_bf16 = fold_prompt_cross_attention_weights(
        w_qkv, w_proj, b_proj, word_emd, LP + LS, H, jnp.bfloat16)
    out16, sim16 = prompt_cross_attention(
        prompt, enc_emd, word_emd, w_qkv, w_proj, b_proj,
        num_heads=H, K=K, compute_dtype=jnp.bfloat16,
        vocab_tile=128, vocab_splits=2, folded_weights=folded_bf16)
    jax.block_until_ready(out16)
    check(out16, sim16, atol=0.15, rtol=0.15, tie_tol=0.35)

    print("KERNEL_OK")
</pallas_src>

<mosaic_0001>
module attributes {stable_mosaic.version = 11 : i64} {
  func.func @kernel(%arg0: i32, %arg1: i32, %arg2: i32, %arg3: memref<8x16x32xf32, #tpu.memory_space<vmem>>, %arg4: memref<32x96xf32, #tpu.memory_space<vmem>>, %arg5: memref<32x128xf32, #tpu.memory_space<vmem>>, %arg6: memref<1x128xf32, #tpu.memory_space<vmem>>, %arg7: memref<8x128xf32, #tpu.memory_space<vmem>>, %arg8: memref<8x32xf32, #tpu.memory_space<vmem>>) attributes {dimension_semantics = [#tpu.dimension_semantics<parallel>, #tpu.dimension_semantics<parallel>, #tpu.dimension_semantics<arbitrary>], iteration_bounds = array<i64: 1, 1, 2>, scalar_prefetch = 0 : i64, scratch_operands = 1 : i64, tpu.core_type = #tpu.core_type<tc>, window_params = [{pipeline_mode = #tpu.pipeline_mode<synchronous>, transform_indices = @transform_0, window_bounds = array<i64: 8, 16, 32>}, {pipeline_mode = #tpu.pipeline_mode<synchronous>, transform_indices = @transform_1, window_bounds = array<i64: 32, 96>}, {transform_indices = @transform_2, window_bounds = array<i64: 32, 128>}, {transform_indices = @transform_3, window_bounds = array<i64: 1, 128>}, {transform_indices = @transform_4, window_bounds = array<i64: 8, 128>}]} {
    %c0_i32 = arith.constant 0 : i32
    %0 = arith.cmpi eq, %arg2, %c0_i32 : i32
    %1 = arith.extui %0 : i1 to i32
    %c0_i32_0 = arith.constant 0 : i32
    %2 = arith.cmpi ne, %1, %c0_i32_0 : i32
    scf.if %2 {
      %c0_8 = arith.constant 0 : index
      %c0_9 = arith.constant 0 : index
      %c0_10 = arith.constant 0 : index
      %10 = vector.load %arg3[%c0_8, %c0_9, %c0_10] : memref<8x16x32xf32, #tpu.memory_space<vmem>>, vector<8x16x32xf32>
      %11 = vector.shape_cast %10 : vector<8x16x32xf32> to vector<128x32xf32>
      %c0_11 = arith.constant 0 : index
      %c0_12 = arith.constant 0 : index
      %12 = vector.load %arg4[%c0_11, %c0_12] : memref<32x96xf32, #tpu.memory_space<vmem>>, vector<32x96xf32>
      %cst_13 = arith.constant dense<0.000000e+00> : vector<128x96xf32>
      %13 = tpu.matmul %11, %12, %cst_13 {dimension_numbers = #tpu.dot_dimension_numbers<[1], [0], [0], [1], [0, 0, 1, 1], [], []>} : vector<128x32xf32>, vector<32x96xf32>, vector<128x96xf32> -> vector<128x96xf32>
      %14 = vector.extract_strided_slice %13 {offsets = [0, 0], sizes = [128, 4], strides = [1, 1]} : vector<128x96xf32> to vector<128x4xf32>
      %15 = vector.shape_cast %14 : vector<128x4xf32> to vector<8x16x4xf32>
      %16 = vector.extract_strided_slice %13 {offsets = [0, 32], sizes = [128, 4], strides = [1, 1]} : vector<128x96xf32> to vector<128x4xf32>
      %17 = vector.shape_cast %16 : vector<128x4xf32> to vector<8x16x4xf32>
      %18 = vector.extract_strided_slice %13 {offsets = [0, 64], sizes = [128, 4], strides = [1, 1]} : vector<128x96xf32> to vector<128x4xf32>
      %19 = vector.shape_cast %18 : vector<128x4xf32> to vector<8x16x4xf32>
      "tpu.trace_start"() <{level = 10 : i32, message = "bkd,bqd->bkq"}> : () -> ()
      %cst_14 = arith.constant dense<0.000000e+00> : vector<8x16x16xf32>
      %20 = tpu.matmul %17, %15, %cst_14 {dimension_numbers = #tpu.dot_dimension_numbers<[2], [2], [1], [1], [0, 0, 0, 1, 1, 1], [0], [0]>} : vector<8x16x4xf32>, vector<8x16x4xf32>, vector<8x16x16xf32> -> vector<8x16x16xf32>
      "tpu.trace_stop"() : () -> ()
      %cst_15 = arith.constant dense<0xFF800000> : vector<8x16xf32>
      %21 = vector.multi_reduction <maximumf>, %20, %cst_15 [1] : vector<8x16x16xf32> to vector<8x16xf32>
      %22 = vector.shape_cast %21 : vector<8x16xf32> to vector<8x1x16xf32>
      %23 = vector.broadcast %22 : vector<8x1x16xf32> to vector<8x16x16xf32>
      %24 = arith.subf %20, %23 : vector<8x16x16xf32>
      %25 = math.exp %24 : vector<8x16x16xf32>
      %cst_16 = arith.constant dense<0.000000e+00> : vector<8x16xf32>
      %26 = vector.multi_reduction <add>, %25, %cst_16 [1] : vector<8x16x16xf32> to vector<8x16xf32>
      %27 = vector.shape_cast %26 : vector<8x16xf32> to vector<8x1x16xf32>
      %28 = tpu.reciprocal %27 {approx = true} : vector<8x1x16xf32> -> vector<8x1x16xf32>
      %29 = vector.broadcast %28 : vector<8x1x16xf32> to vector<8x16x16xf32>
      %30 = arith.mulf %25, %29 : vector<8x16x16xf32>
      %cst_17 = arith.constant dense<0.000000e+00> : vector<8x16xf32>
      %31 = vector.multi_reduction <add>, %30, %cst_17 [2] : vector<8x16x16xf32> to vector<8x16xf32>
      %32 = vector.shape_cast %31 : vector<8x16xf32> to vector<8x16x1xf32>
      %33 = vector.broadcast %32 : vector<8x16x1xf32> to vector<8x16x4xf32>
      %34 = arith.mulf %33, %19 : vector<8x16x4xf32>
      %cst_18 = arith.constant dense<0.000000e+00> : vector<8x4xf32>
      %35 = vector.multi_reduction <add>, %34, %cst_18 [1] : vector<8x16x4xf32> to vector<8x4xf32>
      %c0_19 = arith.constant 0 : index
      %c0_20 = arith.constant 0 : index
      %36 = vector.load %arg8[%c0_19, %c0_20] : memref<8x32xf32, #tpu.memory_space<vmem>>, vector<8x4xf32>
      tpu.vector_store %arg8[%c0_19, %c0_20], %35 {strides = array<i32>} : memref<8x32xf32, #tpu.memory_space<vmem>>, vector<8x4xf32>,
      %37 = vector.extract_strided_slice %13 {offsets = [0, 4], sizes = [128, 4], strides = [1, 1]} : vector<128x96xf32> to vector<128x4xf32>
      %38 = vector.shape_cast %37 : vector<128x4xf32> to vector<8x16x4xf32>
      %39 = vector.extract_strided_slice %13 {offsets = [0, 36], sizes = [128, 4], strides = [1, 1]} : vector<128x96xf32> to vector<128x4xf32>
      %40 = vector.shape_cast %39 : vector<128x4xf32> to vector<8x16x4xf32>
      %41 = vector.extract_strided_slice %13 {offsets = [0, 68], sizes = [128, 4], strides = [1, 1]} : vector<128x96xf32> to vector<128x4xf32>
      %42 = vector.shape_cast %41 : vector<128x4xf32> to vector<8x16x4xf32>
      "tpu.trace_start"() <{level = 10 : i32, message = "bkd,bqd->bkq"}> : () -> ()
      %cst_21 = arith.constant dense<0.000000e+00> : vector<8x16x16xf32>
      %43 = tpu.matmul %40, %38, %cst_21 {dimension_numbers = #tpu.dot_dimension_numbers<[2], [2], [1], [1], [0, 0, 0, 1, 1, 1], [0], [0]>} : vector<8x16x4xf32>, vector<8x16x4xf32>, vector<8x16x16xf32> -> vector<8x16x16xf32>
      "tpu.trace_stop"() : () -> ()
      %cst_22 = arith.constant dense<0xFF800000> : vector<8x16xf32>
      %44 = vector.multi_reduction <maximumf>, %43, %cst_22 [1] : vector<8x16x16xf32> to vector<8x16xf32>
      %45 = vector.shape_cast %44 : vector<8x16xf32> to vector<8x1x16xf32>
      %46 = vector.broadcast %45 : vector<8x1x16xf32> to vector<8x16x16xf32>
      %47 = arith.subf %43, %46 : vector<8x16x16xf32>
      %48 = math.exp %47 : vector<8x16x16xf32>
      %cst_23 = arith.constant dense<0.000000e+00> : vector<8x16xf32>
      %49 = vector.multi_reduction <add>, %48, %cst_23 [1] : vector<8x16x16xf32> to vector<8x16xf32>
      %50 = vector.shape_cast %49 : vector<8x16xf32> to vector<8x1x16xf32>
      %51 = tpu.reciprocal %50 {approx = true} : vector<8x1x16xf32> -> vector<8x1x16xf32>
      %52 = vector.broadcast %51 : vector<8x1x16xf32> to vector<8x16x16xf32>
      %53 = arith.mulf %48, %52 : vector<8x16x16xf32>
      %cst_24 = arith.constant dense<0.000000e+00> : vector<8x16xf32>
      %54 = vector.multi_reduction <add>, %53, %cst_24 [2] : vector<8x16x16xf32> to vector<8x16xf32>
      %55 = vector.shape_cast %54 : vector<8x16xf32> to vector<8x16x1xf32>
      %56 = vector.broadcast %55 : vector<8x16x1xf32> to vector<8x16x4xf32>
      %57 = arith.mulf %56, %42 : vector<8x16x4xf32>
      %cst_25 = arith.constant dense<0.000000e+00> : vector<8x4xf32>
      %58 = vector.multi_reduction <add>, %57, %cst_25 [1] : vector<8x16x4xf32> to vector<8x4xf32>
      %c0_26 = arith.constant 0 : index
      %c4 = arith.constant 4 : index
      %59 = vector.load %arg8[%c0_26, %c4] : memref<8x32xf32, #tpu.memory_space<vmem>>, vector<8x4xf32>
      tpu.vector_store %arg8[%c0_26, %c4], %58 {strides = array<i32>} : memref<8x32xf32, #tpu.memory_space<vmem>>, vector<8x4xf32>,
      %60 = vector.extract_strided_slice %13 {offsets = [0, 8], sizes = [128, 4], strides = [1, 1]} : vector<128x96xf32> to vector<128x4xf32>
      %61 = vector.shape_cast %60 : vector<128x4xf32> to vector<8x16x4xf32>
      %62 = vector.extract_strided_slice %13 {offsets = [0, 40], sizes = [128, 4], strides = [1, 1]} : vector<128x96xf32> to vector<128x4xf32>
      %63 = vector.shape_cast %62 : vector<128x4xf32> to vector<8x16x4xf32>
      %64 = vector.extract_strided_slice %13 {offsets = [0, 72], sizes = [128, 4], strides = [1, 1]} : vector<128x96xf32> to vector<128x4xf32>
      %65 = vector.shape_cast %64 : vector<128x4xf32> to vector<8x16x4xf32>
      "tpu.trace_start"() <{level = 10 : i32, message = "bkd,bqd->bkq"}> : () -> ()
      %cst_27 = arith.constant dense<0.000000e+00> : vector<8x16x16xf32>
      %66 = tpu.matmul %63, %61, %cst_27 {dimension_numbers = #tpu.dot_dimension_numbers<[2], [2], [1], [1], [0, 0, 0, 1, 1, 1], [0], [0]>} : vector<8x16x4xf32>, vector<8x16x4xf32>, vector<8x16x16xf32> -> vector<8x16x16xf32>
      "tpu.trace_stop"() : () -> ()
      %cst_28 = arith.constant dense<0xFF800000> : vector<8x16xf32>
      %67 = vector.multi_reduction <maximumf>, %66, %cst_28 [1] : vector<8x16x16xf32> to vector<8x16xf32>
      %68 = vector.shape_cast %67 : vector<8x16xf32> to vector<8x1x16xf32>
      %69 = vector.broadcast %68 : vector<8x1x16xf32> to vector<8x16x16xf32>
      %70 = arith.subf %66, %69 : vector<8x16x16xf32>
      %71 = math.exp %70 : vector<8x16x16xf32>
      %cst_29 = arith.constant dense<0.000000e+00> : vector<8x16xf32>
      %72 = vector.multi_reduction <add>, %71, %cst_29 [1] : vector<8x16x16xf32> to vector<8x16xf32>
      %73 = vector.shape_cast %72 : vector<8x16xf32> to vector<8x1x16xf32>
      %74 = tpu.reciprocal %73 {approx = true} : vector<8x1x16xf32> -> vector<8x1x16xf32>
      %75 = vector.broadcast %74 : vector<8x1x16xf32> to vector<8x16x16xf32>
      %76 = arith.mulf %71, %75 : vector<8x16x16xf32>
      %cst_30 = arith.constant dense<0.000000e+00> : vector<8x16xf32>
      %77 = vector.multi_reduction <add>, %76, %cst_30 [2] : vector<8x16x16xf32> to vector<8x16xf32>
      %78 = vector.shape_cast %77 : vector<8x16xf32> to vector<8x16x1xf32>
      %79 = vector.broadcast %78 : vector<8x16x1xf32> to vector<8x16x4xf32>
      %80 = arith.mulf %79, %65 : vector<8x16x4xf32>
      %cst_31 = arith.constant dense<0.000000e+00> : vector<8x4xf32>
      %81 = vector.multi_reduction <add>, %80, %cst_31 [1] : vector<8x16x4xf32> to vector<8x4xf32>
      %c0_32 = arith.constant 0 : index
      %c8 = arith.constant 8 : index
      %82 = vector.load %arg8[%c0_32, %c8] : memref<8x32xf32, #tpu.memory_space<vmem>>, vector<8x4xf32>
      tpu.vector_store %arg8[%c0_32, %c8], %81 {strides = array<i32>} : memref<8x32xf32, #tpu.memory_space<vmem>>, vector<8x4xf32>,
      %83 = vector.extract_strided_slice %13 {offsets = [0, 12], sizes = [128, 4], strides = [1, 1]} : vector<128x96xf32> to vector<128x4xf32>
      %84 = vector.shape_cast %83 : vector<128x4xf32> to vector<8x16x4xf32>
      %85 = vector.extract_strided_slice %13 {offsets = [0, 44], sizes = [128, 4], strides = [1, 1]} : vector<128x96xf32> to vector<128x4xf32>
      %86 = vector.shape_cast %85 : vector<128x4xf32> to vector<8x16x4xf32>
      %87 = vector.extract_strided_slice %13 {offsets = [0, 76], sizes = [128, 4], strides = [1, 1]} : vector<128x96xf32> to vector<128x4xf32>
      %88 = vector.shape_cast %87 : vector<128x4xf32> to vector<8x16x4xf32>
      "tpu.trace_start"() <{level = 10 : i32, message = "bkd,bqd->bkq"}> : () -> ()
      %cst_33 = arith.constant dense<0.000000e+00> : vector<8x16x16xf32>
      %89 = tpu.matmul %86, %84, %cst_33 {dimension_numbers = #tpu.dot_dimension_numbers<[2], [2], [1], [1], [0, 0, 0, 1, 1, 1], [0], [0]>} : vector<8x16x4xf32>, vector<8x16x4xf32>, vector<8x16x16xf32> -> vector<8x16x16xf32>
      "tpu.trace_stop"() : () -> ()
      %cst_34 = arith.constant dense<0xFF800000> : vector<8x16xf32>
      %90 = vector.multi_reduction <maximumf>, %89, %cst_34 [1] : vector<8x16x16xf32> to vector<8x16xf32>
      %91 = vector.shape_cast %90 : vector<8x16xf32> to vector<8x1x16xf32>
      %92 = vector.broadcast %91 : vector<8x1x16xf32> to vector<8x16x16xf32>
      %93 = arith.subf %89, %92 : vector<8x16x16xf32>
      %94 = math.exp %93 : vector<8x16x16xf32>
      %cst_35 = arith.constant dense<0.000000e+00> : vector<8x16xf32>
      %95 = vector.multi_reduction <add>, %94, %cst_35 [1] : vector<8x16x16xf32> to vector<8x16xf32>
      %96 = vector.shape_cast %95 : vector<8x16xf32> to vector<8x1x16xf32>
      %97 = tpu.reciprocal %96 {approx = true} : vector<8x1x16xf32> -> vector<8x1x16xf32>
      %98 = vector.broadcast %97 : vector<8x1x16xf32> to vector<8x16x16xf32>
      %99 = arith.mulf %94, %98 : vector<8x16x16xf32>
      %cst_36 = arith.constant dense<0.000000e+00> : vector<8x16xf32>
      %100 = vector.multi_reduction <add>, %99, %cst_36 [2] : vector<8x16x16xf32> to vector<8x16xf32>
      %101 = vector.shape_cast %100 : vector<8x16xf32> to vector<8x16x1xf32>
      %102 = vector.broadcast %101 : vector<8x16x1xf32> to vector<8x16x4xf32>
      %103 = arith.mulf %102, %88 : vector<8x16x4xf32>
      %cst_37 = arith.constant dense<0.000000e+00> : vector<8x4xf32>
      %104 = vector.multi_reduction <add>, %103, %cst_37 [1] : vector<8x16x4xf32> to vector<8x4xf32>
      %c0_38 = arith.constant 0 : index
      %c12 = arith.constant 12 : index
      %105 = vector.load %arg8[%c0_38, %c12] : memref<8x32xf32, #tpu.memory_space<vmem>>, vector<8x4xf32>
      tpu.vector_store %arg8[%c0_38, %c12], %104 {strides = array<i32>} : memref<8x32xf32, #tpu.memory_space<vmem>>, vector<8x4xf32>,
      %106 = vector.extract_strided_slice %13 {offsets = [0, 16], sizes = [128, 4], strides = [1, 1]} : vector<128x96xf32> to vector<128x4xf32>
      %107 = vector.shape_cast %106 : vector<128x4xf32> to vector<8x16x4xf32>
      %108 = vector.extract_strided_slice %13 {offsets = [0, 48], sizes = [128, 4], strides = [1, 1]} : vector<128x96xf32> to vector<128x4xf32>
      %109 = vector.shape_cast %108 : vector<128x4xf32> to vector<8x16x4xf32>
      %110 = vector.extract_strided_slice %13 {offsets = [0, 80], sizes = [128, 4], strides = [1, 1]} : vector<128x96xf32> to vector<128x4xf32>
      %111 = vector.shape_cast %110 : vector<128x4xf32> to vector<8x16x4xf32>
      "tpu.trace_start"() <{level = 10 : i32, message = "bkd,bqd->bkq"}> : () -> ()
      %cst_39 = arith.constant dense<0.000000e+00> : vector<8x16x16xf32>
      %112 = tpu.matmul %109, %107, %cst_39 {dimension_numbers = #tpu.dot_dimension_numbers<[2], [2], [1], [1], [0, 0, 0, 1, 1, 1], [0], [0]>} : vector<8x16x4xf32>, vector<8x16x4xf32>, vector<8x16x16xf32> -> vector<8x16x16xf32>
      "tpu.trace_stop"() : () -> ()
      %cst_40 = arith.constant dense<0xFF800000> : vector<8x16xf32>
      %113 = vector.multi_reduction <maximumf>, %112, %cst_40 [1] : vector<8x16x16xf32> to vector<8x16xf32>
      %114 = vector.shape_cast %113 : vector<8x16xf32> to vector<8x1x16xf32>
      %115 = vector.broadcast %114 : vector<8x1x16xf32> to vector<8x16x16xf32>
      %116 = arith.subf %112, %115 : vector<8x16x16xf32>
      %117 = math.exp %116 : vector<8x16x16xf32>
      %cst_41 = arith.constant dense<0.000000e+00> : vector<8x16xf32>
      %118 = vector.multi_reduction <add>, %117, %cst_41 [1] : vector<8x16x16xf32> to vector<8x16xf32>
      %119 = vector.shape_cast %118 : vector<8x16xf32> to vector<8x1x16xf32>
      %120 = tpu.reciprocal %119 {approx = true} : vector<8x1x16xf32> -> vector<8x1x16xf32>
      %121 = vector.broadcast %120 : vector<8x1x16xf32> to vector<8x16x16xf32>
      %122 = arith.mulf %117, %121 : vector<8x16x16xf32>
      %cst_42 = arith.constant dense<0.000000e+00> : vector<8x16xf32>
      %123 = vector.multi_reduction <add>, %122, %cst_42 [2] : vector<8x16x16xf32> to vector<8x16xf32>
      %124 = vector.shape_cast %123 : vector<8x16xf32> to vector<8x16x1xf32>
      %125 = vector.broadcast %124 : vector<8x16x1xf32> to vector<8x16x4xf32>
      %126 = arith.mulf %125, %111 : vector<8x16x4xf32>
      %cst_43 = arith.constant dense<0.000000e+00> : vector<8x4xf32>
      %127 = vector.multi_reduction <add>, %126, %cst_43 [1] : vector<8x16x4xf32> to vector<8x4xf32>
      %c0_44 = arith.constant 0 : index
      %c16 = arith.constant 16 : index
      %128 = vector.load %arg8[%c0_44, %c16] : memref<8x32xf32, #tpu.memory_space<vmem>>, vector<8x4xf32>
      tpu.vector_store %arg8[%c0_44, %c16], %127 {strides = array<i32>} : memref<8x32xf32, #tpu.memory_space<vmem>>, vector<8x4xf32>,
      %129 = vector.extract_strided_slice %13 {offsets = [0, 20], sizes = [128, 4], strides = [1, 1]} : vector<128x96xf32> to vector<128x4xf32>
      %130 = vector.shape_cast %129 : vector<128x4xf32> to vector<8x16x4xf32>
      %131 = vector.extract_strided_slice %13 {offsets = [0, 52], sizes = [128, 4], strides = [1, 1]} : vector<128x96xf32> to vector<128x4xf32>
      %132 = vector.shape_cast %131 : vector<128x4xf32> to vector<8x16x4xf32>
      %133 = vector.extract_strided_slice %13 {offsets = [0, 84], sizes = [128, 4], strides = [1, 1]} : vector<128x96xf32> to vector<128x4xf32>
      %134 = vector.shape_cast %133 : vector<128x4xf32> to vector<8x16x4xf32>
      "tpu.trace_start"() <{level = 10 : i32, message = "bkd,bqd->bkq"}> : () -> ()
      %cst_45 = arith.constant dense<0.000000e+00> : vector<8x16x16xf32>
      %135 = tpu.matmul %132, %130, %cst_45 {dimension_numbers = #tpu.dot_dimension_numbers<[2], [2], [1], [1], [0, 0, 0, 1, 1, 1], [0], [0]>} : vector<8x16x4xf32>, vector<8x16x4xf32>, vector<8x16x16xf32> -> vector<8x16x16xf32>
      "tpu.trace_stop"() : () -> ()
      %cst_46 = arith.constant dense<0xFF800000> : vector<8x16xf32>
      %136 = vector.multi_reduction <maximumf>, %135, %cst_46 [1] : vector<8x16x16xf32> to vector<8x16xf32>
      %137 = vector.shape_cast %136 : vector<8x16xf32> to vector<8x1x16xf32>
      %138 = vector.broadcast %137 : vector<8x1x16xf32> to vector<8x16x16xf32>
      %139 = arith.subf %135, %138 : vector<8x16x16xf32>
      %140 = math.exp %139 : vector<8x16x16xf32>
      %cst_47 = arith.constant dense<0.000000e+00> : vector<8x16xf32>
      %141 = vector.multi_reduction <add>, %140, %cst_47 [1] : vector<8x16x16xf32> to vector<8x16xf32>
      %142 = vector.shape_cast %141 : vector<8x16xf32> to vector<8x1x16xf32>
      %143 = tpu.reciprocal %142 {approx = true} : vector<8x1x16xf32> -> vector<8x1x16xf32>
      %144 = vector.broadcast %143 : vector<8x1x16xf32> to vector<8x16x16xf32>
      %145 = arith.mulf %140, %144 : vector<8x16x16xf32>
      %cst_48 = arith.constant dense<0.000000e+00> : vector<8x16xf32>
      %146 = vector.multi_reduction <add>, %145, %cst_48 [2] : vector<8x16x16xf32> to vector<8x16xf32>
      %147 = vector.shape_cast %146 : vector<8x16xf32> to vector<8x16x1xf32>
      %148 = vector.broadcast %147 : vector<8x16x1xf32> to vector<8x16x4xf32>
      %149 = arith.mulf %148, %134 : vector<8x16x4xf32>
      %cst_49 = arith.constant dense<0.000000e+00> : vector<8x4xf32>
      %150 = vector.multi_reduction <add>, %149, %cst_49 [1] : vector<8x16x4xf32> to vector<8x4xf32>
      %c0_50 = arith.constant 0 : index
      %c20 = arith.constant 20 : index
      %151 = vector.load %arg8[%c0_50, %c20] : memref<8x32xf32, #tpu.memory_space<vmem>>, vector<8x4xf32>
      tpu.vector_store %arg8[%c0_50, %c20], %150 {strides = array<i32>} : memref<8x32xf32, #tpu.memory_space<vmem>>, vector<8x4xf32>,
      %152 = vector.extract_strided_slice %13 {offsets = [0, 24], sizes = [128, 4], strides = [1, 1]} : vector<128x96xf32> to vector<128x4xf32>
      %153 = vector.shape_cast %152 : vector<128x4xf32> to vector<8x16x4xf32>
      %154 = vector.extract_strided_slice %13 {offsets = [0, 56], sizes = [128, 4], strides = [1, 1]} : vector<128x96xf32> to vector<128x4xf32>
      %155 = vector.shape_cast %154 : vector<128x4xf32> to vector<8x16x4xf32>
      %156 = vector.extract_strided_slice %13 {offsets = [0, 88], sizes = [128, 4], strides = [1, 1]} : vector<128x96xf32> to vector<128x4xf32>
      %157 = vector.shape_cast %156 : vector<128x4xf32> to vector<8x16x4xf32>
      "tpu.trace_start"() <{level = 10 : i32, message = "bkd,bqd->bkq"}> : () -> ()
      %cst_51 = arith.constant dense<0.000000e+00> : vector<8x16x16xf32>
      %158 = tpu.matmul %155, %153, %cst_51 {dimension_numbers = #tpu.dot_dimension_numbers<[2], [2], [1], [1], [0, 0, 0, 1, 1, 1], [0], [0]>} : vector<8x16x4xf32>, vector<8x16x4xf32>, vector<8x16x16xf32> -> vector<8x16x16xf32>
      "tpu.trace_stop"() : () -> ()
      %cst_52 = arith.constant dense<0xFF800000> : vector<8x16xf32>
      %159 = vector.multi_reduction <maximumf>, %158, %cst_52 [1] : vector<8x16x16xf32> to vector<8x16xf32>
      %160 = vector.shape_cast %159 : vector<8x16xf32> to vector<8x1x16xf32>
      %161 = vector.broadcast %160 : vector<8x1x16xf32> to vector<8x16x16xf32>
      %162 = arith.subf %158, %161 : vector<8x16x16xf32>
      %163 = math.exp %162 : vector<8x16x16xf32>
      %cst_53 = arith.constant dense<0.000000e+00> : vector<8x16xf32>
      %164 = vector.multi_reduction <add>, %163, %cst_53 [1] : vector<8x16x16xf32> to vector<8x16xf32>
      %165 = vector.shape_cast %164 : vector<8x16xf32> to vector<8x1x16xf32>
      %166 = tpu.reciprocal %165 {approx = true} : vector<8x1x16xf32> -> vector<8x1x16xf32>
      %167 = vector.broadcast %166 : vector<8x1x16xf32> to vector<8x16x16xf32>
      %168 = arith.mulf %163, %167 : vector<8x16x16xf32>
      %cst_54 = arith.constant dense<0.000000e+00> : vector<8x16xf32>
      %169 = vector.multi_reduction <add>, %168, %cst_54 [2] : vector<8x16x16xf32> to vector<8x16xf32>
      %170 = vector.shape_cast %169 : vector<8x16xf32> to vector<8x16x1xf32>
      %171 = vector.broadcast %170 : vector<8x16x1xf32> to vector<8x16x4xf32>
      %172 = arith.mulf %171, %157 : vector<8x16x4xf32>
      %cst_55 = arith.constant dense<0.000000e+00> : vector<8x4xf32>
      %173 = vector.multi_reduction <add>, %172, %cst_55 [1] : vector<8x16x4xf32> to vector<8x4xf32>
      %c0_56 = arith.constant 0 : index
      %c24 = arith.constant 24 : index
      %174 = vector.load %arg8[%c0_56, %c24] : memref<8x32xf32, #tpu.memory_space<vmem>>, vector<8x4xf32>
      tpu.vector_store %arg8[%c0_56, %c24], %173 {strides = array<i32>} : memref<8x32xf32, #tpu.memory_space<vmem>>, vector<8x4xf32>,
      %175 = vector.extract_strided_slice %13 {offsets = [0, 28], sizes = [128, 4], strides = [1, 1]} : vector<128x96xf32> to vector<128x4xf32>
      %176 = vector.shape_cast %175 : vector<128x4xf32> to vector<8x16x4xf32>
      %177 = vector.extract_strided_slice %13 {offsets = [0, 60], sizes = [128, 4], strides = [1, 1]} : vector<128x96xf32> to vector<128x4xf32>
      %178 = vector.shape_cast %177 : vector<128x4xf32> to vector<8x16x4xf32>
      %179 = vector.extract_strided_slice %13 {offsets = [0, 92], sizes = [128, 4], strides = [1, 1]} : vector<128x96xf32> to vector<128x4xf32>
      %180 = vector.shape_cast %179 : vector<128x4xf32> to vector<8x16x4xf32>
      "tpu.trace_start"() <{level = 10 : i32, message = "bkd,bqd->bkq"}> : () -> ()
      %cst_57 = arith.constant dense<0.000000e+00> : vector<8x16x16xf32>
      %181 = tpu.matmul %178, %176, %cst_57 {dimension_numbers = #tpu.dot_dimension_numbers<[2], [2], [1], [1], [0, 0, 0, 1, 1, 1], [0], [0]>} : vector<8x16x4xf32>, vector<8x16x4xf32>, vector<8x16x16xf32> -> vector<8x16x16xf32>
      "tpu.trace_stop"() : () -> ()
      %cst_58 = arith.constant dense<0xFF800000> : vector<8x16xf32>
      %182 = vector.multi_reduction <maximumf>, %181, %cst_58 [1] : vector<8x16x16xf32> to vector<8x16xf32>
      %183 = vector.shape_cast %182 : vector<8x16xf32> to vector<8x1x16xf32>
      %184 = vector.broadcast %183 : vector<8x1x16xf32> to vector<8x16x16xf32>
      %185 = arith.subf %181, %184 : vector<8x16x16xf32>
      %186 = math.exp %185 : vector<8x16x16xf32>
      %cst_59 = arith.constant dense<0.000000e+00> : vector<8x16xf32>
      %187 = vector.multi_reduction <add>, %186, %cst_59 [1] : vector<8x16x16xf32> to vector<8x16xf32>
      %188 = vector.shape_cast %187 : vector<8x16xf32> to vector<8x1x16xf32>
      %189 = tpu.reciprocal %188 {approx = true} : vector<8x1x16xf32> -> vector<8x1x16xf32>
      %190 = vector.broadcast %189 : vector<8x1x16xf32> to vector<8x16x16xf32>
      %191 = arith.mulf %186, %190 : vector<8x16x16xf32>
      %cst_60 = arith.constant dense<0.000000e+00> : vector<8x16xf32>
      %192 = vector.multi_reduction <add>, %191, %cst_60 [2] : vector<8x16x16xf32> to vector<8x16xf32>
      %193 = vector.shape_cast %192 : vector<8x16xf32> to vector<8x16x1xf32>
      %194 = vector.broadcast %193 : vector<8x16x1xf32> to vector<8x16x4xf32>
      %195 = arith.mulf %194, %180 : vector<8x16x4xf32>
      %cst_61 = arith.constant dense<0.000000e+00> : vector<8x4xf32>
      %196 = vector.multi_reduction <add>, %195, %cst_61 [1] : vector<8x16x4xf32> to vector<8x4xf32>
      %c0_62 = arith.constant 0 : index
      %c28 = arith.constant 28 : index
      %197 = vector.load %arg8[%c0_62, %c28] : memref<8x32xf32, #tpu.memory_space<vmem>>, vector<8x4xf32>
      tpu.vector_store %arg8[%c0_62, %c28], %196 {strides = array<i32>} : memref<8x32xf32, #tpu.memory_space<vmem>>, vector<8x4xf32>,
    } else {
    }
    %c0 = arith.constant 0 : index
    %c0_1 = arith.constant 0 : index
    %3 = vector.load %arg8[%c0, %c0_1] : memref<8x32xf32, #tpu.memory_space<vmem>>, vector<8x32xf32>
    %c0_2 = arith.constant 0 : index
    %c0_3 = arith.constant 0 : index
    %4 = vector.load %arg5[%c0_2, %c0_3] : memref<32x128xf32, #tpu.memory_space<vmem>>, vector<32x128xf32>
    %cst = arith.constant dense<0.000000e+00> : vector<8x128xf32>
    %5 = tpu.matmul %3, %4, %cst {dimension_numbers = #tpu.dot_dimension_numbers<[1], [0], [0], [1], [0, 0, 1, 1], [], []>} : vector<8x32xf32>, vector<32x128xf32>, vector<8x128xf32> -> vector<8x128xf32>
    %c0_4 = arith.constant 0 : index
    %c0_5 = arith.constant 0 : index
    %6 = vector.load %arg6[%c0_4, %c0_5] : memref<1x128xf32, #tpu.memory_space<vmem>>, vector<1x128xf32>
    %7 = vector.broadcast %6 : vector<1x128xf32> to vector<8x128xf32>
    %8 = arith.addf %5, %7 : vector<8x128xf32>
    %c0_6 = arith.constant 0 : index
    %c0_7 = arith.constant 0 : index
    %9 = vector.load %arg7[%c0_6, %c0_7] : memref<8x128xf32, #tpu.memory_space<vmem>>, vector<8x128xf32>
    tpu.vector_store %arg7[%c0_6, %c0_7], %8 {strides = array<i32>} : memref<8x128xf32, #tpu.memory_space<vmem>>, vector<8x128xf32>,
    return
  }
  func.func @transform_0(%arg0: i32, %arg1: i32, %arg2: i32) -> (i32, i32, i32) {
    %c0_i32 = arith.constant 0 : i32
    %c0_i32_0 = arith.constant 0 : i32
    %c0_i32_1 = arith.constant 0 : i32
    return %arg1, %c0_i32, %c0_i32_0 : i32, i32, i32
  }
  func.func @transform_1(%arg0: i32, %arg1: i32, %arg2: i32) -> (i32, i32) {
    %c0_i32 = arith.constant 0 : i32
    %c0_i32_0 = arith.constant 0 : i32
    %c0_i32_1 = arith.constant 0 : i32
    return %c0_i32, %c0_i32_0 : i32, i32
  }
  func.func @transform_2(%arg0: i32, %arg1: i32, %arg2: i32) -> (i32, i32) {
    %c2_i32 = arith.constant 2 : i32
    %0 = arith.muli %arg0, %c2_i32 : i32
    %1 = arith.addi %0, %arg2 : i32
    %c0_i32 = arith.constant 0 : i32
    %c0_i32_0 = arith.constant 0 : i32
    return %c0_i32, %1 : i32, i32
  }
  func.func @transform_3(%arg0: i32, %arg1: i32, %arg2: i32) -> (i32, i32) {
    %c2_i32 = arith.constant 2 : i32
    %0 = arith.muli %arg0, %c2_i32 : i32
    %1 = arith.addi %0, %arg2 : i32
    %c0_i32 = arith.constant 0 : i32
    %c0_i32_0 = arith.constant 0 : i32
    return %c0_i32, %1 : i32, i32
  }
  func.func @transform_4(%arg0: i32, %arg1: i32, %arg2: i32) -> (i32, i32) {
    %c2_i32 = arith.constant 2 : i32
    %0 = arith.muli %arg0, %c2_i32 : i32
    %1 = arith.addi %0, %arg2 : i32
    %c0_i32 = arith.constant 0 : i32
    return %arg1, %1 : i32, i32
  }
}

</mosaic_0001>

<bundles_post_ra>
// kernel: tpu_custom_call.1
= control target key start
LH: loop header
LB: loop body
LE: loop exit
PB: predicated region body
PF: predicated region fallthrough
CT: control target
= control target key end

     0   :  { %s16570_s0 = inlined_call_operand.hbm [shape: f32[8,16,32], index: 0, kind: input, shape index: {}]   ;;  %s16571_s1 = inlined_call_operand.hbm [shape: f32[32,96], index: 1, kind: input, shape index: {}]   ;;  %s16572_s2 = inlined_call_operand.hbm [shape: f32[32,256], index: 2, kind: input, shape index: {}]   ;;  %s16573_s3 = inlined_call_operand.hbm [shape: f32[1,256], index: 3, kind: input, shape index: {}]   ;;  %s16574_s4 = inlined_call_operand.hbm [shape: f32[8,256], index: 4, kind: output, shape index: {}]  }
   0x1   :  { %16804 = sst [smem:[#allocation96_spill]] %s16570_s0 }
   0x2   :  { %16805 = sst [smem:[#allocation97_spill]] %s16572_s2 }
   0x3   :  { %16806 = sst [smem:[#allocation98_spill]] %s16574_s4 }
   0x4   :  { %9 = vsyncpa [#allocation4], 0 }
   0x5   :  { %10 = vsyncpa [#allocation7], 0 }
   0x6   :  { %11 = vsyncpa [#allocation5], 0 }
   0x7   :  { %13 = vsyncpa [#allocation5 + $0x1], 0  ;;  %s12073_s15 = smov 0   ;;  %s12075_s16 = smov 0  }
   0x8   :  { %s12077_s17 = smov 0   ;;  %s12079_s18 = smov 0  }
   0x9   :  { %s12081_s19 = smov 0   ;;  %s12083_s20 = smov 0  }
   0xa LB: > { %16807 = sst [smem:[#allocation15_spill]] %s11999_s15  ;;  %s12104_s21 = sadd.s32 4294967295, %s12019_s20   ;;  %s12019_s20 = sphi %s12083_s20, %s19_s20   ;;  %s12015_s19 = sphi %s12081_s19, %s17335_s19   ;;  %s12011_s18 = sphi %s12079_s18, %s17334_s18   ;;  %s12007_s17 = sphi %s12077_s17, %s17333_s17   ;;  %s12003_s16 = sphi %s12075_s16, %s17332_s16   ;;  %s11999_s15 = sphi %s12073_s15, %s17331_s15  }
   0xb   : > { %s9577_s22 = sadd.s32 4294967294, %s12019_s20   ;;  %p103_p0 = scmp.ne.s32.totalorder %s12007_s17, %s12003_s16 }
   0xc   : > { %p104_p1 = scmp.eq.s32.totalorder %s12019_s20, 0  ;;  %p109_p2 = scmp.ne.s32.totalorder %s12003_s16, %s11999_s15 }
   0xd   : > { %p16575_p3 = scmp.eq.s32.totalorder %s12104_s21, 0  ;;  %p169_p4 = scmp.eq.s32.totalorder %s12104_s21, 1 }
   0xe   : > { %p12115_p5 = por %p104_p1, %p103_p0  ;;  %p175_p6 = scmp.eq.s32.totalorder %s9577_s22, 1 }
   0xf   : > { %p12121_p7 = por %p16575_p3, %p109_p2  ;;  %p12125_p8 = por %p169_p4, %p103_p0 }
  0x10   : > { %p12129_p9 = por %p175_p6, %p109_p2  ;;  %p9578_p10 = scmp.ge.s32.totalorder %s12019_s20, 1 }
  0x11   : > { %s16809_s25 = scalar_select %p12121_p7, 1, 0 }
  0x12   : > { %s16810_s26 = scalar_select %p12125_p8, 1, 0 }
  0x13   : > { %s16811_s27 = scalar_select %p12129_p9, 1, 0 }
  0x14   : > { %p182_p11 = scmp.lt.s32.totalorder %s12019_s20, 3  ;;  %s12021_s29 = smov [#allocation3]  }
  0x15   : > { %16812 = sst [smem:[#allocation16_spill]] %s16811_s27  ;;  %s198_s30 = sshll.u32 %s12021_s29, 4  ;;  %s12139_s30 = int_to_ptr.vmem [resolvable:$true] %s198_s30 }
  0x16   : > { %p12135_p12 = pnand %p9578_p10, %p182_p11  ;;  %p11073_p1 = scmp.lt.s32.totalorder %s12019_s20, 2 }
  0x17   : > { %s31_s7 = sadd.s32 1, %s12015_s19  ;;  %s16817_s0 = sld [smem:[#allocation96_spill]] }
  0x18   : > { %s16813_s28 = scalar_select %p12135_p12, 1, 0 }
  0x19   : > { %p11053_p13 = pneg %p12135_p12  ;;  %p12153_p4 = pnand %p11073_p1, %p12115_p5 }
  0x1a   : > { %p12158_p6 = scmp.ge.s32.totalorder %s31_s7, 2 }
  0x1b   : > { %p12147_p2 = pnand %p11053_p13, %p16575_p3 }
  0x1c   : > { %s16815_s6 = scalar_select %p12153_p4, 1, 0 }
  0x1d   : > { %s11813_s11 = scalar_lea.hbm %s16817_s0, 2048  ;;  %p16582_p11 = pneg %p12147_p2 }
  0x1e   : > { %p11814_p10 = scmp.ne.s32.totalorder %s16817_s0, %s11813_s11  ;;  %p11820_p1 = scmp.lt.u32.totalorder %s11813_s11, %s16817_s0 }
  0x20   : > { %p11816_p5 = pnand %p16582_p11, %p11814_p10 }
  0x22   : > { %p11817_p13 = pneg %p11816_p5 }
  0x24   : > { %p11822_p0 = pnand %p11820_p1, %p11817_p13 }
  0x26   : > { %11825 = shalt.err (!%p11822_p0)
}
  0x27   : > { %s11826_s24 = scalar_lea.vmem %s12139_s30, 2048  ;;  %p11834_p7 = scmp.lt.s32.totalorder %s12139_s30, %s12139_s30 }
  0x28   : > { %p11827_p3 = scmp.ne.s32.totalorder %s12139_s30, %s11826_s24  ;;  %p11835_p10 = scmp.lt.s32.totalorder %s11826_s24, %s11826_s24 }
  0x2a   : > { %p11829_p9 = pnand %p11827_p3, %p16582_p11  ;;  %p11836_p5 = por %p11835_p10, %p11834_p7 }
  0x2c   : > { %p11830_p8 = pneg %p11829_p9 }
  0x2e   : > { %p11837_p12 = pnand %p11836_p5, %p11830_p8 }
  0x30   : > { %11840 = shalt.err (!%p11837_p12)
}
  0x31   : > { %s12022_s29 = smov 128   ;;  %s12023_s9 = smov 8  }
  0x32   : > { %11056 = dma.hbm_to_vmem [thread:$0]  (!%p12147_p2), %s16817_s0, 2048, %s12139_s30, [#allocation4], %s12022_s29, %s12022_s29, %s12023_s9  }
  0x33   : > { %s225_s12 = sand.u32 1, %s12019_s20   ;;  %s17337_s7 = smov (%p12158_p6, %s31_s7), 0 }
  0x34   : > { %s16583_s13 = sand.u32 1, %s12007_s17   ;;  %s93_s14 = ssub.s32 %s12015_s19, %s17337_s7 }
  0x35   : > { %s9582_s22 = sshll.u32 %s16583_s13, 5  ;;  %p94_p3 = scmp.eq.s32.totalorder %s93_s14, 0 }
  0x36   : > { %s9583_s24 = sshll.u32 %s12015_s19, 7  ;;  %s229_s23 = scalar_lea.vmem [#allocation8], %s9582_s22 }
  0x37   : > { %s237_s27 = sshll.u32 %s229_s23, 4  ;;  %s16818_s15 = sadd.s32 1, %s12007_s17  ;;  %s12213_s27 = int_to_ptr.vmem [resolvable:$true] %s237_s27 }
  0x38   : > { %s12206_s4 = scalar_select %p94_p3, %s12007_s17, %s16818_s15  }
  0x39   : > { %s16819_s2 = sld [smem:[#allocation97_spill]]  ;;  %s12215_s8 = scalar_lea.sflag [#allocation4], %s225_s12 }
  0x3a   : > { %p16584_p8 = pneg %p12153_p4 }
  0x3f   : > { %s12211_s11 = scalar_lea.hbm %s16819_s2, %s9583_s24  ;;  %s11846_s22 = scalar_lea.hbm %s16819_s2, 1024 }
  0x40   : > { %s11841_s14 = scalar_lea.hbm %s12211_s11, 512  ;;  %p11847_p0 = scmp.lt.u32.totalorder %s12211_s11, %s16819_s2 }
  0x41   : > { %p11842_p7 = scmp.ne.s32.totalorder %s12211_s11, %s11841_s14  ;;  %p11848_p6 = scmp.lt.u32.totalorder %s11846_s22, %s11841_s14 }
  0x42   : > { %p11850_p1 = scmp.lt.u32.totalorder %s11841_s14, %s12211_s11 }
  0x43   : > { %p11844_p9 = pnand %p16584_p8, %p11842_p7  ;;  %p11849_p13 = por %p11848_p6, %p11847_p0 }
  0x45   : > { %p11845_p12 = pneg %p11844_p9  ;;  %p11851_p10 = por %p11850_p1, %p11849_p13 }
  0x47   : > { %p11852_p5 = pnand %p11851_p10, %p11845_p12 }
  0x49   : > { %11855 = shalt.err (!%p11852_p5)
}
  0x4a   : > { %s11856_s12 = scalar_lea.vmem %s12213_s27, 512  ;;  %s12024_s30 = smov [#allocation8]  }
  0x4b   : > { %p11857_p3 = scmp.ne.s32.totalorder %s12213_s27, %s11856_s12  ;;  %s11861_s15 = sshll.u32 %s12024_s30, 4  ;;  %s11862_s15 = int_to_ptr.vmem [resolvable:$false] %s11861_s15 }
  0x4c   : > { %s11863_s23 = scalar_lea.vmem %s11862_s15, 1024  ;;  %p11864_p11 = scmp.lt.s32.totalorder %s12213_s27, %s11862_s15 }
  0x4d   : > { %p11859_p7 = pnand %p11857_p3, %p16584_p8  ;;  %p11865_p0 = scmp.lt.s32.totalorder %s11863_s23, %s11856_s12 }
  0x4f   : > { %p11860_p9 = pneg %p11859_p7  ;;  %p11866_p6 = por %p11865_p0, %p11864_p11 }
  0x51   : > { %p11867_p13 = pnand %p11866_p6, %p11860_p9 }
  0x53   : > { %11870 = shalt.err (!%p11867_p13)
}
  0x54   : > { %s12025_s14 = smov 256   ;;  %s12026_s22 = smov [#allocation6]  }
  0x55   : > { %11063 = dma.hbm_to_vmem [thread:$0]  (!%p12153_p4), %s12211_s11, 512, %s12213_s27, %s12215_s8, %s12025_s14, %s12022_s29, %s12023_s9  }
  0x56   : > { %s211_s24 = sshll.u32 %s12026_s22, 4  ;;  %s9584_s10 = sshll.u32 %s12015_s19, 4  ;;  %s212_s24 = int_to_ptr.vmem [resolvable:$true] %s211_s24 }
  0x57   : > { %s11871_s15 = scalar_lea.hbm %s16571_s1, 512  ;;  %p16820_p12 = pneg %p12147_p2 }
  0x58   : > { %p11872_p11 = scmp.ne.s32.totalorder %s16571_s1, %s11871_s15  ;;  %p11878_p5 = scmp.lt.u32.totalorder %s11871_s15, %s16571_s1 }
  0x5a   : > { %p11874_p1 = pnand %p11872_p11, %p16820_p12 }
  0x5c   : > { %p11875_p10 = pneg %p11874_p1 }
  0x5e   : > { %p11880_p3 = pnand %p11878_p5, %p11875_p10 }
  0x60   : > { %11883 = shalt.err (!%p11880_p3)
}
  0x61   : > { %s11884_s27 = scalar_lea.vmem %s212_s24, 512  ;;  %p16821_p9 = pmov %p16820_p12 }
  0x62   : > { %p11885_p7 = scmp.ne.s32.totalorder %s212_s24, %s11884_s27  ;;  %p11892_p13 = scmp.lt.s32.totalorder %s212_s24, %s212_s24 }
  0x63   : > { %p11893_p8 = scmp.lt.s32.totalorder %s11884_s27, %s11884_s27 }
  0x64   : > { %p11887_p0 = pnand %p11885_p7, %p16821_p9 }
  0x65   : > { %p11894_p4 = por %p11893_p8, %p11892_p13 }
  0x66   : > { %p11888_p6 = pneg %p11887_p0 }
  0x68   : > { %p11895_p11 = pnand %p11894_p4, %p11888_p6 }
  0x6a   : > { %11898 = shalt.err (!%p11895_p11)
}
  0x6b   : > { %11059 = dma.hbm_to_vmem [thread:$0]  (!%p12147_p2), %s16571_s1, 512, %s212_s24, [#allocation7], %s12022_s29, %s12022_s29, %s12023_s9  }
  0x6c   : > { %s12272_s14 = scalar_lea.hbm %s16573_s3, %s9584_s10  ;;  %s16822_s22 = sand.u32 1, %s12007_s17  }
  0x6d   : > { %s250_s5 = scalar_lea.vmem [#allocation9], %s16822_s22  ;;  %s11899_s12 = scalar_lea.hbm %s12272_s14, 16 }
  0x6e   : > { %s259_s30 = sshll.u32 %s250_s5, 4  ;;  %p11900_p4 = scmp.ne.s32.totalorder %s12272_s14, %s11899_s12  ;;  %s260_s30 = int_to_ptr.vmem [resolvable:$true] %s259_s30 }
  0x6f   : > { %p16823_p8 = scmp.ne.s32.totalorder %s16815_s6, 0  ;;  %s11904_s24 = scalar_lea.hbm %s16573_s3, 32 }
  0x70   : > { %p11905_p2 = scmp.lt.u32.totalorder %s12272_s14, %s16573_s3  ;;  %p11906_p5 = scmp.lt.u32.totalorder %s11904_s24, %s11899_s12 }
  0x71   : > { %p16824_p12 = pneg %p16823_p8  ;;  %p11908_p7 = scmp.lt.u32.totalorder %s11899_s12, %s12272_s14 }
  0x72   : > { %p11907_p3 = por %p11906_p5, %p11905_p2 }
  0x73   : > { %p11902_p1 = pnand %p11900_p4, %p16824_p12 }
  0x74   : > { %p11909_p9 = por %p11908_p7, %p11907_p3 }
  0x75   : > { %p11903_p10 = pneg %p11902_p1 }
  0x77   : > { %p11910_p0 = pnand %p11909_p9, %p11903_p10 }
  0x79   : > { %11913 = shalt.err (!%p11910_p0)
}
  0x7a   : > { %s11914_s23 = scalar_lea.vmem %s260_s30, 16  ;;  %p16825_p13 = pmov %p16824_p12 }
  0x7b   : > { %p11915_p6 = scmp.ne.s32.totalorder %s260_s30, %s11914_s23  ;;  %s12027_s27 = smov [#allocation9]  }
  0x7c   : > { %s11919_s0 = sshll.u32 %s12027_s27, 4  ;;  %s11920_s0 = int_to_ptr.vmem [resolvable:$false] %s11919_s0 }
  0x7d   : > { %p11917_p11 = pnand %p11915_p6, %p16825_p13  ;;  %s11921_s2 = scalar_lea.vmem %s11920_s0, 32 }
  0x7e   : > { %p11922_p12 = scmp.lt.s32.totalorder %s260_s30, %s11920_s0  ;;  %p11923_p1 = scmp.lt.s32.totalorder %s11921_s2, %s11914_s23 }
  0x7f   : > { %p11918_p4 = pneg %p11917_p11 }
  0x80   : > { %p11924_p2 = por %p11923_p1, %p11922_p12 }
  0x82   : > { %p11925_p5 = pnand %p11924_p2, %p11918_p4 }
  0x84   : > { %11928 = shalt.err (!%p11925_p5)
}
  0x85   : > { %11066 = dma.hbm_to_vmem [thread:$0]  (!%p16823_p8), %s12272_s14, 16, %s260_s30, %s12215_s8  }
  0x86   : > { %p16826_p10 = scmp.ne.s32.totalorder %s16813_s28, 0 }
  0x87   : > { %p16827_p3 = scmp.eq.s32.totalorder (!%p16826_p10), %s12104_s21, 0 }
  0x88   : > { %268 = sbr.rel (%p16826_p10) target bundleno = 1992 (0x7c8), region = 36 }
  0x8f   : > { %11982 = dma.done.wait (%p16827_p3), [#allocation4], 2048   ;;  %p16828_p7 = pmov %p16827_p3 }
  0x90   : > { %p16829_p9 = pmov %p16827_p3 }
  0x91   : > { %11984 = vsyncadd (%p16828_p7), [#allocation4], 4294965248 }
  0x92   : > { %11986 = dma.done.wait (%p16829_p9), [#allocation7], 512   ;;  %p16830_p0 = pmov %p16827_p3 }
  0x93   : > { %s278_s6 = sand.u32 1, %s12104_s21   ;;  %s12308_s8 = sand.u32 1, %s12003_s16  }
  0x94   : > { %11988 = vsyncadd (%p16830_p0), [#allocation7], 4294966784  ;;  %s9588_s28 = sshll.u32 %s12308_s8, 5  ;;  %s279_s13 = scalar_lea.sflag [#allocation4], %s278_s6 }
  0x95   : > { %s12311_s11 = scalar_lea.vmem [#allocation8], %s9588_s28  ;;  %p16831_p8 = scmp.ne.s32.totalorder %s16809_s25, 0 }
  0x97   : > { %11990 = dma.done.wait (%p16831_p8), %s279_s13, 528  }
  0x98   : > { %11992 = vsyncadd (%p16831_p8), %s279_s13, 4294966768  ;;  %s9589_s14 = sshll.u32 %s12308_s8, 3  ;;  %s290_s22 = scalar_lea.vmem [#allocation9], %s12308_s8 }
  0x99   : > { %s12319_s5 = scalar_lea.vmem [#allocation10], %s9589_s14  ;;  %p9590_p6 = scmp.ne.s32.totalorder %s12011_s18, 0 }
  0x9b   : > { %329 = sbr.rel (%p9590_p6) target bundleno = 1754 (0x6da), region = 56 }
  0xa2   : > { %v346_v0 = vld [vmem:[#allocation6] sm:$0xff]  ;;  %v347_v1 = vld [vmem:[#allocation6 + $0x8] sm:$0xff]  ;;  %v348_v2 = vld [vmem:[#allocation6 + $0x10] sm:$0xff]  ;;  %vm350_vm0 = vcmask 261120   ;;  %vm550_vm1 = vcmask 31744   ;;  %s12028_s21 = smov 92  }
  0xa3   : > { %v10641_v3 = vpack.c.bf16 %v347_v1, %v346_v0  ;;  %v349_v4 = vld [vmem:[#allocation6 + $0x18] sm:$0xff]  ;;  %v330_v5 = vld [vmem:[#allocation3] sm:$0xff]  ;;  %v331_v7 = vld [vmem:[#allocation3 + $0x8] sm:$0xff]  ;;  %s12029_s25 = smov 96   ;;  %s12030_s30 = smov 88   ;;  %vm1257_vm3 = vcmask 130048  }
  0xa4   : > { %v10645_v6 = vpack.c.bf16 %v349_v4, %v348_v2  ;;  %10158 = vmatprep.mubr.msk.f32.mxu0 %vm350_vm0, %v330_v5  ;;  %v332_v8 = vld [vmem:[#allocation3 + $0x10] sm:$0xff]  ;;  %v333_v9 = vld [vmem:[#allocation3 + $0x18] sm:$0xff]  ;;  %v334_v10 = vld [vmem:[#allocation3 + $0x20] sm:$0xff]  ;;  %s12031_s12 = smov 84   ;;  %s12032_s29 = smov 124   ;;  %vm1538_vm4 = vcmask 556544  }
  0xa5   : > { %10642 = vmatprep.subr.bf16.mxu0 %v10641_v3  ;;  %v335_v11 = vld [vmem:[#allocation3 + $0x28] sm:$0xff]  ;;  %v336_v12 = vld [vmem:[#allocation3 + $0x30] sm:$0xff]  ;;  %v337_v13 = vld [vmem:[#allocation3 + $0x38] sm:$0xff]  ;;  %s12033_s9 = smov 120   ;;  %s12034_s24 = smov 116   ;;  %vm1619_vm5 = vcmask 1041409  }
  0xa6   : > { %10644 = vmatpush3.bf16.msra.mxu0 %v10641_v3  ;;  %v338_v14 = vld [vmem:[#allocation3 + $0x40] sm:$0xff]  ;;  %v339_v15 = vld [vmem:[#allocation3 + $0x48] sm:$0xff]  ;;  %v340_v16 = vld [vmem:[#allocation3 + $0x50] sm:$0xff]  ;;  %s12035_s10 = smov 112   ;;  %s12036_s15 = smov 80   ;;  %vm2645_vm6 = vcmask 589344  }
  0xa7   : > { %10646 = vmatprep.subr.bf16.mxu0 %v10645_v6  ;;  %v341_v17 = vld [vmem:[#allocation3 + $0x58] sm:$0xff]  ;;  %v342_v18 = vld [vmem:[#allocation3 + $0x60] sm:$0xff]  ;;  %v343_v19 = vld [vmem:[#allocation3 + $0x68] sm:$0xff]  ;;  %s12037_s23 = smov 108   ;;  %s12038_s27 = smov 76   ;;  %vm1621_vm7 = vcmask 1042434  }
  0xa8   : > { %v344_v20 = vld [vmem:[#allocation3 + $0x70] sm:$0xff]  ;;  %v345_v21 = vld [vmem:[#allocation3 + $0x78] sm:$0xff]  ;;  %vm12348_vm2 = vmpackc.low %vm550_vm1, %vm550_vm1  ;;  %s12039_s0 = smov 104   ;;  %s12040_s2 = smov 72   ;;  %vm1623_vm8 = vcmask 1043459   ;;  %vm1625_vm9 = vcmask 1044484  }
  0xa9   : > { %s12041_s6 = smov 100   ;;  %s12042_s28 = smov 68   ;;  %vm1627_vm10 = vcmask 1045509   ;;  %vm1629_vm11 = vcmask 1046534   ;;  %vm1631_vm12 = vcmask 1047559   ;;  %vm3746_vm13 = vcmask 622144  }
  0xaa   : > { %10648 = vmatpush3.bf16.msra.mxu0 %v10645_v6  ;;  %s12043_s13 = smov 64   ;;  %vm4847_vm14 = vcmask 654944   ;;  %vm5948_vm15 = vcmask 687744  }
  0xad   : > { %10159 = vmatmul.mubr.msk.f32.vlgmr.msra.gmra.mrb[0].mxu0 %vm350_vm0, %v331_v7 }
  0xae   : > { %10161 = vmatprep.mubr.msk.f32.mxu0 %vm350_vm0, %v332_v8 }
  0xb1   : > { %10162 = vmatmul.mubr.msk.f32.gmra.mrb[2].mxu0 %vm350_vm0, %v333_v9 }
  0xb2   : > { %10164 = vmatprep.mubr.msk.f32.mxu0 %vm350_vm0, %v334_v10 }
  0xb5   : > { %10165 = vmatmul.mubr.msk.f32.gmra.mrb[4].mxu0 %vm350_vm0, %v335_v11 }
  0xb6   : > { %10167 = vmatprep.mubr.msk.f32.mxu0 %vm350_vm0, %v336_v12 }
  0xb9   : > { %10168 = vmatmul.mubr.msk.f32.gmra.mrb[6].mxu0 %vm350_vm0, %v337_v13 }
  0xba   : > { %10170 = vmatprep.mubr.msk.f32.mxu0 %vm350_vm0, %v338_v14 }
  0xbd   : > { %10171 = vmatmul.mubr.msk.f32.gmra.mrb[8].mxu0 %vm350_vm0, %v339_v15 }
  0xbe   : > { %10173 = vmatprep.mubr.msk.f32.mxu0 %vm350_vm0, %v340_v16 }
  0xc1   : > { %10174 = vmatmul.mubr.msk.f32.gmra.mrb[10].mxu0 %vm350_vm0, %v341_v17 }
  0xc2   : > { %10176 = vmatprep.mubr.msk.f32.mxu0 %vm350_vm0, %v342_v18 }
  0xc5   : > { %10177 = vmatmul.mubr.msk.f32.gmra.mrb[12].mxu0 %vm350_vm0, %v343_v19 }
  0xc6   : > { %10179 = vmatprep.mubr.msk.f32.mxu0 %vm350_vm0, %v344_v20 }
  0xc9   : > { %10180 = vmatmul.mubr.msk.f32.gmra.mrb[14].mxu0 %vm350_vm0, %v345_v21  ;;  %vm7049_vm0 = vcmask 720544  }
 0x180   : > { %v12338_v22 = vpop.f32.mrb[0].mxu0 }
 0x181   : > { %16832 = vst [vmem:[#allocation17_spill] sm:$0xff] %v12338_v22  ;;  %1639 = vrot.lane.b32.xlu1 %v12338_v22, %s12028_s21  ;;  %548 = vrot.lane.b32.xlu0 %v12338_v22, %s12029_s25  ;;  %v12344_v23 = vpop.f32.mrb[1].mxu0 }
 0x182   : > { %16833 = vst [vmem:[#allocation18_spill] sm:$0xff] %v12344_v23  ;;  %v10649_v25 = vpack.c.bf16 %v12338_v22, %v12344_v23  ;;  %v12356_v26 = vpack.i.bf16 %v12338_v22, %v12344_v23 }
 0x184   : > { %10651 = vmatprep.subr.msk.bf16.mxu1 %vm12348_vm2, %v10649_v25  ;;  %v12360_v27 = vpop.f32.mrb[2].mxu0 }
 0x185   : > { %16836 = vst [vmem:[#allocation19_spill] sm:$0xff] %v12360_v27  ;;  %2740 = vrot.lane.b32.xlu1 %v12338_v22, %s12030_s30  ;;  %546 = vrot.lane.b32.xlu0 %v12344_v23, %s12029_s25  ;;  %v12366_v28 = vpop.f32.mrb[3].mxu0 }
 0x186   : > { %16837 = vst [vmem:[#allocation20_spill] sm:$0xff] %v12366_v28  ;;  %10654 = vmatpush3.bf16.xpose.msk.msra.mxu1 %vm12348_vm2, %v10649_v25  ;;  %v12372_v29 = vpack.c.bf16 %v12360_v27, %v12366_v28  ;;  %v12376_v30 = vpack.i.bf16 %v12360_v27, %v12366_v28 }
 0x188   : > { %10657 = vmatprep.subr.msk.bf16.mxu1 %vm12348_vm2, %v12372_v29  ;;  %v12381_v31 = vpop.f32.mrb[4].mxu0 }
 0x189   : > { %16838 = vst [vmem:[#allocation21_spill] sm:$0xff] %v12381_v31  ;;  %3841 = vrot.lane.b32.xlu1 %v12338_v22, %s12031_s12  ;;  %1637 = vrot.lane.b32.xlu0 %v12344_v23, %s12028_s21  ;;  %v12387_v32 = vpop.f32.mrb[5].mxu0 }
 0x18a   : > { %16839 = vst [vmem:[#allocation22_spill] sm:$0xff] %v12387_v32  ;;  %v12391_v33 = vpack.i.bf16 %v12381_v31, %v12387_v32  ;;  %v12395_v34 = vpack.c.bf16 %v12381_v31, %v12387_v32 }
 0x18c   : > { %v12397_v35 = vpop.f32.mrb[6].mxu0 }
 0x18d   : > { %16840 = vst [vmem:[#allocation23_spill] sm:$0xff] %v12397_v35  ;;  %11150 = vrot.lane.b32.xlu1 %v12356_v26, %s12032_s29  ;;  %11155 = vrot.lane.b32.xlu0 %v12356_v26, %s12033_s9  ;;  %v12403_v36 = vpop.f32.mrb[7].mxu0 }
 0x18e   : > { %16841 = vst [vmem:[#allocation24_spill] sm:$0xff] %v12403_v36  ;;  %v12407_v37 = vpack.i.bf16 %v12397_v35, %v12403_v36  ;;  %v12411_v38 = vpack.c.bf16 %v12397_v35, %v12403_v36 }
 0x190   : > { %v12413_v39 = vpop.f32.mrb[8].mxu0 }
 0x191   : > { %16842 = vst [vmem:[#allocation25_spill] sm:$0xff] %v12413_v39  ;;  %2738 = vrot.lane.b32.xlu1 %v12344_v23, %s12030_s30  ;;  %3839 = vrot.lane.b32.xlu0 %v12344_v23, %s12031_s12  ;;  %v12419_v40 = vpop.f32.mrb[9].mxu0 }
 0x192   : > { %16843 = vst [vmem:[#allocation26_spill] sm:$0xff] %v12419_v40  ;;  %v10673_v41 = vpack.c.bf16 %v12413_v39, %v12419_v40  ;;  %v12425_v42 = vpack.i.bf16 %v12413_v39, %v12419_v40 }
 0x194   : > { %10675 = vmatprep.subr.msk.bf16.mxu0 %vm12348_vm2, %v10673_v41  ;;  %v12429_v43 = vpop.f32.mrb[10].mxu0 }
 0x195   : > { %16844 = vst [vmem:[#allocation27_spill] sm:$0xff] %v12429_v43  ;;  %11160 = vrot.lane.b32.xlu1 %v12356_v26, %s12034_s24  ;;  %2831 = vrot.lane.b32.xlu0 %v12360_v27, %s12030_s30  ;;  %v12435_v44 = vpop.f32.mrb[11].mxu0 }
 0x196   : > { %16845 = vst [vmem:[#allocation28_spill] sm:$0xff] %v12435_v44  ;;  %10678 = vmatpush3.bf16.xpose.msk.msra.mxu0 %vm12348_vm2, %v10673_v41  ;;  %v12441_v45 = vpack.i.bf16 %v12429_v43, %v12435_v44  ;;  %v12445_v46 = vpack.c.bf16 %v12429_v43, %v12435_v44 }
 0x198   : > { %v12447_v47 = vpop.f32.mrb[12].mxu0 }
 0x199   : > { %16846 = vst [vmem:[#allocation29_spill] sm:$0xff] %v12447_v47  ;;  %638 = vrot.lane.b32.xlu1 %v12360_v27, %s12029_s25  ;;  %1728 = vrot.lane.b32.xlu0 %v12366_v28, %s12028_s21  ;;  %v12453_v48 = vpop.f32.mrb[13].mxu0 }
 0x19a   : > { %16847 = vst [vmem:[#allocation30_spill] sm:$0xff] %v12453_v48  ;;  %v12457_v49 = vpack.c.bf16 %v12447_v47, %v12453_v48  ;;  %v12461_v50 = vpack.i.bf16 %v12447_v47, %v12453_v48 }
 0x19c   : > { %10687 = vmatprep.subr.msk.bf16.mxu0 %vm12348_vm2, %v12457_v49  ;;  %v12466_v51 = vpop.f32.mrb[14].mxu0 }
 0x19d   : > { %16848 = vst [vmem:[#allocation31_spill] sm:$0xff] %v12466_v51  ;;  %1730 = vrot.lane.b32.xlu1 %v12360_v27, %s12028_s21  ;;  %11165 = vrot.lane.b32.xlu0 %v12376_v30, %s12032_s29  ;;  %v12488_v52 = vpop.f32.mrb[15].mxu0 }
 0x19e   : > { %16849 = vst [vmem:[#allocation32_spill] sm:$0xff] %v12488_v52  ;;  %v12496_v53 = vpack.i.bf16 %v12466_v51, %v12488_v52  ;;  %v12500_v54 = vpack.c.bf16 %v12466_v51, %v12488_v52 }
 0x1a1   : > { %3932 = vrot.lane.b32.xlu1 %v12360_v27, %s12031_s12  ;;  %11175 = vrot.lane.b32.xlu0 %v12376_v30, %s12034_s24 }
 0x1a5   : > { %3930 = vrot.lane.b32.xlu0 %v12366_v28, %s12031_s12  ;;  %636 = vrot.lane.b32.xlu1 %v12366_v28, %s12029_s25 }
 0x1a9   : > { %2829 = vrot.lane.b32.xlu1 %v12366_v28, %s12030_s30  ;;  %1821 = vrot.lane.b32.xlu0 %v12381_v31, %s12028_s21 }
 0x1ad   : > { %11170 = vrot.lane.b32.xlu1 %v12376_v30, %s12033_s9  ;;  %725 = vrot.lane.b32.xlu0 %v12387_v32, %s12029_s25 }
 0x1b1   : > { %727 = vrot.lane.b32.xlu1 %v12381_v31, %s12029_s25  ;;  %2920 = vrot.lane.b32.xlu0 %v12387_v32, %s12030_s30 }
 0x1b5   : > { %2922 = vrot.lane.b32.xlu1 %v12381_v31, %s12030_s30  ;;  %11185 = vrot.lane.b32.xlu0 %v12391_v33, %s12033_s9 }
 0x1b9   : > { %4023 = vrot.lane.b32.xlu1 %v12381_v31, %s12031_s12  ;;  %4021 = vrot.lane.b32.xlu0 %v12387_v32, %s12031_s12 }
 0x1bd   : > { %1819 = vrot.lane.b32.xlu1 %v12387_v32, %s12028_s21  ;;  %3013 = vrot.lane.b32.xlu0 %v12397_v35, %s12030_s30 }
 0x1c1   : > { %11180 = vrot.lane.b32.xlu1 %v12391_v33, %s12032_s29  ;;  %814 = vrot.lane.b32.xlu0 %v12403_v36, %s12029_s25 }
 0x1c5   : > { %11190 = vrot.lane.b32.xlu1 %v12391_v33, %s12034_s24  ;;  %1910 = vrot.lane.b32.xlu0 %v12403_v36, %s12028_s21 }
 0x1c9   : > { %816 = vrot.lane.b32.xlu1 %v12397_v35, %s12029_s25  ;;  %11195 = vrot.lane.b32.xlu0 %v12407_v37, %s12032_s29 }
 0x1cd   : > { %1912 = vrot.lane.b32.xlu1 %v12397_v35, %s12028_s21  ;;  %4112 = vrot.lane.b32.xlu0 %v12403_v36, %s12031_s12 }
 0x1d1   : > { %4114 = vrot.lane.b32.xlu1 %v12397_v35, %s12031_s12  ;;  %2003 = vrot.lane.b32.xlu0 %v12413_v39, %s12028_s21 }
 0x1d5   : > { %3011 = vrot.lane.b32.xlu1 %v12403_v36, %s12030_s30  ;;  %903 = vrot.lane.b32.xlu0 %v12419_v40, %s12029_s25 }
 0x1d9   : > { %11200 = vrot.lane.b32.xlu1 %v12407_v37, %s12033_s9  ;;  %3102 = vrot.lane.b32.xlu0 %v12419_v40, %s12030_s30 }
 0x1dd   : > { %11205 = vrot.lane.b32.xlu1 %v12407_v37, %s12034_s24  ;;  %11215 = vrot.lane.b32.xlu0 %v12425_v42, %s12033_s9 }
 0x1e1   : > { %905 = vrot.lane.b32.xlu1 %v12413_v39, %s12029_s25  ;;  %11220 = vrot.lane.b32.xlu0 %v12425_v42, %s12034_s24 }
 0x1e5   : > { %3104 = vrot.lane.b32.xlu1 %v12413_v39, %s12030_s30  ;;  %4203 = vrot.lane.b32.xlu0 %v12419_v40, %s12031_s12 }
 0x1e9   : > { %2001 = vrot.lane.b32.xlu1 %v12419_v40, %s12028_s21  ;;  %3195 = vrot.lane.b32.xlu0 %v12429_v43, %s12030_s30 }
 0x1ed   : > { %11210 = vrot.lane.b32.xlu1 %v12425_v42, %s12032_s29  ;;  %992 = vrot.lane.b32.xlu0 %v12435_v44, %s12029_s25 }
 0x1f1   : > { %994 = vrot.lane.b32.xlu1 %v12429_v43, %s12029_s25  ;;  %2092 = vrot.lane.b32.xlu0 %v12435_v44, %s12028_s21 }
 0x1f3   : > { %v12566_v55 = vpop.permute.xlu1 %1639  ;;  %v549_v56 = vpop.permute.xlu0 %548 }
 0x1f5   : > { %2094 = vrot.lane.b32.xlu1 %v12429_v43, %s12028_s21  ;;  %11225 = vrot.lane.b32.xlu0 %v12441_v45, %s12032_s29 }
 0x1f7   : > { %v12572_v57 = vpop.permute.xlu1 %2740  ;;  %v547_v58 = vpop.permute.xlu0 %546 }
 0x1f8   : > { %10186 = vmatprep.mubr.msk.f32.mxu1 %vm550_vm1, %v547_v58 }
 0x1f9   : > { %10187 = vmatmul.mubr.msk.f32.vlgmr.msra.gmra.mrb[0].mxu1 %vm550_vm1, %v549_v56  ;;  %3193 = vrot.lane.b32.xlu1 %v12435_v44, %s12030_s30 }
 0x1fa   : > { %10660 = vmatpush3.bf16.xpose.msk.msra.mxu1 %vm12348_vm2, %v12372_v29  ;;  %2185 = vrot.lane.b32.xlu0 %v12447_v47, %s12028_s21 }
 0x1fb   : > { %10663 = vmatprep.subr.msk.bf16.mxu1 %vm12348_vm2, %v12395_v34  ;;  %v12586_v59 = vpop.permute.xlu1 %3841  ;;  %v12588_v60 = vpop.permute.xlu0 %1637 }
 0x1fc   : > { %16850 = vst [vmem:[#allocation33_spill] sm:$0xff] %v12586_v59 }
 0x1fd   : > { %11230 = vrot.lane.b32.xlu1 %v12441_v45, %s12033_s9 }
 0x1fe   : > { %1081 = vrot.lane.b32.xlu0 %v12453_v48, %s12029_s25 }
 0x1ff   : > { %v12594_v61 = vpop.permute.xlu1 %11150  ;;  %v12596_v62 = vpop.permute.xlu0 %11155 }
 0x201   : > { %11235 = vrot.lane.b32.xlu1 %v12441_v45, %s12034_s24 }
 0x202   : > { %3284 = vrot.lane.b32.xlu0 %v12453_v48, %s12030_s30 }
 0x203   : > { %v12602_v63 = vpop.permute.xlu1 %2738  ;;  %v12604_v0 = vpop.permute.xlu0 %3839 }
 0x205   : > { %1083 = vrot.lane.b32.xlu1 %v12447_v47, %s12029_s25 }
 0x206   : > { %11245 = vrot.lane.b32.xlu0 %v12461_v50, %s12033_s9 }
 0x207   : > { %v12610_v1 = vpop.permute.xlu1 %11160  ;;  %v12612_v2 = vpop.permute.xlu0 %2831 }
 0x208   : > { %16851 = vst [vmem:[#allocation34_spill] sm:$0xff] %v12612_v2 }
 0x209   : > { %3286 = vrot.lane.b32.xlu1 %v12447_v47, %s12030_s30 }
 0x20a   : > { %11250 = vrot.lane.b32.xlu0 %v12461_v50, %s12034_s24 }
 0x20b   : > { %v639_v3 = vpop.permute.xlu1 %638  ;;  %v12618_v4 = vpop.permute.xlu0 %1728 }
 0x20d   : > { %2183 = vrot.lane.b32.xlu1 %v12453_v48, %s12028_s21 }
 0x20e   : > { %4294 = vrot.lane.b32.xlu0 %v12435_v44, %s12031_s12 }
 0x20f   : > { %v12624_v5 = vpop.permute.xlu1 %1730  ;;  %v12626_v6 = vpop.permute.xlu0 %11165 }
 0x210   : > { %v11168_v2 = vunpack.i.h.bf16 %v12626_v6 }
 0x211   : > { %11240 = vrot.lane.b32.xlu1 %v12461_v50, %s12032_s29 }
 0x212   : > { %11255 = vrot.lane.b32.xlu0 %v12356_v26, %s12035_s10 }
 0x213   : > { %v12632_v7 = vpop.permute.xlu1 %3932  ;;  %v12634_v8 = vpop.permute.xlu0 %11175 }
 0x214   : > { %16852 = vst [vmem:[#allocation35_spill] sm:$0xff] %v12632_v7  ;;  %16853 = vst [vmem:[#allocation36_spill] sm:$0xff] %v12634_v8  ;;  %v11153_v7 = vunpack.i.h.bf16 %v12594_v61 }
 0x215   : > { %1172 = vrot.lane.b32.xlu1 %v12466_v51, %s12029_s25 }
 0x216   : > { %4385 = vrot.lane.b32.xlu0 %v12453_v48, %s12031_s12 }
 0x217   : > { %v12640_v9 = vpop.permute.xlu0 %3930  ;;  %v637_v10 = vpop.permute.xlu1 %636 }
 0x218   : > { %16854 = vst [vmem:[#allocation37_spill] sm:$0xff] %v12640_v9  ;;  %10193 = vmatprep.mubr.msk.f32.mxu1 %vm550_vm1, %v637_v10  ;;  %v11152_v9 = vunpack.i.l.bf16 %v12594_v61 }
 0x219   : > { %10194 = vmatmul.mubr.msk.f32.vlgmr.msra.gmra.mrb[2].mxu1 %vm550_vm1, %v639_v3  ;;  %4205 = vrot.lane.b32.xlu1 %v12413_v39, %s12031_s12 }
 0x21a   : > { %10666 = vmatpush3.bf16.xpose.msk.msra.mxu1 %vm12348_vm2, %v12395_v34  ;;  %11265 = vrot.lane.b32.xlu0 %v12391_v33, %s12035_s10 }
 0x21b   : > { %10669 = vmatprep.subr.msk.bf16.mxu1 %vm12348_vm2, %v12411_v38  ;;  %v12654_v11 = vpop.permute.xlu1 %2829  ;;  %v12656_v12 = vpop.permute.xlu0 %1821 }
 0x21c   : > { %16855 = vst [vmem:[#allocation38_spill] sm:$0xff] %v12654_v11  ;;  %v11167_v11 = vunpack.i.l.bf16 %v12626_v6 }
 0x21d   : > { %4296 = vrot.lane.b32.xlu1 %v12429_v43, %s12031_s12 }
 0x21e   : > { %4940 = vrot.lane.b32.xlu0 %v12344_v23, %s12036_s15 }
 0x21f   : > { %v12662_v13 = vpop.permute.xlu1 %11170  ;;  %v726_v14 = vpop.permute.xlu0 %725 }
 0x220   : > { %10200 = vmatprep.mubr.msk.f32.mxu1 %vm550_vm1, %v726_v14 }
 0x221   : > { %11260 = vrot.lane.b32.xlu1 %v12376_v30, %s12035_s10 }
 0x222   : > { %5031 = vrot.lane.b32.xlu0 %v12366_v28, %s12036_s15 }
 0x223   : > { %v728_v15 = vpop.permute.xlu1 %727  ;;  %v12669_v16 = vpop.permute.xlu0 %2920 }
 0x224   : > { %10201 = vmatmul.mubr.msk.f32.vlgmr.msra.gmra.mrb[4].mxu1 %vm550_vm1, %v728_v15 }
 0x225   : > { %10672 = vmatpush3.bf16.xpose.msk.msra.mxu1 %vm12348_vm2, %v12411_v38  ;;  %4387 = vrot.lane.b32.xlu1 %v12447_v47, %s12031_s12 }
 0x226   : > { %10681 = vmatprep.subr.msk.bf16.mxu1 %vm12348_vm2, %v12445_v46  ;;  %11275 = vrot.lane.b32.xlu0 %v12425_v42, %s12035_s10 }
 0x227   : > { %v12682_v17 = vpop.permute.xlu1 %2922  ;;  %v12684_v18 = vpop.permute.xlu0 %11185 }
 0x229   : > { %11270 = vrot.lane.b32.xlu1 %v12407_v37, %s12035_s10 }
 0x22a   : > { %5122 = vrot.lane.b32.xlu0 %v12387_v32, %s12036_s15 }
 0x22b   : > { %v12690_v19 = vpop.permute.xlu1 %4023  ;;  %v12692_v20 = vpop.permute.xlu0 %4021 }
 0x22c   : > { %16856 = vst [vmem:[#allocation39_spill] sm:$0xff] %v12690_v19  ;;  %16857 = vst [vmem:[#allocation40_spill] sm:$0xff] %v12692_v20  ;;  %v12812_v19 = vpack.c.bf16 %v11168_v2, %v11167_v11 }
 0x22d   : > { %4942 = vrot.lane.b32.xlu1 %v12338_v22, %s12036_s15 }
 0x22e   : > { %5213 = vrot.lane.b32.xlu0 %v12403_v36, %s12036_s15 }
 0x22f   : > { %v12698_v21 = vpop.permute.xlu1 %1819  ;;  %v12700_v25 = vpop.permute.xlu0 %3013 }
 0x230   : > { %16858 = vst [vmem:[#allocation41_spill] sm:$0xff] %v12700_v25 }
 0x231   : > { %5033 = vrot.lane.b32.xlu1 %v12360_v27, %s12036_s15 }
 0x232   : > { %3377 = vrot.lane.b32.xlu0 %v12466_v51, %s12030_s30 }
 0x233   : > { %v12706_v29 = vpop.permute.xlu1 %11180  ;;  %v815_v34 = vpop.permute.xlu0 %814 }
 0x234   : > { %10207 = vmatprep.mubr.msk.f32.mxu1 %vm550_vm1, %v815_v34 }
 0x235   : > { %2276 = vrot.lane.b32.xlu1 %v12466_v51, %s12028_s21 }
 0x236   : > { %1170 = vrot.lane.b32.xlu0 %v12488_v52, %s12029_s25 }
 0x237   : > { %v12713_v38 = vpop.permute.xlu1 %11190  ;;  %v12715_v41 = vpop.permute.xlu0 %1910 }
 0x239   : > { %11280 = vrot.lane.b32.xlu1 %v12441_v45, %s12035_s10 }
 0x23a   : > { %2274 = vrot.lane.b32.xlu0 %v12488_v52, %s12028_s21 }
 0x23b   : > { %v817_v56 = vpop.permute.xlu1 %816  ;;  %v12721_v58 = vpop.permute.xlu0 %11195 }
 0x23c   : > { %10208 = vmatmul.mubr.msk.f32.vlgmr.msra.gmra.mrb[6].mxu1 %vm550_vm1, %v817_v56 }
 0x23d   : > { %10684 = vmatpush3.bf16.xpose.msk.msra.mxu1 %vm12348_vm2, %v12445_v46  ;;  %5124 = vrot.lane.b32.xlu1 %v12381_v31, %s12036_s15 }
 0x23e   : > { %11285 = vrot.lane.b32.xlu0 %v12496_v53, %s12032_s29  ;;  %10693 = vmatprep.subr.msk.bf16.mxu1 %vm12348_vm2, %v12500_v54 }
 0x23f   : > { %v12734_v3 = vpop.permute.xlu1 %1912  ;;  %v12736_v10 = vpop.permute.xlu0 %4112 }
 0x240   : > { %16859 = vst [vmem:[#allocation42_spill] sm:$0xff] %v12736_v10 }
 0x241   : > { %4478 = vrot.lane.b32.xlu1 %v12466_v51, %s12031_s12 }
 0x242   : > { %11295 = vrot.lane.b32.xlu0 %v12461_v50, %s12035_s10 }
 0x243   : > { %v12742_v46 = vpop.permute.xlu1 %4114  ;;  %v12744_v14 = vpop.permute.xlu0 %2003 }
 0x244   : > { %16860 = vst [vmem:[#allocation43_spill] sm:$0xff] %v12742_v46 }
 0x245   : > { %3375 = vrot.lane.b32.xlu1 %v12488_v52, %s12030_s30 }
 0x246   : > { %5304 = vrot.lane.b32.xlu0 %v12419_v40, %s12036_s15 }
 0x247   : > { %v12750_v15 = vpop.permute.xlu1 %3011  ;;  %v904_v34 = vpop.permute.xlu0 %903 }
 0x248   : > { %16861 = vst [vmem:[#allocation44_spill] sm:$0xff] %v12750_v15  ;;  %10214 = vmatprep.mubr.msk.f32.mxu0 %vm550_vm1, %v904_v34  ;;  %v10697_v15 = vpack.c.bf16 %v11153_v7, %v11152_v9 }
 0x249   : > { %11290 = vrot.lane.b32.xlu1 %v12496_v53, %s12033_s9 }
 0x24a   : > { %5395 = vrot.lane.b32.xlu0 %v12435_v44, %s12036_s15 }
 0x24b   : > { %v12757_v56 = vpop.permute.xlu1 %11200  ;;  %v12759_v46 = vpop.permute.xlu0 %3102 }
 0x24c   : > { %16862 = vst [vmem:[#allocation45_spill] sm:$0xff] %v12757_v56  ;;  %v11183_v56 = vunpack.i.h.bf16 %v12706_v29 }
 0x24d   : > { %5215 = vrot.lane.b32.xlu1 %v12397_v35, %s12036_s15 }
 0x24e   : > { %11300 = vrot.lane.b32.xlu0 %v12356_v26, %s12037_s23 }
 0x24f   : > { %v12765_v10 = vpop.permute.xlu1 %11205  ;;  %v12767_v34 = vpop.permute.xlu0 %11215 }
 0x250   : > { %16863 = vst [vmem:[#allocation46_spill] sm:$0xff] %v12765_v10 }
 0x251   : > { %5306 = vrot.lane.b32.xlu1 %v12413_v39, %s12036_s15 }
 0x252   : > { %5486 = vrot.lane.b32.xlu0 %v12453_v48, %s12036_s15 }
 0x253   : > { %v906_v8 = vpop.permute.xlu1 %905  ;;  %v12775_v25 = vpop.permute.xlu0 %11220 }
 0x254   : > { %10215 = vmatmul.mubr.msk.f32.vlgmr.msra.gmra.mrb[16].mxu0 %vm550_vm1, %v906_v8 }
 0x255   : > { %10690 = vmatpush3.bf16.xpose.msk.msra.mxu0 %vm12348_vm2, %v12457_v49  ;;  %5397 = vrot.lane.b32.xlu1 %v12429_v43, %s12036_s15 }
 0x256   : > { %10699 = vmatprep.subr.msk.bf16.mxu0 %vm12348_vm2, %v10697_v15  ;;  %4476 = vrot.lane.b32.xlu0 %v12488_v52, %s12031_s12 }
 0x257   : > { %v12787_v61 = vpop.permute.xlu1 %3104  ;;  %v12789_v10 = vpop.permute.xlu0 %4203 }
 0x258   : > { %16864 = vst [vmem:[#allocation47_spill] sm:$0xff] %v12789_v10 }
 0x259   : > { %11305 = vrot.lane.b32.xlu1 %v12376_v30, %s12037_s23 }
 0x25a   : > { %5577 = vrot.lane.b32.xlu0 %v12488_v52, %s12036_s15 }
 0x25b   : > { %v12795_v49 = vpop.permute.xlu1 %2001  ;;  %v12797_v7 = vpop.permute.xlu0 %3195 }
 0x25c   : > { %16865 = vst [vmem:[#allocation48_spill] sm:$0xff] %v12797_v7 }
 0x25d   : > { %11310 = vrot.lane.b32.xlu1 %v12496_v53, %s12034_s24 }
 0x25e   : > { %11320 = vrot.lane.b32.xlu0 %v12391_v33, %s12037_s23 }
 0x25f   : > { %v11211_v8 = vpop.permute.xlu1 %11210  ;;  %v993_v9 = vpop.permute.xlu0 %992 }
 0x260   : > { %10221 = vmatprep.mubr.msk.f32.mxu1 %vm550_vm1, %v993_v9 }
 0x261   : > { %11315 = vrot.lane.b32.xlu1 %v12496_v53, %s12035_s10 }
 0x262   : > { %6041 = vrot.lane.b32.xlu0 %v12344_v23, %s12038_s27 }
 0x263   : > { %v995_v7 = vpop.permute.xlu1 %994  ;;  %v12810_v10 = vpop.permute.xlu0 %2092 }
 0x264   : > { %10222 = vmatmul.mubr.msk.f32.vlgmr.msra.gmra.mrb[8].mxu1 %vm550_vm1, %v995_v7 }
 0x265   : > { %10696 = vmatpush3.bf16.xpose.msk.msra.mxu1 %vm12348_vm2, %v12500_v54  ;;  %5488 = vrot.lane.b32.xlu1 %v12447_v47, %s12036_s15 }
 0x266   : > { %6132 = vrot.lane.b32.xlu0 %v12366_v28, %s12038_s27  ;;  %10705 = vmatprep.subr.msk.bf16.mxu1 %vm12348_vm2, %v12812_v19 }
 0x267   : > { %v12825_v6 = vpop.permute.xlu1 %2094  ;;  %v12827_v2 = vpop.permute.xlu0 %11225 }
 0x268   : > { %16866 = vst [vmem:[#allocation49_spill] sm:$0xff] %v12825_v6  ;;  %v11182_v6 = vunpack.i.l.bf16 %v12706_v29 }
 0x269   : > { %5579 = vrot.lane.b32.xlu1 %v12466_v51, %s12036_s15 }
 0x26a   : > { %11330 = vrot.lane.b32.xlu0 %v12425_v42, %s12037_s23 }
 0x26b   : > { %v12833_v54 = vpop.permute.xlu1 %3193 }
 0x26c   : > { %16867 = vst [vmem:[#allocation50_spill] sm:$0xff] %v12833_v54  ;;  %v12835_v11 = vpop.permute.xlu0 %2185 }
 0x26d   : > { %11325 = vrot.lane.b32.xlu1 %v12407_v37, %s12037_s23 }
 0x26e   : > { %6223 = vrot.lane.b32.xlu0 %v12387_v32, %s12038_s27 }
 0x26f   : > { %v12841_v7 = vpop.permute.xlu1 %11230 }
 0x270   : > { %16868 = vst [vmem:[#allocation51_spill] sm:$0xff] %v12841_v7  ;;  %v1082_v9 = vpop.permute.xlu0 %1081  ;;  %v10709_v7 = vpack.c.bf16 %v11183_v56, %v11182_v6  ;;  %v11213_v56 = vunpack.i.h.bf16 %v11211_v8  ;;  %v11212_v6 = vunpack.i.l.bf16 %v11211_v8 }
 0x271   : > { %10228 = vmatprep.mubr.msk.f32.mxu0 %vm550_vm1, %v1082_v9  ;;  %6043 = vrot.lane.b32.xlu1 %v12338_v22, %s12038_s27 }
 0x272   : > { %6314 = vrot.lane.b32.xlu0 %v12403_v36, %s12038_s27 }
 0x273   : > { %v12848_v54 = vpop.permute.xlu1 %11235 }
 0x274   : > { %16869 = vst [vmem:[#allocation52_spill] sm:$0xff] %v12848_v54  ;;  %v12852_v20 = vpop.permute.xlu0 %3284 }
 0x275   : > { %6134 = vrot.lane.b32.xlu1 %v12360_v27, %s12038_s27 }
 0x276   : > { %11340 = vrot.lane.b32.xlu0 %v12461_v50, %s12037_s23 }
 0x277   : > { %v1084_v9 = vpop.permute.xlu1 %1083 }
 0x278   : > { %v12858_v59 = vpop.permute.xlu0 %11245  ;;  %10229 = vmatmul.mubr.msk.f32.vlgmr.msra.gmra.mrb[18].mxu0 %vm550_vm1, %v1084_v9 }
 0x279   : > { %10702 = vmatpush3.bf16.xpose.msk.msra.mxu0 %vm12348_vm2, %v10697_v15  ;;  %10242 = vmatprep.mubr.msk.f32.mxu0 %vm550_vm1, %v12588_v60  ;;  %v10721_v15 = vpack.c.bf16 %v11213_v56, %v11212_v6 }
 0x27a   : > { %10711 = vmatprep.subr.msk.bf16.mxu0 %vm12348_vm2, %v10709_v7  ;;  %11335 = vrot.lane.b32.xlu1 %v12441_v45, %s12037_s23 }
 0x27b   : > { %6405 = vrot.lane.b32.xlu0 %v12419_v40, %s12038_s27  ;;  %v12871_v29 = vpop.permute.xlu1 %3286 }
 0x27c   : > { %v12873_v9 = vpop.permute.xlu0 %11250 }
 0x27e   : > { %6225 = vrot.lane.b32.xlu1 %v12381_v31, %s12038_s27 }
 0x27f   : > { %6496 = vrot.lane.b32.xlu0 %v12435_v44, %s12038_s27  ;;  %v2184_v60 = vpop.permute.xlu1 %2183 }
 0x280   : > { %v12879_v54 = vpop.permute.xlu0 %4294  ;;  %10243 = vmatmul.mubr.msk.f32.vlgmr.msra.gmra.mrb[20].mxu0 %vm550_vm1, %v12566_v55 }
 0x281   : > { %16870 = vst [vmem:[#allocation53_spill] sm:$0xff] %v12879_v54  ;;  %10714 = vmatpush3.bf16.xpose.msk.msra.mxu0 %vm12348_vm2, %v10709_v7  ;;  %10256 = vmatprep.mubr.msk.f32.mxu0 %vm550_vm1, %v12698_v21 }
 0x282   : > { %10723 = vmatprep.subr.msk.bf16.mxu0 %vm12348_vm2, %v10721_v15  ;;  %6316 = vrot.lane.b32.xlu1 %v12397_v35, %s12038_s27 }
 0x283   : > { %11350 = vrot.lane.b32.xlu0 %v12356_v26, %s12039_s0  ;;  %v11241_v8 = vpop.permute.xlu1 %11240 }
 0x284   : > { %v11243_v56 = vunpack.i.h.bf16 %v11241_v8  ;;  %v11242_v6 = vunpack.i.l.bf16 %v11241_v8  ;;  %v12893_v55 = vpop.permute.xlu0 %11255 }
 0x286   : > { %v10733_v54 = vpack.c.bf16 %v11243_v56, %v11242_v6  ;;  %11345 = vrot.lane.b32.xlu1 %v12496_v53, %s12037_s23  ;;  %v11158_v56 = vunpack.i.h.bf16 %v12596_v62 }
 0x287   : > { %6587 = vrot.lane.b32.xlu0 %v12453_v48, %s12038_s27  ;;  %v12899_v21 = vpop.permute.xlu1 %1172 }
 0x288   : > { %v12901_v7 = vpop.permute.xlu0 %4385  ;;  %10257 = vmatmul.mubr.msk.f32.vlgmr.msra.gmra.mrb[22].mxu0 %vm550_vm1, %v12656_v12  ;;  %v11157_v12 = vunpack.i.l.bf16 %v12596_v62 }
 0x289   : > { %16871 = vst [vmem:[#allocation54_spill] sm:$0xff] %v12901_v7  ;;  %10726 = vmatpush3.bf16.xpose.msk.msra.mxu0 %vm12348_vm2, %v10721_v15  ;;  %10270 = vmatprep.mubr.msk.f32.mxu0 %vm550_vm1, %v12795_v49 }
 0x28a   : > { %10735 = vmatprep.subr.msk.bf16.mxu0 %vm12348_vm2, %v10733_v54  ;;  %6407 = vrot.lane.b32.xlu1 %v12413_v39, %s12038_s27  ;;  %v10745_v15 = vpack.c.bf16 %v11158_v56, %v11157_v12  ;;  %v11188_v56 = vunpack.i.h.bf16 %v12684_v18 }
 0x28b   : > { %6678 = vrot.lane.b32.xlu0 %v12488_v52, %s12038_s27  ;;  %v12915_v8 = vpop.permute.xlu1 %4205 }
 0x28c   : > { %v12919_v6 = vpop.permute.xlu0 %11265 }
 0x28e   : > { %6498 = vrot.lane.b32.xlu1 %v12429_v43, %s12038_s27 }
 0x28f   : > { %11360 = vrot.lane.b32.xlu0 %v12391_v33, %s12039_s0  ;;  %v12925_v49 = vpop.permute.xlu1 %4296 }
 0x290   : > { %16872 = vst [vmem:[#allocation55_spill] sm:$0xff] %v12925_v49  ;;  %v12927_v7 = vpop.permute.xlu0 %4940  ;;  %10271 = vmatmul.mubr.msk.f32.vlgmr.msra.gmra.mrb[24].mxu0 %vm550_vm1, %v12744_v14  ;;  %v11187_v14 = vunpack.i.l.bf16 %v12684_v18 }
 0x291   : > { %10738 = vmatpush3.bf16.xpose.msk.msra.mxu0 %vm12348_vm2, %v10733_v54  ;;  %10284 = vmatprep.mubr.msk.f32.mxu0 %vm550_vm1, %v2184_v60 }
 0x292   : > { %10747 = vmatprep.subr.msk.bf16.mxu0 %vm12348_vm2, %v10745_v15  ;;  %11355 = vrot.lane.b32.xlu1 %v12376_v30, %s12039_s0  ;;  %v10757_v60 = vpack.c.bf16 %v11188_v56, %v11187_v14  ;;  %v11218_v56 = vunpack.i.h.bf16 %v12767_v34 }
 0x293   : > { %7142 = vrot.lane.b32.xlu0 %v12344_v23, %s12040_s2  ;;  %v12940_v62 = vpop.permute.xlu1 %11260 }
 0x294   : > { %v12944_v12 = vpop.permute.xlu0 %5031 }
 0x295   : > { %16873 = vst [vmem:[#allocation56_spill] sm:$0xff] %v12944_v12 }
 0x296   : > { %6589 = vrot.lane.b32.xlu1 %v12447_v47, %s12038_s27 }
 0x297   : > { %7233 = vrot.lane.b32.xlu0 %v12366_v28, %s12040_s2  ;;  %v12950_v54 = vpop.permute.xlu1 %4387 }
 0x298   : > { %v12952_v49 = vpop.permute.xlu0 %11275  ;;  %10285 = vmatmul.mubr.msk.f32.vlgmr.msra.gmra.mrb[26].mxu0 %vm550_vm1, %v12835_v11  ;;  %v11217_v11 = vunpack.i.l.bf16 %v12767_v34 }
 0x299   : > { %10750 = vmatpush3.bf16.xpose.msk.msra.mxu0 %vm12348_vm2, %v10745_v15  ;;  %10298 = vmatprep.mubr.msk.f32.mxu0 %vm550_vm1, %v12602_v63 }
 0x29a   : > { %10759 = vmatprep.subr.msk.bf16.mxu0 %vm12348_vm2, %v10757_v60  ;;  %6680 = vrot.lane.b32.xlu1 %v12466_v51, %s12038_s27  ;;  %v10769_v15 = vpack.c.bf16 %v11218_v56, %v11217_v11  ;;  %v11248_v56 = vunpack.i.h.bf16 %v12858_v59 }
 0x29b   : > { %11370 = vrot.lane.b32.xlu0 %v12425_v42, %s12039_s0  ;;  %v12966_v18 = vpop.permute.xlu1 %11270 }
 0x29c   : > { %16874 = vst [vmem:[#allocation57_spill] sm:$0xff] %v12966_v18  ;;  %v12970_v14 = vpop.permute.xlu0 %5122 }
 0x29e   : > { %11365 = vrot.lane.b32.xlu1 %v12407_v37, %s12039_s0 }
 0x29f   : > { %7324 = vrot.lane.b32.xlu0 %v12387_v32, %s12040_s2  ;;  %v12976_v63 = vpop.permute.xlu1 %4942 }
 0x2a0   : > { %v12978_v12 = vpop.permute.xlu0 %5213  ;;  %10299 = vmatmul.mubr.msk.f32.vlgmr.msra.gmra.mrb[28].mxu0 %vm550_vm1, %v12572_v57  ;;  %v11247_v57 = vunpack.i.l.bf16 %v12858_v59 }
 0x2a1   : > { %16875 = vst [vmem:[#allocation58_spill] sm:$0xff] %v12978_v12  ;;  %10762 = vmatpush3.bf16.xpose.msk.msra.mxu0 %vm12348_vm2, %v10757_v60  ;;  %10312 = vmatprep.mubr.msk.f32.mxu0 %vm550_vm1, %v12669_v16  ;;  %v11198_v60 = vunpack.i.h.bf16 %v12721_v58  ;;  %v11197_v12 = vunpack.i.l.bf16 %v12721_v58  ;;  %v11162_v58 = vunpack.i.l.bf16 %v12610_v1 }
 0x2a2   : > { %10771 = vmatprep.subr.msk.bf16.mxu0 %vm12348_vm2, %v10769_v15  ;;  %7144 = vrot.lane.b32.xlu1 %v12338_v22, %s12040_s2  ;;  %v10781_v18 = vpack.c.bf16 %v11248_v56, %v11247_v57 }
 0x2a3   : > { %7415 = vrot.lane.b32.xlu0 %v12403_v36, %s12040_s2  ;;  %v12992_v34 = vpop.permute.xlu1 %5033 }
 0x2a4   : > { %16876 = vst [vmem:[#allocation59_spill] sm:$0xff] %v12992_v34  ;;  %v12996_v11 = vpop.permute.xlu0 %3377 }
 0x2a6   : > { %7235 = vrot.lane.b32.xlu1 %v12360_v27, %s12040_s2 }
 0x2a7   : > { %11380 = vrot.lane.b32.xlu0 %v12461_v50, %s12039_s0  ;;  %v13002_v16 = vpop.permute.xlu1 %2276 }
 0x2a8   : > { %10313 = vmatmul.mubr.msk.f32.vlgmr.msra.gmra.mrb[30].mxu0 %vm550_vm1, %v12682_v17  ;;  %v1171_v34 = vpop.permute.xlu0 %1170  ;;  %v11163_v17 = vunpack.i.h.bf16 %v12610_v1 }
 0x2a9   : > { %10235 = vmatprep.mubr.msk.f32.mxu1 %vm550_vm1, %v1171_v34  ;;  %10774 = vmatpush3.bf16.xpose.msk.msra.mxu0 %vm12348_vm2, %v10769_v15  ;;  %v10715_v34 = vpack.c.bf16 %v11198_v60, %v11197_v12  ;;  %v11228_v12 = vunpack.i.h.bf16 %v12827_v2  ;;  %v11227_v15 = vunpack.i.l.bf16 %v12827_v2  ;;  %v11192_v2 = vunpack.i.l.bf16 %v12713_v38 }
 0x2aa   : > { %10326 = vmatprep.mubr.msk.f32.mxu0 %vm550_vm1, %v12759_v46  ;;  %10783 = vmatprep.subr.msk.bf16.mxu0 %vm12348_vm2, %v10781_v18  ;;  %v11222_v60 = vunpack.i.l.bf16 %v12775_v25 }
 0x2ab   : > { %11375 = vrot.lane.b32.xlu1 %v12441_v45, %s12039_s0  ;;  %7506 = vrot.lane.b32.xlu0 %v12419_v40, %s12040_s2  ;;  %v13019_v59 = vpop.permute.xlu1 %11280 }
 0x2ac   : > { %10236 = vmatmul.mubr.msk.f32.vlgmr.msra.gmra.mrb[10].mxu1 %vm550_vm1, %v12899_v21  ;;  %v13025_v46 = vpop.permute.xlu0 %2274  ;;  %v10793_v21 = vpack.c.bf16 %v11163_v17, %v11162_v58  ;;  %v11172_v58 = vunpack.i.l.bf16 %v12662_v13 }
 0x2ad   : > { %10708 = vmatpush3.bf16.xpose.msk.msra.mxu1 %vm12348_vm2, %v12812_v19  ;;  %10249 = vmatprep.mubr.msk.f32.mxu1 %vm550_vm1, %v12618_v4 }
 0x2ae   : > { %10717 = vmatprep.subr.msk.bf16.mxu1 %vm12348_vm2, %v10715_v34 }
 0x2af   : > { %7326 = vrot.lane.b32.xlu1 %v12381_v31, %s12040_s2  ;;  %7597 = vrot.lane.b32.xlu0 %v12435_v44, %s12040_s2  ;;  %v13038_v1 = vpop.permute.xlu1 %5124 }
 0x2b0   : > { %10327 = vmatmul.mubr.msk.f32.vlgmr.msra.gmra.mrb[32].mxu0 %vm550_vm1, %v12787_v61  ;;  %v11286_v4 = vpop.permute.xlu0 %11285  ;;  %v11193_v61 = vunpack.i.h.bf16 %v12713_v38 }
 0x2b1   : > { %10786 = vmatpush3.bf16.xpose.msk.msra.mxu0 %vm12348_vm2, %v10781_v18  ;;  %10340 = vmatprep.mubr.msk.f32.mxu0 %vm550_vm1, %v12852_v20  ;;  %v10727_v18 = vpack.c.bf16 %v11228_v12, %v11227_v15  ;;  %v11288_v38 = vunpack.i.h.bf16 %v11286_v4  ;;  %v11287_v56 = vunpack.i.l.bf16 %v11286_v4  ;;  %v16878_v12 = vld [vmem:[#allocation40_spill] sm:$0xff]  ;;  %v11253_v15 = vunpack.i.h.bf16 %v12873_v9 }
 0x2b2   : > { %10795 = vmatprep.subr.msk.bf16.mxu0 %vm12348_vm2, %v10793_v21  ;;  %v11252_v4 = vunpack.i.l.bf16 %v12873_v9  ;;  %v16880_v9 = vld [vmem:[#allocation45_spill] sm:$0xff] }
 0x2b3   : > { %7417 = vrot.lane.b32.xlu1 %v12397_v35, %s12040_s2  ;;  %11390 = vrot.lane.b32.xlu0 %v12356_v26, %s12041_s6  ;;  %v13054_v19 = vpop.permute.xlu1 %4478  ;;  %v10739_v17 = vpack.c.bf16 %v11288_v38, %v11287_v56  ;;  %v16881_v56 = vld [vmem:[#allocation39_spill] sm:$0xff] }
 0x2b4   : > { %10250 = vmatmul.mubr.msk.f32.vlgmr.msra.gmra.mrb[12].mxu1 %vm550_vm1, %v12624_v5  ;;  %v13060_v20 = vpop.permute.xlu0 %11295  ;;  %v10805_v5 = vpack.c.bf16 %v11193_v61, %v11192_v2  ;;  %v16879_v61 = vld [vmem:[#allocation49_spill] sm:$0xff]  ;;  %v10829_v38 = vpack.c.bf16 %v11253_v15, %v11252_v4 }
 0x2b5   : > { %10720 = vmatpush3.bf16.xpose.msk.msra.mxu1 %vm12348_vm2, %v10715_v34  ;;  %10263 = vmatprep.mubr.msk.f32.mxu1 %vm550_vm1, %v12715_v41 }
 0x2b6   : > { %10729 = vmatprep.subr.msk.bf16.mxu1 %vm12348_vm2, %v10727_v18 }
 0x2b7   : > { %11385 = vrot.lane.b32.xlu1 %v12496_v53, %s12039_s0  ;;  %7688 = vrot.lane.b32.xlu0 %v12453_v48, %s12040_s2  ;;  %v13072_v26 = vpop.permute.xlu1 %3375 }
 0x2b8   : > { %10341 = vmatmul.mubr.msk.f32.vlgmr.msra.gmra.mrb[34].mxu0 %vm550_vm1, %v12871_v29  ;;  %v13076_v57 = vpop.permute.xlu0 %5304  ;;  %v11223_v29 = vunpack.i.h.bf16 %v12775_v25 }
 0x2b9   : > { %10798 = vmatpush3.bf16.xpose.msk.msra.mxu0 %vm12348_vm2, %v10793_v21  ;;  %10354 = vmatprep.mubr.msk.f32.mxu0 %vm550_vm1, %v12604_v0  ;;  %v16877_v21 = vld [vmem:[#allocation33_spill] sm:$0xff] }
 0x2ba   : > { %10807 = vmatprep.subr.msk.bf16.mxu0 %vm12348_vm2, %v10805_v5  ;;  %v10817_v34 = vpack.c.bf16 %v11223_v29, %v11222_v60  ;;  %v16882_v29 = vld [vmem:[#allocation47_spill] sm:$0xff] }
 0x2bb   : > { %7508 = vrot.lane.b32.xlu1 %v12413_v39, %s12040_s2  ;;  %7779 = vrot.lane.b32.xlu0 %v12488_v52, %s12040_s2  ;;  %v13088_v41 = vpop.permute.xlu1 %11290 }
 0x2bc   : > { %10264 = vmatmul.mubr.msk.f32.vlgmr.msra.gmra.mrb[14].mxu1 %vm550_vm1, %v12734_v3  ;;  %v13094_v0 = vpop.permute.xlu0 %5395  ;;  %v11173_v3 = vunpack.i.h.bf16 %v12662_v13 }
 0x2bd   : > { %10732 = vmatpush3.bf16.xpose.msk.msra.mxu1 %vm12348_vm2, %v10727_v18  ;;  %10277 = vmatprep.mubr.msk.f32.mxu1 %vm550_vm1, %v12810_v10  ;;  %v11203_v18 = vunpack.i.h.bf16 %v16880_v9 }
 0x2be   : > { %10741 = vmatprep.subr.msk.bf16.mxu1 %vm12348_vm2, %v10739_v17  ;;  %v10751_v13 = vpack.c.bf16 %v11173_v3, %v11172_v58  ;;  %v11258_v3 = vunpack.i.h.bf16 %v12893_v55  ;;  %v11257_v58 = vunpack.i.l.bf16 %v12893_v55 }
 0x2bf   : > { %7599 = vrot.lane.b32.xlu1 %v12429_v43, %s12040_s2  ;;  %11400 = vrot.lane.b32.xlu0 %v12391_v33, %s12041_s6  ;;  %v13106_v25 = vpop.permute.xlu1 %5215 }
 0x2c0   : > { %10355 = vmatmul.mubr.msk.f32.vlgmr.msra.gmra.mrb[36].mxu0 %vm550_vm1, %v16877_v21  ;;  %v13112_v10 = vpop.permute.xlu0 %11300 }
 0x2c1   : > { %10810 = vmatpush3.bf16.xpose.msk.msra.mxu0 %vm12348_vm2, %v10805_v5  ;;  %10368 = vmatprep.mubr.msk.f32.mxu0 %vm550_vm1, %v16878_v12  ;;  %v11202_v5 = vunpack.i.l.bf16 %v16880_v9  ;;  %v16883_v12 = vld [vmem:[#allocation38_spill] sm:$0xff] }
 0x2c2   : > { %10819 = vmatprep.subr.msk.bf16.mxu0 %vm12348_vm2, %v10817_v34 }
 0x2c3   : > { %11395 = vrot.lane.b32.xlu1 %v12376_v30, %s12041_s6  ;;  %8243 = vrot.lane.b32.xlu0 %v12344_v23, %s12042_s28  ;;  %v13124_v33 = vpop.permute.xlu1 %5306 }
 0x2c4   : > { %10278 = vmatmul.mubr.msk.f32.vlgmr.msra.gmra.mrb[16].mxu1 %vm550_vm1, %v16879_v61  ;;  %v13130_v2 = vpop.permute.xlu0 %5486 }
 0x2c5   : > { %10744 = vmatpush3.bf16.xpose.msk.msra.mxu1 %vm12348_vm2, %v10739_v17  ;;  %10291 = vmatprep.mubr.msk.f32.mxu1 %vm550_vm1, %v13025_v46  ;;  %v10763_v17 = vpack.c.bf16 %v11203_v18, %v11202_v5  ;;  %v10841_v18 = vpack.c.bf16 %v11258_v3, %v11257_v58  ;;  %v11268_v58 = vunpack.i.h.bf16 %v12919_v6 }
 0x2c6   : > { %10753 = vmatprep.subr.msk.bf16.mxu1 %vm12348_vm2, %v10751_v13 }
 0x2c7   : > { %7690 = vrot.lane.b32.xlu1 %v12447_v47, %s12040_s2  ;;  %8334 = vrot.lane.b32.xlu0 %v12366_v28, %s12042_s28  ;;  %v13142_v30 = vpop.permute.xlu1 %5397 }
 0x2c8   : > { %10369 = vmatmul.mubr.msk.f32.vlgmr.msra.gmra.mrb[38].mxu0 %vm550_vm1, %v16881_v56  ;;  %v13148_v46 = vpop.permute.xlu0 %4476 }
 0x2c9   : > { %10822 = vmatpush3.bf16.xpose.msk.msra.mxu0 %vm12348_vm2, %v10817_v34  ;;  %10382 = vmatprep.mubr.msk.f32.mxu0 %vm550_vm1, %v16882_v29 }
 0x2ca   : > { %10831 = vmatprep.subr.msk.bf16.mxu0 %vm12348_vm2, %v10829_v38 }
 0x2cb   : > { %7781 = vrot.lane.b32.xlu1 %v12466_v51, %s12040_s2  ;;  %11410 = vrot.lane.b32.xlu0 %v12425_v42, %s12041_s6  ;;  %v13160_v60 = vpop.permute.xlu1 %11305 }
 0x2cc   : > { %10292 = vmatmul.mubr.msk.f32.vlgmr.msra.gmra.mrb[18].mxu1 %vm550_vm1, %v13002_v16  ;;  %v13166_v34 = vpop.permute.xlu0 %5577  ;;  %v10188_v21 = vpop.f32.mrb[0].mxu1 }
 0x2cd   : > { %10756 = vmatpush3.bf16.xpose.msk.msra.mxu1 %vm12348_vm2, %v10751_v13  ;;  %10305 = vmatprep.mubr.msk.f32.mxu1 %vm550_vm1, %v16883_v12  ;;  %v1259_v42 = vsel %vm1257_vm3, %v10188_v21, -inf  ;;  %v625_v15 = vpop.f32.mrb[1].mxu1  ;;  %v16884_v13 = vld [vmem:[#allocation51_spill] sm:$0xff]  ;;  %v16886_v12 = vld [vmem:[#allocation34_spill] sm:$0xff] }
 0x2ce   : > { %10765 = vmatprep.subr.msk.bf16.mxu1 %vm12348_vm2, %v10763_v17  ;;  %v1258_v55 = vsel %vm1257_vm3, %v625_v15, -inf  ;;  %v11233_v61 = vunpack.i.h.bf16 %v16884_v13  ;;  %v11232_v9 = vunpack.i.l.bf16 %v16884_v13 }
 0x2cf   : > { %v1260_v4 = vmax.f32 %v1258_v55, %v1259_v42  ;;  %11405 = vrot.lane.b32.xlu1 %v12407_v37, %s12041_s6  ;;  %8425 = vrot.lane.b32.xlu0 %v12387_v32, %s12042_s28  ;;  %v13180_v16 = vpop.permute.xlu1 %11310  ;;  %v16885_v37 = vld [vmem:[#allocation54_spill] sm:$0xff] }
 0x2d0   : > { %10383 = vmatmul.mubr.msk.f32.vlgmr.msra.gmra.mrb[40].mxu0 %vm550_vm1, %v12915_v8  ;;  %v13186_v5 = vpop.permute.xlu0 %11320  ;;  %v10775_v3 = vpack.c.bf16 %v11233_v61, %v11232_v9  ;;  %v11293_v9 = vunpack.i.h.bf16 %v13088_v41 }
 0x2d1   : > { %v1261_v56 = vrot.slane %v1260_v4, 4  ;;  %10834 = vmatpush3.bf16.xpose.msk.msra.mxu0 %vm12348_vm2, %v10829_v38  ;;  %10396 = vmatprep.mubr.msk.f32.mxu0 %vm550_vm1, %v16885_v37  ;;  %v11267_v38 = vunpack.i.l.bf16 %v12919_v6 }
 0x2d2   : > { %10843 = vmatprep.subr.msk.bf16.mxu0 %vm12348_vm2, %v10841_v18 }
 0x2d3   : > { %v1262_v29 = vmax.f32 %v1260_v4, %v1261_v56  ;;  %8245 = vrot.lane.b32.xlu1 %v12338_v22, %s12042_s28  ;;  %8516 = vrot.lane.b32.xlu0 %v12403_v36, %s12042_s28  ;;  %v13198_v8 = vpop.permute.xlu1 %11315  ;;  %v16887_v4 = vld [vmem:[#allocation44_spill] sm:$0xff]  ;;  %v10853_v61 = vpack.c.bf16 %v11268_v58, %v11267_v38  ;;  %v16888_v58 = vld [vmem:[#allocation41_spill] sm:$0xff] }
 0x2d4   : > { %10306 = vmatmul.mubr.msk.f32.vlgmr.msra.gmra.mrb[20].mxu1 %vm550_vm1, %v16886_v12  ;;  %v13204_v42 = vpop.permute.xlu0 %6041 }
 0x2d5   : > { %v1263_v55 = vrot.slane %v1262_v29, 2  ;;  %10768 = vmatpush3.bf16.xpose.msk.msra.mxu1 %vm12348_vm2, %v10763_v17  ;;  %10319 = vmatprep.mubr.msk.f32.mxu1 %vm550_vm1, %v16887_v4  ;;  %v11292_v17 = vunpack.i.l.bf16 %v13088_v41  ;;  %v11278_v41 = vunpack.i.h.bf16 %v12952_v49 }
 0x2d6   : > { %10777 = vmatprep.subr.msk.bf16.mxu1 %vm12348_vm2, %v10775_v3 }
 0x2d7   : > { %v1264_v13 = vmax.f32 %v1262_v29, %v1263_v55  ;;  %8336 = vrot.lane.b32.xlu1 %v12360_v27, %s12042_s28  ;;  %11420 = vrot.lane.b32.xlu0 %v12461_v50, %s12041_s6  ;;  %v13216_v6 = vpop.permute.xlu1 %5488  ;;  %v11277_v29 = vunpack.i.l.bf16 %v12952_v49 }
 0x2d8   : > { %10397 = vmatmul.mubr.msk.f32.vlgmr.msra.gmra.mrb[42].mxu0 %vm550_vm1, %v12950_v54  ;;  %v13222_v56 = vpop.permute.xlu0 %6132 }
 0x2d9   : > { %v1265_v37 = vrot.slane %v1264_v13, 1  ;;  %10846 = vmatpush3.bf16.xpose.msk.msra.mxu0 %vm12348_vm2, %v10841_v18  ;;  %10410 = vmatprep.mubr.msk.f32.mxu0 %vm550_vm1, %v12927_v7  ;;  %v10787_v18 = vpack.c.bf16 %v11293_v9, %v11292_v17 }
 0x2da   : > { %10855 = vmatprep.subr.msk.bf16.mxu0 %vm12348_vm2, %v10853_v61 }
 0x2db   : > { %v1266_v50 = vmax.f32 %v1264_v13, %v1265_v37  ;;  %11415 = vrot.lane.b32.xlu1 %v12441_v45, %s12041_s6  ;;  %8607 = vrot.lane.b32.xlu0 %v12419_v40, %s12042_s28  ;;  %v13234_v54 = vpop.permute.xlu1 %5579  ;;  %v16889_v45 = vld [vmem:[#allocation50_spill] sm:$0xff]  ;;  %v10865_v13 = vpack.c.bf16 %v11278_v41, %v11277_v29  ;;  %v11298_v37 = vunpack.i.h.bf16 %v13060_v20 }
 0x2dc   : > { %10320 = vmatmul.mubr.msk.f32.vlgmr.msra.gmra.mrb[22].mxu1 %vm550_vm1, %v16888_v58  ;;  %v13240_v7 = vpop.permute.xlu0 %11330  ;;  %v16892_v41 = vld [vmem:[#allocation46_spill] sm:$0xff] }
 0x2dd   : > { %v1330_v38 = vsub.f32 %v625_v15, %v1266_v50  ;;  %v1331_v12 = vsub.f32 %v10188_v21, %v1266_v50  ;;  %10780 = vmatpush3.bf16.xpose.msk.msra.mxu1 %vm12348_vm2, %v10775_v3  ;;  %10333 = vmatprep.mubr.msk.f32.mxu1 %vm550_vm1, %v16889_v45  ;;  %v16890_v21 = vld [vmem:[#allocation36_spill] sm:$0xff]  ;;  %v11208_v29 = vunpack.i.h.bf16 %v16892_v41  ;;  %v11207_v58 = vunpack.i.l.bf16 %v16892_v41 }
 0x2de   : > { %10789 = vmatprep.subr.msk.bf16.mxu1 %vm12348_vm2, %v10787_v18  ;;  %v11178_v15 = vunpack.i.h.bf16 %v16890_v21  ;;  %v11177_v3 = vunpack.i.l.bf16 %v16890_v21  ;;  %v16891_v50 = vld [vmem:[#allocation48_spill] sm:$0xff]  ;;  %v11302_v45 = vunpack.i.l.bf16 %v13112_v10 }
 0x2df   : > { %v1346_v55 = vmul.f32 1.442695, %v1330_v38  ;;  %v1348_v4 = vmul.f32 1.442695, %v1331_v12  ;;  %8427 = vrot.lane.b32.xlu1 %v12381_v31, %s12042_s28  ;;  %8698 = vrot.lane.b32.xlu0 %v12435_v44, %s12042_s28  ;;  %v13252_v49 = vpop.permute.xlu1 %11325  ;;  %v10811_v12 = vpack.c.bf16 %v11208_v29, %v11207_v58 }
 0x2e0   : > { %10411 = vmatmul.mubr.msk.f32.vlgmr.msra.gmra.mrb[44].mxu0 %vm550_vm1, %v12976_v63  ;;  %v13258_v9 = vpop.permute.xlu0 %6223  ;;  %v10799_v17 = vpack.c.bf16 %v11178_v15, %v11177_v3  ;;  %v16893_v15 = vld [vmem:[#allocation37_spill] sm:$0xff] }
 0x2e1   : > { %11429 = vpow2.f32 %v1346_v55  ;;  %10858 = vmatpush3.bf16.xpose.msk.msra.mxu0 %vm12348_vm2, %v10853_v61  ;;  %10424 = vmatprep.mubr.msk.f32.mxu0 %vm550_vm1, %v12970_v14  ;;  %v11297_v61 = vunpack.i.l.bf16 %v13060_v20 }
 0x2e2   : > { %11431 = vpow2.f32 %v1348_v4  ;;  %10867 = vmatprep.subr.msk.bf16.mxu0 %vm12348_vm2, %v10865_v13 }
 0x2e3   : > { %8518 = vrot.lane.b32.xlu1 %v12397_v35, %s12042_s28  ;;  %8789 = vrot.lane.b32.xlu0 %v12453_v48, %s12042_s28  ;;  %v13270_v63 = vpop.permute.xlu1 %6043  ;;  %v10877_v38 = vpack.c.bf16 %v11298_v37, %v11297_v61 }
 0x2e4   : > { %10334 = vmatmul.mubr.msk.f32.vlgmr.msra.gmra.mrb[24].mxu1 %vm550_vm1, %v16891_v50  ;;  %v13276_v14 = vpop.permute.xlu0 %6314 }
 0x2e5   : > { %10792 = vmatpush3.bf16.xpose.msk.msra.mxu1 %vm12348_vm2, %v10787_v18  ;;  %10347 = vmatprep.mubr.msk.f32.mxu1 %vm550_vm1, %v13072_v26 }
 0x2e6   : > { %10801 = vmatprep.subr.msk.bf16.mxu1 %vm12348_vm2, %v10799_v17 }
 0x2e7   : > { %11425 = vrot.lane.b32.xlu1 %v12496_v53, %s12041_s6  ;;  %8880 = vrot.lane.b32.xlu0 %v12488_v52, %s12042_s28  ;;  %v13288_v20 = vpop.permute.xlu1 %6134  ;;  %v16895_v52 = vld [vmem:[#allocation35_spill] sm:$0xff] }
 0x2e8   : > { %10425 = vmatmul.mubr.msk.f32.vlgmr.msra.gmra.mrb[46].mxu0 %vm550_vm1, %v13038_v1  ;;  %v13294_v26 = vpop.permute.xlu0 %11340  ;;  %v11303_v1 = vunpack.i.h.bf16 %v13112_v10 }
 0x2e9   : > { %10870 = vmatpush3.bf16.xpose.msk.msra.mxu0 %vm12348_vm2, %v10865_v13  ;;  %10438 = vmatprep.mubr.msk.f32.mxu0 %vm550_vm1, %v13076_v57 }
 0x2ea   : > { %10879 = vmatprep.subr.msk.bf16.mxu0 %vm12348_vm2, %v10877_v38  ;;  %v10889_v29 = vpack.c.bf16 %v11303_v1, %v11302_v45 }
 0x2eb   : > { %v13302_v53 = vpop.eup %11429  ;;  %8609 = vrot.lane.b32.xlu1 %v12413_v39, %s12042_s28 }
 0x2ec   : > { %v13306_v18 = vpop.eup %11431  ;;  %v1378_v55 = vsel %vm1257_vm3, %v13302_v53, 0.0  ;;  %10348 = vmatmul.mubr.msk.f32.vlgmr.msra.gmra.mrb[26].mxu1 %vm550_vm1, %v12996_v11  ;;  %v13314_v57 = vpop.permute.xlu1 %11335 }
 0x2ed   : > { %v13316_v4 = vpop.f32.mrb[2].mxu1  ;;  %v1379_v21 = vsel %vm1257_vm3, %v13306_v18, 0.0  ;;  %10804 = vmatpush3.bf16.xpose.msk.msra.mxu1 %vm12348_vm2, %v10799_v17  ;;  %10361 = vmatprep.mubr.msk.f32.mxu1 %vm550_vm1, %v16893_v15  ;;  %v13324_v10 = vpop.permute.xlu0 %6405  ;;  %v16894_v17 = vld [vmem:[#allocation52_spill] sm:$0xff] }
 0x2ee   : > { %v1268_v3 = vsel %vm1257_vm3, %v13316_v4, -inf  ;;  %v13328_v13 = vpop.f32.mrb[3].mxu1  ;;  %v1380_v11 = vadd.f32 %v1379_v21, %v1378_v55  ;;  %10813 = vmatprep.subr.msk.bf16.mxu1 %vm12348_vm2, %v10811_v12  ;;  %v11238_v50 = vunpack.i.h.bf16 %v16894_v17  ;;  %v11237_v41 = vunpack.i.l.bf16 %v16894_v17 }
 0x2ef   : > { %v1267_v37 = vsel %vm1257_vm3, %v13328_v13, -inf  ;;  %8700 = vrot.lane.b32.xlu1 %v12429_v43, %s12042_s28  ;;  %v11322_v17 = vunpack.i.l.bf16 %v13186_v5  ;;  %v11332_v43 = vunpack.i.l.bf16 %v13240_v7 }
 0x2f0   : > { %v1269_v61 = vmax.f32 %v1267_v37, %v1268_v3  ;;  %v1381_v58 = vrot.slane %v1380_v11, 4  ;;  %v13338_v15 = vpop.permute.xlu1 %6225  ;;  %10439 = vmatmul.mubr.msk.f32.vlgmr.msra.gmra.mrb[48].mxu0 %vm550_vm1, %v13124_v33  ;;  %v10823_v45 = vpack.c.bf16 %v11238_v50, %v11237_v41  ;;  %v11323_v33 = vunpack.i.h.bf16 %v13186_v5 }
 0x2f1   : > { %v13342_v21 = vpop.permute.xlu0 %6496  ;;  %10882 = vmatpush3.bf16.xpose.msk.msra.mxu0 %vm12348_vm2, %v10877_v38  ;;  %10452 = vmatprep.mubr.msk.f32.mxu0 %vm550_vm1, %v13130_v2  ;;  %v11313_v5 = vunpack.i.h.bf16 %v13180_v16  ;;  %v11312_v41 = vunpack.i.l.bf16 %v13180_v16 }
 0x2f2   : > { %v1270_v55 = vrot.slane %v1269_v61, 4  ;;  %v1382_v3 = vadd.f32 %v1381_v58, %v1380_v11  ;;  %10891 = vmatprep.subr.msk.bf16.mxu0 %vm12348_vm2, %v10889_v29  ;;  %v16896_v11 = vld [vmem:[#allocation42_spill] sm:$0xff] }
 0x2f3   : > { %8791 = vrot.lane.b32.xlu1 %v12447_v47, %s12042_s28  ;;  %v16897_v47 = vld [vmem:[#allocation43_spill] sm:$0xff] }
 0x2f4   : > { %v1271_v1 = vmax.f32 %v1269_v61, %v1270_v55  ;;  %v1383_v37 = vrot.slane %v1382_v3, 2  ;;  %10362 = vmatmul.mubr.msk.f32.vlgmr.msra.gmra.mrb[28].mxu1 %vm550_vm1, %v16895_v52  ;;  %v13356_v38 = vpop.permute.xlu1 %6316 }
 0x2f5   : > { %10816 = vmatpush3.bf16.xpose.msk.msra.mxu1 %vm12348_vm2, %v10811_v12  ;;  %10375 = vmatprep.mubr.msk.f32.mxu1 %vm550_vm1, %v16896_v11  ;;  %v13362_v61 = vpop.permute.xlu0 %11350  ;;  %v10901_v12 = vpack.c.bf16 %v11323_v33, %v11322_v17  ;;  %v10835_v17 = vpack.c.bf16 %v11313_v5, %v11312_v41  ;;  %v11263_v41 = vunpack.i.h.bf16 %v12940_v62 }
 0x2f6   : > { %v1272_v2 = vrot.slane %v1271_v1, 2  ;;  %10825 = vmatprep.subr.msk.bf16.mxu1 %vm12348_vm2, %v10823_v45  ;;  %v1384_v50 = vadd.f32 %v1383_v37, %v1382_v3 }
 0x2f7   : > { %8882 = vrot.lane.b32.xlu1 %v12466_v51, %s12042_s28  ;;  %v13370_v58 = vpop.f32.mrb[4].mxu1  ;;  %v11333_v51 = vunpack.i.h.bf16 %v13240_v7 }
 0x2f8   : > { %v1273_v52 = vmax.f32 %v1271_v1, %v1272_v2  ;;  %v1277_v55 = vsel %vm1257_vm3, %v13370_v58, -inf  ;;  %v13374_v11 = vpop.permute.xlu1 %11345  ;;  %10453 = vmatmul.mubr.msk.f32.vlgmr.msra.gmra.mrb[50].mxu0 %vm550_vm1, %v13216_v6  ;;  %v13378_v3 = vpop.f32.mrb[5].mxu1  ;;  %v1385_v37 = vrot.slane %v1384_v50, 1 }
 0x2f9   : > { %v13380_v16 = vpop.permute.xlu0 %6587  ;;  %v1276_v1 = vsel %vm1257_vm3, %v13378_v3, -inf  ;;  %10894 = vmatpush3.bf16.xpose.msk.msra.mxu0 %vm12348_vm2, %v10889_v29  ;;  %10466 = vmatprep.mubr.msk.f32.mxu0 %vm550_vm1, %v13204_v42 }
 0x2fa   : > { %v1274_v44 = vrot.slane %v1273_v52, 1  ;;  %v1278_v33 = vmax.f32 %v1276_v1, %v1277_v55  ;;  %10903 = vmatprep.subr.msk.bf16.mxu0 %vm12348_vm2, %v10901_v12  ;;  %v1386_v6 = vadd.f32 %v1385_v37, %v1384_v50  ;;  %v16898_v50 = vld [vmem:[#allocation53_spill] sm:$0xff]  ;;  %v16899_v37 = vld [vmem:[#allocation55_spill] sm:$0xff] }
 0x2fc   : > { %v1275_v2 = vmax.f32 %v1273_v52, %v1274_v44  ;;  %v1279_v48 = vrot.slane %v1278_v33, 4  ;;  %10376 = vmatmul.mubr.msk.f32.vlgmr.msra.gmra.mrb[30].mxu1 %vm550_vm1, %v16897_v47  ;;  %v13394_v36 = vpop.permute.xlu1 %6407  ;;  %11433 = vrcp.f32 %v1386_v6  ;;  %v10913_v52 = vpack.c.bf16 %v11333_v51, %v11332_v43 }
 0x2fd   : > { %10828 = vmatpush3.bf16.xpose.msk.msra.mxu1 %vm12348_vm2, %v10823_v45  ;;  %10389 = vmatprep.mubr.msk.f32.mxu1 %vm550_vm1, %v16898_v50  ;;  %v13402_v44 = vpop.permute.xlu0 %6678  ;;  %v11343_v51 = vunpack.i.h.bf16 %v13294_v26 }
 0x2fe   : > { %v1332_v42 = vsub.f32 %v13328_v13, %v1275_v2  ;;  %v1333_v29 = vsub.f32 %v13316_v4, %v1275_v2  ;;  %v1280_v7 = vmax.f32 %v1278_v33, %v1279_v48  ;;  %10837 = vmatprep.subr.msk.bf16.mxu1 %vm12348_vm2, %v10835_v17  ;;  %v11262_v13 = vunpack.i.l.bf16 %v12940_v62 }
 0x2ff   : > { %v11342_v62 = vunpack.i.l.bf16 %v13294_v26  ;;  %v16900_v26 = vld [vmem:[#allocation57_spill] sm:$0xff] }
 0x300   : > { %v1350_v47 = vmul.f32 1.442695, %v1332_v42  ;;  %v1352_v5 = vmul.f32 1.442695, %v1333_v29  ;;  %v1281_v4 = vrot.slane %v1280_v7, 2  ;;  %v13408_v55 = vpop.permute.xlu1 %6498  ;;  %10467 = vmatmul.mubr.msk.f32.vlgmr.msra.gmra.mrb[52].mxu0 %vm550_vm1, %v13270_v63  ;;  %v10847_v43 = vpack.c.bf16 %v11263_v41, %v11262_v13 }
 0x301   : > { %v13412_v45 = vpop.permute.xlu0 %11360  ;;  %10906 = vmatpush3.bf16.xpose.msk.msra.mxu0 %vm12348_vm2, %v10901_v12  ;;  %10480 = vmatprep.mubr.msk.f32.mxu0 %vm550_vm1, %v13258_v9  ;;  %v11273_v6 = vunpack.i.h.bf16 %v16900_v26  ;;  %v11272_v2 = vunpack.i.l.bf16 %v16900_v26  ;;  %v11353_v13 = vunpack.i.h.bf16 %v13362_v61 }
 0x302   : > { %11435 = vpow2.f32 %v1350_v47  ;;  %v1282_v48 = vmax.f32 %v1280_v7, %v1281_v4  ;;  %10915 = vmatprep.subr.msk.bf16.mxu0 %vm12348_vm2, %v10913_v52 }
 0x303   : > { %11437 = vpow2.f32 %v1352_v5 }
 0x304   : > { %v1283_v63 = vrot.slane %v1282_v48, 1  ;;  %10390 = vmatmul.mubr.msk.f32.vlgmr.msra.gmra.mrb[32].mxu1 %vm550_vm1, %v16899_v37  ;;  %v13424_v1 = vpop.permute.xlu1 %11355 }
 0x305   : > { %10840 = vmatpush3.bf16.xpose.msk.msra.mxu1 %vm12348_vm2, %v10835_v17  ;;  %10403 = vmatprep.mubr.msk.f32.mxu1 %vm550_vm1, %v13148_v46  ;;  %v13430_v9 = vpop.permute.xlu0 %7142  ;;  %v10925_v17 = vpack.c.bf16 %v11343_v51, %v11342_v62 }
 0x306   : > { %v11434_v12 = vpop.eup %11433  ;;  %v1284_v33 = vmax.f32 %v1282_v48, %v1283_v63  ;;  %10849 = vmatprep.subr.msk.bf16.mxu1 %vm12348_vm2, %v10847_v43  ;;  %v16901_v48 = vld [vmem:[#allocation56_spill] sm:$0xff] }
 0x307   : > { %v1458_v42 = vmul.f32 %v11434_v12, %v13302_v53  ;;  %v13438_v29 = vmul.f32 %v11434_v12, %v13306_v18 }
 0x308   : > { %v1334_v50 = vsub.f32 %v13378_v3, %v1284_v33  ;;  %v1335_v46 = vsub.f32 %v13370_v58, %v1284_v33  ;;  %v13442_v7 = vpop.permute.xlu1 %6589  ;;  %10481 = vmatmul.mubr.msk.f32.vlgmr.msra.gmra.mrb[54].mxu0 %vm550_vm1, %v13338_v15  ;;  %v10859_v3 = vpack.c.bf16 %v11273_v6, %v11272_v2 }
 0x309   : > { %v13446_v47 = vpop.permute.xlu0 %7233  ;;  %10918 = vmatpush3.bf16.xpose.msk.msra.mxu0 %vm12348_vm2, %v10913_v52  ;;  %10494 = vmatprep.mubr.msk.f32.mxu0 %vm550_vm1, %v13324_v10  ;;  %v1474_v53 = vsel %vm1257_vm3, %v1458_v42, 0.0  ;;  %v11352_v10 = vunpack.i.l.bf16 %v13362_v61  ;;  %v11282_v61 = vunpack.i.l.bf16 %v13019_v59 }
 0x30a   : > { %v1354_v18 = vmul.f32 1.442695, %v1334_v50  ;;  %v1356_v5 = vmul.f32 1.442695, %v1335_v46  ;;  %1475 = vadd.xlane.f32.xlu0 %v1474_v53  ;;  %10927 = vmatprep.subr.msk.bf16.mxu0 %vm12348_vm2, %v10925_v17  ;;  %v11363_v46 = vunpack.i.h.bf16 %v13412_v45  ;;  %v11362_v53 = vunpack.i.l.bf16 %v13412_v45 }
 0x30b   : > { %v10937_v12 = vpack.c.bf16 %v11353_v13, %v11352_v10 }
 0x30c   : > { %v13455_v58 = vpop.eup %11435  ;;  %11439 = vpow2.f32 %v1354_v18  ;;  %10404 = vmatmul.mubr.msk.f32.vlgmr.msra.gmra.mrb[34].mxu1 %vm550_vm1, %v13054_v19  ;;  %v13465_v52 = vpop.permute.xlu1 %6680  ;;  %v11283_v19 = vunpack.i.h.bf16 %v13019_v59 }
 0x30d   : > { %v13457_v15 = vpop.eup %11437  ;;  %v1387_v41 = vsel %vm1257_vm3, %v13455_v58, 0.0  ;;  %11441 = vpow2.f32 %v1356_v5  ;;  %10852 = vmatpush3.bf16.xpose.msk.msra.mxu1 %vm12348_vm2, %v10847_v43  ;;  %10417 = vmatprep.mubr.msk.f32.mxu1 %vm550_vm1, %v16901_v48  ;;  %v13473_v51 = vpop.permute.xlu0 %11370  ;;  %v16902_v5 = vld [vmem:[#allocation59_spill] sm:$0xff]  ;;  %v11318_v48 = vunpack.i.h.bf16 %v13198_v8 }
 0x30e   : > { %v1388_v4 = vsel %vm1257_vm3, %v13457_v15, 0.0  ;;  %10861 = vmatprep.subr.msk.bf16.mxu1 %vm12348_vm2, %v10859_v3  ;;  %v10871_v50 = vpack.c.bf16 %v11283_v19, %v11282_v61  ;;  %v10949_v61 = vpack.c.bf16 %v11363_v46, %v11362_v53 }
 0x30f   : > { %v1389_v62 = vadd.f32 %v1388_v4, %v1387_v41  ;;  %v13479_v63 = vpop.f32.mrb[6].mxu1 }
 0x310   : > { %v1286_v43 = vsel %vm1257_vm3, %v13479_v63, -inf  ;;  %v13483_v33 = vpop.permute.xlu1 %11365  ;;  %10495 = vmatmul.mubr.msk.f32.vlgmr.msra.gmra.mrb[56].mxu0 %vm550_vm1, %v13394_v36  ;;  %v13487_v26 = vpop.f32.mrb[7].mxu1 }
 0x311   : > { %v1390_v37 = vrot.slane %v1389_v62, 4  ;;  %v13489_v6 = vpop.permute.xlu0 %7324  ;;  %v1285_v2 = vsel %vm1257_vm3, %v13487_v26, -inf  ;;  %10930 = vmatpush3.bf16.xpose.msk.msra.mxu0 %vm12348_vm2, %v10925_v17  ;;  %10508 = vmatprep.mubr.msk.f32.mxu0 %vm550_vm1, %v13380_v16  ;;  %v16903_v16 = vld [vmem:[#allocation58_spill] sm:$0xff] }
 0x312   : > { %v1287_v42 = vmax.f32 %v1285_v2, %v1286_v43  ;;  %10939 = vmatprep.subr.msk.bf16.mxu0 %vm12348_vm2, %v10937_v12 }
 0x313   : > { %v1391_v59 = vadd.f32 %v1390_v37, %v1389_v62  ;;  %v11317_v62 = vunpack.i.l.bf16 %v13198_v8 }
 0x314   : > { %v1288_v18 = vrot.slane %v1287_v42, 4  ;;  %10418 = vmatmul.mubr.msk.f32.vlgmr.msra.gmra.mrb[36].mxu1 %vm550_vm1, %v16902_v5  ;;  %v7145_v41 = vpop.permute.xlu1 %7144  ;;  %v11372_v5 = vunpack.i.l.bf16 %v13473_v51 }
 0x315   : > { %v1392_v36 = vrot.slane %v1391_v59, 2  ;;  %10864 = vmatpush3.bf16.xpose.msk.msra.mxu1 %vm12348_vm2, %v10859_v3  ;;  %10431 = vmatprep.mubr.msk.f32.mxu1 %vm550_vm1, %v16903_v16  ;;  %v13507_v17 = vpop.permute.xlu0 %7415  ;;  %v10883_v53 = vpack.c.bf16 %v11318_v48, %v11317_v62 }
 0x316   : > { %v13509_v13 = vpop.eup %11439  ;;  %v1289_v10 = vmax.f32 %v1287_v42, %v1288_v18  ;;  %10873 = vmatprep.subr.msk.bf16.mxu1 %vm12348_vm2, %v10871_v50 }
 0x317   : > { %v1393_v45 = vadd.f32 %v1392_v36, %v1391_v59  ;;  %v13513_v4 = vpop.eup %11441  ;;  %v1396_v3 = vsel %vm1257_vm3, %v13509_v13, 0.0  ;;  %v1477_v36 = vsel %vm1257_vm3, %v13438_v29, 0.0 }
 0x318   : > { %v1397_v19 = vsel %vm1257_vm3, %v13513_v4, 0.0  ;;  %v1290_v37 = vrot.slane %v1289_v10, 2  ;;  %v13521_v43 = vpop.permute.xlu1 %7235  ;;  %10509 = vmatmul.mubr.msk.f32.vlgmr.msra.gmra.mrb[58].mxu0 %vm550_vm1, %v13442_v7  ;;  %v11373_v7 = vunpack.i.h.bf16 %v13473_v51  ;;  %v11308_v51 = vunpack.i.h.bf16 %v13160_v60 }
 0x319   : > { %v1394_v2 = vrot.slane %v1393_v45, 1  ;;  %v1398_v59 = vadd.f32 %v1397_v19, %v1396_v3  ;;  %v11381_v42 = vpop.permute.xlu0 %11380  ;;  %10942 = vmatpush3.bf16.xpose.msk.msra.mxu0 %vm12348_vm2, %v10937_v12  ;;  %10522 = vmatprep.mubr.msk.f32.mxu0 %vm550_vm1, %v13430_v9 }
 0x31a   : > { %v1291_v8 = vmax.f32 %v1289_v10, %v1290_v37  ;;  %10951 = vmatprep.subr.msk.bf16.mxu0 %vm12348_vm2, %v10949_v61  ;;  %v10961_v48 = vpack.c.bf16 %v11373_v7, %v11372_v5 }
 0x31b   : > { %v1395_v46 = vadd.f32 %v1394_v2, %v1393_v45  ;;  %v1399_v18 = vrot.slane %v1398_v59, 4  ;;  %1478 = vadd.xlane.f32.xlu1 %v1477_v36 }
 0x31c   : > { %v1292_v16 = vrot.slane %v1291_v8, 1  ;;  %10432 = vmatmul.mubr.msk.f32.vlgmr.msra.gmra.mrb[38].mxu1 %vm550_vm1, %v13106_v25  ;;  %v11307_v25 = vunpack.i.l.bf16 %v13160_v60 }
 0x31d   : > { %11443 = vrcp.f32 %v1395_v46  ;;  %v1400_v9 = vadd.f32 %v1399_v18, %v1398_v59  ;;  %10876 = vmatpush3.bf16.xpose.msk.msra.mxu1 %vm12348_vm2, %v10871_v50  ;;  %10445 = vmatprep.mubr.msk.f32.mxu1 %vm550_vm1, %v13094_v0  ;;  %v13541_v29 = vpop.permute.xlu1 %11375  ;;  %v7507_v12 = vpop.permute.xlu0 %7506  ;;  %v11328_v46 = vunpack.i.h.bf16 %v13252_v49 }
 0x31e   : > { %v1293_v10 = vmax.f32 %v1291_v8, %v1292_v16  ;;  %10885 = vmatprep.subr.msk.bf16.mxu1 %vm12348_vm2, %v10883_v53 }
 0x31f   : > { %v1401_v45 = vrot.slane %v1400_v9, 2 }
 0x320   : > { %v1336_v62 = vsub.f32 %v13487_v26, %v1293_v10  ;;  %v1337_v50 = vsub.f32 %v13479_v63, %v1293_v10  ;;  %10523 = vmatmul.mubr.msk.f32.vlgmr.msra.gmra.mrb[60].mxu0 %vm550_vm1, %v7145_v41  ;;  %v10895_v26 = vpack.c.bf16 %v11308_v51, %v11307_v25  ;;  %v11383_v63 = vunpack.i.h.bf16 %v11381_v42 }
 0x321   : > { %v7327_v0 = vpop.permute.xlu1 %7326  ;;  %v13550_v3 = vpop.permute.xlu0 %7597  ;;  %10954 = vmatpush3.bf16.xpose.msk.msra.mxu0 %vm12348_vm2, %v10949_v61  ;;  %10536 = vmatprep.mubr.msk.f32.mxu0 %vm550_vm1, %v13489_v6  ;;  %v1402_v19 = vadd.f32 %v1401_v45, %v1400_v9  ;;  %v11382_v41 = vunpack.i.l.bf16 %v11381_v42 }
 0x322   : > { %v1358_v37 = vmul.f32 1.442695, %v1336_v62  ;;  %v1360_v2 = vmul.f32 1.442695, %v1337_v50  ;;  %10963 = vmatprep.subr.msk.bf16.mxu0 %vm12348_vm2, %v10961_v48 }
 0x323   : > { %v1403_v60 = vrot.slane %v1402_v19, 1 }
 0x324   : > { %11445 = vpow2.f32 %v1358_v37  ;;  %10446 = vmatmul.mubr.msk.f32.vlgmr.msra.gmra.mrb[40].mxu1 %vm550_vm1, %v13142_v30 }
 0x325   : > { %11447 = vpow2.f32 %v1360_v2  ;;  %10888 = vmatpush3.bf16.xpose.msk.msra.mxu1 %vm12348_vm2, %v10883_v53  ;;  %10459 = vmatprep.mubr.msk.f32.mxu1 %vm550_vm1, %v13166_v34  ;;  %v13564_v6 = vpop.permute.xlu1 %7417  ;;  %v11391_v61 = vpop.permute.xlu0 %11390  ;;  %v1404_v59 = vadd.f32 %v1403_v60, %v1402_v19  ;;  %v11327_v53 = vunpack.i.l.bf16 %v13252_v49  ;;  %v10973_v34 = vpack.c.bf16 %v11383_v63, %v11382_v41 }
 0x326   : > { %10897 = vmatprep.subr.msk.bf16.mxu1 %vm12348_vm2, %v10895_v26  ;;  %v11393_v10 = vunpack.i.h.bf16 %v11391_v61  ;;  %v11392_v51 = vunpack.i.l.bf16 %v11391_v61 }
 0x327   : > { %v11444_v8 = vpop.eup %11443  ;;  %v13568_v36 = vpop.f32.mrb[16].mxu0  ;;  %11449 = vrcp.f32 %v1404_v59  ;;  %v10907_v9 = vpack.c.bf16 %v11328_v46, %v11327_v53 }
 0x328   : > { %v1460_v42 = vmul.f32 %v11444_v8, %v13455_v58  ;;  %v1461_v30 = vmul.f32 %v11444_v8, %v13457_v15  ;;  %v1295_v18 = vsel %vm1257_vm3, %v13568_v36, -inf  ;;  %10537 = vmatmul.mubr.msk.f32.vlgmr.msra.gmra.mrb[62].mxu0 %vm550_vm1, %v7327_v0  ;;  %v13577_v7 = vpop.f32.mrb[17].mxu0  ;;  %v10985_v2 = vpack.c.bf16 %v11393_v10, %v11392_v51 }
 0x329   : > { %v13579_v5 = vpop.permute.xlu1 %11385  ;;  %v7689_v16 = vpop.permute.xlu0 %7688  ;;  %v1294_v58 = vsel %vm1257_vm3, %v13577_v7, -inf  ;;  %10966 = vmatpush3.bf16.xpose.msk.msra.mxu0 %vm12348_vm2, %v10961_v48  ;;  %10550 = vmatprep.mubr.msk.f32.mxu0 %vm550_vm1, %v7507_v12 }
 0x32a   : > { %v1480_v49 = vsel %vm1257_vm3, %v1460_v42, 0.0  ;;  %v1296_v15 = vmax.f32 %v1294_v58, %v1295_v18  ;;  %10975 = vmatprep.subr.msk.bf16.mxu0 %vm12348_vm2, %v10973_v34  ;;  %v1483_v48 = vsel %vm1257_vm3, %v1461_v30, 0.0 }
 0x32b   : > { %1481 = vadd.xlane.f32.xlu0 %v1480_v49 }
 0x32c   : > { %v1297_v45 = vrot.slane %v1296_v15, 4  ;;  %10460 = vmatmul.mubr.msk.f32.vlgmr.msra.gmra.mrb[42].mxu1 %vm550_vm1, %v13234_v54  ;;  %v11338_v54 = vunpack.i.h.bf16 %v13314_v57 }
 0x32d   : > { %10900 = vmatpush3.bf16.xpose.msk.msra.mxu1 %vm12348_vm2, %v10895_v26  ;;  %10473 = vmatprep.mubr.msk.f32.mxu1 %vm550_vm1, %v13222_v56  ;;  %v7509_v12 = vpop.permute.xlu1 %7508  ;;  %v13595_v25 = vpop.permute.xlu0 %7779  ;;  %v11337_v56 = vunpack.i.l.bf16 %v13314_v57 }
 0x32e   : > { %v13598_v62 = vpop.eup %11445  ;;  %v1298_v50 = vmax.f32 %v1296_v15, %v1297_v45  ;;  %10909 = vmatprep.subr.msk.bf16.mxu1 %vm12348_vm2, %v10907_v9 }
 0x32f   : > { %1484 = vadd.xlane.f32.xlu0 %v1483_v48  ;;  %v13602_v0 = vpop.eup %11447  ;;  %v1405_v19 = vsel %vm1257_vm3, %v13598_v62, 0.0  ;;  %v10919_v30 = vpack.c.bf16 %v11338_v54, %v11337_v56 }
 0x330   : > { %v1406_v37 = vsel %vm1257_vm3, %v13602_v0, 0.0  ;;  %v1299_v60 = vrot.slane %v1298_v50, 2  ;;  %10551 = vmatmul.mubr.msk.f32.vlgmr.msra.gmra.mrb[64].mxu0 %vm550_vm1, %v7509_v12 }
 0x331   : > { %v11450_v26 = vpop.eup %11449  ;;  %v1407_v63 = vadd.f32 %v1406_v37, %v1405_v19  ;;  %v13611_v41 = vpop.permute.xlu1 %7599  ;;  %10978 = vmatpush3.bf16.xpose.msk.msra.mxu0 %vm12348_vm2, %v10973_v34  ;;  %10564 = vmatprep.mubr.msk.f32.mxu0 %vm550_vm1, %v7689_v16 }
 0x332   : > { %v11401_v61 = vpop.permute.xlu0 %11400  ;;  %v1300_v59 = vmax.f32 %v1298_v50, %v1299_v60  ;;  %10987 = vmatprep.subr.msk.bf16.mxu0 %vm12348_vm2, %v10985_v2  ;;  %v1462_v57 = vmul.f32 %v11450_v26, %v13509_v13  ;;  %v1463_v42 = vmul.f32 %v11450_v26, %v13513_v4 }
 0x333   : > { %v1408_v8 = vrot.slane %v1407_v63, 4  ;;  %v11403_v58 = vunpack.i.h.bf16 %v11401_v61  ;;  %v11402_v49 = vunpack.i.l.bf16 %v11401_v61 }
 0x334   : > { %v1301_v46 = vrot.slane %v1300_v59, 1  ;;  %10474 = vmatmul.mubr.msk.f32.vlgmr.msra.gmra.mrb[44].mxu1 %vm550_vm1, %v13288_v20  ;;  %v1486_v53 = vsel %vm1257_vm3, %v1462_v57, 0.0  ;;  %v1489_v16 = vsel %vm1257_vm3, %v1463_v42, 0.0  ;;  %v11348_v20 = vunpack.i.h.bf16 %v13374_v11 }
 0x335   : > { %v1409_v18 = vadd.f32 %v1408_v8, %v1407_v63  ;;  %10912 = vmatpush3.bf16.xpose.msk.msra.mxu1 %vm12348_vm2, %v10907_v9  ;;  %10487 = vmatprep.mubr.msk.f32.mxu1 %vm550_vm1, %v13276_v14  ;;  %v13627_v34 = vpop.permute.xlu1 %11395  ;;  %v11347_v14 = vunpack.i.l.bf16 %v13374_v11  ;;  %v10997_v60 = vpack.c.bf16 %v11403_v58, %v11402_v49  ;;  %v11357_v57 = vunpack.i.l.bf16 %v13424_v1 }
 0x336   : > { %v8244_v13 = vpop.permute.xlu0 %8243  ;;  %v1302_v4 = vmax.f32 %v1300_v59, %v1301_v46  ;;  %10921 = vmatprep.subr.msk.bf16.mxu1 %vm12348_vm2, %v10919_v30  ;;  %1487 = vadd.xlane.f32.xlu1 %v1486_v53 }
 0x337   : > { %v1410_v15 = vrot.slane %v1409_v18, 2  ;;  %1490 = vadd.xlane.f32.xlu0 %v1489_v16  ;;  %v13633_v9 = vpop.f32.mrb[8].mxu1 }
 0x338   : > { %v1338_v10 = vsub.f32 %v13577_v7, %v1302_v4  ;;  %v1339_v51 = vsub.f32 %v13568_v36, %v1302_v4  ;;  %v1304_v45 = vsel %vm1257_vm3, %v13633_v9, -inf  ;;  %v1070_v12 = vpop.f32.mrb[9].mxu1  ;;  %v10931_v36 = vpack.c.bf16 %v11348_v20, %v11347_v14 }
 0x339   : > { %v7691_v48 = vpop.permute.xlu1 %7690  ;;  %v1303_v54 = vsel %vm1257_vm3, %v1070_v12, -inf  ;;  %v1411_v19 = vadd.f32 %v1410_v15, %v1409_v18 }
 0x33a   : > { %v13640_v50 = vpop.permute.xlu0 %8334  ;;  %v1362_v56 = vmul.f32 1.442695, %v1338_v10  ;;  %v1364_v37 = vmul.f32 1.442695, %v1339_v51  ;;  %v1305_v26 = vmax.f32 %v1303_v54, %v1304_v45  ;;  %10565 = vmatmul.mubr.msk.f32.vlgmr.msra.gmra.mrb[66].mxu0 %vm550_vm1, %v7691_v48 }
 0x33b   : > { %10990 = vmatpush3.bf16.xpose.msk.msra.mxu0 %vm12348_vm2, %v10985_v2  ;;  %10578 = vmatprep.mubr.msk.f32.mxu0 %vm550_vm1, %v8244_v13  ;;  %v1412_v11 = vrot.slane %v1411_v19, 1 }
 0x33c   : > { %11451 = vpow2.f32 %v1362_v56  ;;  %v1306_v7 = vrot.slane %v1305_v26, 4  ;;  %10488 = vmatmul.mubr.msk.f32.vlgmr.msra.gmra.mrb[46].mxu1 %vm550_vm1, %v13356_v38  ;;  %10999 = vmatprep.subr.msk.bf16.mxu0 %vm12348_vm2, %v10997_v60  ;;  %v11358_v38 = vunpack.i.h.bf16 %v13424_v1 }
 0x33d   : > { %11453 = vpow2.f32 %v1364_v37  ;;  %10924 = vmatpush3.bf16.xpose.msk.msra.mxu1 %vm12348_vm2, %v10919_v30  ;;  %10501 = vmatprep.mubr.msk.f32.mxu1 %vm550_vm1, %v13342_v21  ;;  %v13655_v2 = vpop.permute.xlu1 %7781  ;;  %v1413_v61 = vadd.f32 %v1412_v11, %v1411_v19 }
 0x33e   : > { %v11411_v63 = vpop.permute.xlu0 %11410  ;;  %v1307_v59 = vmax.f32 %v1305_v26, %v1306_v7  ;;  %10933 = vmatprep.subr.msk.bf16.mxu1 %vm12348_vm2, %v10931_v36  ;;  %v10943_v18 = vpack.c.bf16 %v11358_v38, %v11357_v57  ;;  %v11378_v38 = vunpack.i.h.bf16 %v13541_v29  ;;  %v11377_v57 = vunpack.i.l.bf16 %v13541_v29 }
 0x33f   : > { %11455 = vrcp.f32 %v1413_v61  ;;  %v11413_v53 = vunpack.i.h.bf16 %v11411_v63  ;;  %v11412_v21 = vunpack.i.l.bf16 %v11411_v63 }
 0x340   : > { %v1308_v8 = vrot.slane %v1307_v59, 2 }
 0x341   : > { %v13661_v42 = vpop.permute.xlu1 %11405  ;;  %v11009_v49 = vpack.c.bf16 %v11413_v53, %v11412_v21 }
 0x342   : > { %v8426_v30 = vpop.permute.xlu0 %8425  ;;  %v1309_v46 = vmax.f32 %v1307_v59, %v1308_v8 }
 0x344   : > { %v1310_v13 = vrot.slane %v1309_v46, 1  ;;  %10502 = vmatmul.mubr.msk.f32.vlgmr.msra.gmra.mrb[48].mxu1 %vm550_vm1, %v13408_v55  ;;  %v11368_v55 = vunpack.i.h.bf16 %v13483_v33 }
 0x345   : > { %10936 = vmatpush3.bf16.xpose.msk.msra.mxu1 %vm12348_vm2, %v10931_v36  ;;  %10515 = vmatprep.mubr.msk.f32.mxu1 %vm550_vm1, %v13402_v44  ;;  %v8246_v16 = vpop.permute.xlu1 %8245  ;;  %v11367_v44 = vunpack.i.l.bf16 %v13483_v33 }
 0x346   : > { %v13669_v1 = vpop.permute.xlu0 %8516  ;;  %v13671_v4 = vpop.eup %11451  ;;  %v1311_v58 = vmax.f32 %v1309_v46, %v1310_v13  ;;  %10945 = vmatprep.subr.msk.bf16.mxu1 %vm12348_vm2, %v10943_v18  ;;  %10579 = vmatmul.mubr.msk.f32.vlgmr.msra.gmra.mrb[68].mxu0 %vm550_vm1, %v8246_v16  ;;  %v10967_v16 = vpack.c.bf16 %v11378_v38, %v11377_v57 }
 0x347   : > { %v13676_v20 = vpop.eup %11453  ;;  %v1414_v15 = vsel %vm1257_vm3, %v13671_v4, 0.0  ;;  %11002 = vmatpush3.bf16.xpose.msk.msra.mxu0 %vm12348_vm2, %v10997_v60  ;;  %10592 = vmatprep.mubr.msk.f32.mxu0 %vm550_vm1, %v8426_v30 }
 0x348   : > { %v1415_v14 = vsel %vm1257_vm3, %v13676_v20, 0.0  ;;  %v1340_v10 = vsub.f32 %v1070_v12, %v1311_v58  ;;  %v1341_v51 = vsub.f32 %v13633_v9, %v1311_v58  ;;  %11011 = vmatprep.subr.msk.bf16.mxu0 %vm12348_vm2, %v11009_v49  ;;  %v10955_v9 = vpack.c.bf16 %v11368_v55, %v11367_v44 }
 0x349   : > { %v11456_v45 = vpop.eup %11455  ;;  %v1416_v48 = vadd.f32 %v1415_v14, %v1414_v15  ;;  %v13690_v54 = vpop.permute.xlu1 %8336 }
 0x34a   : > { %v1366_v19 = vmul.f32 1.442695, %v1340_v10  ;;  %v1368_v56 = vmul.f32 1.442695, %v1341_v51  ;;  %v11421_v60 = vpop.permute.xlu0 %11420  ;;  %v13695_v33 = vmul.f32 %v11456_v45, %v13602_v0  ;;  %v13698_v12 = vmul.f32 %v11456_v45, %v13598_v62 }
 0x34b   : > { %v1417_v37 = vrot.slane %v1416_v48, 4  ;;  %v13692_v26 = vpop.f32.mrb[18].mxu0  ;;  %v11423_v63 = vunpack.i.h.bf16 %v11421_v60  ;;  %v11388_v45 = vunpack.i.h.bf16 %v13579_v5 }
 0x34c   : > { %11457 = vpow2.f32 %v1366_v19  ;;  %10516 = vmatmul.mubr.msk.f32.vlgmr.msra.gmra.mrb[50].mxu1 %vm550_vm1, %v13465_v52  ;;  %v1313_v11 = vsel %vm1257_vm3, %v13692_v26, -inf  ;;  %v13704_v36 = vpop.f32.mrb[19].mxu0  ;;  %v11422_v52 = vunpack.i.l.bf16 %v11421_v60 }
 0x34d   : > { %v1418_v7 = vadd.f32 %v1417_v37, %v1416_v48  ;;  %11459 = vpow2.f32 %v1368_v56  ;;  %10948 = vmatpush3.bf16.xpose.msk.msra.mxu1 %vm12348_vm2, %v10943_v18  ;;  %10529 = vmatprep.mubr.msk.f32.mxu1 %vm550_vm1, %v13446_v47  ;;  %v13710_v62 = vpop.permute.xlu1 %11415  ;;  %v1312_v0 = vsel %vm1257_vm3, %v13704_v36, -inf  ;;  %v11387_v48 = vunpack.i.l.bf16 %v13579_v5 }
 0x34e   : > { %10957 = vmatprep.subr.msk.bf16.mxu1 %vm12348_vm2, %v10955_v9  ;;  %v1314_v61 = vmax.f32 %v1312_v0, %v1313_v11  ;;  %v11021_v47 = vpack.c.bf16 %v11423_v63, %v11422_v52  ;;  %v8608_v53 = vpop.permute.xlu0 %8607 }
 0x34f   : > { %v1419_v59 = vrot.slane %v1418_v7, 2 }
 0x350   : > { %v1315_v8 = vrot.slane %v1314_v61, 4 }
 0x351   : > { %v8428_v30 = vpop.permute.xlu1 %8427  ;;  %v1420_v46 = vadd.f32 %v1419_v59, %v1418_v7 }
 0x352   : > { %v1316_v21 = vmax.f32 %v1314_v61, %v1315_v8  ;;  %10593 = vmatmul.mubr.msk.f32.vlgmr.msra.gmra.mrb[70].mxu0 %vm550_vm1, %v8428_v30  ;;  %v13752_v37 = vpop.permute.xlu0 %8698  ;;  %v10979_v61 = vpack.c.bf16 %v11388_v45, %v11387_v48 }
 0x353   : > { %11014 = vmatpush3.bf16.xpose.msk.msra.mxu0 %vm12348_vm2, %v11009_v49  ;;  %10606 = vmatprep.mubr.msk.f32.mxu0 %vm550_vm1, %v8608_v53  ;;  %v13722_v18 = vpop.f32.mrb[20].mxu0  ;;  %v1421_v13 = vrot.slane %v1420_v46, 1 }
 0x354   : > { %v1317_v58 = vrot.slane %v1316_v21, 2  ;;  %10530 = vmatmul.mubr.msk.f32.vlgmr.msra.gmra.mrb[52].mxu1 %vm550_vm1, %v13521_v43  ;;  %11023 = vmatprep.subr.msk.bf16.mxu0 %vm12348_vm2, %v11021_v47  ;;  %v2366_v29 = vsel %vm1257_vm3, %v13722_v18, -inf  ;;  %v13730_v55 = vpop.f32.mrb[21].mxu0 }
 0x355   : > { %10960 = vmatpush3.bf16.xpose.msk.msra.mxu1 %vm12348_vm2, %v10955_v9  ;;  %10543 = vmatprep.mubr.msk.f32.mxu1 %vm550_vm1, %v13507_v17  ;;  %v13736_v49 = vpop.permute.xlu1 %8518  ;;  %v2365_v15 = vsel %vm1257_vm3, %v13730_v55, -inf  ;;  %v1422_v43 = vadd.f32 %v1421_v13, %v1420_v46 }
 0x356   : > { %v13740_v44 = vpop.eup %11457  ;;  %v1318_v14 = vmax.f32 %v1316_v21, %v1317_v58  ;;  %10969 = vmatprep.subr.msk.bf16.mxu1 %vm12348_vm2, %v10967_v16  ;;  %v2367_v10 = vmax.f32 %v2365_v15, %v2366_v29  ;;  %v8790_v21 = vpop.permute.xlu0 %8789 }
 0x357   : > { %v13744_v51 = vpop.eup %11459  ;;  %v1423_v17 = vsel %vm1257_vm3, %v13740_v44, 0.0  ;;  %11461 = vrcp.f32 %v1422_v43 }
 0x358   : > { %v1424_v19 = vsel %vm1257_vm3, %v13744_v51, 0.0  ;;  %v1319_v56 = vrot.slane %v1318_v14, 1  ;;  %v2368_v60 = vrot.slane %v2367_v10, 4 }
 0x359   : > { %v1425_v9 = vadd.f32 %v1424_v19, %v1423_v17  ;;  %v13754_v11 = vpop.permute.xlu1 %11425 }
 0x35a   : > { %v1320_v7 = vmax.f32 %v1318_v14, %v1319_v56  ;;  %v2369_v0 = vmax.f32 %v2367_v10, %v2368_v60 }
 0x35b   : > { %v1426_v63 = vrot.slane %v1425_v9, 4  ;;  %v13756_v52 = vpop.f32.mrb[22].mxu0 }
 0x35c   : > { %v1342_v59 = vsub.f32 %v13704_v36, %v1320_v7  ;;  %v1343_v5 = vsub.f32 %v13692_v26, %v1320_v7  ;;  %v2370_v38 = vrot.slane %v2369_v0, 2  ;;  %10544 = vmatmul.mubr.msk.f32.vlgmr.msra.gmra.mrb[54].mxu1 %vm550_vm1, %v13564_v6  ;;  %v13762_v57 = vpop.f32.mrb[23].mxu0  ;;  %v2384_v30 = vsel %vm1257_vm3, %v13756_v52, -inf }
 0x35d   : > { %v1427_v8 = vadd.f32 %v1426_v63, %v1425_v9  ;;  %10972 = vmatpush3.bf16.xpose.msk.msra.mxu1 %vm12348_vm2, %v10967_v16  ;;  %10557 = vmatprep.mubr.msk.f32.mxu1 %vm550_vm1, %v13550_v3  ;;  %v8610_v46 = vpop.permute.xlu1 %8609  ;;  %v2383_v26 = vsel %vm1257_vm3, %v13762_v57, -inf  ;;  %v11398_v16 = vunpack.i.h.bf16 %v13627_v34  ;;  %v11397_v3 = vunpack.i.l.bf16 %v13627_v34 }
 0x35e   : > { %v1370_v36 = vmul.f32 1.442695, %v1342_v59  ;;  %v1372_v53 = vmul.f32 1.442695, %v1343_v5  ;;  %v2371_v6 = vmax.f32 %v2369_v0, %v2370_v38  ;;  %10981 = vmatprep.subr.msk.bf16.mxu1 %vm12348_vm2, %v10979_v61  ;;  %v2385_v13 = vmax.f32 %v2383_v26, %v2384_v30  ;;  %10607 = vmatmul.mubr.msk.f32.vlgmr.msra.gmra.mrb[72].mxu0 %vm550_vm1, %v8610_v46 }
 0x35f   : > { %v1428_v58 = vrot.slane %v1427_v8, 2  ;;  %11026 = vmatpush3.bf16.xpose.msk.msra.mxu0 %vm12348_vm2, %v11021_v47  ;;  %10620 = vmatprep.mubr.msk.f32.mxu0 %vm550_vm1, %v8790_v21  ;;  %v10991_v19 = vpack.c.bf16 %v11398_v16, %v11397_v3  ;;  %v1495_v21 = vsel %vm1257_vm3, %v13695_v33, 0.0 }
 0x360   : > { %11463 = vpow2.f32 %v1370_v36  ;;  %v2372_v29 = vrot.slane %v2371_v6, 1  ;;  %v2386_v15 = vrot.slane %v2385_v13, 4 }
 0x361   : > { %v11462_v43 = vpop.eup %11461  ;;  %11465 = vpow2.f32 %v1372_v53  ;;  %v13780_v14 = vpop.permute.xlu1 %8700  ;;  %v1429_v10 = vadd.f32 %v1428_v58, %v1427_v8 }
 0x362   : > { %v2373_v45 = vmax.f32 %v2371_v6, %v2372_v29  ;;  %v2387_v17 = vmax.f32 %v2385_v13, %v2386_v15  ;;  %v1467_v48 = vmul.f32 %v11462_v43, %v13676_v20  ;;  %v1466_v34 = vmul.f32 %v11462_v43, %v13671_v4 }
 0x363   : > { %v13784_v56 = vpop.f32.mrb[24].mxu0  ;;  %v1430_v47 = vrot.slane %v1429_v10, 1  ;;  %v1492_v6 = vsel %vm1257_vm3, %v13698_v12, 0.0 }
 0x364   : > { %v2437_v60 = vsub.f32 %v13730_v55, %v2373_v45  ;;  %v2438_v9 = vsub.f32 %v13722_v18, %v2373_v45  ;;  %v2388_v7 = vrot.slane %v2387_v17, 2  ;;  %10558 = vmatmul.mubr.msk.f32.vlgmr.msra.gmra.mrb[56].mxu1 %vm550_vm1, %v13611_v41  ;;  %v2402_v0 = vsel %vm1257_vm3, %v13784_v56, -inf  ;;  %v13792_v63 = vpop.f32.mrb[25].mxu0 }
 0x365   : > { %10984 = vmatpush3.bf16.xpose.msk.msra.mxu1 %vm12348_vm2, %v10979_v61  ;;  %10571 = vmatprep.mubr.msk.f32.mxu1 %vm550_vm1, %v13595_v25  ;;  %v8792_v4 = vpop.permute.xlu1 %8791  ;;  %v2401_v20 = vsel %vm1257_vm3, %v13792_v63, -inf  ;;  %v1501_v18 = vsel %vm1257_vm3, %v1467_v48, 0.0  ;;  %v1498_v55 = vsel %vm1257_vm3, %v1466_v34, 0.0  ;;  %v1431_v41 = vadd.f32 %v1430_v47, %v1429_v10 }
 0x366   : > { %v2453_v59 = vmul.f32 1.442695, %v2437_v60  ;;  %v2455_v5 = vmul.f32 1.442695, %v2438_v9  ;;  %v2389_v38 = vmax.f32 %v2387_v17, %v2388_v7  ;;  %10993 = vmatprep.subr.msk.bf16.mxu1 %vm12348_vm2, %v10991_v19  ;;  %v2403_v8 = vmax.f32 %v2401_v20, %v2402_v0  ;;  %10621 = vmatmul.mubr.msk.f32.vlgmr.msra.gmra.mrb[74].mxu0 %vm550_vm1, %v8792_v4 }
 0x367   : > { %v11408_v25 = vunpack.i.h.bf16 %v13661_v42  ;;  %v11407_v61 = vunpack.i.l.bf16 %v13661_v42  ;;  %1502 = vadd.xlane.f32.xlu0 %v1501_v18  ;;  %1499 = vadd.xlane.f32.xlu1 %v1498_v55  ;;  %11467 = vrcp.f32 %v1431_v41  ;;  %v11418_v48 = vunpack.i.h.bf16 %v13710_v62 }
 0x368   : > { %11469 = vpow2.f32 %v2453_v59  ;;  %v2390_v30 = vrot.slane %v2389_v38, 1  ;;  %v2404_v46 = vrot.slane %v2403_v8, 4  ;;  %v11417_v34 = vunpack.i.l.bf16 %v13710_v62 }
 0x369   : > { %11471 = vpow2.f32 %v2455_v5  ;;  %v11003_v42 = vpack.c.bf16 %v11408_v25, %v11407_v61 }
 0x36a   : > { %v13807_v26 = vpop.eup %11463  ;;  %v2391_v36 = vmax.f32 %v2389_v38, %v2390_v30  ;;  %v2405_v53 = vmax.f32 %v2403_v8, %v2404_v46  ;;  %v11015_v62 = vpack.c.bf16 %v11418_v48, %v11417_v34 }
 0x36b   : > { %v13813_v13 = vpop.eup %11465  ;;  %v1432_v16 = vsel %vm1257_vm3, %v13807_v26, 0.0  ;;  %1496 = vadd.xlane.f32.xlu0 %v1495_v21  ;;  %1493 = vadd.xlane.f32.xlu1 %v1492_v6  ;;  %v13817_v3 = vpop.f32.mrb[26].mxu0  ;;  %v11428_v6 = vunpack.i.h.bf16 %v13754_v11 }
 0x36c   : > { %v1433_v58 = vsel %vm1257_vm3, %v13813_v13, 0.0  ;;  %v2441_v29 = vsub.f32 %v13762_v57, %v2391_v36  ;;  %v2442_v33 = vsub.f32 %v13756_v52, %v2391_v36  ;;  %v2406_v15 = vrot.slane %v2405_v53, 2  ;;  %10572 = vmatmul.mubr.msk.f32.vlgmr.msra.gmra.mrb[58].mxu1 %vm550_vm1, %v13655_v2  ;;  %v13825_v12 = vpop.f32.mrb[27].mxu0 }
 0x36d   : > { %v1434_v43 = vadd.f32 %v1433_v58, %v1432_v16  ;;  %10996 = vmatpush3.bf16.xpose.msk.msra.mxu1 %vm12348_vm2, %v10991_v19  ;;  %10585 = vmatprep.mubr.msk.f32.mxu1 %vm550_vm1, %v13640_v50  ;;  %v2420_v10 = vsel %vm1257_vm3, %v13817_v3, -inf  ;;  %v2419_v57 = vsel %vm1257_vm3, %v13825_v12, -inf }
 0x36e   : > { %v2461_v52 = vmul.f32 1.442695, %v2441_v29  ;;  %v2463_v45 = vmul.f32 1.442695, %v2442_v33  ;;  %v2407_v17 = vmax.f32 %v2405_v53, %v2406_v15  ;;  %11005 = vmatprep.subr.msk.bf16.mxu1 %vm12348_vm2, %v11003_v42  ;;  %v2421_v2 = vmax.f32 %v2419_v57, %v2420_v10 }
 0x36f   : > { %v1435_v19 = vrot.slane %v1434_v43, 4 }
 0x370   : > { %11473 = vpow2.f32 %v2461_v52  ;;  %v2408_v50 = vrot.slane %v2407_v17, 1  ;;  %v2422_v47 = vrot.slane %v2421_v2, 4 }
 0x371   : > { %v11468_v60 = vpop.eup %11467  ;;  %v1436_v9 = vadd.f32 %v1435_v19, %v1434_v43  ;;  %11475 = vpow2.f32 %v2463_v45 }
 0x372   : > { %v13839_v7 = vpop.eup %11469  ;;  %v2409_v0 = vmax.f32 %v2407_v17, %v2408_v50  ;;  %v2423_v4 = vmax.f32 %v2421_v2, %v2422_v47  ;;  %v13842_v20 = vmul.f32 %v11468_v60, %v13744_v51  ;;  %v13845_v18 = vmul.f32 %v11468_v60, %v13740_v44 }
 0x373   : > { %v13847_v55 = vpop.eup %11471  ;;  %v1437_v41 = vrot.slane %v1436_v9, 2  ;;  %v2485_v59 = vsel %vm1257_vm3, %v13839_v7, 0.0  ;;  %v13851_v5 = vpop.f32.mrb[28].mxu0 }
 0x374   : > { %v2486_v38 = vsel %vm1257_vm3, %v13847_v55, 0.0  ;;  %v2445_v8 = vsub.f32 %v13792_v63, %v2409_v0  ;;  %v2446_v51 = vsub.f32 %v13784_v56, %v2409_v0  ;;  %v2424_v25 = vrot.slane %v2423_v4, 2  ;;  %10586 = vmatmul.mubr.msk.f32.vlgmr.msra.gmra.mrb[60].mxu1 %vm550_vm1, %v13690_v54  ;;  %v13859_v44 = vpop.f32.mrb[29].mxu0 }
 0x375   : > { %v2487_v61 = vadd.f32 %v2486_v38, %v2485_v59  ;;  %11008 = vmatpush3.bf16.xpose.msk.msra.mxu1 %vm12348_vm2, %v11003_v42  ;;  %10599 = vmatprep.mubr.msk.f32.mxu1 %vm550_vm1, %v13669_v1  ;;  %v3467_v30 = vsel %vm1257_vm3, %v13851_v5, -inf  ;;  %v3466_v63 = vsel %vm1257_vm3, %v13859_v44, -inf  ;;  %v1438_v56 = vadd.f32 %v1437_v41, %v1436_v9 }
 0x376   : > { %v2469_v46 = vmul.f32 1.442695, %v2445_v8  ;;  %v2471_v36 = vmul.f32 1.442695, %v2446_v51  ;;  %v2425_v53 = vmax.f32 %v2423_v4, %v2424_v25  ;;  %11017 = vmatprep.subr.msk.bf16.mxu1 %vm12348_vm2, %v11015_v62  ;;  %v3468_v54 = vmax.f32 %v3466_v63, %v3467_v30 }
 0x377   : > { %v2488_v21 = vrot.slane %v2487_v61, 4  ;;  %v11427_v42 = vunpack.i.l.bf16 %v13754_v11  ;;  %v1439_v1 = vrot.slane %v1438_v56, 1 }
 0x378   : > { %11477 = vpow2.f32 %v2469_v46  ;;  %v2426_v16 = vrot.slane %v2425_v53, 1  ;;  %v3469_v58 = vrot.slane %v3468_v54, 4 }
 0x379   : > { %v2489_v29 = vadd.f32 %v2488_v21, %v2487_v61  ;;  %11479 = vpow2.f32 %v2471_v36  ;;  %v1440_v33 = vadd.f32 %v1439_v1, %v1438_v56  ;;  %v11027_v45 = vpack.c.bf16 %v11428_v6, %v11427_v42 }
 0x37a   : > { %v13873_v15 = vpop.eup %11473  ;;  %v2427_v43 = vmax.f32 %v2425_v53, %v2426_v16  ;;  %v3470_v10 = vmax.f32 %v3468_v54, %v3469_v58  ;;  %v8881_v54 = vpop.permute.xlu0 %8880 }
 0x37b   : > { %v13875_v57 = vpop.eup %11475  ;;  %v2490_v52 = vrot.slane %v2489_v29, 2  ;;  %v2503_v17 = vsel %vm1257_vm3, %v13873_v15, 0.0  ;;  %v13879_v2 = vpop.f32.mrb[30].mxu0  ;;  %11481 = vrcp.f32 %v1440_v33 }
 0x37c   : > { %v2504_v11 = vsel %vm1257_vm3, %v13875_v57, 0.0  ;;  %v2449_v48 = vsub.f32 %v13825_v12, %v2427_v43  ;;  %v2450_v34 = vsub.f32 %v13817_v3, %v2427_v43  ;;  %v3471_v19 = vrot.slane %v3470_v10, 2  ;;  %10600 = vmatmul.mubr.msk.f32.vlgmr.msra.gmra.mrb[62].mxu1 %vm550_vm1, %v13736_v49  ;;  %v13887_v50 = vpop.f32.mrb[31].mxu0 }
 0x37d   : > { %v13889_v47 = vadd.f32 %v2504_v11, %v2503_v17  ;;  %11020 = vmatpush3.bf16.xpose.msk.msra.mxu1 %vm12348_vm2, %v11015_v62  ;;  %10613 = vmatprep.mubr.msk.f32.mxu1 %vm550_vm1, %v13752_v37  ;;  %v3485_v60 = vsel %vm1257_vm3, %v13879_v2, -inf  ;;  %v3484_v3 = vsel %vm1257_vm3, %v13887_v50, -inf  ;;  %v2491_v12 = vadd.f32 %v2490_v52, %v2489_v29 }
 0x37e   : > { %v2477_v9 = vmul.f32 1.442695, %v2449_v48  ;;  %v2479_v0 = vmul.f32 1.442695, %v2450_v34  ;;  %v3472_v49 = vmax.f32 %v3470_v10, %v3471_v19  ;;  %11029 = vmatprep.subr.msk.bf16.mxu1 %vm12348_vm2, %v11027_v45  ;;  %v3486_v4 = vmax.f32 %v3484_v3, %v3485_v60 }
 0x37f   : > { %v13901_v41 = vpop.f32.mrb[10].mxu1  ;;  %v2492_v62 = vrot.slane %v2491_v12, 1 }
 0x380   : > { %11483 = vpow2.f32 %v2477_v9  ;;  %v3473_v59 = vrot.slane %v3472_v49, 1  ;;  %v3487_v37 = vrot.slane %v3486_v4, 4  ;;  %v1322_v38 = vsel %vm1257_vm3, %v13901_v41, -inf  ;;  %v13905_v8 = vpop.f32.mrb[11].mxu1 }
 0x381   : > { %11485 = vpow2.f32 %v2479_v0  ;;  %v1321_v51 = vsel %vm1257_vm3, %v13905_v8, -inf  ;;  %v2493_v25 = vadd.f32 %v2492_v62, %v2491_v12  ;;  %v8883_v62 = vpop.permute.xlu1 %8882 }
 0x382   : > { %v13909_v61 = vpop.eup %11477  ;;  %v3474_v30 = vmax.f32 %v3472_v49, %v3473_v59  ;;  %v3488_v63 = vmax.f32 %v3486_v4, %v3487_v37  ;;  %v1323_v56 = vmax.f32 %v1321_v51, %v1322_v38 }
 0x383   : > { %16904 = vst [vmem:[#allocation33_spill] sm:$0xff] %v13909_v61  ;;  %v13911_v46 = vpop.eup %11479  ;;  %v2521_v36 = vsel %vm1257_vm3, %v13909_v61, 0.0  ;;  %v13915_v53 = vpop.f32.mrb[32].mxu0  ;;  %11487 = vrcp.f32 %v2493_v25  ;;  %v1507_v25 = vsel %vm1257_vm3, %v13842_v20, 0.0 }
 0x384   : > { %16905 = vst [vmem:[#allocation40_spill] sm:$0xff] %v13911_v46  ;;  %v2522_v21 = vsel %vm1257_vm3, %v13911_v46, 0.0  ;;  %v3538_v6 = vsub.f32 %v13859_v44, %v3474_v30  ;;  %v3539_v42 = vsub.f32 %v13851_v5, %v3474_v30  ;;  %v3489_v1 = vrot.slane %v3488_v63, 2  ;;  %10614 = vmatmul.mubr.msk.f32.vlgmr.msra.gmra.mrb[64].mxu1 %vm550_vm1, %v13780_v14  ;;  %v13923_v16 = vpop.f32.mrb[33].mxu0 }
 0x385   : > { %v11482_v58 = vpop.eup %11481  ;;  %v13925_v29 = vadd.f32 %v2522_v21, %v2521_v36  ;;  %v1324_v33 = vrot.slane %v1323_v56, 4  ;;  %11032 = vmatpush3.bf16.xpose.msk.msra.mxu1 %vm12348_vm2, %v11027_v45  ;;  %10627 = vmatprep.mubr.msk.f32.mxu1 %vm550_vm1, %v8881_v54  ;;  %v3503_v44 = vsel %vm1257_vm3, %v13915_v53, -inf  ;;  %v3502_v5 = vsel %vm1257_vm3, %v13923_v16, -inf }
 0x386   : > { %v3554_v43 = vmul.f32 1.442695, %v3538_v6  ;;  %v3556_v10 = vmul.f32 1.442695, %v3539_v42  ;;  %v3490_v14 = vmax.f32 %v3488_v63, %v3489_v1  ;;  %v3504_v52 = vmax.f32 %v3502_v5, %v3503_v44 }
 0x387   : > { %v1325_v17 = vmax.f32 %v1323_v56, %v1324_v33  ;;  %v13934_v11 = vpop.f32.mrb[12].mxu1  ;;  %v1471_v48 = vmul.f32 %v11482_v58, %v13813_v13  ;;  %v1470_v24 = vmul.f32 %v11482_v58, %v13807_v26  ;;  %vm9251_vm2 = vcmask 786144  }
 0x388   : > { %11489 = vpow2.f32 %v3554_v43  ;;  %v3491_v45 = vrot.slane %v3490_v14, 1  ;;  %v2375_v34 = vsel %vm1257_vm3, %v13934_v11, -inf  ;;  %v3505_v19 = vrot.slane %v3504_v52, 4  ;;  %v13940_v60 = vpop.f32.mrb[13].mxu1 }
 0x389   : > { %11491 = vpow2.f32 %v3556_v10  ;;  %v1326_v3 = vrot.slane %v1325_v17, 2  ;;  %v2374_v12 = vsel %vm1257_vm3, %v13940_v60, -inf  ;;  %v1513_v26 = vsel %vm1257_vm3, %v1471_v48, 0.0 }
 0x38a   : > { %v13944_v9 = vpop.eup %11483  ;;  %v3492_v0 = vmax.f32 %v3490_v14, %v3491_v45  ;;  %v3506_v49 = vmax.f32 %v3504_v52, %v3505_v19  ;;  %v2376_v13 = vmax.f32 %v2374_v12, %v2375_v34  ;;  %1514 = vadd.xlane.f32.xlu0 %v1513_v26  ;;  %v1510_v38 = vsel %vm1257_vm3, %v1470_v24, 0.0 }
 0x38b   : > { %16906 = vst [vmem:[#allocation49_spill] sm:$0xff] %v13944_v9  ;;  %v13947_v4 = vpop.eup %11485  ;;  %v2539_v59 = vsel %vm1257_vm3, %v13944_v9, 0.0  ;;  %v1327_v37 = vmax.f32 %v1325_v17, %v1326_v3  ;;  %v13952_v51 = vpop.f32.mrb[34].mxu0  ;;  %1511 = vadd.xlane.f32.xlu1 %v1510_v38  ;;  %v1504_v14 = vsel %vm1257_vm3, %v13845_v18, 0.0 }
 0x38c   : > { %16907 = vst [vmem:[#allocation45_spill] sm:$0xff] %v13947_v4  ;;  %v2540_v30 = vsel %vm1257_vm3, %v13947_v4, 0.0  ;;  %v3542_v63 = vsub.f32 %v13887_v50, %v3492_v0  ;;  %v3543_v56 = vsub.f32 %v13879_v2, %v3492_v0  ;;  %v3507_v36 = vrot.slane %v3506_v49, 2  ;;  %10628 = vmatmul.mubr.msk.f32.vlgmr.msra.gmra.mrb[66].mxu1 %vm550_vm1, %v8883_v62  ;;  %v13961_v54 = vpop.f32.mrb[35].mxu0 }
 0x38d   : > { %v11488_v21 = vpop.eup %11487  ;;  %v13963_v6 = vadd.f32 %v2540_v30, %v2539_v59  ;;  %v1328_v42 = vrot.slane %v1327_v37, 1  ;;  %v2377_v1 = vrot.slane %v2376_v13, 4  ;;  %v3521_v20 = vsel %vm1257_vm3, %v13952_v51, -inf }
 0x38e   : > { %v3562_v58 = vmul.f32 1.442695, %v3542_v63  ;;  %v3564_v33 = vmul.f32 1.442695, %v3543_v56  ;;  %v3508_v44 = vmax.f32 %v3506_v49, %v3507_v36  ;;  %v3520_v2 = vsel %vm1257_vm3, %v13961_v54, -inf  ;;  %1508 = vadd.xlane.f32.xlu0 %v1507_v25 }
 0x38f   : > { %v1329_v50 = vmax.f32 %v1327_v37, %v1328_v42  ;;  %v2378_v5 = vmax.f32 %v2376_v13, %v2377_v1  ;;  %v13969_v43 = vpop.f32.mrb[14].mxu1  ;;  %v3522_v10 = vmax.f32 %v3520_v2, %v3521_v20  ;;  %1505 = vadd.xlane.f32.xlu1 %v1504_v14  ;;  %v2566_v48 = vmul.f32 %v11488_v21, %v13847_v55 }
 0x390   : > { %11493 = vpow2.f32 %v3562_v58  ;;  %v3509_v52 = vrot.slane %v3508_v44, 1  ;;  %v13973_v17 = vpop.f32.mrb[15].mxu1  ;;  %v2393_v34 = vsel %vm1257_vm3, %v13969_v43, -inf }
 0x391   : > { %11495 = vpow2.f32 %v3564_v33  ;;  %v1344_v24 = vsub.f32 %v13905_v8, %v1329_v50  ;;  %v1345_v45 = vsub.f32 %v13901_v41, %v1329_v50  ;;  %v2379_v12 = vrot.slane %v2378_v5, 2 }
 0x392   : > { %v13980_v19 = vpop.eup %11489  ;;  %v3510_v3 = vmax.f32 %v3508_v44, %v3509_v52  ;;  %v3523_v18 = vrot.slane %v3522_v10, 4  ;;  %v2392_v0 = vsel %vm1257_vm3, %v13973_v17, -inf  ;;  %v2565_v33 = vmul.f32 %v11488_v21, %v13839_v7 }
 0x393   : > { %16908 = vst [vmem:[#allocation39_spill] sm:$0xff] %v13980_v19  ;;  %v13984_v49 = vpop.eup %11491  ;;  %v3586_v55 = vsel %vm1257_vm3, %v13980_v19, 0.0  ;;  %v1374_v13 = vmul.f32 1.442695, %v1344_v24  ;;  %v1376_v8 = vmul.f32 1.442695, %v1345_v45  ;;  %v2380_v59 = vmax.f32 %v2378_v5, %v2379_v12 }
 0x394   : > { %16909 = vst [vmem:[#allocation47_spill] sm:$0xff] %v13984_v49  ;;  %v3587_v41 = vsel %vm1257_vm3, %v13984_v49, 0.0  ;;  %v3546_v26 = vsub.f32 %v13923_v16, %v3510_v3  ;;  %v3547_v62 = vsub.f32 %v13915_v53, %v3510_v3  ;;  %v13992_v37 = vpop.f32.mrb[36].mxu0  ;;  %v3524_v25 = vmax.f32 %v3522_v10, %v3523_v18 }
 0x395   : > { %v13994_v38 = vadd.f32 %v3587_v41, %v3586_v55  ;;  %11497 = vpow2.f32 %v1374_v13  ;;  %v2394_v30 = vmax.f32 %v2392_v0, %v2393_v34  ;;  %v13996_v63 = vpop.f32.mrb[37].mxu0  ;;  %v2381_v42 = vrot.slane %v2380_v59, 1 }
 0x396   : > { %11499 = vpow2.f32 %v1376_v8  ;;  %v3570_v56 = vmul.f32 1.442695, %v3546_v26  ;;  %v3572_v36 = vmul.f32 1.442695, %v3547_v62  ;;  %v3525_v1 = vrot.slane %v3524_v25, 2 }
 0x397   : > { %v2395_v20 = vrot.slane %v2394_v30, 4  ;;  %v2584_v16 = vsel %vm1257_vm3, %v2566_v48, 0.0  ;;  %v13999_v58 = vpop.f32.mrb[16].mxu1  ;;  %v2382_v53 = vmax.f32 %v2380_v59, %v2381_v42  ;;  %v2581_v52 = vsel %vm1257_vm3, %v2565_v33, 0.0 }
 0x398   : > { %11501 = vpow2.f32 %v3570_v56  ;;  %2585 = vadd.xlane.f32.xlu0 %v2584_v16  ;;  %v14002_v44 = vpop.f32.mrb[17].mxu1  ;;  %v3526_v2 = vmax.f32 %v3524_v25, %v3525_v1  ;;  %v4568_v48 = vsel %vm1257_vm3, %v13992_v37, -inf  ;;  %2582 = vadd.xlane.f32.xlu1 %v2581_v52  ;;  %v2411_v34 = vsel %vm1257_vm3, %v13999_v58, -inf }
 0x399   : > { %11503 = vpow2.f32 %v3572_v36  ;;  %v2396_v50 = vmax.f32 %v2394_v30, %v2395_v20  ;;  %v2439_v10 = vsub.f32 %v13940_v60, %v2382_v53  ;;  %v2440_v14 = vsub.f32 %v13934_v11, %v2382_v53 }
 0x39a   : > { %v14004_v5 = vpop.eup %11493  ;;  %v3527_v21 = vrot.slane %v3526_v2, 1  ;;  %v4567_v18 = vsel %vm1257_vm3, %v13996_v63, -inf  ;;  %v2410_v26 = vsel %vm1257_vm3, %v14002_v44, -inf }
 0x39b   : > { %16910 = vst [vmem:[#allocation38_spill] sm:$0xff] %v14004_v5  ;;  %v14011_v24 = vpop.eup %11495  ;;  %v3604_v7 = vsel %vm1257_vm3, %v14004_v5, 0.0  ;;  %v2397_v45 = vrot.slane %v2396_v50, 2  ;;  %v14017_v3 = vpop.f32.mrb[38].mxu0  ;;  %v2457_v60 = vmul.f32 1.442695, %v2439_v10  ;;  %v4569_v8 = vmax.f32 %v4567_v18, %v4568_v48 }
 0x39c   : > { %16911 = vst [vmem:[#allocation51_spill] sm:$0xff] %v14011_v24  ;;  %v3605_v11 = vsel %vm1257_vm3, %v14011_v24, 0.0  ;;  %v2459_v12 = vmul.f32 1.442695, %v2440_v14  ;;  %v3528_v55 = vmax.f32 %v3526_v2, %v3527_v21  ;;  %v14025_v41 = vpop.f32.mrb[39].mxu0  ;;  %v2412_v20 = vmax.f32 %v2410_v26, %v2411_v34 }
 0x39d   : > { %v14023_v0 = vadd.f32 %v3605_v11, %v3604_v7  ;;  %v2398_v13 = vmax.f32 %v2396_v50, %v2397_v45  ;;  %11505 = vpow2.f32 %v2457_v60  ;;  %v4570_v1 = vrot.slane %v4569_v8, 4 }
 0x39e   : > { %11507 = vpow2.f32 %v2459_v12  ;;  %v3550_v59 = vsub.f32 %v13961_v54, %v3528_v55  ;;  %v3551_v25 = vsub.f32 %v13952_v51, %v3528_v55  ;;  %v2413_v14 = vrot.slane %v2412_v20, 4 }
 0x39f   : > { %v14029_v62 = vpop.eup %11497  ;;  %v14033_v30 = vpop.f32.mrb[18].mxu1  ;;  %v2399_v42 = vrot.slane %v2398_v13, 1  ;;  %v4571_v10 = vmax.f32 %v4569_v8, %v4570_v1  ;;  %v4586_v34 = vsel %vm1257_vm3, %v14017_v3, -inf  ;;  %v4585_v8 = vsel %vm1257_vm3, %v14025_v41, -inf }
 0x3a0   : > { %v14035_v56 = vpop.eup %11499  ;;  %v1441_v36 = vsel %vm1257_vm3, %v14029_v62, 0.0  ;;  %v14039_v16 = vpop.f32.mrb[19].mxu1  ;;  %v3578_v33 = vmul.f32 1.442695, %v3550_v59  ;;  %v3580_v2 = vmul.f32 1.442695, %v3551_v25  ;;  %v2414_v55 = vmax.f32 %v2412_v20, %v2413_v14 }
 0x3a1   : > { %v1442_v53 = vsel %vm1257_vm3, %v14035_v56, 0.0  ;;  %v2400_v50 = vmax.f32 %v2398_v13, %v2399_v42  ;;  %v4572_v18 = vrot.slane %v4571_v10, 2  ;;  %v4587_v1 = vmax.f32 %v4585_v8, %v4586_v34 }
 0x3a2   : > { %v14043_v54 = vpop.eup %11501  ;;  %v14045_v51 = vadd.f32 %v1442_v53, %v1441_v36  ;;  %11509 = vpow2.f32 %v3578_v33  ;;  %v2415_v25 = vrot.slane %v2414_v55, 2 }
 0x3a3   : > { %16912 = vst [vmem:[#allocation54_spill] sm:$0xff] %v14043_v54  ;;  %v14047_v52 = vpop.eup %11503  ;;  %v3622_v48 = vsel %vm1257_vm3, %v14043_v54, 0.0  ;;  %v14051_v7 = vpop.f32.mrb[40].mxu0  ;;  %11511 = vpow2.f32 %v3580_v2  ;;  %v2443_v45 = vsub.f32 %v13973_v17, %v2400_v50  ;;  %v2444_v12 = vsub.f32 %v13969_v43, %v2400_v50 }
 0x3a4   : > { %16913 = vst [vmem:[#allocation34_spill] sm:$0xff] %v14047_v52  ;;  %v3623_v21 = vsel %vm1257_vm3, %v14047_v52, 0.0  ;;  %v14058_v11 = vpop.f32.mrb[41].mxu0  ;;  %v4573_v59 = vmax.f32 %v4571_v10, %v4572_v18  ;;  %v2429_v17 = vsel %vm1257_vm3, %v14033_v30, -inf  ;;  %v2428_v43 = vsel %vm1257_vm3, %v14039_v16, -inf }
 0x3a5   : > { %v14060_v60 = vadd.f32 %v3623_v21, %v3622_v48  ;;  %v2465_v13 = vmul.f32 1.442695, %v2443_v45  ;;  %v2467_v26 = vmul.f32 1.442695, %v2444_v12  ;;  %v2416_v10 = vmax.f32 %v2414_v55, %v2415_v25 }
 0x3a6   : > { %v4574_v2 = vrot.slane %v4573_v59, 1  ;;  %v4588_v14 = vrot.slane %v4587_v1, 4  ;;  %v2430_v48 = vmax.f32 %v2428_v43, %v2429_v17  ;;  %v2506_v12 = vrot.slane %v13889_v47, 4 }
 0x3a7   : > { %v14067_v36 = vpop.f32.mrb[20].mxu1  ;;  %v14069_v42 = vpop.eup %11505  ;;  %11513 = vpow2.f32 %v2465_v13  ;;  %v2417_v18 = vrot.slane %v2416_v10, 1  ;;  %v4604_v25 = vsel %vm1257_vm3, %v14051_v7, -inf }
 0x3a8   : > { %v14073_v20 = vpop.f32.mrb[21].mxu1  ;;  %v14075_v53 = vpop.eup %11507  ;;  %v2494_v33 = vsel %vm1257_vm3, %v14069_v42, 0.0  ;;  %11515 = vpow2.f32 %v2467_v26  ;;  %v4575_v45 = vmax.f32 %v4573_v59, %v4574_v2  ;;  %v4589_v13 = vmax.f32 %v4587_v1, %v4588_v14 }
 0x3a9   : > { %16914 = vst [vmem:[#allocation44_spill] sm:$0xff] %v14075_v53  ;;  %v2495_v50 = vsel %vm1257_vm3, %v14075_v53, 0.0  ;;  %v2431_v8 = vrot.slane %v2430_v48, 4  ;;  %v4603_v59 = vsel %vm1257_vm3, %v14058_v11, -inf  ;;  %v2418_v43 = vmax.f32 %v2416_v10, %v2417_v18 }
 0x3aa   : > { %v14081_v21 = vadd.f32 %v2495_v50, %v2494_v33  ;;  %v4639_v40 = vsub.f32 %v13996_v63, %v4575_v45  ;;  %v4640_v55 = vsub.f32 %v13992_v37, %v4575_v45  ;;  %v4590_v33 = vrot.slane %v4589_v13, 2 }
 0x3ab   : > { %v14083_v34 = vpop.f32.mrb[42].mxu0  ;;  %v2432_v2 = vmax.f32 %v2430_v48, %v2431_v8  ;;  %v2447_v39 = vsub.f32 %v14002_v44, %v2418_v43  ;;  %v2448_v52 = vsub.f32 %v13999_v58, %v2418_v43  ;;  %v2524_v10 = vrot.slane %v13925_v29, 4  ;;  %v1476_v48 = vpop.xlane.xlu0 %1475 }
 0x3ac   : > { %v14086_v35 = vpop.f32.mrb[43].mxu0  ;;  %v14088_v26 = vpop.eup %11509  ;;  %v4655_v63 = vmul.f32 1.442695, %v4639_v40  ;;  %v4657_v14 = vmul.f32 1.442695, %v4640_v55  ;;  %v4591_v54 = vmax.f32 %v4589_v13, %v4590_v33  ;;  %v4605_v8 = vmax.f32 %v4603_v59, %v4604_v25 }
 0x3ad   : > { %16915 = vst [vmem:[#allocation41_spill] sm:$0xff] %v14088_v26  ;;  %v14096_v17 = vpop.eup %11511  ;;  %v3640_v1 = vsel %vm1257_vm3, %v14088_v26, 0.0  ;;  %v2433_v18 = vrot.slane %v2432_v2, 2  ;;  %v2473_v40 = vmul.f32 1.442695, %v2447_v39  ;;  %v1522_v39 = vmul.f32 %v1476_v48, %v12344_v23 }
 0x3ae   : > { %16916 = vst [vmem:[#allocation50_spill] sm:$0xff] %v14096_v17  ;;  %v3641_v50 = vsel %vm1257_vm3, %v14096_v17, 0.0  ;;  %11517 = vpow2.f32 %v4655_v63  ;;  %v2475_v55 = vmul.f32 1.442695, %v2448_v52  ;;  %v4592_v13 = vrot.slane %v4591_v54, 1 }
 0x3af   : > { %v14102_v37 = vpop.f32.mrb[22].mxu1  ;;  %v14104_v45 = vadd.f32 %v3641_v50, %v3640_v1  ;;  %11519 = vpow2.f32 %v4657_v14  ;;  %v3476_v1 = vsel %vm1257_vm3, %v14067_v36, -inf  ;;  %v2434_v43 = vmax.f32 %v2432_v2, %v2433_v18  ;;  %v1479_v50 = vpop.xlane.xlu1 %1478 }
 0x3b0   : > { %v14108_v24 = vpop.f32.mrb[23].mxu1  ;;  %v4606_v33 = vrot.slane %v4605_v8, 4  ;;  %11521 = vpow2.f32 %v2473_v40  ;;  %v3475_v52 = vsel %vm1257_vm3, %v14073_v20, -inf  ;;  %v4593_v26 = vmax.f32 %v4591_v54, %v4592_v13 }
 0x3b1   : > { %v14111_v17 = vpop.eup %11513  ;;  %11523 = vpow2.f32 %v2475_v55  ;;  %v2435_v2 = vrot.slane %v2434_v43, 1  ;;  %v3477_v5 = vmax.f32 %v3475_v52, %v3476_v1  ;;  %v1523_v49 = vmul.f32 %v12338_v22, %v1479_v50 }
 0x3b2   : > { %16917 = vst [vmem:[#allocation36_spill] sm:$0xff] %v14111_v17  ;;  %v14115_v44 = vpop.eup %11515  ;;  %v2512_v58 = vsel %vm1257_vm3, %v14111_v17, 0.0  ;;  %v4607_v18 = vmax.f32 %v4605_v8, %v4606_v33  ;;  %v14132_v19 = vadd.f32 %v2506_v12, %v13889_v47  ;;  %v4643_v48 = vsub.f32 %v14025_v41, %v4593_v26 }
 0x3b3   : > { %16918 = vst [vmem:[#allocation48_spill] sm:$0xff] %v14115_v44  ;;  %v14119_v63 = vpop.f32.mrb[44].mxu0  ;;  %v2513_v25 = vsel %vm1257_vm3, %v14115_v44, 0.0  ;;  %v4644_v40 = vsub.f32 %v14017_v3, %v4593_v26  ;;  %v2436_v23 = vmax.f32 %v2434_v43, %v2435_v2  ;;  %v3478_v55 = vrot.slane %v3477_v5, 4 }
 0x3b4   : > { %v14126_v59 = vpop.f32.mrb[45].mxu0  ;;  %v14128_v14 = vadd.f32 %v2513_v25, %v2512_v58  ;;  %v14139_v58 = vadd.f32 %v2524_v10, %v13925_v29  ;;  %v4608_v54 = vrot.slane %v4607_v18, 2  ;;  %v1540_v8 = vsel %vm1538_vm4, %v1523_v49, 0.0 }
 0x3b5   : > { %v1539_v13 = vsel %vm1538_vm4, %v1522_v39, 0.0  ;;  %v4663_v47 = vmul.f32 1.442695, %v4643_v48  ;;  %v4665_v12 = vmul.f32 1.442695, %v4644_v40  ;;  %v2451_v41 = vsub.f32 %v14039_v16, %v2436_v23 }
 0x3b6   : > { %v2452_v3 = vsub.f32 %v14033_v30, %v2436_v23  ;;  %v4609_v26 = vmax.f32 %v4607_v18, %v4608_v54  ;;  %v3479_v43 = vmax.f32 %v3477_v5, %v3478_v55  ;;  %v14147_v33 = vadd.f32 %v1540_v8, %v1539_v13 }
 0x3b7   : > { %v14136_v4 = vpop.f32.mrb[24].mxu1  ;;  %v2542_v10 = vrot.slane %v13963_v6, 4  ;;  %11525 = vpow2.f32 %v4663_v47  ;;  %v2481_v49 = vmul.f32 1.442695, %v2451_v41  ;;  %v4622_v50 = vsel %vm1257_vm3, %v14083_v34, -inf }
 0x3b8   : > { %v14142_v1 = vpop.f32.mrb[25].mxu1  ;;  %v14149_v29 = vpop.eup %11517  ;;  %11527 = vpow2.f32 %v4665_v12  ;;  %v2483_v5 = vmul.f32 1.442695, %v2452_v3  ;;  %v4610_v30 = vrot.slane %v4609_v26, 1  ;;  %v3589_v52 = vrot.slane %v13994_v38, 4 }
 0x3b9   : > { %16919 = vst [vmem:[#allocation46_spill] sm:$0xff] %v14149_v29  ;;  %v14156_v39 = vpop.eup %11519  ;;  %v4687_v23 = vsel %vm1257_vm3, %v14149_v29, 0.0  ;;  %11529 = vpow2.f32 %v2481_v49  ;;  %v3480_v18 = vrot.slane %v3479_v43, 2  ;;  %v4621_v55 = vsel %vm1257_vm3, %v14086_v35, -inf }
 0x3ba   : > { %16920 = vst [vmem:[#allocation37_spill] sm:$0xff] %v14156_v39  ;;  %v4688_v2 = vsel %vm1257_vm3, %v14156_v39, 0.0  ;;  %v14165_v48 = vpop.eup %11521  ;;  %11531 = vpow2.f32 %v2483_v5  ;;  %v4611_v54 = vmax.f32 %v4609_v26, %v4610_v30  ;;  %v1444_v13 = vrot.slane %v14045_v51, 4 }
 0x3bb   : > { %v14154_v25 = vpop.f32.mrb[46].mxu0  ;;  %16921 = vst [vmem:[#allocation52_spill] sm:$0xff] %v14165_v48  ;;  %v14167_v40 = vadd.f32 %v4688_v2, %v4687_v23  ;;  %v14171_v8 = vpop.eup %11523  ;;  %v2530_v47 = vsel %vm1257_vm3, %v14165_v48, 0.0  ;;  %v3481_v12 = vmax.f32 %v3479_v43, %v3480_v18  ;;  %v4623_v41 = vmax.f32 %v4621_v55, %v4622_v50 }
 0x3bc   : > { %v14160_v16 = vpop.f32.mrb[47].mxu0  ;;  %16922 = vst [vmem:[#allocation35_spill] sm:$0xff] %v14171_v8  ;;  %v3607_v49 = vrot.slane %v14023_v0, 4  ;;  %v2531_v23 = vsel %vm1257_vm3, %v14171_v8, 0.0  ;;  %v4647_v26 = vsub.f32 %v14058_v11, %v4611_v54  ;;  %v4648_v5 = vsub.f32 %v14051_v7, %v4611_v54 }
 0x3bd   : > { %v14185_v2 = vadd.f32 %v2531_v23, %v2530_v47  ;;  %v3482_v22 = vrot.slane %v3481_v12, 1  ;;  %v3494_v43 = vsel %vm1257_vm3, %v14102_v37, -inf  ;;  %v4624_v50 = vrot.slane %v4623_v41, 4 }
 0x3be   : > { %v4671_v55 = vmul.f32 1.442695, %v4647_v26  ;;  %v4673_v39 = vmul.f32 1.442695, %v4648_v5  ;;  %v3493_v29 = vsel %vm1257_vm3, %v14108_v24, -inf  ;;  %v1445_v7 = vadd.f32 %v1444_v13, %v14045_v51 }
 0x3bf   : > { %v14176_v3 = vpop.f32.mrb[26].mxu1  ;;  %v3483_v54 = vmax.f32 %v3481_v12, %v3482_v22  ;;  %v4625_v8 = vmax.f32 %v4623_v41, %v4624_v50  ;;  %v14197_v23 = vadd.f32 %v2542_v10, %v13963_v6  ;;  %v14200_v48 = vadd.f32 %v3589_v52, %v13994_v38 }
 0x3c0   : > { %v14183_v30 = vpop.f32.mrb[27].mxu1  ;;  %11533 = vpow2.f32 %v4671_v55  ;;  %v3495_v26 = vmax.f32 %v3493_v29, %v3494_v43  ;;  %v14207_v11 = vadd.f32 %v3607_v49, %v14023_v0  ;;  %v3625_v6 = vrot.slane %v14060_v60, 4 }
 0x3c1   : > { %16923 = vst [vmem:[#allocation42_spill] sm:$0xff] %v14197_v23  ;;  %16924 = vst [vmem:[#allocation43_spill] sm:$0xff] %v14200_v48  ;;  %v14204_v18 = vpop.eup %11525  ;;  %11535 = vpow2.f32 %v4673_v39  ;;  %v3540_v22 = vsub.f32 %v14073_v20, %v3483_v54  ;;  %v3541_v51 = vsub.f32 %v14067_v36, %v3483_v54  ;;  %v4626_v29 = vrot.slane %v4625_v8, 2 }
 0x3c2   : > { %16925 = vst [vmem:[#allocation53_spill] sm:$0xff] %v14204_v18  ;;  %16926 = vst [vmem:[#allocation55_spill] sm:$0xff] %v14207_v11  ;;  %v14211_v13 = vpop.eup %11527  ;;  %v4705_v38 = vsel %vm1257_vm3, %v14204_v18, 0.0  ;;  %v3496_v10 = vrot.slane %v3495_v26, 4  ;;  %v1446_v12 = vrot.slane %v1445_v7, 2  ;;  %v1542_v43 = vrot.slane %v14147_v33, 4 }
 0x3c3   : > { %v14194_v47 = vpop.f32.mrb[48].mxu0  ;;  %16927 = vst [vmem:[#allocation57_spill] sm:$0xff] %v14211_v13  ;;  %v14216_v52 = vpop.eup %11529  ;;  %v4706_v0 = vsel %vm1257_vm3, %v14211_v13, 0.0  ;;  %v3558_v39 = vmul.f32 1.442695, %v3540_v22  ;;  %v4627_v50 = vmax.f32 %v4625_v8, %v4626_v29  ;;  %v5669_v22 = vsel %vm1257_vm3, %v14119_v63, -inf }
 0x3c4   : > { %v14202_v5 = vpop.f32.mrb[49].mxu0  ;;  %16928 = vst [vmem:[#allocation56_spill] sm:$0xff] %v14216_v52  ;;  %v3560_v41 = vmul.f32 1.442695, %v3541_v51  ;;  %v14220_v20 = vpop.eup %11531  ;;  %v14222_v36 = vadd.f32 %v4706_v0, %v4705_v38  ;;  %v2548_v49 = vsel %vm1257_vm3, %v14216_v52, 0.0  ;;  %v3497_v18 = vmax.f32 %v3495_v26, %v3496_v10 }
 0x3c5   : > { %16929 = vst [vmem:[#allocation59_spill] sm:$0xff] %v14220_v20  ;;  %v2549_v54 = vsel %vm1257_vm3, %v14220_v20, 0.0  ;;  %11537 = vpow2.f32 %v3558_v39  ;;  %v4628_v0 = vrot.slane %v4627_v50, 1  ;;  %v3512_v13 = vsel %vm1257_vm3, %v14136_v4, -inf  ;;  %v1482_v8 = vpop.xlane.xlu0 %1481 }
 0x3c6   : > { %v14235_v38 = vadd.f32 %v2549_v54, %v2548_v49  ;;  %11539 = vpow2.f32 %v3560_v41  ;;  %v3498_v52 = vrot.slane %v3497_v18, 2  ;;  %v5668_v39 = vsel %vm1257_vm3, %v14126_v59, -inf }
 0x3c7   : > { %v14227_v55 = vpop.f32.mrb[28].mxu1  ;;  %v3511_v26 = vsel %vm1257_vm3, %v14142_v1, -inf  ;;  %v1543_v41 = vadd.f32 %v1542_v43, %v14147_v33  ;;  %v4629_v54 = vmax.f32 %v4627_v50, %v4628_v0  ;;  %v5670_v20 = vmax.f32 %v5668_v39, %v5669_v22 }
 0x3c8   : > { %v14233_v51 = vpop.f32.mrb[29].mxu1  ;;  %v14252_v29 = vadd.f32 %v3625_v6, %v14060_v60  ;;  %v3499_v17 = vmax.f32 %v3497_v18, %v3498_v52  ;;  %v3513_v46 = vmax.f32 %v3511_v26, %v3512_v13  ;;  %v2497_v23 = vrot.slane %v14081_v21, 4 }
 0x3c9   : > { %v4651_v53 = vsub.f32 %v14086_v35, %v4629_v54  ;;  %v4652_v49 = vsub.f32 %v14083_v34, %v4629_v54  ;;  %v1447_v33 = vadd.f32 %v1446_v12, %v1445_v7  ;;  %v5671_v0 = vrot.slane %v5670_v20, 4  ;;  %v1485_v35 = vpop.xlane.xlu0 %1484 }
 0x3ca   : > { %16930 = vst [vmem:[#allocation58_spill] sm:$0xff] %v14252_v29  ;;  %v14254_v61 = vpop.eup %11533  ;;  %v3500_v22 = vrot.slane %v3499_v17, 1  ;;  %v3514_v60 = vrot.slane %v3513_v46, 4  ;;  %v1544_v13 = vrot.slane %v1543_v41, 2  ;;  %v14272_v44 = vadd.f32 %v2497_v23, %v14081_v21 }
 0x3cb   : > { %v14244_v10 = vpop.f32.mrb[50].mxu0  ;;  %16931 = vst [vmem:[#allocation60_spill] sm:$0xff] %v14254_v61  ;;  %v14259_v43 = vpop.eup %11535  ;;  %v4723_v50 = vsel %vm1257_vm3, %v14254_v61, 0.0  ;;  %v4679_v52 = vmul.f32 1.442695, %v4651_v53  ;;  %v5672_v7 = vmax.f32 %v5670_v20, %v5671_v0  ;;  %v1524_v61 = vmul.f32 %v1482_v8, %v12366_v28 }
 0x3cc   : > { %v14248_v9 = vpop.f32.mrb[51].mxu0  ;;  %16932 = vst [vmem:[#allocation61_spill] sm:$0xff] %v14259_v43  ;;  %v4724_v18 = vsel %vm1257_vm3, %v14259_v43, 0.0  ;;  %v4681_v39 = vmul.f32 1.442695, %v4652_v49  ;;  %v3501_v34 = vmax.f32 %v3499_v17, %v3500_v22  ;;  %v3515_v12 = vmax.f32 %v3513_v46, %v3514_v60 }
 0x3cd   : > { %v14267_v26 = vadd.f32 %v4724_v18, %v4723_v50  ;;  %11541 = vpow2.f32 %v4679_v52  ;;  %v1448_v11 = vrot.slane %v1447_v33, 1  ;;  %v1525_v17 = vmul.f32 %v12360_v27, %v1485_v35 }
 0x3ce   : > { %11543 = vpow2.f32 %v4681_v39  ;;  %v3544_v53 = vsub.f32 %v14108_v24, %v3501_v34  ;;  %v3545_v49 = vsub.f32 %v14102_v37, %v3501_v34  ;;  %v5673_v23 = vrot.slane %v5672_v7, 2 }
 0x3cf   : > { %v14263_v6 = vpop.f32.mrb[30].mxu1  ;;  %v14275_v48 = vpop.eup %11537  ;;  %v3516_v50 = vrot.slane %v3515_v12, 2  ;;  %v1449_v8 = vadd.f32 %v1448_v11, %v1447_v33  ;;  %v14290_v24 = vadd.f32 %v1544_v13, %v1543_v41  ;;  %v1548_v35 = vsel %vm1538_vm4, %v1524_v61, 0.0 }
 0x3d0   : > { %v14269_v54 = vpop.f32.mrb[31].mxu1  ;;  %16933 = vst [vmem:[#allocation62_spill] sm:$0xff] %v14275_v48  ;;  %v14282_v46 = vpop.eup %11539  ;;  %v3595_v21 = vsel %vm1257_vm3, %v14275_v48, 0.0  ;;  %v3566_v37 = vmul.f32 1.442695, %v3544_v53  ;;  %v5674_v52 = vmax.f32 %v5672_v7, %v5673_v23  ;;  %v1549_v34 = vsel %vm1538_vm4, %v1525_v17, 0.0 }
 0x3d1   : > { %16934 = vst [vmem:[#allocation63_spill] sm:$0xff] %v14282_v46  ;;  %v3596_v0 = vsel %vm1257_vm3, %v14282_v46, 0.0  ;;  %v3568_v60 = vmul.f32 1.442695, %v3545_v49  ;;  %v3517_v39 = vmax.f32 %v3515_v12, %v3516_v50  ;;  %11545 = vrcp.f32 %v1449_v8 }
 0x3d2   : > { %v14292_v18 = vadd.f32 %v3596_v0, %v3595_v21  ;;  %11547 = vpow2.f32 %v3566_v37  ;;  %v5687_v11 = vsel %vm1257_vm3, %v14154_v25, -inf  ;;  %v5675_v41 = vrot.slane %v5674_v52, 1 }
 0x3d3   : > { %v14280_v20 = vpop.f32.mrb[52].mxu0  ;;  %11549 = vpow2.f32 %v3568_v60  ;;  %v3518_v13 = vrot.slane %v3517_v39, 1  ;;  %v3530_v53 = vsel %vm1257_vm3, %v14176_v3, -inf  ;;  %v1550_v7 = vadd.f32 %v1549_v34, %v1548_v35 }
 0x3d4   : > { %v14286_v22 = vpop.f32.mrb[53].mxu0  ;;  %v5686_v12 = vsel %vm1257_vm3, %v14160_v16, -inf  ;;  %v3529_v61 = vsel %vm1257_vm3, %v14183_v30, -inf  ;;  %v16935_v17 = vrot.slane %v14132_v19, 2  ;;  %v5676_v50 = vmax.f32 %v5674_v52, %v5675_v41 }
 0x3d5   : > { %v3519_v8 = vmax.f32 %v3517_v39, %v3518_v13  ;;  %v5688_v0 = vmax.f32 %v5686_v12, %v5687_v11  ;;  %v1546_v60 = vrot.slane %v14290_v24, 1  ;;  %v1551_v35 = vrot.slane %v1550_v7, 4  ;;  %v1488_v12 = vpop.xlane.xlu1 %1487 }
 0x3d6   : > { %v2509_v21 = vadd.f32 %v16935_v17, %v14132_v19  ;;  %v3531_v34 = vmax.f32 %v3529_v61, %v3530_v53  ;;  %v5740_v43 = vsub.f32 %v14126_v59, %v5676_v50  ;;  %v5741_v46 = vsub.f32 %v14119_v63, %v5676_v50 }
 0x3d7   : > { %v14298_v33 = vpop.f32.mrb[32].mxu1  ;;  %v14316_v28 = vpop.eup %11541  ;;  %v3548_v19 = vsub.f32 %v14142_v1, %v3519_v8  ;;  %v3549_v41 = vsub.f32 %v14136_v4, %v3519_v8  ;;  %v1552_v13 = vadd.f32 %v1551_v35, %v1550_v7  ;;  %v5689_v53 = vrot.slane %v5688_v0, 4 }
 0x3d8   : > { %v14302_v49 = vpop.f32.mrb[33].mxu1  ;;  %16936 = vst [vmem:[#allocation64_spill] sm:$0xff] %v14316_v28  ;;  %v2510_v17 = vrot.slane %v2509_v21, 1  ;;  %v14323_v39 = vpop.eup %11543  ;;  %v4741_v11 = vsel %vm1257_vm3, %v14316_v28, 0.0  ;;  %v5756_v63 = vmul.f32 1.442695, %v5740_v43  ;;  %v1526_v7 = vmul.f32 %v1488_v12, %v12387_v32 }
 0x3d9   : > { %16938 = vst [vmem:[#allocation66_spill] sm:$0xff] %v14323_v39  ;;  %v4742_v59 = vsel %vm1257_vm3, %v14323_v39, 0.0  ;;  %v5758_v61 = vmul.f32 1.442695, %v5741_v46  ;;  %v3532_v1 = vrot.slane %v3531_v34, 4  ;;  %v1553_v48 = vrot.slane %v1552_v13, 2 }
 0x3da   : > { %v14330_v50 = vadd.f32 %v4742_v59, %v4741_v11  ;;  %v3574_v23 = vmul.f32 1.442695, %v3548_v19  ;;  %v3576_v37 = vmul.f32 1.442695, %v3549_v41  ;;  %11551 = vpow2.f32 %v5756_v63 }
 0x3db   : > { %v14314_v27 = vpop.f32.mrb[54].mxu0  ;;  %v11546_v28 = vpop.eup %11545  ;;  %v5690_v4 = vmax.f32 %v5688_v0, %v5689_v53  ;;  %v3533_v8 = vmax.f32 %v3531_v34, %v3532_v1  ;;  %11553 = vpow2.f32 %v5758_v61  ;;  %v2511_v19 = vadd.f32 %v2510_v17, %v2509_v21 }
 0x3dc   : > { %v14321_v52 = vpop.f32.mrb[55].mxu0  ;;  %v1473_v43 = vmul.f32 %v11546_v28, %v14035_v56  ;;  %v1472_v46 = vmul.f32 %v11546_v28, %v14029_v62  ;;  %11555 = vpow2.f32 %v3574_v23  ;;  %v1554_v0 = vadd.f32 %v1553_v48, %v1552_v13  ;;  %v1491_v56 = vpop.xlane.xlu0 %1490 }
 0x3dd   : > { %16937 = vst [vmem:[#allocation65_spill] sm:$0xff] %v14321_v52  ;;  %v14337_v52 = vpop.eup %11547  ;;  %v5691_v34 = vrot.slane %v5690_v4, 2  ;;  %v3643_v53 = vrot.slane %v14104_v45, 4  ;;  %11557 = vpow2.f32 %v3576_v37  ;;  %v2515_v17 = vrot.slane %v14128_v14, 4 }
 0x3de   : > { %16939 = vst [vmem:[#allocation67_spill] sm:$0xff] %v14337_v52  ;;  %v14341_v11 = vpop.eup %11549  ;;  %v3613_v41 = vsel %vm1257_vm3, %v14337_v52, 0.0  ;;  %v1519_v59 = vsel %vm1257_vm3, %v1473_v43, 0.0  ;;  %v1516_v62 = vsel %vm1257_vm3, %v1472_v46, 0.0  ;;  %v1555_v21 = vrot.slane %v1554_v0, 1 }
 0x3df   : > { %v14332_v29 = vpop.f32.mrb[34].mxu1  ;;  %16940 = vst [vmem:[#allocation68_spill] sm:$0xff] %v14341_v11  ;;  %v3614_v12 = vsel %vm1257_vm3, %v14341_v11, 0.0  ;;  %1520 = vadd.xlane.f32.xlu0 %v1519_v59  ;;  %v5692_v23 = vmax.f32 %v5690_v4, %v5691_v34  ;;  %v1547_v13 = vadd.f32 %v1546_v60, %v14290_v24  ;;  %1517 = vadd.xlane.f32.xlu1 %v1516_v62  ;;  %v3534_v37 = vrot.slane %v3533_v8, 2 }
 0x3e0   : > { %v14335_v35 = vpop.f32.mrb[35].mxu1  ;;  %v14351_v28 = vadd.f32 %v3614_v12, %v3613_v41  ;;  %11559 = vrcp.f32 %v2511_v19  ;;  %v1556_v61 = vadd.f32 %v1555_v21, %v1554_v0  ;;  %v1557_v43 = vsel %vm1538_vm4, %v1526_v7, 0.0 }
 0x3e1   : > { %v5693_v1 = vrot.slane %v5692_v23, 1  ;;  %v1527_v41 = vmul.f32 %v12381_v31, %v1491_v56  ;;  %v14361_v12 = vadd.f32 %v3643_v53, %v14104_v45  ;;  %v3535_v46 = vmax.f32 %v3533_v8, %v3534_v37 }
 0x3e2   : > { %v16941_v4 = vrot.slane %v14272_v44, 2  ;;  %v5705_v24 = vsel %vm1257_vm3, %v14194_v47, -inf  ;;  %v4690_v19 = vrot.slane %v14167_v40, 4  ;;  %v14372_v0 = vsel %vm1619_vm5, %v1556_v61, %v1547_v13 }
 0x3e3   : > { %v14349_v63 = vpop.f32.mrb[56].mxu0  ;;  %16942 = vst [vmem:[#allocation69_spill] sm:$0xff] %v14372_v0  ;;  %v14374_v7 = vmax.f32 %v5692_v23, %v5693_v1  ;;  %v1558_v45 = vsel %vm1538_vm4, %v1527_v41, 0.0  ;;  %v2516_v8 = vadd.f32 %v2515_v17, %v14128_v14  ;;  %v3536_v59 = vrot.slane %v3535_v46, 1 }
 0x3e4   : > { %v14354_v48 = vpop.f32.mrb[57].mxu0  ;;  %v2500_v34 = vadd.f32 %v16941_v4, %v14272_v44  ;;  %v14380_v44 = vadd.f32 %v1558_v45, %v1557_v43  ;;  %v5704_v56 = vsel %vm1257_vm3, %v14202_v5, -inf  ;;  %v14384_v62 = vpop.eup %11551  ;;  %v2533_v21 = vrot.slane %v14185_v2, 4 }
 0x3e5   : > { %16943 = vst [vmem:[#allocation70_spill] sm:$0xff] %v14384_v62  ;;  %v5706_v37 = vmax.f32 %v5704_v56, %v5705_v24  ;;  %v14391_v61 = vpop.eup %11553  ;;  %v4708_v14 = vrot.slane %v14222_v36, 4  ;;  %v5788_v17 = vsel %vm1257_vm3, %v14384_v62, 0.0  ;;  %v3537_v1 = vmax.f32 %v3535_v46, %v3536_v59 }
 0x3e6   : > { %16944 = vst [vmem:[#allocation71_spill] sm:$0xff] %v14391_v61  ;;  %v2501_v43 = vrot.slane %v2500_v34, 1  ;;  %v14398_v4 = vpop.eup %11555  ;;  %v14401_v45 = vadd.f32 %v4690_v19, %v14167_v40  ;;  %v2551_v23 = vrot.slane %v14235_v38, 4  ;;  %v5789_v24 = vsel %vm1257_vm3, %v14391_v61, 0.0 }
 0x3e7   : > { %v14368_v60 = vpop.f32.mrb[36].mxu1  ;;  %16945 = vst [vmem:[#allocation72_spill] sm:$0xff] %v14398_v4  ;;  %v5707_v56 = vrot.slane %v5706_v37, 4  ;;  %v14406_v13 = vpop.eup %11557  ;;  %v14408_v0 = vadd.f32 %v5789_v24, %v5788_v17  ;;  %v3631_v46 = vsel %vm1257_vm3, %v14398_v4, 0.0  ;;  %v3552_v59 = vsub.f32 %v14183_v30, %v3537_v1 }
 0x3e8   : > { %v14377_v53 = vpop.f32.mrb[37].mxu1  ;;  %16946 = vst [vmem:[#allocation73_spill] sm:$0xff] %v14401_v45  ;;  %16947 = vst [vmem:[#allocation74_spill] sm:$0xff] %v14406_v13  ;;  %v3553_v31 = vsub.f32 %v14176_v3, %v3537_v1  ;;  %v2517_v40 = vrot.slane %v2516_v8, 2  ;;  %v14417_v19 = vadd.f32 %v2533_v21, %v14185_v2  ;;  %v3632_v61 = vsel %vm1257_vm3, %v14406_v13, 0.0 }
 0x3e9   : > { %v5708_v62 = vmax.f32 %v5706_v37, %v5707_v56  ;;  %v14422_v17 = vadd.f32 %v4708_v14, %v14222_v36  ;;  %v14424_v24 = vadd.f32 %v3632_v61, %v3631_v46  ;;  %v3582_v4 = vmul.f32 1.442695, %v3552_v59 }
 0x3ea   : > { %v11560_v39 = vpop.eup %11559  ;;  %v2502_v30 = vadd.f32 %v2501_v43, %v2500_v34  ;;  %v14429_v3 = vadd.f32 %v2551_v23, %v14235_v38  ;;  %v3584_v1 = vmul.f32 1.442695, %v3553_v31  ;;  %v4577_v31 = vsel %vm1257_vm3, %v14227_v55, -inf }
 0x3eb   : > { %v14396_v41 = vpop.f32.mrb[58].mxu0  ;;  %16948 = vst [vmem:[#allocation75_spill] sm:$0xff] %v14422_v17  ;;  %v2569_v2 = vmul.f32 %v11560_v39, %v13873_v15  ;;  %v2570_v21 = vmul.f32 %v11560_v39, %v13875_v57  ;;  %11561 = vpow2.f32 %v3582_v4  ;;  %v5709_v61 = vrot.slane %v5708_v62, 2 }
 0x3ec   : > { %v14414_v32 = vpop.f32.mrb[59].mxu0  ;;  %11563 = vpow2.f32 %v3584_v1  ;;  %v4576_v43 = vsel %vm1257_vm3, %v14233_v51, -inf  ;;  %v16949_v4 = vrot.slane %v14139_v58, 2  ;;  %v2518_v46 = vadd.f32 %v2517_v40, %v2516_v8 }
 0x3ed   : > { %v2593_v34 = vsel %vm1257_vm3, %v2569_v2, 0.0  ;;  %v2596_v14 = vsel %vm1257_vm3, %v2570_v21, 0.0  ;;  %11565 = vrcp.f32 %v2502_v30  ;;  %v5710_v38 = vmax.f32 %v5708_v62, %v5709_v61 }
 0x3ee   : > { %2594 = vadd.xlane.f32.xlu0 %v2593_v34  ;;  %2597 = vadd.xlane.f32.xlu1 %v2596_v14  ;;  %v2527_v56 = vadd.f32 %v16949_v4, %v14139_v58  ;;  %v4726_v59 = vrot.slane %v14267_v26, 4  ;;  %v4578_v2 = vmax.f32 %v4576_v43, %v4577_v31  ;;  %v5723_v30 = vsel %vm1257_vm3, %v14244_v10, -inf }
 0x3ef   : > { %v14426_v11 = vpop.f32.mrb[38].mxu1  ;;  %v5711_v1 = vrot.slane %v5710_v38, 1  ;;  %v3598_v21 = vrot.slane %v14292_v18, 4  ;;  %v2519_v34 = vrot.slane %v2518_v46, 1  ;;  %v4595_v14 = vsel %vm1257_vm3, %v14263_v6, -inf }
 0x3f0   : > { %v14433_v13 = vpop.f32.mrb[39].mxu1  ;;  %v2528_v61 = vrot.slane %v2527_v56, 1  ;;  %v4579_v57 = vrot.slane %v4578_v2, 4  ;;  %v5722_v58 = vsel %vm1257_vm3, %v14248_v9, -inf  ;;  %v4594_v8 = vsel %vm1257_vm3, %v14269_v54, -inf }
 0x3f1   : > { %v5712_v36 = vmax.f32 %v5710_v38, %v5711_v1  ;;  %v2520_v43 = vadd.f32 %v2519_v34, %v2518_v46  ;;  %v5724_v4 = vmax.f32 %v5722_v58, %v5723_v30  ;;  %v4596_v37 = vmax.f32 %v4594_v8, %v4595_v14 }
 0x3f2   : > { %v2529_v31 = vadd.f32 %v2528_v61, %v2527_v56  ;;  %v14468_v15 = vadd.f32 %v4726_v59, %v14267_v26  ;;  %v4580_v45 = vmax.f32 %v4578_v2, %v4579_v57  ;;  %v16952_v17 = vsub.f32 %v14160_v16, %v14374_v7 }
 0x3f3   : > { %v14443_v39 = vpop.f32.mrb[60].mxu0  ;;  %v5748_v38 = vsub.f32 %v14202_v5, %v5712_v36  ;;  %v5749_v1 = vsub.f32 %v14194_v47, %v5712_v36  ;;  %v4597_v56 = vrot.slane %v4596_v37, 4  ;;  %v14478_v30 = vadd.f32 %v3598_v21, %v14292_v18 }
 0x3f4   : > { %v14454_v62 = vpop.f32.mrb[61].mxu0  ;;  %16951 = vst [vmem:[#allocation77_spill] sm:$0xff] %v14468_v15  ;;  %v5764_v52 = vmul.f32 1.442695, %v16952_v17  ;;  %11567 = vrcp.f32 %v2529_v31  ;;  %v4581_v59 = vrot.slane %v4580_v45, 2  ;;  %v16955_v18 = vsub.f32 %v14154_v25, %v14374_v7  ;;  %v16956_v31 = vld [vmem:[#allocation44_spill] sm:$0xff] }
 0x3f5   : > { %16950 = vst [vmem:[#allocation76_spill] sm:$0xff] %v14454_v62  ;;  %v5725_v62 = vrot.slane %v5724_v4, 4  ;;  %v14475_v46 = vpop.eup %11561  ;;  %v5772_v61 = vmul.f32 1.442695, %v5748_v38  ;;  %v5774_v26 = vmul.f32 1.442695, %v5749_v1  ;;  %11569 = vrcp.f32 %v2520_v43 }
 0x3f6   : > { %16953 = vst [vmem:[#allocation78_spill] sm:$0xff] %v14475_v46  ;;  %v14482_v5 = vpop.eup %11563  ;;  %v3649_v47 = vsel %vm1257_vm3, %v14475_v46, 0.0  ;;  %v4598_v17 = vmax.f32 %v4596_v37, %v4597_v56  ;;  %v5766_v2 = vmul.f32 1.442695, %v16955_v18  ;;  %v4582_v14 = vmax.f32 %v4580_v45, %v4581_v59  ;;  %v16957_v56 = vld [vmem:[#allocation42_spill] sm:$0xff]  ;;  %v16964_v46 = vld [vmem:[#allocation36_spill] sm:$0xff] }
 0x3f7   : > { %v14463_v40 = vpop.f32.mrb[40].mxu1  ;;  %16954 = vst [vmem:[#allocation79_spill] sm:$0xff] %v14482_v5  ;;  %v5726_v16 = vmax.f32 %v5724_v4, %v5725_v62  ;;  %v11566_v57 = vpop.eup %11565  ;;  %v3650_v21 = vsel %vm1257_vm3, %v14482_v5, 0.0  ;;  %11571 = vpow2.f32 %v5772_v61  ;;  %v16958_v61 = vrot.slane %v16957_v56, 2 }
 0x3f8   : > { %v14465_v23 = vpop.f32.mrb[41].mxu1  ;;  %v14493_v58 = vadd.f32 %v3650_v21, %v3649_v47  ;;  %v2567_v8 = vmul.f32 %v11566_v57, %v14069_v42  ;;  %v2568_v43 = vmul.f32 %v11566_v57, %v16956_v31  ;;  %11573 = vpow2.f32 %v5774_v26 }
 0x3f9   : > { %v4583_v62 = vrot.slane %v4582_v14, 1  ;;  %v5727_v4 = vrot.slane %v5726_v16, 2  ;;  %v4599_v38 = vrot.slane %v4598_v17, 2  ;;  %v2545_v42 = vadd.f32 %v16958_v61, %v16957_v56 }
 0x3fa   : > { %v2587_v7 = vsel %vm1257_vm3, %v2567_v8, 0.0  ;;  %v2590_v45 = vsel %vm1257_vm3, %v2568_v43, 0.0  ;;  %11575 = vpow2.f32 %v5764_v52  ;;  %v4744_v18 = vrot.slane %v14330_v50, 4 }
 0x3fb   : > { %v14480_v34 = vpop.f32.mrb[62].mxu0  ;;  %2588 = vadd.xlane.f32.xlu0 %v2587_v7  ;;  %2591 = vadd.xlane.f32.xlu1 %v2590_v45  ;;  %v4584_v26 = vmax.f32 %v4582_v14, %v4583_v62  ;;  %v5728_v47 = vmax.f32 %v5726_v16, %v5727_v4  ;;  %v4600_v57 = vmax.f32 %v4598_v17, %v4599_v38  ;;  %11577 = vpow2.f32 %v5766_v2 }
 0x3fc   : > { %v14486_v36 = vpop.f32.mrb[63].mxu0  ;;  %v2546_v21 = vrot.slane %v2545_v42, 1  ;;  %v16959_v8 = vrot.slane %v14417_v19, 2  ;;  %v6770_v17 = vsel %vm1257_vm3, %v14280_v20, -inf  ;;  %v4613_v2 = vsel %vm1257_vm3, %v14298_v33, -inf }
 0x3fd   : > { %v4641_v43 = vsub.f32 %v14233_v51, %v4584_v26  ;;  %v4642_v56 = vsub.f32 %v14227_v55, %v4584_v26  ;;  %v5729_v61 = vrot.slane %v5728_v47, 1  ;;  %v4601_v37 = vrot.slane %v4600_v57, 1  ;;  %v16961_v51 = vld [vmem:[#allocation33_spill] sm:$0xff]  ;;  %v16962_v55 = vld [vmem:[#allocation40_spill] sm:$0xff] }
 0x3fe   : > { %v2536_v31 = vadd.f32 %v16959_v8, %v14417_v19  ;;  %v11568_v7 = vpop.eup %11567  ;;  %v2547_v14 = vadd.f32 %v2546_v21, %v2545_v42 }
 0x3ff   : > { %v14498_v1 = vpop.f32.mrb[42].mxu1  ;;  %v4659_v19 = vmul.f32 1.442695, %v4641_v43  ;;  %v4661_v4 = vmul.f32 1.442695, %v4642_v56  ;;  %v2573_v38 = vmul.f32 %v11568_v7, %v16961_v51  ;;  %v2574_v45 = vmul.f32 %v11568_v7, %v16962_v55  ;;  %v11570_v26 = vpop.eup %11569 }
 0x400   : > { %v14506_v59 = vpop.f32.mrb[43].mxu1  ;;  %v2537_v16 = vrot.slane %v2536_v31, 1  ;;  %v5730_v8 = vmax.f32 %v5728_v47, %v5729_v61  ;;  %v4602_v25 = vmax.f32 %v4600_v57, %v4601_v37  ;;  %11579 = vrcp.f32 %v2547_v14  ;;  %v16966_v37 = vld [vmem:[#allocation48_spill] sm:$0xff] }
 0x401   : > { %v14524_v21 = vpop.eup %11571  ;;  %11581 = vpow2.f32 %v4659_v19  ;;  %v2605_v15 = vsel %vm1257_vm3, %v2573_v38, 0.0  ;;  %v2608_v5 = vsel %vm1257_vm3, %v2574_v45, 0.0  ;;  %v2572_v47 = vmul.f32 %v11570_v26, %v16966_v37 }
 0x402   : > { %v2538_v42 = vadd.f32 %v2537_v16, %v2536_v31  ;;  %16963 = vst [vmem:[#allocation42_spill] sm:$0xff] %v14524_v21  ;;  %v14531_v56 = vpop.eup %11573  ;;  %v5824_v7 = vsel %vm1257_vm3, %v14524_v21, 0.0  ;;  %11583 = vpow2.f32 %v4661_v4  ;;  %2606 = vadd.xlane.f32.xlu0 %v2605_v15  ;;  %2609 = vadd.xlane.f32.xlu1 %v2608_v5  ;;  %v5752_v57 = vsub.f32 %v14248_v9, %v5730_v8 }
 0x403   : > { %v14514_v52 = vpop.f32.mrb[64].mxu0  ;;  %16965 = vst [vmem:[#allocation33_spill] sm:$0xff] %v14531_v56  ;;  %v5825_v61 = vsel %vm1257_vm3, %v14531_v56, 0.0  ;;  %v5753_v14 = vsub.f32 %v14244_v10, %v5730_v8  ;;  %v4645_v16 = vsub.f32 %v14269_v54, %v4602_v25  ;;  %v2602_v15 = vsel %vm1257_vm3, %v2572_v47, 0.0  ;;  %v16979_v56 = vld [vmem:[#allocation65_spill] sm:$0xff] }
 0x404   : > { %v14520_v62 = vpop.f32.mrb[65].mxu0  ;;  %v14544_v19 = vadd.f32 %v5825_v61, %v5824_v7  ;;  %v5780_v5 = vmul.f32 1.442695, %v5752_v57  ;;  %v4646_v4 = vsub.f32 %v14263_v6, %v4602_v25  ;;  %v14548_v51 = vpop.eup %11575  ;;  %11585 = vrcp.f32 %v2538_v42  ;;  %v16970_v25 = vld [vmem:[#allocation43_spill] sm:$0xff] }
 0x405   : > { %16960 = vst [vmem:[#allocation44_spill] sm:$0xff] %v14520_v62  ;;  %v2571_v62 = vmul.f32 %v11570_v26, %v16964_v46  ;;  %16967 = vst [vmem:[#allocation40_spill] sm:$0xff] %v14548_v51  ;;  %v5782_v9 = vmul.f32 1.442695, %v5753_v14  ;;  %v4667_v38 = vmul.f32 1.442695, %v4645_v16  ;;  %v14555_v10 = vadd.f32 %v4744_v18, %v14330_v50 }
 0x406   : > { %v6769_v55 = vsel %vm1257_vm3, %v14286_v22, -inf  ;;  %2603 = vadd.xlane.f32.xlu1 %v2602_v15  ;;  %11587 = vpow2.f32 %v5780_v5  ;;  %v4669_v54 = vmul.f32 1.442695, %v4646_v4  ;;  %v4612_v6 = vsel %vm1257_vm3, %v14302_v49, -inf }
 0x407   : > { %v14529_v43 = vpop.f32.mrb[44].mxu1  ;;  %v2599_v46 = vsel %vm1257_vm3, %v2571_v62, 0.0  ;;  %v14552_v62 = vpop.eup %11577  ;;  %16969 = vst [vmem:[#allocation48_spill] sm:$0xff] %v14555_v10  ;;  %v6771_v45 = vmax.f32 %v6769_v55, %v6770_v17  ;;  %11589 = vpow2.f32 %v5782_v9  ;;  %v16971_v26 = vrot.slane %v16970_v25, 2  ;;  %v16977_v55 = vld [vmem:[#allocation45_spill] sm:$0xff] }
 0x408   : > { %v14537_v31 = vpop.f32.mrb[45].mxu1  ;;  %16968 = vst [vmem:[#allocation36_spill] sm:$0xff] %v14552_v62  ;;  %2600 = vadd.xlane.f32.xlu0 %v2599_v46  ;;  %v16972_v42 = vrot.slane %v14429_v3, 2  ;;  %v3616_v50 = vrot.slane %v14351_v28, 4  ;;  %11591 = vpow2.f32 %v4667_v38  ;;  %v4614_v47 = vmax.f32 %v4612_v6, %v4613_v2  ;;  %v16976_v2 = vld [vmem:[#allocation49_spill] sm:$0xff] }
 0x409   : > { %v3592_v8 = vadd.f32 %v16971_v26, %v16970_v25  ;;  %v6772_v18 = vrot.slane %v6771_v45, 4  ;;  %v1560_v17 = vrot.slane %v14380_v44, 4  ;;  %11593 = vpow2.f32 %v4669_v54 }
 0x40a   : > { %v2554_v7 = vadd.f32 %v16972_v42, %v14429_v3  ;;  %v11580_v14 = vpop.eup %11579  ;;  %v4615_v15 = vrot.slane %v4614_v47, 4  ;;  %v6788_v3 = vsel %vm1257_vm3, %v14314_v27, -inf  ;;  %v4631_v5 = vsel %vm1257_vm3, %v14332_v29, -inf }
 0x40b   : > { %v3593_v57 = vrot.slane %v3592_v8, 1  ;;  %v6773_v16 = vmax.f32 %v6771_v45, %v6772_v18  ;;  %v14577_v9 = vpop.eup %11581  ;;  %v2577_v38 = vmul.f32 %v11580_v14, %v16976_v2  ;;  %v2578_v54 = vmul.f32 %v11580_v14, %v16977_v55 }
 0x40c   : > { %v2555_v61 = vrot.slane %v2554_v7, 1  ;;  %16975 = vst [vmem:[#allocation81_spill] sm:$0xff] %v14577_v9  ;;  %v14581_v26 = vpop.eup %11583  ;;  %v4696_v45 = vsel %vm1257_vm3, %v14577_v9, 0.0  ;;  %v4616_v18 = vmax.f32 %v4614_v47, %v4615_v15  ;;  %v6787_v21 = vsel %vm1257_vm3, %v16979_v56, -inf }
 0x40d   : > { %v14565_v37 = vpop.f32.mrb[66].mxu0  ;;  %v3594_v6 = vadd.f32 %v3593_v57, %v3592_v8  ;;  %16978 = vst [vmem:[#allocation49_spill] sm:$0xff] %v14581_v26  ;;  %v6774_v42 = vrot.slane %v6773_v16, 2  ;;  %v2620_v2 = vsel %vm1257_vm3, %v2578_v54, 0.0  ;;  %v14594_v47 = vadd.f32 %v3616_v50, %v14351_v28 }
 0x40e   : > { %16973 = vst [vmem:[#allocation43_spill] sm:$0xff] %v14565_v37  ;;  %v2556_v25 = vadd.f32 %v2555_v61, %v2554_v7  ;;  %v4697_v37 = vsel %vm1257_vm3, %v14581_v26, 0.0  ;;  %2621 = vadd.xlane.f32.xlu1 %v2620_v2  ;;  %v4617_v57 = vrot.slane %v4616_v18, 2  ;;  %v11586_v61 = vpop.eup %11585  ;;  %v14597_v14 = vadd.f32 %v1560_v17, %v14380_v44  ;;  %v14601_v55 = vpop.f32.mrb[67].mxu0  ;;  %v16986_v26 = vld [vmem:[#allocation55_spill] sm:$0xff] }
 0x40f   : > { %v14569_v46 = vpop.f32.mrb[46].mxu1  ;;  %11595 = vrcp.f32 %v3594_v6  ;;  %v14591_v8 = vadd.f32 %v4697_v37, %v4696_v45  ;;  %v6775_v7 = vmax.f32 %v6773_v16, %v6774_v42  ;;  %v6789_v15 = vmax.f32 %v6787_v21, %v6788_v3  ;;  %16980 = vst [vmem:[#allocation45_spill] sm:$0xff] %v14601_v55  ;;  %v16982_v16 = vld [vmem:[#allocation52_spill] sm:$0xff]  ;;  %v16983_v6 = vld [vmem:[#allocation35_spill] sm:$0xff] }
 0x410   : > { %v14575_v4 = vpop.f32.mrb[47].mxu1  ;;  %11597 = vrcp.f32 %v2556_v25  ;;  %v14603_v37 = vpop.eup %11587  ;;  %v2575_v54 = vmul.f32 %v11586_v61, %v16982_v16  ;;  %v2576_v25 = vmul.f32 %v11586_v61, %v16983_v6  ;;  %v4618_v21 = vmax.f32 %v4616_v18, %v4617_v57 }
 0x411   : > { %16974 = vst [vmem:[#allocation80_spill] sm:$0xff] %v14575_v4  ;;  %v2617_v4 = vsel %vm1257_vm3, %v2577_v38, 0.0  ;;  %v4630_v38 = vsel %vm1257_vm3, %v14335_v35, -inf  ;;  %16981 = vst [vmem:[#allocation65_spill] sm:$0xff] %v14603_v37  ;;  %v6776_v45 = vrot.slane %v6775_v7, 1  ;;  %v14608_v28 = vpop.eup %11589  ;;  %v5842_v44 = vsel %vm1257_vm3, %v14603_v37, 0.0 }
 0x412   : > { %2618 = vadd.xlane.f32.xlu0 %v2617_v4  ;;  %v5791_v4 = vrot.slane %v14408_v0, 4  ;;  %16984 = vst [vmem:[#allocation52_spill] sm:$0xff] %v14608_v28  ;;  %v6790_v50 = vrot.slane %v6789_v15, 4  ;;  %v4632_v17 = vmax.f32 %v4630_v38, %v4631_v5  ;;  %v14612_v3 = vpop.eup %11591  ;;  %v5843_v42 = vsel %vm1257_vm3, %v14608_v28, 0.0 }
 0x413   : > { %16985 = vst [vmem:[#allocation35_spill] sm:$0xff] %v14612_v3  ;;  %v2611_v2 = vsel %vm1257_vm3, %v2575_v54, 0.0  ;;  %v2614_v16 = vsel %vm1257_vm3, %v2576_v25, 0.0  ;;  %v16987_v61 = vrot.slane %v16986_v26, 2  ;;  %v14623_v55 = vpop.eup %11593  ;;  %v14625_v18 = vadd.f32 %v5843_v42, %v5842_v44 }
 0x414   : > { %16988 = vst [vmem:[#allocation55_spill] sm:$0xff] %v14623_v55  ;;  %v4714_v5 = vsel %vm1257_vm3, %v14612_v3, 0.0  ;;  %2615 = vadd.xlane.f32.xlu1 %v2614_v16  ;;  %v6777_v57 = vmax.f32 %v6775_v7, %v6776_v45  ;;  %v4619_v38 = vrot.slane %v4618_v21, 1  ;;  %v4633_v28 = vrot.slane %v4632_v17, 4 }
 0x415   : > { %v3610_v6 = vadd.f32 %v16987_v61, %v16986_v26  ;;  %v4715_v26 = vsel %vm1257_vm3, %v14623_v55, 0.0  ;;  %v6791_v61 = vmax.f32 %v6789_v15, %v6790_v50  ;;  %v14635_v37 = vadd.f32 %v5791_v4, %v14408_v0 }
 0x416   : > { %2612 = vadd.xlane.f32.xlu0 %v2611_v2  ;;  %v14637_v44 = vadd.f32 %v4715_v26, %v4714_v5  ;;  %v6841_v42 = vsub.f32 %v14286_v22, %v6777_v57  ;;  %v6842_v2 = vsub.f32 %v14280_v20, %v6777_v57  ;;  %v5806_v7 = vsel %vm1257_vm3, %v14548_v51, 0.0  ;;  %v16991_v26 = vld [vmem:[#allocation39_spill] sm:$0xff] }
 0x417   : > { %v14621_v9 = vpop.f32.mrb[48].mxu1  ;;  %16990 = vst [vmem:[#allocation83_spill] sm:$0xff] %v14635_v37  ;;  %v5807_v45 = vsel %vm1257_vm3, %v14552_v62, 0.0  ;;  %v4620_v16 = vmax.f32 %v4618_v21, %v4619_v38  ;;  %v6792_v25 = vrot.slane %v6791_v61, 2  ;;  %v4634_v3 = vmax.f32 %v4632_v17, %v4633_v28  ;;  %v16992_v57 = vld [vmem:[#allocation47_spill] sm:$0xff]  ;;  %v16993_v62 = vld [vmem:[#allocation56_spill] sm:$0xff] }
 0x418   : > { %v14629_v54 = vpop.f32.mrb[49].mxu1  ;;  %v6857_v15 = vmul.f32 1.442695, %v6841_v42  ;;  %v6859_v50 = vmul.f32 1.442695, %v6842_v2  ;;  %v3611_v0 = vrot.slane %v3610_v6, 1 }
 0x419   : > { %16989 = vst [vmem:[#allocation82_spill] sm:$0xff] %v14629_v54  ;;  %v11596_v55 = vpop.eup %11595  ;;  %v4649_v5 = vsub.f32 %v14302_v49, %v4620_v16  ;;  %v4650_v22 = vsub.f32 %v14298_v33, %v4620_v16  ;;  %v3634_v51 = vrot.slane %v14424_v24, 4  ;;  %v16994_v38 = vrot.slane %v14478_v30, 2  ;;  %v14655_v2 = vpop.f32.mrb[68].mxu0 }
 0x41a   : > { %v11598_v4 = vpop.eup %11597  ;;  %v3666_v20 = vmul.f32 %v11596_v55, %v16991_v26  ;;  %v3667_v54 = vmul.f32 %v11596_v55, %v16992_v57  ;;  %11599 = vpow2.f32 %v6857_v15  ;;  %v14657_v33 = vadd.f32 %v5807_v45, %v5806_v7  ;;  %v16995_v15 = vld [vmem:[#allocation59_spill] sm:$0xff]  ;;  %v14662_v26 = vpop.f32.mrb[69].mxu0  ;;  %v16996_v7 = vld [vmem:[#allocation58_spill] sm:$0xff] }
 0x41b   : > { %v2579_v21 = vmul.f32 %v11598_v4, %v16993_v62  ;;  %v3601_v42 = vadd.f32 %v16994_v38, %v14478_v30  ;;  %11601 = vpow2.f32 %v6859_v50  ;;  %v4675_v28 = vmul.f32 1.442695, %v4649_v5 }
 0x41c   : > { %v4677_v17 = vmul.f32 1.442695, %v4650_v22  ;;  %v3682_v49 = vsel %vm1257_vm3, %v3666_v20, 0.0  ;;  %v3685_v55 = vsel %vm1257_vm3, %v3667_v54, 0.0  ;;  %v2580_v62 = vmul.f32 %v11598_v4, %v16995_v15 }
 0x41d   : > { %3683 = vadd.xlane.f32.xlu0 %v3682_v49  ;;  %v2623_v16 = vsel %vm1257_vm3, %v2579_v21, 0.0  ;;  %11603 = vpow2.f32 %v4675_v28  ;;  %3686 = vadd.xlane.f32.xlu1 %v3685_v55  ;;  %v6793_v30 = vmax.f32 %v6791_v61, %v6792_v25  ;;  %v4635_v50 = vrot.slane %v4634_v3, 2 }
 0x41e   : > { %v3612_v5 = vadd.f32 %v3611_v0, %v3610_v6  ;;  %11605 = vpow2.f32 %v4677_v17  ;;  %v2626_v22 = vsel %vm1257_vm3, %v2580_v62, 0.0  ;;  %v3602_v20 = vrot.slane %v3601_v42, 1 }
 0x41f   : > { %v16997_v45 = vrot.slane %v16996_v7, 2  ;;  %v6794_v54 = vrot.slane %v6793_v30, 1  ;;  %v4636_v38 = vmax.f32 %v4634_v3, %v4635_v50  ;;  %v6806_v4 = vsel %vm1257_vm3, %v14349_v63, -inf }
 0x420   : > { %11607 = vrcp.f32 %v3612_v5  ;;  %v3603_v21 = vadd.f32 %v3602_v20, %v3601_v42  ;;  %v5678_v6 = vsel %vm1257_vm3, %v14368_v60, -inf  ;;  %v6805_v25 = vsel %vm1257_vm3, %v14354_v48, -inf }
 0x421   : > { %v3628_v57 = vadd.f32 %v16997_v45, %v16996_v7  ;;  %2624 = vadd.xlane.f32.xlu0 %v2623_v16  ;;  %2627 = vadd.xlane.f32.xlu1 %v2626_v22  ;;  %v14674_v61 = vmax.f32 %v6793_v30, %v6794_v54  ;;  %v4637_v0 = vrot.slane %v4636_v38, 1  ;;  %v6807_v17 = vmax.f32 %v6805_v25, %v6806_v4 }
 0x422   : > { %v5677_v3 = vsel %vm1257_vm3, %v14377_v53, -inf  ;;  %11609 = vrcp.f32 %v3603_v21  ;;  %v16998_v42 = vrot.slane %v14361_v12, 2  ;;  %v17000_v22 = vrot.slane %v14597_v14, 2 }
 0x423   : > { %v3629_v28 = vrot.slane %v3628_v57, 1  ;;  %v5679_v55 = vmax.f32 %v5677_v3, %v5678_v6  ;;  %v6845_v15 = vsub.f32 %v16979_v56, %v14674_v61  ;;  %v6846_v62 = vsub.f32 %v14314_v27, %v14674_v61 }
 0x424   : > { %v3646_v16 = vadd.f32 %v16998_v42, %v14361_v12  ;;  %v14685_v30 = vmax.f32 %v4636_v38, %v4637_v0  ;;  %v6808_v50 = vrot.slane %v6807_v17, 4  ;;  %v14687_v5 = vpop.eup %11599  ;;  %v14692_v20 = vadd.f32 %v17000_v22, %v14597_v14 }
 0x425   : > { %v3630_v49 = vadd.f32 %v3629_v28, %v3628_v57  ;;  %16999 = vst [vmem:[#allocation39_spill] sm:$0xff] %v14687_v5  ;;  %v5680_v7 = vrot.slane %v5679_v55, 4  ;;  %v14694_v12 = vpop.eup %11601  ;;  %v14697_v56 = vadd.f32 %v3634_v51, %v14424_v24  ;;  %v5809_v27 = vrot.slane %v14657_v33, 4 }
 0x426   : > { %v3647_v45 = vrot.slane %v3646_v16, 1  ;;  %17001 = vst [vmem:[#allocation47_spill] sm:$0xff] %v14694_v12  ;;  %v6889_v57 = vsel %vm1257_vm3, %v14687_v5, 0.0  ;;  %v4653_v54 = vsub.f32 %v14335_v35, %v14685_v30  ;;  %v6890_v14 = vsel %vm1257_vm3, %v14694_v12, 0.0 }
 0x427   : > { %11611 = vrcp.f32 %v3630_v49  ;;  %v4654_v38 = vsub.f32 %v14332_v29, %v14685_v30  ;;  %v6809_v4 = vmax.f32 %v6807_v17, %v6808_v50  ;;  %v5681_v21 = vmax.f32 %v5679_v55, %v5680_v7  ;;  %v14708_v28 = vpop.eup %11603  ;;  %v17004_v7 = vld [vmem:[#allocation38_spill] sm:$0xff] }
 0x428   : > { %17002 = vst [vmem:[#allocation56_spill] sm:$0xff] %v14708_v28  ;;  %v3652_v51 = vrot.slane %v14493_v58, 4  ;;  %v14712_v6 = vadd.f32 %v6890_v14, %v6889_v57  ;;  %v3648_v25 = vadd.f32 %v3647_v45, %v3646_v16  ;;  %v14714_v61 = vpop.eup %11605  ;;  %v4732_v29 = vsel %vm1257_vm3, %v14708_v28, 0.0  ;;  %v14724_v16 = vpop.f32.mrb[50].mxu1  ;;  %v17005_v57 = vld [vmem:[#allocation51_spill] sm:$0xff] }
 0x429   : > { %17003 = vst [vmem:[#allocation59_spill] sm:$0xff] %v14714_v61  ;;  %v6810_v17 = vrot.slane %v6809_v4, 2  ;;  %v1564_v55 = vrot.slane %v14692_v20, 1  ;;  %v4733_v42 = vsel %vm1257_vm3, %v14714_v61, 0.0  ;;  %v5682_v30 = vrot.slane %v5681_v21, 2  ;;  %v14733_v0 = vpop.f32.mrb[51].mxu1 }
 0x42a   : > { %v11608_v3 = vpop.eup %11607  ;;  %v14727_v50 = vadd.f32 %v5809_v27, %v14657_v33  ;;  %v14729_v22 = vadd.f32 %v4733_v42, %v4732_v29  ;;  %v14736_v24 = vadd.f32 %v3652_v51, %v14493_v58  ;;  %11613 = vrcp.f32 %v3648_v25 }
 0x42b   : > { %v3670_v45 = vmul.f32 %v11608_v3, %v17004_v7  ;;  %v3671_v14 = vmul.f32 %v11608_v3, %v17005_v57  ;;  %v6811_v49 = vmax.f32 %v6809_v4, %v6810_v17  ;;  %v5683_v35 = vmax.f32 %v5681_v21, %v5682_v30  ;;  %v17006_v3 = vld [vmem:[#allocation62_spill] sm:$0xff]  ;;  %v17007_v17 = vld [vmem:[#allocation63_spill] sm:$0xff] }
 0x42c   : > { %v11610_v12 = vpop.eup %11609  ;;  %v5827_v5 = vrot.slane %v14544_v19, 4  ;;  %v6824_v29 = vsel %vm1257_vm3, %v14396_v41, -inf  ;;  %v6865_v42 = vmul.f32 1.442695, %v6845_v15  ;;  %v6867_v21 = vmul.f32 1.442695, %v6846_v62 }
 0x42d   : > { %v3694_v33 = vsel %vm1257_vm3, %v3670_v45, 0.0  ;;  %v3697_v27 = vsel %vm1257_vm3, %v3671_v14, 0.0  ;;  %v3668_v7 = vmul.f32 %v11610_v12, %v17006_v3  ;;  %v6812_v58 = vrot.slane %v6811_v49, 1  ;;  %v17008_v14 = vld [vmem:[#allocation54_spill] sm:$0xff] }
 0x42e   : > { %3695 = vadd.xlane.f32.xlu0 %v3694_v33  ;;  %3698 = vadd.xlane.f32.xlu1 %v3697_v27  ;;  %v5684_v51 = vrot.slane %v5683_v35, 1  ;;  %v4683_v25 = vmul.f32 1.442695, %v4653_v54  ;;  %v3669_v30 = vmul.f32 %v11610_v12, %v17007_v17  ;;  %v6823_v45 = vsel %vm1257_vm3, %v14414_v32, -inf  ;;  %v17009_v33 = vld [vmem:[#allocation34_spill] sm:$0xff] }
 0x42f   : > { %v3688_v57 = vsel %vm1257_vm3, %v3668_v7, 0.0  ;;  %v14749_v28 = vmax.f32 %v6811_v49, %v6812_v58  ;;  %v5696_v3 = vsel %vm1257_vm3, %v14426_v11, -inf  ;;  %v6825_v37 = vmax.f32 %v6823_v45, %v6824_v29  ;;  %v14762_v7 = vpop.f32.mrb[52].mxu1  ;;  %v14764_v58 = vpop.f32.mrb[70].mxu0 }
 0x430   : > { %v5685_v15 = vmax.f32 %v5683_v35, %v5684_v51  ;;  %v5695_v62 = vsel %vm1257_vm3, %v14433_v13, -inf  ;;  %v14767_v29 = vadd.f32 %v1564_v55, %v14692_v20  ;;  %v4685_v51 = vmul.f32 1.442695, %v4654_v38  ;;  %v14770_v17 = vpop.f32.mrb[53].mxu1 }
 0x431   : > { %v11612_v4 = vpop.eup %11611  ;;  %11615 = vpow2.f32 %v6865_v42  ;;  %v3691_v20 = vsel %vm1257_vm3, %v3669_v30, 0.0  ;;  %v17013_v30 = vrot.slane %v14594_v47, 2 }
 0x432   : > { %v3674_v61 = vmul.f32 %v11612_v4, %v17008_v14  ;;  %v3675_v27 = vmul.f32 %v11612_v4, %v17009_v33  ;;  %3689 = vadd.xlane.f32.xlu0 %v3688_v57  ;;  %v5742_v35 = vsub.f32 %v14377_v53, %v5685_v15  ;;  %17010 = vst [vmem:[#allocation58_spill] sm:$0xff] %v14767_v29  ;;  %11617 = vpow2.f32 %v6867_v21 }
 0x433   : > { %v5743_v4 = vsub.f32 %v14368_v60, %v5685_v15  ;;  %v14774_v57 = vadd.f32 %v5827_v5, %v14544_v19  ;;  %v5697_v53 = vmax.f32 %v5695_v62, %v5696_v3  ;;  %11619 = vpow2.f32 %v4683_v25  ;;  %v17012_v5 = vld [vmem:[#allocation41_spill] sm:$0xff]  ;;  %v1500_v25 = vpop.xlane.xlu1 %1499 }
 0x434   : > { %v3706_v12 = vsel %vm1257_vm3, %v3674_v61, 0.0  ;;  %v6826_v61 = vrot.slane %v6825_v37, 4  ;;  %v5760_v14 = vmul.f32 1.442695, %v5742_v35  ;;  %v14777_v55 = vpop.eup %11613  ;;  %v5845_v19 = vrot.slane %v14625_v18, 4  ;;  %v1503_v35 = vpop.xlane.xlu0 %1502 }
 0x435   : > { %3707 = vadd.xlane.f32.xlu1 %v3706_v12  ;;  %17011 = vst [vmem:[#allocation38_spill] sm:$0xff] %v14774_v57  ;;  %v5762_v33 = vmul.f32 1.442695, %v5743_v4  ;;  %v5698_v15 = vrot.slane %v5697_v53, 4  ;;  %v4699_v12 = vrot.slane %v14591_v8, 4  ;;  %11621 = vpow2.f32 %v4685_v51 }
 0x436   : > { %3692 = vadd.xlane.f32.xlu0 %v3691_v20  ;;  %v6827_v60 = vmax.f32 %v6825_v37, %v6826_v61  ;;  %v3678_v42 = vmul.f32 %v14777_v55, %v17012_v5  ;;  %11623 = vpow2.f32 %v5760_v14  ;;  %v3619_v62 = vadd.f32 %v17013_v30, %v14594_v47 }
 0x437   : > { %v5699_v3 = vmax.f32 %v5697_v53, %v5698_v15  ;;  %11625 = vpow2.f32 %v5762_v33  ;;  %v3709_v61 = vsel %vm1257_vm3, %v3675_v27, 0.0  ;;  %v17014_v53 = vrot.slane %v14697_v56, 2  ;;  %v17016_v33 = vld [vmem:[#allocation25_spill] sm:$0xff]  ;;  %v1494_v57 = vpop.xlane.xlu1 %1493 }
 0x438   : > { %v6828_v21 = vrot.slane %v6827_v60, 2  ;;  %v3718_v4 = vsel %vm1257_vm3, %v3678_v42, 0.0  ;;  %v3620_v14 = vrot.slane %v3619_v62, 1  ;;  %v14794_v47 = vadd.f32 %v4699_v12, %v14591_v8  ;;  %v17017_v42 = vld [vmem:[#allocation26_spill] sm:$0xff] }
 0x439   : > { %3719 = vadd.xlane.f32.xlu1 %v3718_v4  ;;  %v5700_v20 = vrot.slane %v5699_v3, 2  ;;  %v3637_v15 = vadd.f32 %v17014_v53, %v14697_v56  ;;  %v14797_v5 = vadd.f32 %v5845_v19, %v14625_v18  ;;  %v1531_v30 = vmul.f32 %v17016_v33, %v1503_v35 }
 0x43a   : > { %3710 = vadd.xlane.f32.xlu0 %v3709_v61  ;;  %v6829_v51 = vmax.f32 %v6827_v60, %v6828_v21  ;;  %v1530_v37 = vmul.f32 %v1500_v25, %v17017_v42  ;;  %v3621_v61 = vadd.f32 %v3620_v14, %v3619_v62  ;;  %v4717_v21 = vrot.slane %v14637_v44, 4  ;;  %v14810_v25 = vpop.f32.mrb[71].mxu0 }
 0x43b   : > { %17015 = vst [vmem:[#allocation51_spill] sm:$0xff] %v14797_v5  ;;  %v5701_v4 = vmax.f32 %v5699_v3, %v5700_v20  ;;  %v3638_v60 = vrot.slane %v3637_v15, 1  ;;  %v1576_v45 = vsel %vm1538_vm4, %v1531_v30, 0.0  ;;  %v7871_v8 = vsel %vm1257_vm3, %v14443_v39, -inf  ;;  %v14806_v12 = vpop.eup %11615  ;;  %17019 = vst [vmem:[#allocation63_spill] sm:$0xff] %v14810_v25  ;;  %v14868_v10 = vpop.f32.mrb[72].mxu0 }
 0x43c   : > { %v6830_v27 = vrot.slane %v6829_v51, 1  ;;  %v1575_v56 = vsel %vm1538_vm4, %v1530_v37, 0.0  ;;  %17018 = vst [vmem:[#allocation62_spill] sm:$0xff] %v14806_v12  ;;  %11627 = vrcp.f32 %v3621_v61  ;;  %v14812_v3 = vpop.eup %11617  ;;  %v5714_v20 = vsel %vm1257_vm3, %v14463_v40, -inf  ;;  %v17021_v37 = vld [vmem:[#allocation76_spill] sm:$0xff] }
 0x43d   : > { %v5702_v19 = vrot.slane %v5701_v4, 1  ;;  %v3639_v35 = vadd.f32 %v3638_v60, %v3637_v15  ;;  %17020 = vst [vmem:[#allocation54_spill] sm:$0xff] %v14812_v3  ;;  %v14814_v62 = vadd.f32 %v1576_v45, %v1575_v56  ;;  %v7870_v14 = vsel %vm1257_vm3, %v17021_v37, -inf  ;;  %v14828_v45 = vpop.f32.mrb[54].mxu1  ;;  %v1497_v60 = vpop.xlane.xlu0 %1496 }
 0x43e   : > { %v14808_v18 = vmax.f32 %v6829_v51, %v6830_v27  ;;  %v5713_v53 = vsel %vm1257_vm3, %v14465_v23, -inf  ;;  %v14822_v51 = vpop.eup %11619  ;;  %17022 = vst [vmem:[#allocation34_spill] sm:$0xff] %v14828_v45  ;;  %v7872_v38 = vmax.f32 %v7870_v14, %v7871_v8  ;;  %v14834_v54 = vpop.f32.mrb[55].mxu1  ;;  %v6908_v8 = vsel %vm1257_vm3, %v14812_v3, 0.0 }
 0x43f   : > { %v5703_v27 = vmax.f32 %v5701_v4, %v5702_v19  ;;  %11629 = vrcp.f32 %v3639_v35  ;;  %v14830_v61 = vpop.eup %11621  ;;  %v5715_v49 = vmax.f32 %v5713_v53, %v5714_v20  ;;  %17024 = vst [vmem:[#allocation76_spill] sm:$0xff] %v14834_v54  ;;  %v6892_v4 = vrot.slane %v14712_v6, 4  ;;  %v17029_v54 = vld [vmem:[#allocation23_spill] sm:$0xff] }
 0x440   : > { %v6853_v15 = vsub.f32 %v14414_v32, %v14808_v18  ;;  %17023 = vst [vmem:[#allocation41_spill] sm:$0xff] %v14830_v61  ;;  %v14836_v29 = vpop.eup %11623  ;;  %v14839_v32 = vadd.f32 %v4717_v21, %v14637_v44  ;;  %v6907_v19 = vsel %vm1257_vm3, %v14806_v12, 0.0  ;;  %v4750_v20 = vsel %vm1257_vm3, %v14822_v51, 0.0 }
 0x441   : > { %17025 = vst [vmem:[#allocation84_spill] sm:$0xff] %v14836_v29  ;;  %v5746_v35 = vsub.f32 %v14433_v13, %v5703_v27  ;;  %v14845_v30 = vpop.eup %11625  ;;  %v5797_v14 = vsel %vm1257_vm3, %v14836_v29, 0.0  ;;  %v5747_v44 = vsub.f32 %v14426_v11, %v5703_v27  ;;  %v4751_v21 = vsel %vm1257_vm3, %v14830_v61, 0.0 }
 0x442   : > { %17026 = vst [vmem:[#allocation85_spill] sm:$0xff] %v14845_v30  ;;  %v5798_v53 = vsel %vm1257_vm3, %v14845_v30, 0.0  ;;  %v7873_v56 = vrot.slane %v7872_v38, 4  ;;  %v4735_v12 = vrot.slane %v14729_v22, 4  ;;  %v17027_v5 = vsub.f32 %v14354_v48, %v14749_v28 }
 0x443   : > { %v5768_v13 = vmul.f32 1.442695, %v5746_v35  ;;  %v14862_v42 = vadd.f32 %v5798_v53, %v5797_v14  ;;  %v5770_v29 = vmul.f32 1.442695, %v5747_v44  ;;  %v17028_v11 = vsub.f32 %v14349_v63, %v14749_v28  ;;  %v17031_v53 = vld [vmem:[#allocation24_spill] sm:$0xff]  ;;  %v14874_v63 = vpop.f32.mrb[73].mxu0 }
 0x444   : > { %v6873_v33 = vmul.f32 1.442695, %v17027_v5  ;;  %v7874_v3 = vmax.f32 %v7872_v38, %v7873_v56  ;;  %v5716_v30 = vrot.slane %v5715_v49, 4  ;;  %v6909_v35 = vadd.f32 %v6908_v8, %v6907_v19  ;;  %v17032_v38 = vld [vmem:[#allocation67_spill] sm:$0xff]  ;;  %v17033_v56 = vld [vmem:[#allocation68_spill] sm:$0xff] }
 0x445   : > { %v6875_v27 = vmul.f32 1.442695, %v17028_v11  ;;  %11631 = vpow2.f32 %v5768_v13  ;;  %v4752_v61 = vadd.f32 %v4751_v21, %v4750_v20  ;;  %v1529_v45 = vmul.f32 %v17029_v54, %v1497_v60 }
 0x446   : > { %11633 = vpow2.f32 %v5770_v29  ;;  %v11628_v48 = vpop.eup %11627  ;;  %v14871_v5 = vadd.f32 %v6892_v4, %v14712_v6  ;;  %v7875_v14 = vrot.slane %v7874_v3, 2  ;;  %v5717_v44 = vmax.f32 %v5715_v49, %v5716_v30  ;;  %v17034_v30 = vld [vmem:[#allocation72_spill] sm:$0xff] }
 0x447   : > { %v1528_v25 = vmul.f32 %v1494_v57, %v17031_v53  ;;  %v14877_v28 = vadd.f32 %v4735_v12, %v14729_v22  ;;  %11635 = vpow2.f32 %v6873_v33  ;;  %v3672_v29 = vmul.f32 %v11628_v48, %v17032_v38  ;;  %v14893_v38 = vpop.f32.mrb[56].mxu1 }
 0x448   : > { %17030 = vst [vmem:[#allocation86_spill] sm:$0xff] %v14871_v5  ;;  %v3673_v60 = vmul.f32 %v11628_v48, %v17033_v56  ;;  %11637 = vpow2.f32 %v6875_v27  ;;  %v7876_v8 = vmax.f32 %v7874_v3, %v7875_v14  ;;  %v5718_v20 = vrot.slane %v5717_v44, 2  ;;  %v17035_v3 = vld [vmem:[#allocation50_spill] sm:$0xff] }
 0x449   : > { %v11630_v19 = vpop.eup %11629  ;;  %v1567_v6 = vsel %vm1538_vm4, %v1529_v45, 0.0  ;;  %v6910_v4 = vrot.slane %v6909_v35, 4  ;;  %v4753_v49 = vrot.slane %v4752_v61, 4  ;;  %v3700_v57 = vsel %vm1257_vm3, %v3672_v29, 0.0  ;;  %v17037_v56 = vld [vmem:[#allocation74_spill] sm:$0xff] }
 0x44a   : > { %v3676_v21 = vmul.f32 %v11630_v19, %v17034_v30  ;;  %v6881_v13 = vmul.f32 1.442695, %v6853_v15  ;;  %3701 = vadd.xlane.f32.xlu0 %v3700_v57  ;;  %v7877_v22 = vrot.slane %v7876_v8, 1  ;;  %v5719_v33 = vmax.f32 %v5717_v44, %v5718_v20  ;;  %v14897_v20 = vpop.f32.mrb[57].mxu1 }
 0x44b   : > { %v1566_v12 = vsel %vm1538_vm4, %v1528_v25, 0.0  ;;  %v3679_v27 = vmul.f32 %v14777_v55, %v17035_v3  ;;  %v17036_v45 = vrot.slane %v14736_v24, 2  ;;  %v3677_v25 = vmul.f32 %v11630_v19, %v17037_v56 }
 0x44c   : > { %v3712_v11 = vsel %vm1257_vm3, %v3676_v21, 0.0  ;;  %v14886_v48 = vadd.f32 %v1567_v6, %v1566_v12  ;;  %v7878_v29 = vmax.f32 %v7876_v8, %v7877_v22  ;;  %v5720_v44 = vrot.slane %v5719_v33, 1 }
 0x44d   : > { %v3655_v14 = vadd.f32 %v17036_v45, %v14736_v24  ;;  %3713 = vadd.xlane.f32.xlu1 %v3712_v11  ;;  %v17038_v55 = vsub.f32 %v14396_v41, %v14808_v18  ;;  %v3703_v24 = vsel %vm1257_vm3, %v3673_v60, 0.0  ;;  %v14911_v3 = vadd.f32 %v6910_v4, %v6909_v35 }
 0x44e   : > { %3704 = vadd.xlane.f32.xlu0 %v3703_v24  ;;  %v7942_v8 = vsub.f32 %v17021_v37, %v7878_v29  ;;  %v7943_v22 = vsub.f32 %v14443_v39, %v7878_v29  ;;  %v5721_v19 = vmax.f32 %v5719_v33, %v5720_v44  ;;  %v14913_v45 = vadd.f32 %v4753_v49, %v4752_v61  ;;  %v14920_v39 = vpop.f32.mrb[74].mxu0 }
 0x44f   : > { %v6883_v30 = vmul.f32 1.442695, %v17038_v55  ;;  %v14905_v21 = vpop.eup %11631  ;;  %v3656_v12 = vrot.slane %v3655_v14, 1  ;;  %17041 = vst [vmem:[#allocation72_spill] sm:$0xff] %v14911_v3  ;;  %11639 = vpow2.f32 %v6881_v13  ;;  %v3721_v4 = vsel %vm1257_vm3, %v3679_v27, 0.0  ;;  %v14928_v49 = vpop.f32.mrb[75].mxu0 }
 0x450   : > { %17039 = vst [vmem:[#allocation67_spill] sm:$0xff] %v14905_v21  ;;  %v14909_v11 = vpop.eup %11633  ;;  %v5815_v41 = vsel %vm1257_vm3, %v14905_v21, 0.0  ;;  %v7958_v60 = vmul.f32 1.442695, %v7942_v8  ;;  %v7960_v56 = vmul.f32 1.442695, %v7943_v22  ;;  %v5750_v37 = vsub.f32 %v14465_v23, %v5721_v19 }
 0x451   : > { %17040 = vst [vmem:[#allocation68_spill] sm:$0xff] %v14909_v11  ;;  %v5816_v18 = vsel %vm1257_vm3, %v14909_v11, 0.0  ;;  %v14922_v33 = vpop.eup %11635  ;;  %11641 = vpow2.f32 %v6883_v30  ;;  %v5751_v61 = vsub.f32 %v14463_v40, %v5721_v19  ;;  %v3657_v44 = vadd.f32 %v3656_v12, %v3655_v14  ;;  %v17050_v55 = vld [vmem:[#allocation44_spill] sm:$0xff] }
 0x452   : > { %17042 = vst [vmem:[#allocation50_spill] sm:$0xff] %v14922_v33  ;;  %v14924_v35 = vadd.f32 %v5816_v18, %v5815_v41  ;;  %v14930_v13 = vpop.eup %11637  ;;  %11643 = vpow2.f32 %v7958_v60  ;;  %v5776_v29 = vmul.f32 1.442695, %v5750_v37  ;;  %3722 = vadd.xlane.f32.xlu0 %v3721_v4  ;;  %v7889_v23 = vsel %vm1257_vm3, %v14480_v34, -inf  ;;  %v17044_v18 = vld [vmem:[#allocation75_spill] sm:$0xff]  ;;  %v14950_v37 = vpop.f32.mrb[58].mxu1 }
 0x453   : > { %17043 = vst [vmem:[#allocation74_spill] sm:$0xff] %v14930_v13  ;;  %11645 = vpow2.f32 %v7960_v56  ;;  %v5778_v30 = vmul.f32 1.442695, %v5751_v61  ;;  %v5732_v40 = vsel %vm1257_vm3, %v14498_v1, -inf  ;;  %v6925_v27 = vsel %vm1257_vm3, %v14922_v33, 0.0 }
 0x454   : > { %11647 = vpow2.f32 %v5776_v29  ;;  %v7888_v24 = vsel %vm1257_vm3, %v14486_v36, -inf  ;;  %v5731_v14 = vsel %vm1257_vm3, %v14506_v59, -inf  ;;  %v6926_v8 = vsel %vm1257_vm3, %v14930_v13, 0.0  ;;  %v17046_v29 = vld [vmem:[#allocation73_spill] sm:$0xff] }
 0x455   : > { %11649 = vpow2.f32 %v5778_v30  ;;  %v3715_v22 = vsel %vm1257_vm3, %v3677_v25, 0.0  ;;  %v7890_v19 = vmax.f32 %v7888_v24, %v7889_v23  ;;  %v5733_v41 = vmax.f32 %v5731_v14, %v5732_v40  ;;  %v14958_v23 = vpop.f32.mrb[59].mxu1 }
 0x456   : > { %11651 = vrcp.f32 %v3657_v44  ;;  %3716 = vadd.xlane.f32.xlu0 %v3715_v22  ;;  %v17045_v60 = vrot.slane %v17044_v18, 2  ;;  %v1578_v61 = vrot.slane %v14814_v62, 4  ;;  %v17047_v30 = vrot.slane %v17046_v29, 2  ;;  %17048 = vst [vmem:[#allocation75_spill] sm:$0xff] %v14958_v23 }
 0x457   : > { %v7891_v4 = vrot.slane %v7890_v19, 4  ;;  %v7907_v25 = vsel %vm1257_vm3, %v14514_v52, -inf  ;;  %v14960_v44 = vadd.f32 %v6926_v8, %v6925_v27  ;;  %v5734_v40 = vrot.slane %v5733_v41, 4 }
 0x458   : > { %v4711_v56 = vadd.f32 %v17045_v60, %v17044_v18  ;;  %v4693_v6 = vadd.f32 %v17047_v30, %v17046_v29  ;;  %v6779_v14 = vsel %vm1257_vm3, %v14529_v43, -inf  ;;  %v7906_v57 = vsel %vm1257_vm3, %v17050_v55, -inf }
 0x459   : > { %v14964_v22 = vpop.eup %11639  ;;  %v7892_v18 = vmax.f32 %v7890_v19, %v7891_v4  ;;  %v6778_v29 = vsel %vm1257_vm3, %v14537_v31, -inf  ;;  %v5735_v30 = vmax.f32 %v5733_v41, %v5734_v40  ;;  %v7908_v12 = vmax.f32 %v7906_v57, %v7907_v25 }
 0x45a   : > { %v4712_v24 = vrot.slane %v4711_v56, 1  ;;  %17049 = vst [vmem:[#allocation73_spill] sm:$0xff] %v14964_v22  ;;  %v4694_v60 = vrot.slane %v4693_v6, 1  ;;  %v6780_v27 = vmax.f32 %v6778_v29, %v6779_v14  ;;  %v14973_v33 = vadd.f32 %v1578_v61, %v14814_v62  ;;  %v17054_v62 = vld [vmem:[#allocation80_spill] sm:$0xff] }
 0x45b   : > { %v14970_v8 = vpop.eup %11641  ;;  %v7893_v5 = vrot.slane %v7892_v18, 2  ;;  %v6797_v19 = vsel %vm1257_vm3, %v14569_v46, -inf  ;;  %v5736_v21 = vrot.slane %v5735_v30, 2  ;;  %v7909_v54 = vrot.slane %v7908_v12, 4 }
 0x45c   : > { %v4713_v15 = vadd.f32 %v4712_v24, %v4711_v56  ;;  %17051 = vst [vmem:[#allocation44_spill] sm:$0xff] %v14970_v8  ;;  %v4695_v11 = vadd.f32 %v4694_v60, %v4693_v6  ;;  %v14977_v4 = vpop.eup %11643  ;;  %v6781_v53 = vrot.slane %v6780_v27, 4  ;;  %v6796_v61 = vsel %vm1257_vm3, %v17054_v62, -inf }
 0x45d   : > { %17052 = vst [vmem:[#allocation87_spill] sm:$0xff] %v14977_v4  ;;  %v14979_v41 = vpop.eup %11645  ;;  %v7990_v57 = vsel %vm1257_vm3, %v14977_v4, 0.0  ;;  %v7894_v56 = vmax.f32 %v7892_v18, %v7893_v5  ;;  %v5737_v40 = vmax.f32 %v5735_v30, %v5736_v21  ;;  %v7910_v24 = vmax.f32 %v7908_v12, %v7909_v54  ;;  %v17057_v21 = vld [vmem:[#allocation78_spill] sm:$0xff] }
 0x45e   : > { %11653 = vrcp.f32 %v4713_v15  ;;  %17053 = vst [vmem:[#allocation88_spill] sm:$0xff] %v14979_v41  ;;  %v14985_v6 = vpop.eup %11647  ;;  %v7991_v25 = vsel %vm1257_vm3, %v14979_v41, 0.0  ;;  %v6782_v15 = vmax.f32 %v6780_v27, %v6781_v53  ;;  %v15003_v27 = vpop.f32.mrb[60].mxu1  ;;  %v6944_v54 = vsel %vm1257_vm3, %v14970_v8, 0.0 }
 0x45f   : > { %11655 = vrcp.f32 %v4695_v11  ;;  %17055 = vst [vmem:[#allocation80_spill] sm:$0xff] %v14985_v6  ;;  %v14989_v14 = vpop.eup %11649  ;;  %v14991_v60 = vadd.f32 %v7991_v25, %v7990_v57  ;;  %v5833_v29 = vsel %vm1257_vm3, %v14985_v6, 0.0  ;;  %v7895_v5 = vrot.slane %v7894_v56, 1  ;;  %v15006_v23 = vpop.f32.mrb[61].mxu1 }
 0x460   : > { %17056 = vst [vmem:[#allocation89_spill] sm:$0xff] %v14989_v14  ;;  %v14995_v11 = vmax.f32 %v6796_v61, %v6797_v19  ;;  %v11652_v18 = vpop.eup %11651  ;;  %v5834_v4 = vsel %vm1257_vm3, %v14989_v14, 0.0  ;;  %v5738_v13 = vrot.slane %v5737_v40, 1  ;;  %v7911_v3 = vrot.slane %v7910_v24, 2  ;;  %v17058_v61 = vld [vmem:[#allocation79_spill] sm:$0xff]  ;;  %17059 = vst [vmem:[#allocation78_spill] sm:$0xff] %v15006_v23 }
 0x461   : > { %v6783_v41 = vrot.slane %v6782_v15, 2  ;;  %v15000_v53 = vadd.f32 %v5834_v4, %v5833_v29  ;;  %v3680_v12 = vmul.f32 %v11652_v18, %v17057_v21  ;;  %v7896_v30 = vmax.f32 %v7894_v56, %v7895_v5 }
 0x462   : > { %v5739_v57 = vmax.f32 %v5737_v40, %v5738_v13  ;;  %v7912_v25 = vmax.f32 %v7910_v24, %v7911_v3  ;;  %v3681_v6 = vmul.f32 %v11652_v18, %v17058_v61  ;;  %v6943_v14 = vsel %vm1257_vm3, %v14964_v22, 0.0  ;;  %v17062_v40 = vld [vmem:[#allocation37_spill] sm:$0xff] }
 0x463   : > { %v6784_v19 = vmax.f32 %v6782_v15, %v6783_v41  ;;  %v3724_v4 = vsel %vm1257_vm3, %v3680_v12, 0.0  ;;  %v7946_v29 = vsub.f32 %v14486_v36, %v7896_v30  ;;  %v7947_v56 = vsub.f32 %v14480_v34, %v7896_v30  ;;  %v17060_v30 = vld [vmem:[#allocation53_spill] sm:$0xff] }
 0x464   : > { %3725 = vadd.xlane.f32.xlu1 %v3724_v4  ;;  %v5754_v3 = vsub.f32 %v14506_v59, %v5739_v57  ;;  %v5755_v13 = vsub.f32 %v14498_v1, %v5739_v57  ;;  %v7913_v41 = vrot.slane %v7912_v25, 1  ;;  %v1569_v24 = vrot.slane %v14886_v48, 4  ;;  %v17061_v1 = vld [vmem:[#allocation46_spill] sm:$0xff] }
 0x465   : > { %v7966_v15 = vmul.f32 1.442695, %v7946_v29  ;;  %v6785_v5 = vrot.slane %v6784_v19, 1  ;;  %v15019_v21 = vadd.f32 %v6944_v54, %v6943_v14  ;;  %v7968_v12 = vmul.f32 1.442695, %v7947_v56 }
 0x466   : > { %v5784_v61 = vmul.f32 1.442695, %v5754_v3  ;;  %v7914_v36 = vmax.f32 %v7912_v25, %v7913_v41  ;;  %v5786_v34 = vmul.f32 1.442695, %v5755_v13  ;;  %v15026_v23 = vadd.f32 %v1569_v24, %v14886_v48  ;;  %v17063_v3 = vld [vmem:[#allocation43_spill] sm:$0xff]  ;;  %v17064_v24 = vld [vmem:[#allocation57_spill] sm:$0xff] }
 0x467   : > { %11657 = vpow2.f32 %v7966_v15  ;;  %v6786_v22 = vmax.f32 %v6784_v19, %v6785_v5  ;;  %v7925_v13 = vsel %vm1257_vm3, %v17063_v3, -inf  ;;  %v17065_v15 = vld [vmem:[#allocation45_spill] sm:$0xff] }
 0x468   : > { %v11654_v18 = vpop.eup %11653  ;;  %11659 = vpow2.f32 %v7968_v12  ;;  %v7950_v29 = vsub.f32 %v17050_v55, %v7914_v36  ;;  %v7951_v54 = vsub.f32 %v14514_v52, %v7914_v36  ;;  %v7924_v5 = vsel %vm1257_vm3, %v17065_v15, -inf }
 0x469   : > { %v11656_v4 = vpop.eup %11655  ;;  %v4771_v59 = vmul.f32 %v11654_v18, %v17060_v30  ;;  %v6843_v25 = vsub.f32 %v14537_v31, %v6786_v22  ;;  %11661 = vpow2.f32 %v5784_v61  ;;  %v6844_v48 = vsub.f32 %v14529_v43, %v6786_v22  ;;  %v1512_v30 = vpop.xlane.xlu1 %1511 }
 0x46a   : > { %v4767_v57 = vmul.f32 %v11656_v4, %v17061_v1  ;;  %v4768_v8 = vmul.f32 %v11656_v4, %v17062_v40  ;;  %v7974_v56 = vmul.f32 1.442695, %v7950_v29  ;;  %11663 = vpow2.f32 %v5786_v34  ;;  %v1515_v34 = vpop.xlane.xlu0 %1514  ;;  %v17067_v29 = vld [vmem:[#allocation82_spill] sm:$0xff] }
 0x46b   : > { %v4795_v14 = vsel %vm1257_vm3, %v4771_v59, 0.0  ;;  %v6861_v41 = vmul.f32 1.442695, %v6843_v25  ;;  %v7976_v40 = vmul.f32 1.442695, %v7951_v54  ;;  %v4772_v52 = vmul.f32 %v11654_v18, %v17064_v24  ;;  %v17068_v25 = vld [vmem:[#allocation77_spill] sm:$0xff] }
 0x46c   : > { %4796 = vadd.xlane.f32.xlu1 %v4795_v14  ;;  %v4783_v19 = vsel %vm1257_vm3, %v4767_v57, 0.0  ;;  %v4786_v55 = vsel %vm1257_vm3, %v4768_v8, 0.0  ;;  %v6799_v31 = vrot.slane %v14995_v11, 4  ;;  %11665 = vpow2.f32 %v7974_v56  ;;  %v15043_v8 = vpop.f32.mrb[62].mxu1 }
 0x46d   : > { %4784 = vadd.xlane.f32.xlu0 %v4783_v19  ;;  %v6863_v12 = vmul.f32 1.442695, %v6844_v48  ;;  %v7926_v61 = vmax.f32 %v7924_v5, %v7925_v13  ;;  %v17066_v36 = vrot.slane %v14794_v47, 2  ;;  %11667 = vpow2.f32 %v6861_v41  ;;  %v15049_v59 = vpop.f32.mrb[63].mxu1 }
 0x46e   : > { %v3727_v43 = vsel %vm1257_vm3, %v3681_v6, 0.0  ;;  %v6800_v22 = vmax.f32 %v14995_v11, %v6799_v31  ;;  %v6815_v18 = vsel %vm1257_vm3, %v14621_v9, -inf  ;;  %v17069_v6 = vrot.slane %v17068_v25, 2  ;;  %v17070_v11 = vld [vmem:[#allocation29_spill] sm:$0xff] }
 0x46f   : > { %v4702_v4 = vadd.f32 %v17066_v36, %v14794_v47  ;;  %11669 = vpow2.f32 %v6863_v12  ;;  %v7927_v1 = vrot.slane %v7926_v61, 4  ;;  %v6814_v47 = vsel %vm1257_vm3, %v17067_v29, -inf }
 0x470   : > { %v6801_v14 = vrot.slane %v6800_v22, 2  ;;  %v6816_v54 = vmax.f32 %v6814_v47, %v6815_v18  ;;  %v4729_v19 = vadd.f32 %v17069_v6, %v17068_v25  ;;  %v1535_v56 = vmul.f32 %v17070_v11, %v1515_v34 }
 0x471   : > { %4787 = vadd.xlane.f32.xlu0 %v4786_v55  ;;  %v4703_v57 = vrot.slane %v4702_v4, 1  ;;  %v15057_v13 = vpop.eup %11657  ;;  %11671 = vpow2.f32 %v7976_v40  ;;  %v7928_v48 = vmax.f32 %v7926_v61, %v7927_v1  ;;  %v17072_v55 = vld [vmem:[#allocation30_spill] sm:$0xff]  ;;  %v5800_v47 = vrot.slane %v14862_v42, 4 }
 0x472   : > { %17071 = vst [vmem:[#allocation79_spill] sm:$0xff] %v15057_v13  ;;  %v1534_v24 = vmul.f32 %v1512_v30, %v17072_v55  ;;  %v15060_v31 = vpop.eup %11659  ;;  %v8008_v5 = vsel %vm1257_vm3, %v15057_v13, 0.0  ;;  %v6802_v12 = vmax.f32 %v6800_v22, %v6801_v14  ;;  %v6817_v36 = vrot.slane %v6816_v54, 4 }
 0x473   : > { %v4704_v41 = vadd.f32 %v4703_v57, %v4702_v4  ;;  %17073 = vst [vmem:[#allocation53_spill] sm:$0xff] %v15060_v31  ;;  %v4730_v18 = vrot.slane %v4729_v19, 1  ;;  %v8009_v34 = vsel %vm1257_vm3, %v15060_v31, 0.0  ;;  %v7929_v25 = vrot.slane %v7928_v48, 2  ;;  %v15067_v40 = vpop.eup %11661 }
 0x474   : > { %v15069_v61 = vadd.f32 %v8009_v34, %v8008_v5  ;;  %v6803_v4 = vrot.slane %v6802_v12, 1  ;;  %v6818_v30 = vmax.f32 %v6816_v54, %v6817_v36  ;;  %v1594_v1 = vsel %vm1538_vm4, %v1535_v56, 0.0  ;;  %v15072_v57 = vpop.eup %11663 }
 0x475   : > { %3728 = vadd.xlane.f32.xlu0 %v3727_v43  ;;  %11673 = vrcp.f32 %v4704_v41  ;;  %17074 = vst [vmem:[#allocation46_spill] sm:$0xff] %v15072_v57  ;;  %v17075_v22 = vrot.slane %v14973_v33, 2  ;;  %v7930_v6 = vmax.f32 %v7928_v48, %v7929_v25  ;;  %v4731_v13 = vadd.f32 %v4730_v18, %v4729_v19 }
 0x476   : > { %v1593_v43 = vsel %vm1538_vm4, %v1534_v24, 0.0  ;;  %v6946_v41 = vrot.slane %v15019_v21, 4  ;;  %v1571_v31 = vrot.slane %v15026_v23, 2  ;;  %v4798_v5 = vsel %vm1257_vm3, %v4772_v52, 0.0  ;;  %v15081_v54 = vpop.eup %11665 }
 0x477   : > { %v1581_v14 = vadd.f32 %v17075_v22, %v14973_v33  ;;  %v6804_v34 = vmax.f32 %v6802_v12, %v6803_v4  ;;  %17076 = vst [vmem:[#allocation37_spill] sm:$0xff] %v15081_v54  ;;  %v5818_v56 = vrot.slane %v14924_v35, 4  ;;  %v7931_v36 = vrot.slane %v7930_v6, 1  ;;  %v15086_v33 = vpop.eup %11667 }
 0x478   : > { %11675 = vrcp.f32 %v4731_v13  ;;  %v15084_v11 = vadd.f32 %v1594_v1, %v1593_v43  ;;  %17077 = vst [vmem:[#allocation43_spill] sm:$0xff] %v15086_v33  ;;  %v17078_v19 = vrot.slane %v14960_v44, 4  ;;  %v15094_v24 = vadd.f32 %v5800_v47, %v14862_v42 }
 0x479   : > { %4799 = vadd.xlane.f32.xlu0 %v4798_v5  ;;  %v6847_v52 = vsub.f32 %v17054_v62, %v6804_v34  ;;  %v6819_v12 = vrot.slane %v6818_v30, 2  ;;  %v15097_v18 = vpop.eup %11669  ;;  %v1582_v25 = vrot.slane %v1581_v14, 1  ;;  %v6898_v13 = vsel %vm1257_vm3, %v15086_v33, 0.0  ;;  %v17089_v33 = vld [vmem:[#allocation27_spill] sm:$0xff] }
 0x47a   : > { %v15091_v48 = vadd.f32 %v17078_v19, %v14960_v44  ;;  %17079 = vst [vmem:[#allocation57_spill] sm:$0xff] %v15097_v18  ;;  %v6848_v4 = vsub.f32 %v14569_v46, %v6804_v34  ;;  %v7932_v1 = vmax.f32 %v7930_v6, %v7931_v36  ;;  %v15103_v22 = vadd.f32 %v6946_v41, %v15019_v21  ;;  %v15118_v6 = vpop.f32.mrb[64].mxu1 }
 0x47b   : > { %v15106_v44 = vadd.f32 %v1571_v31, %v15026_v23  ;;  %v6899_v42 = vsel %vm1257_vm3, %v15097_v18, 0.0  ;;  %v6869_v62 = vmul.f32 1.442695, %v6847_v52  ;;  %v15110_v47 = vpop.eup %11671  ;;  %v15113_v43 = vadd.f32 %v5818_v56, %v14924_v35  ;;  %v15122_v41 = vpop.f32.mrb[65].mxu1  ;;  %v17084_v52 = vld [vmem:[#allocation81_spill] sm:$0xff] }
 0x47c   : > { %17080 = vst [vmem:[#allocation45_spill] sm:$0xff] %v15110_v47  ;;  %v15115_v5 = vadd.f32 %v6899_v42, %v6898_v13  ;;  %v6871_v19 = vmul.f32 1.442695, %v6848_v4  ;;  %v7954_v46 = vsub.f32 %v17065_v15, %v7932_v1  ;;  %v7955_v23 = vsub.f32 %v17063_v3, %v7932_v1  ;;  %17082 = vst [vmem:[#allocation77_spill] sm:$0xff] %v15122_v41  ;;  %v17085_v4 = vld [vmem:[#allocation49_spill] sm:$0xff] }
 0x47d   : > { %17081 = vst [vmem:[#allocation82_spill] sm:$0xff] %v15113_v43  ;;  %11677 = vpow2.f32 %v6869_v62  ;;  %v6820_v31 = vmax.f32 %v6818_v30, %v6819_v12  ;;  %v5851_v35 = vsel %vm1257_vm3, %v15067_v40, 0.0  ;;  %v5852_v56 = vsel %vm1257_vm3, %v15072_v57, 0.0 }
 0x47e   : > { %11679 = vpow2.f32 %v6871_v19  ;;  %v15129_v15 = vadd.f32 %v1582_v25, %v1581_v14  ;;  %v8972_v62 = vsel %vm1257_vm3, %v14655_v2, -inf  ;;  %v7993_v36 = vrot.slane %v14991_v60, 4  ;;  %v1509_v19 = vpop.xlane.xlu0 %1508 }
 0x47f   : > { %v11674_v34 = vpop.eup %11673  ;;  %v6821_v3 = vrot.slane %v6820_v31, 1  ;;  %v15139_v21 = vadd.f32 %v5852_v56, %v5851_v35  ;;  %v8971_v12 = vsel %vm1257_vm3, %v14662_v26, -inf  ;;  %v17086_v35 = vrot.slane %v14913_v45, 2 }
 0x480   : > { %17083 = vst [vmem:[#allocation90_spill] sm:$0xff] %v15129_v15  ;;  %v4769_v13 = vmul.f32 %v11674_v34, %v17084_v52  ;;  %v4770_v42 = vmul.f32 %v11674_v34, %v17085_v4  ;;  %v8026_v52 = vsel %vm1257_vm3, %v15081_v54, 0.0  ;;  %v8027_v4 = vsel %vm1257_vm3, %v15110_v47, 0.0  ;;  %v17088_v47 = vld [vmem:[#allocation61_spill] sm:$0xff]  ;;  %v1506_v15 = vpop.xlane.xlu1 %1505 }
 0x481   : > { %v15142_v25 = vmax.f32 %v6820_v31, %v6821_v3  ;;  %v4756_v56 = vadd.f32 %v17086_v35, %v14913_v45  ;;  %v17087_v3 = vld [vmem:[#allocation60_spill] sm:$0xff]  ;;  %v8973_v1 = vmax.f32 %v8971_v12, %v8972_v62  ;;  %v7982_v54 = vmul.f32 1.442695, %v7954_v46 }
 0x482   : > { %v4789_v14 = vsel %vm1257_vm3, %v4769_v13, 0.0  ;;  %v11676_v34 = vpop.eup %11675  ;;  %v1533_v57 = vmul.f32 %v17089_v33, %v1509_v19  ;;  %v5836_v55 = vrot.slane %v15000_v53, 4  ;;  %v8011_v45 = vrot.slane %v15069_v61, 4  ;;  %v17091_v19 = vld [vmem:[#allocation28_spill] sm:$0xff] }
 0x483   : > { %4790 = vadd.xlane.f32.xlu0 %v4789_v14  ;;  %v4775_v30 = vmul.f32 %v11676_v34, %v17087_v3  ;;  %v4757_v18 = vrot.slane %v4756_v56, 1  ;;  %v4776_v14 = vmul.f32 %v11676_v34, %v17088_v47  ;;  %v4792_v35 = vsel %vm1257_vm3, %v4770_v42, 0.0 }
 0x484   : > { %v8974_v31 = vrot.slane %v8973_v1, 4  ;;  %v5854_v43 = vrot.slane %v15139_v21, 4  ;;  %v8028_v13 = vadd.f32 %v8027_v4, %v8026_v52  ;;  %v7984_v41 = vmul.f32 1.442695, %v7955_v23 }
 0x485   : > { %v4758_v12 = vadd.f32 %v4757_v18, %v4756_v56  ;;  %v1585_v47 = vsel %vm1538_vm4, %v1533_v57, 0.0  ;;  %v1532_v34 = vmul.f32 %v1506_v15, %v17091_v19  ;;  %v6833_v3 = vsel %vm1257_vm3, %v14724_v16, -inf }
 0x486   : > { %v8975_v62 = vmax.f32 %v8973_v1, %v8974_v31  ;;  %11681 = vpow2.f32 %v7982_v54  ;;  %v4807_v23 = vsel %vm1257_vm3, %v4775_v30, 0.0  ;;  %v6832_v18 = vsel %vm1257_vm3, %v14733_v0, -inf  ;;  %v15185_v31 = vpop.f32.mrb[66].mxu1 }
 0x487   : > { %4793 = vadd.xlane.f32.xlu0 %v4792_v35  ;;  %v15164_v46 = vpop.eup %11677  ;;  %11683 = vrcp.f32 %v4758_v12  ;;  %v1584_v15 = vsel %vm1538_vm4, %v1532_v34, 0.0  ;;  %v1596_v4 = vrot.slane %v15084_v11, 4  ;;  %v6834_v54 = vmax.f32 %v6832_v18, %v6833_v3 }
 0x488   : > { %17090 = vst [vmem:[#allocation81_spill] sm:$0xff] %v15164_v46  ;;  %v15170_v33 = vpop.eup %11679  ;;  %v6916_v42 = vsel %vm1257_vm3, %v15164_v46, 0.0  ;;  %v8976_v57 = vrot.slane %v8975_v62, 2  ;;  %v15183_v56 = vadd.f32 %v1585_v47, %v1584_v15  ;;  %11685 = vpow2.f32 %v7984_v41 }
 0x489   : > { %17092 = vst [vmem:[#allocation49_spill] sm:$0xff] %v15170_v33  ;;  %v6917_v1 = vsel %vm1257_vm3, %v15170_v33, 0.0  ;;  %v17093_v35 = vrot.slane %v14727_v50, 2  ;;  %v17094_v12 = vrot.slane %v14839_v32, 2  ;;  %v8029_v47 = vrot.slane %v8028_v13, 4 }
 0x48a   : > { %v15180_v52 = vadd.f32 %v6917_v1, %v6916_v42  ;;  %v8977_v30 = vmax.f32 %v8975_v62, %v8976_v57  ;;  %v15193_v42 = vpop.f32.mrb[67].mxu1  ;;  %v6901_v3 = vrot.slane %v15115_v5, 4  ;;  %v6835_v18 = vrot.slane %v6834_v54, 4 }
 0x48b   : > { %4808 = vadd.xlane.f32.xlu0 %v4807_v23  ;;  %v5812_v33 = vadd.f32 %v17093_v35, %v14727_v50  ;;  %v4720_v34 = vadd.f32 %v17094_v12, %v14839_v32  ;;  %v15196_v23 = vadd.f32 %v7993_v36, %v14991_v60  ;;  %v4810_v41 = vsel %vm1257_vm3, %v4776_v14, 0.0  ;;  %v2586_v36 = vpop.xlane.xlu0 %2585 }
 0x48c   : > { %v8978_v1 = vrot.slane %v8977_v30, 1  ;;  %v15201_v50 = vadd.f32 %v5836_v55, %v15000_v53  ;;  %v15204_v15 = vadd.f32 %v8011_v45, %v15069_v61  ;;  %v1597_v32 = vadd.f32 %v1596_v4, %v15084_v11 }
 0x48d   : > { %17095 = vst [vmem:[#allocation60_spill] sm:$0xff] %v15196_v23  ;;  %v5813_v62 = vrot.slane %v5812_v33, 1  ;;  %v4721_v57 = vrot.slane %v4720_v34, 1  ;;  %v6836_v60 = vmax.f32 %v6834_v54, %v6835_v18  ;;  %v15208_v35 = vadd.f32 %v5854_v43, %v15139_v21  ;;  %v17113_v23 = vld [vmem:[#allocation55_spill] sm:$0xff] }
 0x48e   : > { %17096 = vst [vmem:[#allocation61_spill] sm:$0xff] %v15201_v50  ;;  %17097 = vst [vmem:[#allocation91_spill] sm:$0xff] %v15204_v15  ;;  %v15210_v12 = vmax.f32 %v8977_v30, %v8978_v1  ;;  %v17098_v19 = vrot.slane %v15106_v44, 1  ;;  %v15217_v55 = vadd.f32 %v8029_v47, %v8028_v13  ;;  %v15220_v61 = vadd.f32 %v6901_v3, %v15115_v5  ;;  %v2583_v13 = vpop.xlane.xlu1 %2582  ;;  %v17114_v50 = vld [vmem:[#allocation76_spill] sm:$0xff] }
 0x48f   : > { %4811 = vadd.xlane.f32.xlu0 %v4810_v41  ;;  %v5814_v46 = vadd.f32 %v5813_v62, %v5812_v33  ;;  %v4722_v14 = vadd.f32 %v4721_v57, %v4720_v34  ;;  %v6837_v11 = vrot.slane %v6836_v60, 2  ;;  %v17101_v33 = vld [vmem:[#allocation17_spill] sm:$0xff]  ;;  %v1598_v54 = vrot.slane %v1597_v32, 2 }
 0x490   : > { %v15215_v53 = vadd.f32 %v17098_v19, %v15106_v44  ;;  %17099 = vst [vmem:[#allocation92_spill] sm:$0xff] %v15217_v55  ;;  %17100 = vst [vmem:[#allocation93_spill] sm:$0xff] %v15220_v61  ;;  %v2630_v21 = vmul.f32 %v17101_v33, %v2586_v36  ;;  %v15227_v4 = vpop.eup %11681  ;;  %v17104_v62 = vsub.f32 %v17067_v29, %v15142_v25  ;;  %v17105_v36 = vld [vmem:[#allocation18_spill] sm:$0xff] }
 0x491   : > { %11687 = vrcp.f32 %v5814_v46  ;;  %17102 = vst [vmem:[#allocation94_spill] sm:$0xff] %v15227_v4  ;;  %v6838_v44 = vmax.f32 %v6836_v60, %v6837_v11  ;;  %v15229_v19 = vpop.eup %11683  ;;  %v7880_v11 = vsel %vm1257_vm3, %v14762_v7, -inf  ;;  %v8044_v34 = vsel %vm1257_vm3, %v15227_v4, 0.0 }
 0x492   : > { %11689 = vrcp.f32 %v4722_v14  ;;  %v4781_v18 = vmul.f32 %v15229_v19, %v14822_v51  ;;  %v15239_v41 = vpop.eup %11685  ;;  %v6877_v57 = vmul.f32 1.442695, %v17104_v62  ;;  %v2647_v60 = vsel %vm2645_vm6, %v2630_v21, 0.0 }
 0x493   : > { %v6839_v1 = vrot.slane %v6838_v44, 1  ;;  %17103 = vst [vmem:[#allocation95_spill] sm:$0xff] %v15239_v41  ;;  %v2629_v14 = vmul.f32 %v2583_v13, %v17105_v36  ;;  %v17106_v51 = vsub.f32 %v14621_v9, %v15142_v25  ;;  %v1599_v46 = vadd.f32 %v1598_v54, %v1597_v32  ;;  %v17107_v25 = vld [vmem:[#allocation63_spill] sm:$0xff] }
 0x494   : > { %v4825_v3 = vsel %vm1257_vm3, %v4781_v18, 0.0  ;;  %v8990_v13 = vsel %vm1257_vm3, %v14764_v58, -inf  ;;  %v7879_v62 = vsel %vm1257_vm3, %v14770_v17, -inf  ;;  %v8045_v30 = vsel %vm1257_vm3, %v15239_v41, 0.0  ;;  %v17108_v18 = vld [vmem:[#allocation48_spill] sm:$0xff]  ;;  %v17112_v41 = vld [vmem:[#allocation35_spill] sm:$0xff] }
 0x495   : > { %v6879_v5 = vmul.f32 1.442695, %v17106_v51  ;;  %4826 = vadd.xlane.f32.xlu1 %v4825_v3  ;;  %v15254_v29 = vmax.f32 %v6838_v44, %v6839_v1  ;;  %v2646_v21 = vsel %vm2645_vm6, %v2629_v14, 0.0  ;;  %v7881_v9 = vmax.f32 %v7879_v62, %v7880_v11  ;;  %v15275_v11 = vpop.xlane.xlu0 %1520 }
 0x496   : > { %v15263_v47 = vadd.f32 %v2647_v60, %v2646_v21  ;;  %v8989_v32 = vsel %vm1257_vm3, %v17107_v25, -inf  ;;  %v17109_v1 = vrot.slane %v17108_v18, 2  ;;  %v6919_v51 = vrot.slane %v15180_v52, 4 }
 0x497   : > { %v6855_v54 = vsub.f32 %v14733_v0, %v15254_v29  ;;  %v8991_v3 = vmax.f32 %v8989_v32, %v8990_v13  ;;  %11691 = vpow2.f32 %v6877_v57  ;;  %v1600_v60 = vrot.slane %v1599_v46, 1  ;;  %v17110_v32 = vld [vmem:[#allocation40_spill] sm:$0xff] }
 0x498   : > { %v4747_v14 = vadd.f32 %v17109_v1, %v17108_v18  ;;  %v7882_v21 = vrot.slane %v7881_v9, 4  ;;  %11693 = vpow2.f32 %v6879_v5  ;;  %v1587_v0 = vrot.slane %v15183_v56, 4  ;;  %v17111_v1 = vld [vmem:[#allocation34_spill] sm:$0xff] }
 0x499   : > { %v8992_v43 = vrot.slane %v8991_v3, 4  ;;  %v8046_v13 = vadd.f32 %v8045_v30, %v8044_v34  ;;  %v7898_v57 = vsel %vm1257_vm3, %v17111_v1, -inf  ;;  %v7897_v5 = vsel %vm1257_vm3, %v17114_v50, -inf }
 0x49a   : > { %v4748_v45 = vrot.slane %v4747_v14, 1  ;;  %v7883_v18 = vmax.f32 %v7881_v9, %v7882_v21  ;;  %v15289_v33 = vadd.f32 %v6919_v51, %v15180_v52  ;;  %v15291_v36 = vadd.f32 %v1600_v60, %v1599_v46  ;;  %v15299_v46 = vpop.xlane.xlu0 %2594 }
 0x49b   : > { %v15277_v62 = vpop.eup %11687  ;;  %v8993_v61 = vmax.f32 %v8991_v3, %v8992_v43  ;;  %v1588_v9 = vadd.f32 %v1587_v0, %v15183_v56  ;;  %v17116_v43 = vsub.f32 %v14662_v26, %v15210_v12  ;;  %v7899_v3 = vmax.f32 %v7897_v5, %v7898_v57 }
 0x49c   : > { %v11690_v44 = vpop.eup %11689  ;;  %v5872_v4 = vmul.f32 %v15277_v62, %v17110_v32  ;;  %17115 = vst [vmem:[#allocation63_spill] sm:$0xff] %v15289_v33  ;;  %v7884_v34 = vrot.slane %v7883_v18, 2  ;;  %v4749_v32 = vadd.f32 %v4748_v45, %v4747_v14  ;;  %v9008_v5 = vsel %vm1257_vm3, %v14868_v10, -inf }
 0x49d   : > { %v4773_v15 = vmul.f32 %v11690_v44, %v17112_v41  ;;  %v4774_v55 = vmul.f32 %v11690_v44, %v17113_v23  ;;  %v8994_v41 = vrot.slane %v8993_v61, 2  ;;  %v8047_v23 = vrot.slane %v8046_v13, 4 }
 0x49e   : > { %v5896_v30 = vsel %vm1257_vm3, %v5872_v4, 0.0  ;;  %v9059_v44 = vmul.f32 1.442695, %v17116_v43  ;;  %v7885_v52 = vmax.f32 %v7883_v18, %v7884_v34  ;;  %v17117_v4 = vsub.f32 %v14655_v2, %v15210_v12  ;;  %v15319_v14 = vpop.xlane.xlu0 %2588 }
 0x49f   : > { %5897 = vadd.xlane.f32.xlu1 %v5896_v30  ;;  %v4801_v21 = vsel %vm1257_vm3, %v4773_v15, 0.0  ;;  %v8995_v56 = vmax.f32 %v8993_v61, %v8994_v41  ;;  %11695 = vrcp.f32 %v4749_v32  ;;  %v17118_v15 = vrot.slane %v14877_v28, 2 }
 0x4a0   : > { %4802 = vadd.xlane.f32.xlu0 %v4801_v21  ;;  %v9061_v51 = vmul.f32 1.442695, %v17117_v4  ;;  %v4804_v26 = vsel %vm1257_vm3, %v4774_v55, 0.0  ;;  %v7886_v60 = vrot.slane %v7885_v52, 1  ;;  %v7900_v0 = vrot.slane %v7899_v3, 4 }
 0x4a1   : > { %v4738_v45 = vadd.f32 %v17118_v15, %v14877_v28  ;;  %v8996_v18 = vrot.slane %v8995_v56, 1  ;;  %v9007_v2 = vsel %vm1257_vm3, %v14874_v63, -inf  ;;  %v15313_v12 = vpop.eup %11691  ;;  %11697 = vpow2.f32 %v9059_v44 }
 0x4a2   : > { %17119 = vst [vmem:[#allocation48_spill] sm:$0xff] %v15313_v12  ;;  %v1589_v61 = vrot.slane %v1588_v9, 2  ;;  %v7887_v28 = vmax.f32 %v7885_v52, %v7886_v60  ;;  %v7901_v30 = vmax.f32 %v7899_v3, %v7900_v0  ;;  %v15315_v34 = vpop.eup %11693  ;;  %11699 = vpow2.f32 %v9061_v51 }
 0x4a3   : > { %v4739_v57 = vrot.slane %v4738_v45, 1  ;;  %v8997_v55 = vmax.f32 %v8995_v56, %v8996_v18  ;;  %v9009_v41 = vmax.f32 %v9007_v2, %v9008_v5  ;;  %v6885_v32 = vmul.f32 1.442695, %v6855_v54  ;;  %v17122_v5 = vld [vmem:[#allocation83_spill] sm:$0xff] }
 0x4a4   : > { %4805 = vadd.xlane.f32.xlu0 %v4804_v26  ;;  %v7944_v43 = vsub.f32 %v14770_v17, %v7887_v28  ;;  %v7945_v4 = vsub.f32 %v14762_v7, %v7887_v28  ;;  %v7902_v15 = vrot.slane %v7901_v30, 2  ;;  %v15323_v3 = vadd.f32 %v8047_v23, %v8046_v13 }
 0x4a5   : > { %v4740_v21 = vadd.f32 %v4739_v57, %v4738_v45  ;;  %v9047_v44 = vsub.f32 %v17107_v25, %v8997_v55  ;;  %v9048_v26 = vsub.f32 %v14764_v58, %v8997_v55  ;;  %v9010_v52 = vrot.slane %v9009_v41, 4  ;;  %v15345_v55 = vpop.xlane.xlu0 %2606 }
 0x4a6   : > { %17120 = vst [vmem:[#allocation40_spill] sm:$0xff] %v15323_v3  ;;  %v7962_v51 = vmul.f32 1.442695, %v7944_v43  ;;  %v7964_v56 = vmul.f32 1.442695, %v7945_v4  ;;  %v7916_v54 = vsel %vm1257_vm3, %v14893_v38, -inf  ;;  %v15331_v45 = vadd.f32 %v1589_v61, %v1588_v9 }
 0x4a7   : > { %11701 = vrcp.f32 %v4740_v21  ;;  %v6934_v17 = vsel %vm1257_vm3, %v15313_v12, 0.0  ;;  %v6935_v7 = vsel %vm1257_vm3, %v15315_v34, 0.0  ;;  %v7903_v25 = vmax.f32 %v7901_v30, %v7902_v15  ;;  %v17124_v61 = vld [vmem:[#allocation64_spill] sm:$0xff] }
 0x4a8   : > { %v17121_v58 = vsub.f32 %v14724_v16, %v15254_v29  ;;  %11703 = vpow2.f32 %v7962_v51  ;;  %v9011_v13 = vmax.f32 %v9009_v41, %v9010_v52  ;;  %v7915_v23 = vsel %vm1257_vm3, %v14897_v20, -inf  ;;  %v17125_v16 = vld [vmem:[#allocation66_spill] sm:$0xff] }
 0x4a9   : > { %v11696_v0 = vpop.eup %11695  ;;  %11705 = vpow2.f32 %v7964_v56  ;;  %v7904_v18 = vrot.slane %v7903_v25, 1  ;;  %v7917_v57 = vmax.f32 %v7915_v23, %v7916_v54  ;;  %v17123_v2 = vrot.slane %v17122_v5, 2 }
 0x4aa   : > { %v6887_v60 = vmul.f32 1.442695, %v17121_v58  ;;  %v15341_v9 = vadd.f32 %v6935_v7, %v6934_v17  ;;  %11707 = vpow2.f32 %v6885_v32  ;;  %v4779_v30 = vmul.f32 %v11696_v0, %v17124_v61 }
 0x4ab   : > { %v5794_v28 = vadd.f32 %v17123_v2, %v17122_v5  ;;  %v4780_v29 = vmul.f32 %v11696_v0, %v17125_v16  ;;  %v9067_v21 = vmul.f32 1.442695, %v9047_v44  ;;  %v15347_v41 = vmax.f32 %v7903_v25, %v7904_v18  ;;  %v15349_v15 = vpop.eup %11697 }
 0x4ac   : > { %v9012_v43 = vrot.slane %v9011_v13, 2  ;;  %v7918_v4 = vrot.slane %v7917_v57, 4  ;;  %17126 = vst [vmem:[#allocation34_spill] sm:$0xff] %v15349_v15  ;;  %11709 = vpow2.f32 %v6887_v60  ;;  %v2649_v52 = vrot.slane %v15263_v47, 4  ;;  %v15353_v32 = vpop.eup %11699 }
 0x4ad   : > { %v4819_v51 = vsel %vm1257_vm3, %v4779_v30, 0.0  ;;  %v5795_v56 = vrot.slane %v5794_v28, 1  ;;  %17127 = vst [vmem:[#allocation35_spill] sm:$0xff] %v15353_v32  ;;  %v7948_v54 = vsub.f32 %v17114_v50, %v15347_v41  ;;  %v7949_v44 = vsub.f32 %v17111_v1, %v15347_v41  ;;  %v17128_v50 = vld [vmem:[#allocation56_spill] sm:$0xff]  ;;  %v17129_v30 = vld [vmem:[#allocation59_spill] sm:$0xff] }
 0x4ae   : > { %4820 = vadd.xlane.f32.xlu0 %v4819_v51  ;;  %v9013_v17 = vmax.f32 %v9011_v13, %v9012_v43  ;;  %v7919_v7 = vmax.f32 %v7917_v57, %v7918_v4  ;;  %v9069_v25 = vmul.f32 1.442695, %v9048_v26  ;;  %v9026_v60 = vsel %vm1257_vm3, %v14920_v39, -inf  ;;  %v15366_v26 = vpop.xlane.xlu0 %2600 }
 0x4af   : > { %v5796_v58 = vadd.f32 %v5795_v56, %v5794_v28  ;;  %v9025_v23 = vsel %vm1257_vm3, %v14928_v49, -inf  ;;  %11711 = vpow2.f32 %v9067_v21  ;;  %v4822_v18 = vsel %vm1257_vm3, %v4780_v29, 0.0 }
 0x4b0   : > { %v9014_v5 = vrot.slane %v9013_v17, 1  ;;  %v7920_v2 = vrot.slane %v7919_v7, 2  ;;  %v9027_v13 = vmax.f32 %v9025_v23, %v9026_v60  ;;  %v2650_v57 = vadd.f32 %v2649_v52, %v15263_v47 }
 0x4b1   : > { %v11702_v0 = vpop.eup %11701  ;;  %11713 = vrcp.f32 %v5796_v58  ;;  %v17130_v21 = vrot.slane %v15208_v35, 2  ;;  %v9091_v43 = vsel %vm1257_vm3, %v15349_v15, 0.0  ;;  %v9092_v4 = vsel %vm1257_vm3, %v15353_v32, 0.0 }
 0x4b2   : > { %v4777_v61 = vmul.f32 %v11702_v0, %v17128_v50  ;;  %v4778_v1 = vmul.f32 %v11702_v0, %v17129_v30  ;;  %4823 = vadd.xlane.f32.xlu0 %v4822_v18  ;;  %v15369_v28 = vmax.f32 %v9013_v17, %v9014_v5  ;;  %v7921_v16 = vmax.f32 %v7919_v7, %v7920_v2  ;;  %v15374_v41 = vpop.eup %11703  ;;  %v17135_v0 = vld [vmem:[#allocation75_spill] sm:$0xff] }
 0x4b3   : > { %v5857_v29 = vadd.f32 %v17130_v21, %v15208_v35  ;;  %17131 = vst [vmem:[#allocation55_spill] sm:$0xff] %v15374_v41  ;;  %11715 = vpow2.f32 %v9069_v25  ;;  %v9028_v51 = vrot.slane %v9027_v13, 4  ;;  %v15380_v56 = vpop.eup %11705  ;;  %v7999_v47 = vsel %vm1257_vm3, %v15374_v41, 0.0 }
 0x4b4   : > { %17132 = vst [vmem:[#allocation76_spill] sm:$0xff] %v15380_v56  ;;  %v9051_v52 = vsub.f32 %v14874_v63, %v15369_v28  ;;  %v9052_v35 = vsub.f32 %v14868_v10, %v15369_v28  ;;  %v7922_v17 = vrot.slane %v7921_v16, 1  ;;  %v15388_v7 = vpop.eup %11707  ;;  %v8000_v58 = vsel %vm1257_vm3, %v15380_v56, 0.0 }
 0x4b5   : > { %17133 = vst [vmem:[#allocation83_spill] sm:$0xff] %v15388_v7  ;;  %v4813_v25 = vsel %vm1257_vm3, %v4777_v61, 0.0  ;;  %v9029_v60 = vmax.f32 %v9027_v13, %v9028_v51  ;;  %v5858_v23 = vrot.slane %v5857_v29, 1  ;;  %v6937_v18 = vrot.slane %v15341_v9, 4  ;;  %v15404_v13 = vpop.xlane.xlu0 %2618 }
 0x4b6   : > { %v1591_v5 = vrot.slane %v15331_v45, 1  ;;  %v15396_v63 = vadd.f32 %v8000_v58, %v7999_v47  ;;  %4814 = vadd.xlane.f32.xlu0 %v4813_v25  ;;  %v15398_v10 = vpop.eup %11709  ;;  %v15400_v2 = vmax.f32 %v7921_v16, %v7922_v17  ;;  %v7934_v61 = vsel %vm1257_vm3, %v14950_v37, -inf }
 0x4b7   : > { %17134 = vst [vmem:[#allocation64_spill] sm:$0xff] %v15398_v10  ;;  %v9030_v50 = vrot.slane %v9029_v60, 2  ;;  %v5859_v30 = vadd.f32 %v5858_v23, %v5857_v29  ;;  %v9093_v28 = vadd.f32 %v9092_v4, %v9091_v43  ;;  %v2651_v21 = vrot.slane %v2650_v57, 2 }
 0x4b8   : > { %v7970_v51 = vmul.f32 1.442695, %v7948_v54  ;;  %v7933_v15 = vsel %vm1257_vm3, %v17135_v0, -inf  ;;  %v4816_v47 = vsel %vm1257_vm3, %v4778_v1, 0.0  ;;  %v7952_v58 = vsub.f32 %v14897_v20, %v15400_v2 }
 0x4b9   : > { %v7953_v16 = vsub.f32 %v14893_v38, %v15400_v2  ;;  %v9031_v29 = vmax.f32 %v9029_v60, %v9030_v50  ;;  %v15413_v17 = vpop.eup %11711  ;;  %v15416_v25 = vadd.f32 %v1591_v5, %v15331_v45  ;;  %v7972_v43 = vmul.f32 1.442695, %v7949_v44  ;;  %v17137_v2 = vld [vmem:[#allocation70_spill] sm:$0xff]  ;;  %v17138_v5 = vld [vmem:[#allocation71_spill] sm:$0xff]  ;;  %v17139_v50 = vld [vmem:[#allocation72_spill] sm:$0xff]  ;;  %v15434_v56 = vpop.xlane.xlu0 %2612 }
 0x4ba   : > { %17136 = vst [vmem:[#allocation66_spill] sm:$0xff] %v15413_v17  ;;  %4817 = vadd.xlane.f32.xlu0 %v4816_v47  ;;  %11717 = vrcp.f32 %v5859_v30  ;;  %v7935_v54 = vmax.f32 %v7933_v15, %v7934_v61  ;;  %v15419_v23 = vadd.f32 %v6937_v18, %v15341_v9  ;;  %v6952_v20 = vsel %vm1257_vm3, %v15388_v7, 0.0 }
 0x4bb   : > { %v11714_v4 = vpop.eup %11713  ;;  %v6953_v38 = vsel %vm1257_vm3, %v15398_v10, 0.0  ;;  %v9032_v1 = vrot.slane %v9031_v29, 1  ;;  %v15425_v60 = vadd.f32 %v2651_v21, %v2650_v57  ;;  %v17140_v15 = vrot.slane %v17139_v50, 2 }
 0x4bc   : > { %v5868_v45 = vmul.f32 %v11714_v4, %v17137_v2  ;;  %v5869_v44 = vmul.f32 %v11714_v4, %v17138_v5  ;;  %v9094_v9 = vrot.slane %v9093_v28, 4  ;;  %11719 = vpow2.f32 %v7970_v51 }
 0x4bd   : > { %v6913_v30 = vadd.f32 %v17140_v15, %v17139_v50  ;;  %v15432_v61 = vpop.eup %11715  ;;  %v9033_v18 = vmax.f32 %v9031_v29, %v9032_v1  ;;  %v7936_v47 = vrot.slane %v7935_v54, 4  ;;  %v6954_v41 = vadd.f32 %v6953_v38, %v6952_v20 }
 0x4be   : > { %17141 = vst [vmem:[#allocation56_spill] sm:$0xff] %v15432_v61  ;;  %v9109_v57 = vsel %vm1257_vm3, %v15413_v17, 0.0  ;;  %11721 = vpow2.f32 %v7972_v43  ;;  %v5884_v21 = vsel %vm1257_vm3, %v5868_v45, 0.0  ;;  %v9075_v4 = vmul.f32 1.442695, %v9051_v52 }
 0x4bf   : > { %v9077_v2 = vmul.f32 1.442695, %v9052_v35  ;;  %5885 = vadd.xlane.f32.xlu0 %v5884_v21  ;;  %v9055_v5 = vsub.f32 %v14928_v49, %v9033_v18  ;;  %v9056_v50 = vsub.f32 %v14920_v39, %v9033_v18  ;;  %v9110_v51 = vsel %vm1257_vm3, %v15432_v61, 0.0  ;;  %v17144_v35 = vld [vmem:[#allocation41_spill] sm:$0xff] }
 0x4c0   : > { %v7937_v29 = vmax.f32 %v7935_v54, %v7936_v47  ;;  %v6914_v1 = vrot.slane %v6913_v30, 1  ;;  %v17142_v20 = vrot.slane %v15091_v48, 2  ;;  %v15447_v15 = vadd.f32 %v9094_v9, %v9093_v28 }
 0x4c1   : > { %v2653_v52 = vrot.slane %v15425_v60, 1  ;;  %v4782_v49 = vmul.f32 %v15229_v19, %v17144_v35  ;;  %v5887_v39 = vsel %vm1257_vm3, %v5869_v44, 0.0  ;;  %v6955_v54 = vrot.slane %v6954_v41, 4 }
 0x4c2   : > { %v6931_v38 = vadd.f32 %v17142_v20, %v15091_v48  ;;  %17143 = vst [vmem:[#allocation59_spill] sm:$0xff] %v15447_v15  ;;  %v7938_v45 = vrot.slane %v7937_v29, 2  ;;  %v6915_v18 = vadd.f32 %v6914_v1, %v6913_v30  ;;  %v15453_v47 = vadd.f32 %v9110_v51, %v9109_v57  ;;  %v15455_v48 = vpop.xlane.xlu0 %3683  ;;  %v17145_v30 = vld [vmem:[#allocation36_spill] sm:$0xff]  ;;  %v17146_v1 = vld [vmem:[#allocation78_spill] sm:$0xff]  ;;  %v17173_v15 = vld [vmem:[#allocation19_spill] sm:$0xff] }
 0x4c3   : > { %11723 = vpow2.f32 %v9075_v4  ;;  %v7978_v17 = vmul.f32 1.442695, %v7952_v58  ;;  %5888 = vadd.xlane.f32.xlu0 %v5887_v39  ;;  %v7980_v9 = vmul.f32 1.442695, %v7953_v16  ;;  %v4828_v44 = vsel %vm1257_vm3, %v4782_v49, 0.0  ;;  %v1518_v4 = vpop.xlane.xlu1 %1517 }
 0x4c4   : > { %v6932_v21 = vrot.slane %v6931_v38, 1  ;;  %v15457_v28 = vpop.eup %11717  ;;  %11725 = vpow2.f32 %v9077_v2  ;;  %v7939_v20 = vmax.f32 %v7937_v29, %v7938_v45  ;;  %v5873_v57 = vmul.f32 %v15277_v62, %v17145_v30 }
 0x4c5   : > { %v5882_v19 = vmul.f32 %v15457_v28, %v15067_v40  ;;  %11727 = vrcp.f32 %v6915_v18  ;;  %v8981_v51 = vsel %vm1257_vm3, %v15003_v27, -inf  ;;  %v8980_v16 = vsel %vm1257_vm3, %v17146_v1, -inf }
 0x4c6   : > { %v6933_v43 = vadd.f32 %v6932_v21, %v6931_v38  ;;  %v7940_v58 = vrot.slane %v7939_v20, 1  ;;  %v15468_v2 = vpop.eup %11719  ;;  %v8982_v29 = vmax.f32 %v8980_v16, %v8981_v51  ;;  %v17148_v38 = vrot.slane %v15103_v22, 2 }
 0x4c7   : > { %17147 = vst [vmem:[#allocation75_spill] sm:$0xff] %v15468_v2  ;;  %v5926_v40 = vsel %vm1257_vm3, %v5882_v19, 0.0  ;;  %4829 = vadd.xlane.f32.xlu0 %v4828_v44  ;;  %v17150_v39 = vrot.slane %v15094_v24, 2  ;;  %v5899_v18 = vsel %vm1257_vm3, %v5873_v57, 0.0  ;;  %v15482_v44 = vpop.xlane.xlu0 %2624  ;;  %v2598_v51 = vpop.xlane.xlu1 %2597  ;;  %v8017_v16 = vsel %vm1257_vm3, %v15468_v2, 0.0 }
 0x4c8   : > { %11729 = vrcp.f32 %v6933_v43  ;;  %v6949_v62 = vadd.f32 %v17148_v38, %v15103_v22  ;;  %v15474_v35 = vpop.eup %11721  ;;  %v9083_v43 = vmul.f32 1.442695, %v9055_v5  ;;  %5927 = vadd.xlane.f32.xlu1 %v5926_v40  ;;  %v15476_v49 = vmax.f32 %v7939_v20, %v7940_v58  ;;  %v17151_v20 = vld [vmem:[#allocation31_spill] sm:$0xff] }
 0x4c9   : > { %11731 = vpow2.f32 %v7978_v17  ;;  %17149 = vst [vmem:[#allocation70_spill] sm:$0xff] %v15474_v35  ;;  %v5803_v45 = vadd.f32 %v17150_v39, %v15094_v24  ;;  %v9085_v17 = vmul.f32 1.442695, %v9056_v50  ;;  %v8983_v21 = vrot.slane %v8982_v29, 4 }
 0x4ca   : > { %11733 = vpow2.f32 %v7980_v9  ;;  %v6950_v19 = vrot.slane %v6949_v62, 1  ;;  %v1537_v30 = vmul.f32 %v17151_v20, %v15275_v11  ;;  %v15490_v58 = vadd.f32 %v6955_v54, %v6954_v41  ;;  %v17153_v11 = vld [vmem:[#allocation32_spill] sm:$0xff]  ;;  %v17154_v54 = vld [vmem:[#allocation22_spill] sm:$0xff] }
 0x4cb   : > { %v5804_v9 = vrot.slane %v5803_v45, 1  ;;  %v8002_v24 = vrot.slane %v15396_v63, 4  ;;  %5900 = vadd.xlane.f32.xlu0 %v5899_v18  ;;  %v8984_v50 = vmax.f32 %v8982_v29, %v8983_v21  ;;  %v8018_v40 = vsel %vm1257_vm3, %v15474_v35, 0.0 }
 0x4cc   : > { %v6951_v57 = vadd.f32 %v6950_v19, %v6949_v62  ;;  %11735 = vpow2.f32 %v9083_v43  ;;  %v1536_v41 = vmul.f32 %v1518_v4, %v17153_v11  ;;  %v2633_v18 = vmul.f32 %v15299_v46, %v17154_v54  ;;  %v17156_v19 = vld [vmem:[#allocation21_spill] sm:$0xff] }
 0x4cd   : > { %v5805_v38 = vadd.f32 %v5804_v9, %v5803_v45  ;;  %v15497_v39 = vpop.eup %11723  ;;  %v8985_v5 = vrot.slane %v8984_v50, 2  ;;  %v9112_v62 = vrot.slane %v15453_v47, 4  ;;  %v1603_v21 = vsel %vm1538_vm4, %v1537_v30, 0.0 }
 0x4ce   : > { %17152 = vst [vmem:[#allocation71_spill] sm:$0xff] %v15497_v39  ;;  %11737 = vrcp.f32 %v6951_v57  ;;  %v15502_v29 = vpop.eup %11725  ;;  %v2634_v22 = vmul.f32 %v17156_v19, %v2598_v51  ;;  %v15512_v45 = vadd.f32 %v2653_v52, %v15425_v60  ;;  %v8019_v4 = vadd.f32 %v8018_v40, %v8017_v16  ;;  %v15515_v57 = vpop.xlane.xlu0 %3695  ;;  %v17158_v51 = vld [vmem:[#allocation54_spill] sm:$0xff] }
 0x4cf   : > { %17155 = vst [vmem:[#allocation72_spill] sm:$0xff] %v15502_v29  ;;  %11739 = vpow2.f32 %v9085_v17  ;;  %v15507_v43 = vpop.eup %11727  ;;  %v8986_v9 = vmax.f32 %v8984_v50, %v8985_v5  ;;  %v1602_v46 = vsel %vm1538_vm4, %v1536_v41, 0.0  ;;  %v15526_v60 = vadd.f32 %v8002_v24, %v15396_v63  ;;  %v17163_v17 = vld [vmem:[#allocation74_spill] sm:$0xff] }
 0x4d0   : > { %v6974_v7 = vmul.f32 %v15507_v43, %v17158_v51  ;;  %11741 = vrcp.f32 %v5805_v38  ;;  %v1604_v5 = vadd.f32 %v1603_v21, %v1602_v46  ;;  %v2664_v50 = vsel %vm2645_vm6, %v2633_v18, 0.0 }
 0x4d1   : > { %17160 = vst [vmem:[#allocation78_spill] sm:$0xff] %v15526_v60  ;;  %v8987_v52 = vrot.slane %v8986_v9, 1  ;;  %v15532_v40 = vadd.f32 %v9112_v62, %v15453_v47  ;;  %v2665_v38 = vsel %vm2645_vm6, %v2634_v22, 0.0  ;;  %v8020_v30 = vrot.slane %v8019_v4, 4  ;;  %v17164_v62 = vld [vmem:[#allocation38_spill] sm:$0xff] }
 0x4d2   : > { %v15517_v2 = vpop.eup %11729  ;;  %v7000_v41 = vsel %vm1257_vm3, %v6974_v7, 0.0  ;;  %v15538_v24 = vadd.f32 %v2665_v38, %v2664_v50  ;;  %v8999_v18 = vsel %vm1257_vm3, %v15043_v8, -inf  ;;  %v9127_v21 = vsel %vm1257_vm3, %v15497_v39, 0.0  ;;  %v15557_v38 = vpop.xlane.xlu0 %3689  ;;  %v17181_v60 = vld [vmem:[#allocation82_spill] sm:$0xff] }
 0x4d3   : > { %17157 = vst [vmem:[#allocation41_spill] sm:$0xff] %v15517_v2  ;;  %v15523_v61 = vpop.eup %11731  ;;  %17162 = vst [vmem:[#allocation32_spill] sm:$0xff] %v15532_v40  ;;  %v6978_v51 = vmul.f32 %v15517_v2, %v17163_v17  ;;  %7001 = vadd.xlane.f32.xlu1 %v7000_v41  ;;  %v8988_v63 = vmax.f32 %v8986_v9, %v8987_v52  ;;  %v9128_v47 = vsel %vm1257_vm3, %v15502_v29, 0.0  ;;  %v8998_v7 = vsel %vm1257_vm3, %v15049_v59, -inf  ;;  %v2592_v41 = vpop.xlane.xlu1 %2591  ;;  %v17187_v40 = vld [vmem:[#allocation33_spill] sm:$0xff] }
 0x4d4   : > { %17159 = vst [vmem:[#allocation36_spill] sm:$0xff] %v15523_v61  ;;  %v15529_v16 = vpop.eup %11733  ;;  %v17165_v22 = vrot.slane %v17164_v62, 2  ;;  %v8035_v9 = vsel %vm1257_vm3, %v15523_v61, 0.0  ;;  %v9000_v12 = vmax.f32 %v8998_v7, %v8999_v18  ;;  %v15568_v35 = vadd.f32 %v8020_v30, %v8019_v4 }
 0x4d5   : > { %17161 = vst [vmem:[#allocation31_spill] sm:$0xff] %v15529_v16  ;;  %v8036_v17 = vsel %vm1257_vm3, %v15529_v16, 0.0  ;;  %v9045_v52 = vsub.f32 %v17146_v1, %v8988_v63  ;;  %v9046_v50 = vsub.f32 %v15003_v27, %v8988_v63  ;;  %v7012_v29 = vsel %vm1257_vm3, %v6978_v51, 0.0  ;;  %v17172_v51 = vld [vmem:[#allocation44_spill] sm:$0xff] }
 0x4d6   : > { %v5830_v46 = vadd.f32 %v17165_v22, %v17164_v62  ;;  %v15559_v39 = vpop.eup %11735  ;;  %v17167_v62 = vld [vmem:[#allocation20_spill] sm:$0xff]  ;;  %17169 = vst [vmem:[#allocation74_spill] sm:$0xff] %v15568_v35  ;;  %v17170_v27 = vsub.f32 %v17135_v0, %v15476_v49  ;;  %v9001_v7 = vrot.slane %v9000_v12, 4  ;;  %v2632_v3 = vmul.f32 %v17173_v15, %v2592_v41 }
 0x4d7   : > { %17166 = vst [vmem:[#allocation21_spill] sm:$0xff] %v15559_v39  ;;  %v2631_v22 = vmul.f32 %v15319_v14, %v17167_v62  ;;  %7013 = vadd.xlane.f32.xlu1 %v7012_v29  ;;  %v15578_v2 = vadd.f32 %v9128_v47, %v9127_v21  ;;  %v15580_v16 = vadd.f32 %v8036_v17, %v8035_v9  ;;  %v1605_v0 = vrot.slane %v1604_v5, 4  ;;  %v17175_v47 = vld [vmem:[#allocation84_spill] sm:$0xff]  ;;  %v17176_v9 = vld [vmem:[#allocation85_spill] sm:$0xff] }
 0x4d8   : > { %v5831_v32 = vrot.slane %v5830_v46, 1  ;;  %v15564_v61 = vpop.eup %11737  ;;  %v7986_v63 = vmul.f32 1.442695, %v17170_v27  ;;  %v17174_v4 = vsub.f32 %v14950_v37, %v15476_v49  ;;  %v9145_v29 = vsel %vm1257_vm3, %v15559_v39, 0.0  ;;  %v15593_v49 = vpop.xlane.xlu0 %3692 }
 0x4d9   : > { %17168 = vst [vmem:[#allocation54_spill] sm:$0xff] %v15564_v61  ;;  %v15573_v10 = vpop.eup %11739  ;;  %v6982_v18 = vmul.f32 %v15564_v61, %v17172_v51  ;;  %v9002_v51 = vmax.f32 %v9000_v12, %v9001_v7  ;;  %v9063_v17 = vmul.f32 1.442695, %v9045_v52  ;;  %vm3837_vm4 = vcmask 97344  }
 0x4da   : > { %17171 = vst [vmem:[#allocation38_spill] sm:$0xff] %v15573_v10  ;;  %v5832_v14 = vadd.f32 %v5831_v32, %v5830_v46  ;;  %v7988_v30 = vmul.f32 1.442695, %v17174_v4  ;;  %v11742_v27 = vpop.eup %11741  ;;  %v2655_v32 = vsel %vm2645_vm6, %v2631_v22, 0.0  ;;  %v9146_v21 = vsel %vm1257_vm3, %v15573_v10, 0.0 }
 0x4db   : > { %v7024_v1 = vsel %vm1257_vm3, %v6982_v18, 0.0  ;;  %11743 = vpow2.f32 %v7986_v63  ;;  %v5870_v46 = vmul.f32 %v11742_v27, %v17175_v47  ;;  %v5871_v37 = vmul.f32 %v11742_v27, %v17176_v9  ;;  %v2610_v18 = vpop.xlane.xlu1 %2609  ;;  %v17178_v9 = vld [vmem:[#allocation26_spill] sm:$0xff] }
 0x4dc   : > { %7025 = vadd.xlane.f32.xlu1 %v7024_v1  ;;  %v9003_v41 = vrot.slane %v9002_v51, 2  ;;  %11745 = vrcp.f32 %v5832_v14  ;;  %v2656_v4 = vsel %vm2645_vm6, %v2632_v3, 0.0  ;;  %v1606_v22 = vadd.f32 %v1605_v0, %v1604_v5  ;;  %v17179_v3 = vld [vmem:[#allocation25_spill] sm:$0xff] }
 0x4dd   : > { %11747 = vpow2.f32 %v7988_v30  ;;  %v5890_v12 = vsel %vm1257_vm3, %v5870_v46, 0.0  ;;  %v2657_v7 = vadd.f32 %v2656_v4, %v2655_v32  ;;  %v2667_v1 = vrot.slane %v15538_v24, 4 }
 0x4de   : > { %5891 = vadd.xlane.f32.xlu0 %v5890_v12  ;;  %v9004_v63 = vmax.f32 %v9002_v51, %v9003_v41  ;;  %v17177_v27 = vrot.slane %v15419_v23, 2  ;;  %v2637_v52 = vmul.f32 %v15345_v55, %v17178_v9  ;;  %v9065_v14 = vmul.f32 1.442695, %v9046_v50  ;;  %v17180_v41 = vld [vmem:[#allocation77_spill] sm:$0xff]  ;;  %v15611_v50 = vpop.xlane.xlu0 %3710 }
 0x4df   : > { %v2658_v39 = vrot.slane %v2657_v7, 4  ;;  %v2638_v10 = vmul.f32 %v17179_v3, %v2610_v18  ;;  %v9017_v30 = vsel %vm1257_vm3, %v15118_v6, -inf  ;;  %11749 = vpow2.f32 %v9063_v17 }
 0x4e0   : > { %v6940_v47 = vadd.f32 %v17177_v27, %v15419_v23  ;;  %v9005_v5 = vrot.slane %v9004_v63, 1  ;;  %v2682_v32 = vsel %vm2645_vm6, %v2637_v52, 0.0  ;;  %v5893_v51 = vsel %vm1257_vm3, %v5871_v37, 0.0 }
 0x4e1   : > { %v2659_v46 = vadd.f32 %v2658_v39, %v2657_v7  ;;  %v2683_v23 = vsel %vm2645_vm6, %v2638_v10, 0.0  ;;  %v9016_v55 = vsel %vm1257_vm3, %v17180_v41, -inf  ;;  %v9130_v27 = vrot.slane %v15578_v2, 4 }
 0x4e2   : > { %v6941_v0 = vrot.slane %v6940_v47, 1  ;;  %5894 = vadd.xlane.f32.xlu0 %v5893_v51  ;;  %v9006_v4 = vmax.f32 %v9004_v63, %v9005_v5  ;;  %v15613_v12 = vadd.f32 %v2683_v23, %v2682_v32  ;;  %v9018_v17 = vmax.f32 %v9016_v55, %v9017_v30  ;;  %v2604_v63 = vpop.xlane.xlu1 %2603  ;;  %v17184_v55 = vld [vmem:[#allocation24_spill] sm:$0xff] }
 0x4e3   : > { %11751 = vpow2.f32 %v9065_v14  ;;  %v2660_v52 = vrot.slane %v2659_v46, 2  ;;  %v17182_v39 = vrot.slane %v17181_v60, 2  ;;  %v8038_v10 = vrot.slane %v15580_v16, 4 }
 0x4e4   : > { %v6942_v18 = vadd.f32 %v6941_v0, %v6940_v47  ;;  %v9049_v7 = vsub.f32 %v15049_v59, %v9006_v4  ;;  %v9050_v61 = vsub.f32 %v15043_v8, %v9006_v4  ;;  %v15625_v5 = vadd.f32 %v9146_v21, %v9145_v29  ;;  %v17186_v4 = vld [vmem:[#allocation42_spill] sm:$0xff]  ;;  %v17188_v29 = vld [vmem:[#allocation23_spill] sm:$0xff] }
 0x4e5   : > { %v5821_v37 = vadd.f32 %v17182_v39, %v17181_v60  ;;  %v15622_v47 = vpop.eup %11743  ;;  %v2661_v14 = vadd.f32 %v2660_v52, %v2659_v46  ;;  %v9019_v0 = vrot.slane %v9018_v17, 4  ;;  %v1607_v51 = vrot.slane %v1606_v22, 2  ;;  %v15637_v46 = vpop.xlane.xlu0 %3701 }
 0x4e6   : > { %11753 = vrcp.f32 %v6942_v18  ;;  %17183 = vst [vmem:[#allocation44_spill] sm:$0xff] %v15622_v47  ;;  %v11746_v32 = vpop.eup %11745  ;;  %v15628_v60 = vadd.f32 %v2667_v1, %v15538_v24  ;;  %v2635_v59 = vmul.f32 %v15366_v26, %v17184_v55  ;;  %v2636_v21 = vmul.f32 %v17188_v29, %v2604_v63 }
 0x4e7   : > { %v5822_v23 = vrot.slane %v5821_v37, 1  ;;  %v15632_v8 = vpop.eup %11747  ;;  %v5876_v18 = vmul.f32 %v11746_v32, %v17186_v4  ;;  %v2662_v39 = vrot.slane %v2661_v14, 1  ;;  %v5877_v30 = vmul.f32 %v11746_v32, %v17187_v40 }
 0x4e8   : > { %17185 = vst [vmem:[#allocation84_spill] sm:$0xff] %v15632_v8  ;;  %v15640_v52 = vadd.f32 %v9130_v27, %v15578_v2  ;;  %v15643_v24 = vadd.f32 %v8038_v10, %v15580_v16  ;;  %v9020_v1 = vmax.f32 %v9018_v17, %v9019_v0  ;;  %v9148_v26 = vrot.slane %v15625_v5, 4  ;;  %v2622_v16 = vpop.xlane.xlu1 %2621  ;;  %v17193_v0 = vld [vmem:[#allocation30_spill] sm:$0xff] }
 0x4e9   : > { %v5823_v35 = vadd.f32 %v5822_v23, %v5821_v37  ;;  %v8053_v4 = vsel %vm1257_vm3, %v15622_v47, 0.0  ;;  %v5908_v33 = vsel %vm1257_vm3, %v5876_v18, 0.0  ;;  %v2663_v40 = vadd.f32 %v2662_v39, %v2661_v14  ;;  %v15649_v32 = vpop.eup %11749  ;;  %v17195_v39 = vld [vmem:[#allocation29_spill] sm:$0xff] }
 0x4ea   : > { %17189 = vst [vmem:[#allocation85_spill] sm:$0xff] %v15640_v52  ;;  %17190 = vst [vmem:[#allocation26_spill] sm:$0xff] %v15643_v24  ;;  %v15651_v63 = vadd.f32 %v1607_v51, %v1606_v22  ;;  %5909 = vadd.xlane.f32.xlu0 %v5908_v33  ;;  %v9021_v27 = vrot.slane %v9020_v1, 2  ;;  %v2673_v37 = vsel %vm2645_vm6, %v2635_v59, 0.0  ;;  %v2674_v10 = vsel %vm2645_vm6, %v2636_v21, 0.0 }
 0x4eb   : > { %17191 = vst [vmem:[#allocation25_spill] sm:$0xff] %v15649_v32  ;;  %11755 = vrcp.f32 %v5823_v35  ;;  %v15656_v17 = vsel %vm1619_vm5, %v2663_v40, %v15512_v45  ;;  %v2641_v14 = vmul.f32 %v15404_v13, %v17193_v0  ;;  %v9071_v23 = vmul.f32 1.442695, %v9049_v7  ;;  %v15673_v40 = vpop.xlane.xlu0 %3704 }
 0x4ec   : > { %17192 = vst [vmem:[#allocation77_spill] sm:$0xff] %v15656_v17  ;;  %v5911_v22 = vsel %vm1257_vm3, %v5877_v30, 0.0  ;;  %v9022_v51 = vmax.f32 %v9020_v1, %v9021_v27  ;;  %v15663_v18 = vadd.f32 %v2674_v10, %v2673_v37  ;;  %v2642_v45 = vmul.f32 %v17195_v39, %v2622_v16 }
 0x4ed   : > { %v15665_v33 = vpop.eup %11751  ;;  %v2700_v35 = vsel %vm2645_vm6, %v2641_v14, 0.0  ;;  %v9035_v59 = vsel %vm1257_vm3, %v15185_v31, -inf  ;;  %v9034_v21 = vsel %vm1257_vm3, %v15193_v42, -inf  ;;  %v8054_v7 = vsel %vm1257_vm3, %v15632_v8, 0.0  ;;  %v17197_v14 = vld [vmem:[#allocation51_spill] sm:$0xff] }
 0x4ee   : > { %17194 = vst [vmem:[#allocation82_spill] sm:$0xff] %v15665_v33  ;;  %v9073_v30 = vmul.f32 1.442695, %v9050_v61  ;;  %5912 = vadd.xlane.f32.xlu0 %v5911_v22  ;;  %v9023_v1 = vrot.slane %v9022_v51, 1  ;;  %v9036_v27 = vmax.f32 %v9034_v21, %v9035_v59  ;;  %v9100_v16 = vsel %vm1257_vm3, %v15649_v32, 0.0  ;;  %v2616_v59 = vpop.xlane.xlu1 %2615 }
 0x4ef   : > { %v2701_v10 = vsel %vm2645_vm6, %v2642_v45, 0.0  ;;  %v17198_v2 = vrot.slane %v17197_v14, 2  ;;  %v9101_v17 = vsel %vm1257_vm3, %v15665_v33, 0.0  ;;  %v2685_v61 = vrot.slane %v15613_v12, 4 }
 0x4f0   : > { %v15675_v13 = vpop.eup %11753  ;;  %v9024_v22 = vmax.f32 %v9022_v51, %v9023_v1  ;;  %v15690_v8 = vadd.f32 %v2701_v10, %v2700_v35  ;;  %11757 = vpow2.f32 %v9071_v23  ;;  %v9037_v32 = vrot.slane %v9036_v27, 4  ;;  %v17200_v1 = vld [vmem:[#allocation27_spill] sm:$0xff]  ;;  %v15702_v10 = vpop.xlane.xlu0 %3722 }
 0x4f1   : > { %17196 = vst [vmem:[#allocation24_spill] sm:$0xff] %v15675_v13  ;;  %v6980_v37 = vmul.f32 %v15675_v13, %v15315_v34  ;;  %v5848_v47 = vadd.f32 %v17198_v2, %v17197_v14  ;;  %11759 = vpow2.f32 %v9073_v30  ;;  %v17199_v14 = vld [vmem:[#allocation28_spill] sm:$0xff]  ;;  %v15697_v13 = vadd.f32 %v8054_v7, %v8053_v4 }
 0x4f2   : > { %v9053_v45 = vsub.f32 %v17180_v41, %v9024_v22  ;;  %v9054_v2 = vsub.f32 %v15118_v6, %v9024_v22  ;;  %v2639_v33 = vmul.f32 %v15434_v56, %v17199_v14  ;;  %v15699_v51 = vadd.f32 %v9101_v17, %v9100_v16  ;;  %v17202_v17 = vld [vmem:[#allocation67_spill] sm:$0xff]  ;;  %v17203_v7 = vld [vmem:[#allocation68_spill] sm:$0xff] }
 0x4f3   : > { %v7018_v21 = vsel %vm1257_vm3, %v6980_v37, 0.0  ;;  %v5849_v34 = vrot.slane %v5848_v47, 1  ;;  %v9038_v35 = vmax.f32 %v9036_v27, %v9037_v32  ;;  %v2640_v23 = vmul.f32 %v17200_v1, %v2616_v59 }
 0x4f4   : > { %7019 = vadd.xlane.f32.xlu1 %v7018_v21  ;;  %v15707_v41 = vadd.f32 %v2685_v61, %v15613_v12  ;;  %v15710_v56 = vadd.f32 %v9148_v26, %v15625_v5  ;;  %v1609_v4 = vrot.slane %v15651_v63, 1  ;;  %v9079_v16 = vmul.f32 1.442695, %v9053_v45 }
 0x4f5   : > { %v11756_v37 = vpop.eup %11755  ;;  %v5850_v6 = vadd.f32 %v5849_v34, %v5848_v47  ;;  %v9039_v22 = vrot.slane %v9038_v35, 2  ;;  %v2691_v59 = vsel %vm2645_vm6, %v2639_v33, 0.0  ;;  %v2692_v30 = vsel %vm2645_vm6, %v2640_v23, 0.0  ;;  %v3687_v33 = vpop.xlane.xlu1 %3686 }
 0x4f6   : > { %17201 = vst [vmem:[#allocation42_spill] sm:$0xff] %v15710_v56  ;;  %v5874_v32 = vmul.f32 %v11756_v37, %v17202_v17  ;;  %v5875_v27 = vmul.f32 %v11756_v37, %v17203_v7  ;;  %v8056_v21 = vrot.slane %v15697_v13, 4  ;;  %v9103_v12 = vrot.slane %v15699_v51, 4  ;;  %v15730_v7 = vpop.xlane.xlu0 %3716 }
 0x4f7   : > { %v17204_v47 = vrot.slane %v15628_v60, 2  ;;  %v2687_v61 = vrot.slane %v15707_v41, 2  ;;  %v9081_v34 = vmul.f32 1.442695, %v9054_v2  ;;  %v9040_v45 = vmax.f32 %v9038_v35, %v9039_v22 }
 0x4f8   : > { %v5902_v26 = vsel %vm1257_vm3, %v5874_v32, 0.0  ;;  %11761 = vrcp.f32 %v5850_v6  ;;  %v2676_v23 = vrot.slane %v15663_v18, 4  ;;  %v2703_v37 = vrot.slane %v15690_v8, 4  ;;  %v17206_v32 = vld [vmem:[#allocation58_spill] sm:$0xff] }
 0x4f9   : > { %v15722_v5 = vadd.f32 %v17204_v47, %v15628_v60  ;;  %5903 = vadd.xlane.f32.xlu0 %v5902_v26  ;;  %v15728_v17 = vadd.f32 %v2692_v30, %v2691_v59  ;;  %11763 = vpow2.f32 %v9079_v16  ;;  %v9041_v60 = vrot.slane %v9040_v45, 1  ;;  %v17205_v47 = vld [vmem:[#allocation69_spill] sm:$0xff]  ;;  %v17209_v59 = vld [vmem:[#allocation90_spill] sm:$0xff] }
 0x4fa   : > { %v1622_v52 = vsel %vm1621_vm7, %v17206_v32, %v17205_v47  ;;  %v15735_v2 = vpop.eup %11757  ;;  %v5905_v35 = vsel %vm1257_vm3, %v5875_v27, 0.0  ;;  %v1610_v6 = vadd.f32 %v1609_v4, %v15651_v63  ;;  %11765 = vpow2.f32 %v9081_v34  ;;  %v2628_v34 = vpop.xlane.xlu1 %2627 }
 0x4fb   : > { %17207 = vst [vmem:[#allocation33_spill] sm:$0xff] %v15735_v2  ;;  %v1624_v30 = vsel %vm1623_vm8, %v15215_v53, %v1622_v52  ;;  %v15741_v22 = vpop.eup %11759  ;;  %v15743_v16 = vmax.f32 %v9040_v45, %v9041_v60  ;;  %v2677_v47 = vadd.f32 %v2676_v23, %v15663_v18  ;;  %v9118_v53 = vsel %vm1257_vm3, %v15735_v2, 0.0  ;;  %v17210_v45 = vld [vmem:[#allocation18_spill] sm:$0xff]  ;;  %v15763_v60 = vpop.xlane.xlu0 %4784 }
 0x4fc   : > { %17208 = vst [vmem:[#allocation23_spill] sm:$0xff] %v15741_v22  ;;  %v1626_v26 = vsel %vm1625_vm9, %v17209_v59, %v1624_v30  ;;  %v9119_v18 = vsel %vm1257_vm3, %v15741_v22, 0.0  ;;  %v3730_v23 = vmul.f32 %v15455_v48, %v17210_v45  ;;  %v17211_v30 = vld [vmem:[#allocation17_spill] sm:$0xff]  ;;  %v2671_v63 = vrot.slane %v15722_v5, 1 }
 0x4fd   : > { %5906 = vadd.xlane.f32.xlu0 %v5905_v35  ;;  %v1628_v27 = vsel %vm1627_vm10, %v15416_v25, %v1626_v26  ;;  %v2704_v35 = vadd.f32 %v2703_v37, %v15690_v8  ;;  %v3731_v59 = vmul.f32 %v17211_v30, %v3687_v33  ;;  %v17212_v26 = vld [vmem:[#allocation61_spill] sm:$0xff]  ;;  %v2678_v52 = vrot.slane %v2677_v47, 2 }
 0x4fe   : > { %v1630_v4 = vsel %vm1629_vm11, %v15291_v36, %v1628_v27  ;;  %v17213_v36 = vrot.slane %v17212_v26, 2  ;;  %v2643_v48 = vmul.f32 %v15482_v44, %v17153_v11  ;;  %v15776_v2 = vadd.f32 %v8056_v21, %v15697_v13  ;;  %v17216_v21 = vld [vmem:[#allocation52_spill] sm:$0xff]  ;;  %v3699_v56 = vpop.xlane.xlu1 %3698 }
 0x4ff   : > { %v1632_v25 = vsel %vm1631_vm12, %v1610_v6, %v1630_v4  ;;  %v3747_v6 = vsel %vm3746_vm13, %v3730_v23, 0.0  ;;  %v9120_v32 = vadd.f32 %v9119_v18, %v9118_v53  ;;  %v3748_v8 = vsel %vm3746_vm13, %v3731_v59, 0.0 }
 0x500   : > { %v5839_v27 = vadd.f32 %v17213_v36, %v17212_v26  ;;  %v15780_v37 = vadd.f32 %v9103_v12, %v15699_v51  ;;  %v2688_v26 = vadd.f32 %v2687_v61, %v15707_v41  ;;  %v17214_v36 = vld [vmem:[#allocation65_spill] sm:$0xff]  ;;  %v2694_v23 = vrot.slane %v15728_v17, 4  ;;  %v15792_v61 = vpop.xlane.xlu0 %4787 }
 0x501   : > { %v2705_v13 = vrot.slane %v2704_v35, 2  ;;  %v3749_v18 = vadd.f32 %v3748_v8, %v3747_v6  ;;  %v2679_v24 = vadd.f32 %v2678_v52, %v2677_v47  ;;  %v2709_v41 = vsel %vm2645_vm6, %v2643_v48, 0.0  ;;  %v17217_v52 = vld [vmem:[#allocation86_spill] sm:$0xff] }
 0x502   : > { %v11762_v4 = vpop.eup %11761  ;;  %v5840_v33 = vrot.slane %v5839_v27, 1  ;;  %v2644_v12 = vmul.f32 %v17151_v20, %v2628_v34  ;;  %v3734_v6 = vmul.f32 %v15515_v57, %v17154_v54  ;;  %v17218_v34 = vrot.slane %v17217_v52, 2 }
 0x503   : > { %v5880_v22 = vmul.f32 %v11762_v4, %v17214_v36  ;;  %v15786_v44 = vpop.eup %11763  ;;  %v5881_v53 = vmul.f32 %v11762_v4, %v17216_v21  ;;  %v3750_v30 = vrot.slane %v3749_v18, 4  ;;  %v2706_v8 = vadd.f32 %v2705_v13, %v2704_v35 }
 0x504   : > { %17215 = vst [vmem:[#allocation30_spill] sm:$0xff] %v15786_v44  ;;  %v5841_v59 = vadd.f32 %v5840_v33, %v5839_v27  ;;  %v15794_v36 = vpop.eup %11765  ;;  %v2695_v27 = vadd.f32 %v2694_v23, %v15728_v17  ;;  %v2710_v47 = vsel %vm2645_vm6, %v2644_v12, 0.0  ;;  %v6895_v48 = vadd.f32 %v17218_v34, %v17217_v52 }
 0x505   : > { %1633 = vrot.lane.b32.xlu1 %v1632_v25, %s12043_s13  ;;  %v5920_v51 = vsel %vm1257_vm3, %v5880_v22, 0.0  ;;  %v9121_v25 = vrot.slane %v9120_v32, 4  ;;  %v3735_v22 = vmul.f32 %v17156_v19, %v3699_v56  ;;  %v9136_v4 = vsel %vm1257_vm3, %v15786_v44, 0.0 }
 0x506   : > { %5921 = vadd.xlane.f32.xlu0 %v5920_v51  ;;  %11767 = vrcp.f32 %v5841_v59  ;;  %v15806_v33 = vadd.f32 %v2710_v47, %v2709_v41  ;;  %v3765_v21 = vsel %vm3746_vm13, %v3734_v6, 0.0  ;;  %v9137_v57 = vsel %vm1257_vm3, %v15794_v36, 0.0  ;;  %v15820_v47 = vpop.xlane.xlu0 %3728 }
 0x507   : > { %v5923_v17 = vsel %vm1257_vm3, %v5881_v53, 0.0  ;;  %v3766_v23 = vsel %vm3746_vm13, %v3735_v22, 0.0  ;;  %v6896_v56 = vrot.slane %v6895_v48, 1  ;;  %v2689_v59 = vrot.slane %v2688_v26, 1 }
 0x508   : > { %v3751_v51 = vadd.f32 %v3750_v30, %v3749_v18  ;;  %v3767_v12 = vadd.f32 %v3766_v23, %v3765_v21  ;;  %v3732_v52 = vmul.f32 %v15557_v38, %v17167_v62  ;;  %v15816_v35 = vadd.f32 %v2671_v63, %v15722_v5  ;;  %v3708_v30 = vpop.xlane.xlu1 %3707 }
 0x509   : > { %v2696_v13 = vrot.slane %v2695_v27, 2  ;;  %v6897_v41 = vadd.f32 %v6896_v56, %v6895_v48  ;;  %v3733_v6 = vmul.f32 %v17173_v15, %v15593_v49  ;;  %v15822_v53 = vadd.f32 %v9121_v25, %v9120_v32 }
 0x50a   : > { %5924 = vadd.xlane.f32.xlu0 %v5923_v17  ;;  %17219 = vst [vmem:[#allocation29_spill] sm:$0xff] %v15816_v35  ;;  %v9138_v22 = vadd.f32 %v9137_v57, %v9136_v4  ;;  %v2680_v34 = vrot.slane %v2679_v24, 1  ;;  %v2707_v17 = vrot.slane %v2706_v8, 1  ;;  %v15827_v63 = vadd.f32 %v2689_v59, %v2688_v26 }
 0x50b   : > { %11769 = vrcp.f32 %v6897_v41  ;;  %v3757_v5 = vsel %vm3746_vm13, %v3733_v6, 0.0  ;;  %v17221_v49 = vsub.f32 %v15193_v42, %v15743_v16  ;;  %v3752_v21 = vrot.slane %v3751_v51, 2 }
 0x50c   : > { %17220 = vst [vmem:[#allocation51_spill] sm:$0xff] %v15827_v63  ;;  %v3756_v32 = vsel %vm3746_vm13, %v3732_v52, 0.0  ;;  %v15833_v25 = vadd.f32 %v2696_v13, %v2695_v27  ;;  %v3738_v4 = vmul.f32 %v3708_v30, %v17178_v9  ;;  %v3739_v23 = vmul.f32 %v17179_v3, %v15611_v50  ;;  %v17225_v27 = vld [vmem:[#allocation80_spill] sm:$0xff]  ;;  %v17226_v30 = vld [vmem:[#allocation89_spill] sm:$0xff]  ;;  %v3720_v38 = vpop.xlane.xlu1 %3719 }
 0x50d   : > { %v9087_v48 = vmul.f32 1.442695, %v17221_v49  ;;  %v3758_v57 = vadd.f32 %v3757_v5, %v3756_v32  ;;  %v9139_v26 = vrot.slane %v9138_v22, 4  ;;  %v15839_v59 = vadd.f32 %v2680_v34, %v2679_v24  ;;  %v15850_v32 = vpop.xlane.xlu0 %4799 }
 0x50e   : > { %v15841_v6 = vadd.f32 %v2707_v17, %v2706_v8  ;;  %v17224_v42 = vsub.f32 %v15185_v31, %v15743_v16  ;;  %v3753_v50 = vadd.f32 %v3752_v21, %v3751_v51  ;;  %v3768_v41 = vrot.slane %v3767_v12, 4 }
 0x50f   : > { %17222 = vst [vmem:[#allocation28_spill] sm:$0xff] %v15839_v59  ;;  %v3759_v49 = vrot.slane %v3758_v57, 4  ;;  %11771 = vpow2.f32 %v9087_v48  ;;  %v3784_v24 = vsel %vm3746_vm13, %v3739_v23, 0.0  ;;  %v3783_v31 = vsel %vm3746_vm13, %v3738_v4, 0.0  ;;  %v17227_v48 = vld [vmem:[#allocation93_spill] sm:$0xff] }
 0x510   : > { %v11768_v56 = vpop.eup %11767  ;;  %17223 = vst [vmem:[#allocation27_spill] sm:$0xff] %v15841_v6  ;;  %v15846_v52 = vmul.f32 1.442695, %v17224_v42  ;;  %v15856_v17 = vadd.f32 %v9139_v26, %v9138_v22  ;;  %v3736_v42 = vmul.f32 %v15637_v46, %v17184_v55  ;;  %v17228_v51 = vrot.slane %v17227_v48, 2 }
 0x511   : > { %v5878_v13 = vmul.f32 %v11768_v56, %v17225_v27  ;;  %v5879_v5 = vmul.f32 %v11768_v56, %v17226_v30  ;;  %v3760_v16 = vadd.f32 %v3759_v49, %v3758_v57  ;;  %v3785_v56 = vadd.f32 %v3784_v24, %v3783_v31 }
 0x512   : > { %v6904_v21 = vadd.f32 %v17228_v51, %v17227_v48  ;;  %v2712_v23 = vrot.slane %v15806_v33, 4  ;;  %v3742_v30 = vmul.f32 %v3720_v38, %v17193_v0  ;;  %v3737_v4 = vmul.f32 %v17188_v29, %v15673_v40  ;;  %v15871_v51 = vpop.xlane.xlu0 %4790  ;;  %v17229_v38 = vld [vmem:[#allocation39_spill] sm:$0xff] }
 0x513   : > { %v5914_v34 = vsel %vm1257_vm3, %v5878_v13, 0.0  ;;  %v3761_v27 = vrot.slane %v3760_v16, 2  ;;  %v3754_v57 = vrot.slane %v3753_v50, 1  ;;  %v5917_v22 = vsel %vm1257_vm3, %v5879_v5, 0.0  ;;  %v17230_v40 = vld [vmem:[#allocation47_spill] sm:$0xff] }
 0x514   : > { %5915 = vadd.xlane.f32.xlu0 %v5914_v34  ;;  %v3769_v26 = vadd.f32 %v3768_v41, %v3767_v12  ;;  %v6905_v13 = vrot.slane %v6904_v21, 1  ;;  %v3786_v46 = vrot.slane %v3785_v56, 4  ;;  %v3714_v34 = vpop.xlane.xlu1 %3713  ;;  %v3775_v31 = vsel %vm3746_vm13, %v3737_v4, 0.0 }
 0x515   : > { %v11770_v49 = vpop.eup %11769  ;;  %v3762_v24 = vadd.f32 %v3761_v27, %v3760_v16  ;;  %v3743_v48 = vmul.f32 %v17195_v39, %v15702_v10  ;;  %v3774_v5 = vsel %vm3746_vm13, %v3736_v42, 0.0  ;;  %v2713_v41 = vadd.f32 %v2712_v23, %v15806_v33  ;;  %v17232_v33 = vld [vmem:[#allocation46_spill] sm:$0xff] }
 0x516   : > { %v6969_v18 = vmul.f32 %v11770_v49, %v17229_v38  ;;  %v6970_v8 = vmul.f32 %v11770_v49, %v17230_v40  ;;  %v6906_v12 = vadd.f32 %v6905_v13, %v6904_v21  ;;  %v3776_v27 = vadd.f32 %v3775_v31, %v3774_v5 }
 0x517   : > { %v3763_v16 = vrot.slane %v3762_v24, 1  ;;  %v3802_v44 = vsel %vm3746_vm13, %v3743_v48, 0.0  ;;  %v3755_v4 = vadd.f32 %v3754_v57, %v3753_v50  ;;  %v3801_v6 = vsel %vm3746_vm13, %v3742_v30, 0.0 }
 0x518   : > { %5918 = vadd.xlane.f32.xlu0 %v5917_v22  ;;  %11773 = vrcp.f32 %v6906_v12  ;;  %v3740_v10 = vmul.f32 %v3714_v34, %v17199_v14  ;;  %v6985_v22 = vsel %vm1257_vm3, %v6969_v18, 0.0  ;;  %v3787_v63 = vadd.f32 %v3786_v46, %v3785_v56  ;;  %v17235_v56 = vld [vmem:[#allocation63_spill] sm:$0xff]  ;;  %v15900_v34 = vpop.xlane.xlu0 %4793 }
 0x519   : > { %v3764_v38 = vadd.f32 %v3763_v16, %v3762_v24  ;;  %v15881_v49 = vadd.f32 %v3802_v44, %v3801_v6  ;;  %v15883_v42 = vpop.eup %11771  ;;  %v3770_v21 = vrot.slane %v3769_v26, 2  ;;  %v5883_v23 = vmul.f32 %v15457_v28, %v17232_v33  ;;  %v17234_v44 = vld [vmem:[#allocation62_spill] sm:$0xff] }
 0x51a   : > { %17231 = vst [vmem:[#allocation67_spill] sm:$0xff] %v15883_v42  ;;  %v17233_v50 = vrot.slane %v15490_v58, 2  ;;  %v3741_v57 = vmul.f32 %v17200_v1, %v15730_v7  ;;  %v2714_v13 = vrot.slane %v2713_v41, 2  ;;  %v6973_v6 = vmul.f32 %v15507_v43, %v17234_v44 }
 0x51b   : > { %v15893_v18 = vsel %vm1619_vm5, %v3764_v38, %v3755_v4  ;;  %v17236_v24 = vrot.slane %v17235_v56, 2  ;;  %v6988_v28 = vsel %vm1257_vm3, %v6970_v8, 0.0  ;;  %v3788_v48 = vrot.slane %v3787_v63, 2  ;;  %v3726_v4 = vpop.xlane.xlu1 %3725 }
 0x51c   : > { %6986 = vadd.xlane.f32.xlu0 %v6985_v22  ;;  %v6958_v30 = vadd.f32 %v17233_v50, %v15490_v58  ;;  %v3792_v58 = vsel %vm3746_vm13, %v3740_v10, 0.0  ;;  %v3793_v7 = vsel %vm3746_vm13, %v3741_v57, 0.0  ;;  %v3777_v40 = vrot.slane %v3776_v27, 4  ;;  %v17237_v22 = vld [vmem:[#allocation92_spill] sm:$0xff] }
 0x51d   : > { %v6922_v46 = vadd.f32 %v17236_v24, %v17235_v56  ;;  %v15905_v5 = vadd.f32 %v3793_v7, %v3792_v58  ;;  %11775 = vpow2.f32 %v15846_v52  ;;  %v15908_v43 = vadd.f32 %v3770_v21, %v3769_v26 }
 0x51e   : > { %v6959_v31 = vrot.slane %v6958_v30, 1  ;;  %v17238_v8 = vrot.slane %v17237_v22, 2  ;;  %v17239_v33 = vrot.slane %v15833_v25, 1  ;;  %v5929_v57 = vsel %vm1257_vm3, %v5883_v23, 0.0 }
 0x51f   : > { %v6923_v12 = vrot.slane %v6922_v46, 1  ;;  %v15920_v52 = vadd.f32 %v2714_v13, %v2713_v41  ;;  %v6997_v26 = vsel %vm1257_vm3, %v6973_v6, 0.0  ;;  %v3778_v56 = vadd.f32 %v3777_v40, %v3776_v27  ;;  %v17241_v13 = vld [vmem:[#allocation74_spill] sm:$0xff]  ;;  %v17244_v27 = vld [vmem:[#allocation57_spill] sm:$0xff] }
 0x520   : > { %6989 = vadd.xlane.f32.xlu0 %v6988_v28  ;;  %v6960_v16 = vadd.f32 %v6959_v31, %v6958_v30  ;;  %v8032_v38 = vadd.f32 %v17238_v8, %v17237_v22  ;;  %v15917_v50 = vadd.f32 %v17239_v33, %v15833_v25  ;;  %v15923_v30 = vadd.f32 %v3788_v48, %v3787_v63  ;;  %v15926_v28 = vpop.xlane.xlu0 %4808  ;;  %v17243_v63 = vld [vmem:[#allocation43_spill] sm:$0xff]  ;;  %v17245_v40 = vld [vmem:[#allocation50_spill] sm:$0xff]  ;;  %v17247_v22 = vld [vmem:[#allocation17_spill] sm:$0xff] }
 0x521   : > { %v6924_v44 = vadd.f32 %v6923_v12, %v6922_v46  ;;  %v3744_v24 = vmul.f32 %v3726_v4, %v17153_v11  ;;  %v4831_v41 = vmul.f32 %v15763_v60, %v17210_v45  ;;  %v17242_v6 = vrot.slane %v17241_v13, 2  ;;  %v17246_v12 = vld [vmem:[#allocation41_spill] sm:$0xff] }
 0x522   : > { %17240 = vst [vmem:[#allocation68_spill] sm:$0xff] %v15917_v50  ;;  %11777 = vrcp.f32 %v6960_v16  ;;  %v8033_v21 = vrot.slane %v8032_v38, 1  ;;  %v11774_v58 = vpop.eup %11773  ;;  %v3804_v48 = vrot.slane %v15881_v49, 4  ;;  %v6977_v16 = vmul.f32 %v17246_v12, %v17245_v40  ;;  %v17250_v12 = vld [vmem:[#allocation60_spill] sm:$0xff] }
 0x523   : > { %11779 = vrcp.f32 %v6924_v44  ;;  %v8023_v46 = vadd.f32 %v17242_v6, %v17241_v13  ;;  %v6971_v31 = vmul.f32 %v11774_v58, %v17243_v63  ;;  %v6972_v7 = vmul.f32 %v11774_v58, %v17244_v27  ;;  %v17248_v44 = vld [vmem:[#allocation40_spill] sm:$0xff] }
 0x524   : > { %5930 = vadd.xlane.f32.xlu0 %v5929_v57  ;;  %v8034_v23 = vadd.f32 %v8033_v21, %v8032_v38  ;;  %v4832_v8 = vmul.f32 %v17247_v22, %v15792_v61  ;;  %v3790_v60 = vrot.slane %v15923_v30, 1  ;;  %v3779_v38 = vrot.slane %v3778_v56, 2  ;;  %v4797_v57 = vpop.xlane.xlu1 %4796  ;;  %v15954_v25 = vpop.xlane.xlu0 %4811 }
 0x525   : > { %v8024_v4 = vrot.slane %v8023_v46, 1  ;;  %v3810_v33 = vsel %vm3746_vm13, %v3744_v24, 0.0  ;;  %v17249_v21 = vrot.slane %v17248_v44, 2  ;;  %v4848_v13 = vsel %vm4847_vm14, %v4831_v41, 0.0 }
 0x526   : > { %11781 = vrcp.f32 %v8034_v23  ;;  %v4849_v23 = vsel %vm4847_vm14, %v4832_v8, 0.0  ;;  %v3745_v63 = vmul.f32 %v17151_v20, %v15820_v47  ;;  %v3805_v61 = vadd.f32 %v3804_v48, %v15881_v49 }
 0x527   : > { %v8050_v58 = vadd.f32 %v17249_v21, %v17248_v44  ;;  %v8025_v6 = vadd.f32 %v8024_v4, %v8023_v46  ;;  %v4850_v27 = vadd.f32 %v4849_v23, %v4848_v13  ;;  %v17251_v24 = vrot.slane %v17250_v12, 2  ;;  %v15956_v44 = vpop.eup %11775  ;;  %v17253_v46 = vld [vmem:[#allocation59_spill] sm:$0xff] }
 0x528   : > { %6998 = vadd.xlane.f32.xlu0 %v6997_v26  ;;  %17252 = vst [vmem:[#allocation69_spill] sm:$0xff] %v15956_v44  ;;  %v4835_v26 = vmul.f32 %v4797_v57, %v17154_v54  ;;  %v3811_v41 = vsel %vm3746_vm13, %v3745_v63, 0.0  ;;  %v17254_v47 = vrot.slane %v17253_v46, 2  ;;  %v6991_v49 = vsel %vm1257_vm3, %v6971_v31, 0.0 }
 0x529   : > { %v8051_v40 = vrot.slane %v8050_v58, 1  ;;  %v7996_v10 = vadd.f32 %v17251_v24, %v17250_v12  ;;  %11783 = vrcp.f32 %v8025_v6  ;;  %v15964_v8 = vadd.f32 %v3811_v41, %v3810_v33  ;;  %v17255_v24 = vld [vmem:[#allocation64_spill] sm:$0xff]  ;;  %v17256_v33 = vld [vmem:[#allocation26_spill] sm:$0xff]  ;;  %v17258_v41 = vld [vmem:[#allocation81_spill] sm:$0xff] }
 0x52a   : > { %v9097_v4 = vadd.f32 %v17254_v47, %v17253_v46  ;;  %v15968_v23 = vadd.f32 %v3779_v38, %v3778_v56  ;;  %v3795_v57 = vrot.slane %v15905_v5, 4  ;;  %v4836_v63 = vmul.f32 %v17156_v19, %v15850_v32  ;;  %v17259_v56 = vld [vmem:[#allocation49_spill] sm:$0xff] }
 0x52b   : > { %v8052_v48 = vadd.f32 %v8051_v40, %v8050_v58  ;;  %v7997_v21 = vrot.slane %v7996_v10, 1  ;;  %v4851_v31 = vrot.slane %v4850_v27, 4  ;;  %v17257_v58 = vrot.slane %v17256_v33, 2 }
 0x52c   : > { %v15966_v13 = vpop.eup %11777  ;;  %6992 = vadd.xlane.f32.xlu0 %v6991_v49  ;;  %v9098_v6 = vrot.slane %v9097_v4, 1  ;;  %v6994_v59 = vsel %vm1257_vm3, %v6972_v7, 0.0  ;;  %v4866_v44 = vsel %vm4847_vm14, %v4835_v26, 0.0  ;;  %v15995_v7 = vsel %vm1257_vm3, %v15883_v42, 0.0  ;;  %v17260_v26 = vld [vmem:[#allocation45_spill] sm:$0xff] }
 0x52d   : > { %v11780_v12 = vpop.eup %11779  ;;  %v6984_v46 = vmul.f32 %v15966_v13, %v17255_v24  ;;  %11785 = vrcp.f32 %v8052_v48  ;;  %v8041_v40 = vadd.f32 %v17257_v58, %v17256_v33  ;;  %v7998_v49 = vadd.f32 %v7997_v21, %v7996_v10  ;;  %v15984_v35 = vpop.xlane.xlu0 %4802 }
 0x52e   : > { %v6975_v47 = vmul.f32 %v11780_v12, %v17258_v41  ;;  %v6976_v38 = vmul.f32 %v11780_v12, %v17259_v56  ;;  %v9099_v50 = vadd.f32 %v9098_v6, %v9097_v4  ;;  %v4867_v24 = vsel %vm4847_vm14, %v4836_v63, 0.0 }
 0x52f   : > { %v7030_v32 = vsel %vm1257_vm3, %v6984_v46, 0.0  ;;  %v3806_v33 = vrot.slane %v3805_v61, 2  ;;  %v15989_v58 = vadd.f32 %v3795_v57, %v15905_v5  ;;  %11787 = vrcp.f32 %v7998_v49 }
 0x530   : > { %v15986_v48 = vpop.eup %11781  ;;  %6995 = vadd.xlane.f32.xlu0 %v6994_v59  ;;  %7031 = vadd.xlane.f32.xlu1 %v7030_v32  ;;  %v15991_v10 = vadd.f32 %v4867_v24, %v4866_v44  ;;  %v4852_v21 = vadd.f32 %v4851_v31, %v4850_v27  ;;  %11789 = vrcp.f32 %v9099_v50  ;;  %v17261_v59 = vrot.slane %v15908_v43, 1  ;;  %v17262_v27 = vld [vmem:[#allocation32_spill] sm:$0xff] }
 0x531   : > { %v8079_v4 = vmul.f32 %v15986_v48, %v17260_v26  ;;  %v7009_v5 = vsel %vm1257_vm3, %v6977_v16, 0.0  ;;  %v8042_v44 = vrot.slane %v8041_v40, 1  ;;  %v16007_v57 = vadd.f32 %v3790_v60, %v15923_v30  ;;  %v17264_v60 = vld [vmem:[#allocation70_spill] sm:$0xff]  ;;  %v16025_v26 = vpop.xlane.xlu0 %4805 }
 0x532   : > { %v16003_v63 = vadd.f32 %v17261_v59, %v15908_v43  ;;  %v4833_v46 = vmul.f32 %v15871_v51, %v17167_v62  ;;  %v17263_v50 = vrot.slane %v17262_v27, 2  ;;  %v3781_v43 = vrot.slane %v15968_v23, 1 }
 0x533   : > { %v8113_v12 = vsel %vm1257_vm3, %v8079_v4, 0.0  ;;  %v16015_v41 = vpop.eup %11783  ;;  %v16018_v56 = vadd.f32 %v3806_v33, %v3805_v61  ;;  %v3797_v16 = vrot.slane %v15989_v58, 2  ;;  %v8043_v30 = vadd.f32 %v8042_v44, %v8041_v40  ;;  %v17265_v61 = vld [vmem:[#allocation91_spill] sm:$0xff] }
 0x534   : > { %v9115_v31 = vadd.f32 %v17263_v50, %v17262_v27  ;;  %7010 = vadd.xlane.f32.xlu0 %v7009_v5  ;;  %8114 = vadd.xlane.f32.xlu1 %v8113_v12  ;;  %v8077_v49 = vmul.f32 %v16015_v41, %v17264_v60  ;;  %v4853_v32 = vrot.slane %v4852_v21, 2  ;;  %v4834_v24 = vmul.f32 %v17173_v15, %v15900_v34  ;;  %v16039_v60 = vpop.xlane.xlu1 %4826 }
 0x535   : > { %v7003_v4 = vsel %vm1257_vm3, %v6975_v47, 0.0  ;;  %11791 = vrcp.f32 %v8043_v30  ;;  %v17266_v33 = vrot.slane %v17265_v61, 2  ;;  %v17267_v40 = vrot.slane %v15776_v2, 2  ;;  %v17269_v47 = vld [vmem:[#allocation73_spill] sm:$0xff]  ;;  %v17270_v30 = vld [vmem:[#allocation54_spill] sm:$0xff] }
 0x536   : > { %v9116_v51 = vrot.slane %v9115_v31, 1  ;;  %v8107_v12 = vsel %vm1257_vm3, %v8077_v49, 0.0  ;;  %v4857_v27 = vsel %vm4847_vm14, %v4833_v46, 0.0  ;;  %v4858_v50 = vsel %vm4847_vm14, %v4834_v24, 0.0 }
 0x537   : > { %v8014_v59 = vadd.f32 %v17266_v33, %v17265_v61  ;;  %v8059_v5 = vadd.f32 %v17267_v40, %v15776_v2  ;;  %v16034_v44 = vpop.eup %11785  ;;  %v6981_v61 = vmul.f32 %v17270_v30, %v17269_v47  ;;  %v17271_v33 = vld [vmem:[#allocation95_spill] sm:$0xff]  ;;  %v4859_v2 = vadd.f32 %v4858_v50, %v4857_v27  ;;  %v17274_v27 = vld [vmem:[#allocation88_spill] sm:$0xff] }
 0x538   : > { %17268 = vst [vmem:[#allocation58_spill] sm:$0xff] %v16034_v44  ;;  %v9117_v34 = vadd.f32 %v9116_v51, %v9115_v31  ;;  %7004 = vadd.xlane.f32.xlu0 %v7003_v4  ;;  %8108 = vadd.xlane.f32.xlu1 %v8107_v12  ;;  %v8083_v6 = vmul.f32 %v16034_v44, %v17271_v33  ;;  %v7006_v42 = vsel %vm1257_vm3, %v6976_v38, 0.0  ;;  %v17272_v46 = vrot.slane %v15780_v37, 2  ;;  %v17273_v30 = vld [vmem:[#allocation87_spill] sm:$0xff] }
 0x539   : > { %v8015_v40 = vrot.slane %v8014_v59, 1  ;;  %v8060_v49 = vrot.slane %v8059_v5, 1  ;;  %v11788_v51 = vpop.eup %11787  ;;  %v4854_v24 = vadd.f32 %v4853_v32, %v4852_v21  ;;  %v4860_v12 = vrot.slane %v4859_v2, 4  ;;  %v17275_v44 = vld [vmem:[#allocation35_spill] sm:$0xff] }
 0x53a   : > { %11793 = vrcp.f32 %v9117_v34  ;;  %v9106_v31 = vadd.f32 %v17272_v46, %v15780_v37  ;;  %v8125_v4 = vsel %vm1257_vm3, %v8083_v6, 0.0  ;;  %v16050_v47 = vpop.eup %11789  ;;  %v8070_v33 = vmul.f32 %v11788_v51, %v17273_v30 }
 0x53b   : > { %v8016_v15 = vadd.f32 %v8015_v40, %v8014_v59  ;;  %v8071_v50 = vmul.f32 %v11788_v51, %v17274_v27  ;;  %v8061_v62 = vadd.f32 %v8060_v49, %v8059_v5  ;;  %v16054_v34 = vpop.xlane.xlu0 %4820  ;;  %v9172_v37 = vmul.f32 %v16050_v47, %v17275_v44  ;;  %v5898_v40 = vpop.xlane.xlu1 %5897 }
 0x53c   : > { %v9107_v38 = vrot.slane %v9106_v31, 1  ;;  %7007 = vadd.xlane.f32.xlu0 %v7006_v42  ;;  %8126 = vadd.xlane.f32.xlu1 %v8125_v4  ;;  %v4861_v21 = vadd.f32 %v4860_v12, %v4859_v2  ;;  %v4839_v6 = vmul.f32 %v15926_v28, %v17178_v9  ;;  %v16061_v32 = vadd.f32 %v3781_v43, %v15968_v23  ;;  %v17276_v23 = vld [vmem:[#allocation85_spill] sm:$0xff]  ;;  %v17278_v4 = vld [vmem:[#allocation31_spill] sm:$0xff] }
 0x53d   : > { %11795 = vrcp.f32 %v8016_v15  ;;  %v16064_v59 = vadd.f32 %v3797_v16, %v15989_v58  ;;  %v7021_v42 = vsel %vm1257_vm3, %v6981_v61, 0.0  ;;  %v4869_v49 = vrot.slane %v15991_v10, 4 }
 0x53e   : > { %11797 = vrcp.f32 %v8061_v62  ;;  %v9108_v5 = vadd.f32 %v9107_v38, %v9106_v31  ;;  %v4862_v46 = vrot.slane %v4861_v21, 2  ;;  %v4840_v15 = vmul.f32 %v17179_v3, %v15954_v25 }
 0x53f   : > { %v4855_v44 = vrot.slane %v4854_v24, 1  ;;  %v9190_v28 = vsel %vm1257_vm3, %v9172_v37, 0.0  ;;  %v17277_v43 = vrot.slane %v17276_v23, 2  ;;  %v16074_v16 = vpop.xlane.xlu0 %4823  ;;  %v16076_v62 = vpop.eup %11791  ;;  %v4884_v2 = vsel %vm4847_vm14, %v4839_v6, 0.0  ;;  %v17279_v37 = vld [vmem:[#allocation48_spill] sm:$0xff]  ;;  %v17281_v6 = vld [vmem:[#allocation78_spill] sm:$0xff] }
 0x540   : > { %11799 = vrcp.f32 %v9108_v5  ;;  %7022 = vadd.xlane.f32.xlu0 %v7021_v42  ;;  %9191 = vadd.xlane.f32.xlu1 %v9190_v28  ;;  %v4863_v61 = vadd.f32 %v4862_v46, %v4861_v21  ;;  %v4885_v31 = vsel %vm4847_vm14, %v4840_v15, 0.0  ;;  %v16081_v25 = vmul.f32 %v5898_v40, %v17154_v54  ;;  %v17280_v5 = vld [vmem:[#allocation24_spill] sm:$0xff] }
 0x541   : > { %v9133_v58 = vadd.f32 %v17277_v43, %v17276_v23  ;;  %v3813_v51 = vrot.slane %v15964_v8, 4  ;;  %v8081_v12 = vmul.f32 %v16076_v62, %v17278_v4  ;;  %v4886_v30 = vadd.f32 %v4885_v31, %v4884_v2  ;;  %v17284_v4 = vld [vmem:[#allocation56_spill] sm:$0xff] }
 0x542   : > { %v16087_v38 = vadd.f32 %v4869_v49, %v15991_v10  ;;  %v6979_v21 = vmul.f32 %v17280_v5, %v17279_v37  ;;  %v4864_v42 = vrot.slane %v4863_v61, 1  ;;  %v17282_v46 = vrot.slane %v17281_v6, 2 }
 0x543   : > { %v9134_v27 = vrot.slane %v9133_v58, 1  ;;  %v8086_v28 = vsel %vm1257_vm3, %v8070_v33, 0.0  ;;  %v8119_v23 = vsel %vm1257_vm3, %v8081_v12, 0.0  ;;  %v17283_v2 = vrot.slane %v15822_v53, 2  ;;  %v4815_v49 = vpop.xlane.xlu0 %4814 }
 0x544   : > { %v8005_v15 = vadd.f32 %v17282_v46, %v17281_v6  ;;  %v16094_v40 = vpop.eup %11793  ;;  %v4856_v31 = vadd.f32 %v4855_v44, %v4854_v24  ;;  %8087 = vadd.xlane.f32.xlu0 %v8086_v28  ;;  %8120 = vadd.xlane.f32.xlu1 %v8119_v23  ;;  %v4865_v5 = vadd.f32 %v4864_v42, %v4863_v61  ;;  %vm4938_vm6 = vcmask 130144  }
 0x545   : > { %v9135_v43 = vadd.f32 %v9134_v27, %v9133_v58  ;;  %v9124_v10 = vadd.f32 %v17283_v2, %v15822_v53  ;;  %v9176_v37 = vmul.f32 %v16094_v40, %v17284_v4  ;;  %v4837_v33 = vmul.f32 %v15984_v35, %v17184_v55  ;;  %v17285_v27 = vld [vmem:[#allocation42_spill] sm:$0xff]  ;;  %v17287_v35 = vld [vmem:[#allocation79_spill] sm:$0xff]  ;;  %v17288_v2 = vld [vmem:[#allocation53_spill] sm:$0xff] }
 0x546   : > { %v8006_v6 = vrot.slane %v8005_v15, 1  ;;  %v4838_v58 = vmul.f32 %v17188_v29, %v16025_v26  ;;  %v8089_v53 = vsel %vm1257_vm3, %v8071_v50, 0.0  ;;  %v16109_v24 = vsel %vm1619_vm5, %v4865_v5, %v4856_v31  ;;  %v17289_v50 = vld [vmem:[#allocation84_spill] sm:$0xff] }
 0x547   : > { %11801 = vrcp.f32 %v9135_v43  ;;  %v9125_v46 = vrot.slane %v9124_v10, 1  ;;  %v11796_v12 = vpop.eup %11795  ;;  %v17286_v28 = vrot.slane %v17285_v27, 2  ;;  %v9202_v23 = vsel %vm1257_vm3, %v9176_v37, 0.0  ;;  %v4818_v54 = vpop.xlane.xlu0 %4817 }
 0x548   : > { %v8007_v44 = vadd.f32 %v8006_v6, %v8005_v15  ;;  %v16114_v42 = vpop.eup %11797  ;;  %v8074_v43 = vmul.f32 %v11796_v12, %v17287_v35  ;;  %v8075_v4 = vmul.f32 %v11796_v12, %v17288_v2  ;;  %8090 = vadd.xlane.f32.xlu0 %v8089_v53  ;;  %9203 = vadd.xlane.f32.xlu1 %v9202_v23  ;;  %v4876_v15 = vsel %vm4847_vm14, %v4838_v58, 0.0 }
 0x549   : > { %v9151_v61 = vadd.f32 %v17286_v28, %v17285_v27  ;;  %v9126_v26 = vadd.f32 %v9125_v46, %v9124_v10  ;;  %v8085_v31 = vmul.f32 %v16114_v42, %v17289_v50  ;;  %v3799_v27 = vrot.slane %v16064_v59, 1 }
 0x54a   : > { %11803 = vrcp.f32 %v8007_v44  ;;  %v16122_v6 = vpop.eup %11799  ;;  %v4887_v37 = vrot.slane %v4886_v30, 4  ;;  %v4875_v28 = vsel %vm4847_vm14, %v4837_v33, 0.0  ;;  %v3814_v10 = vadd.f32 %v3813_v51, %v15964_v8  ;;  %v17290_v44 = vld [vmem:[#allocation82_spill] sm:$0xff] }
 0x54b   : > { %v9152_v5 = vrot.slane %v9151_v61, 1  ;;  %11805 = vrcp.f32 %v9126_v26  ;;  %v7015_v46 = vsel %vm1257_vm3, %v6979_v21, 0.0  ;;  %v4877_v12 = vadd.f32 %v4876_v15, %v4875_v28 }
 0x54c   : > { %v8131_v23 = vsel %vm1257_vm3, %v8085_v31, 0.0  ;;  %v9174_v58 = vmul.f32 %v16122_v6, %v17290_v44  ;;  %v4843_v35 = vmul.f32 %v16054_v34, %v17193_v0  ;;  %v17291_v2 = vrot.slane %v15856_v17, 2  ;;  %7016 = vadd.xlane.f32.xlu0 %v7015_v46  ;;  %v5886_v21 = vpop.xlane.xlu0 %5885 }
 0x54d   : > { %v9153_v53 = vadd.f32 %v9152_v5, %v9151_v61  ;;  %v4871_v33 = vrot.slane %v16087_v38, 2  ;;  %8132 = vadd.xlane.f32.xlu1 %v8131_v23  ;;  %v4878_v8 = vrot.slane %v4877_v12, 4  ;;  %v4844_v51 = vmul.f32 %v17195_v39, %v16074_v16 }
 0x54e   : > { %v9142_v50 = vadd.f32 %v17291_v2, %v15856_v17  ;;  %v16141_v26 = vadd.f32 %v3799_v27, %v16064_v59  ;;  %v4888_v34 = vadd.f32 %v4887_v37, %v4886_v30  ;;  %v8098_v15 = vsel %vm1257_vm3, %v8074_v43, 0.0  ;;  %v17292_v43 = vld [vmem:[#allocation72_spill] sm:$0xff] }
 0x54f   : > { %11807 = vrcp.f32 %v9153_v53  ;;  %v4902_v17 = vsel %vm4847_vm14, %v4843_v35, 0.0  ;;  %v4903_v5 = vsel %vm4847_vm14, %v4844_v51, 0.0  ;;  %v4841_v28 = vmul.f32 %v4815_v49, %v17199_v14 }
 0x550   : > { %v9143_v31 = vrot.slane %v9142_v50, 1  ;;  %v9196_v16 = vsel %vm1257_vm3, %v9174_v58, 0.0  ;;  %v4904_v23 = vadd.f32 %v4903_v5, %v4902_v17  ;;  %v4842_v44 = vmul.f32 %v17200_v1, %v4818_v54  ;;  %8099 = vadd.xlane.f32.xlu0 %v8098_v15  ;;  %v5889_v35 = vpop.xlane.xlu0 %5888  ;;  %v17294_v17 = vld [vmem:[#allocation55_spill] sm:$0xff] }
 0x551   : > { %v16147_v46 = vpop.eup %11801  ;;  %v3815_v59 = vrot.slane %v3814_v10, 2  ;;  %v16152_v30 = vadd.f32 %v4871_v33, %v16087_v38  ;;  %9197 = vadd.xlane.f32.xlu1 %v9196_v16  ;;  %v4879_v37 = vadd.f32 %v4878_v8, %v4877_v12  ;;  %v4893_v2 = vsel %vm4847_vm14, %v4841_v28, 0.0  ;;  %v17293_v38 = vld [vmem:[#allocation83_spill] sm:$0xff]  ;;  %v17295_v28 = vld [vmem:[#allocation76_spill] sm:$0xff] }
 0x552   : > { %v9144_v53 = vadd.f32 %v9143_v31, %v9142_v50  ;;  %v9180_v27 = vmul.f32 %v16147_v46, %v17292_v43  ;;  %v4905_v49 = vrot.slane %v4904_v23, 4  ;;  %v4894_v58 = vsel %vm4847_vm14, %v4842_v44, 0.0  ;;  %v17296_v44 = vld [vmem:[#allocation23_spill] sm:$0xff] }
 0x553   : > { %v4845_v54 = vmul.f32 %v16039_v60, %v17153_v11  ;;  %v4889_v51 = vrot.slane %v4888_v34, 2  ;;  %v6983_v33 = vmul.f32 %v15966_v13, %v17293_v38  ;;  %v4895_v31 = vadd.f32 %v4894_v58, %v4893_v2 }
 0x554   : > { %11809 = vrcp.f32 %v9144_v53  ;;  %v11804_v50 = vpop.eup %11803  ;;  %v8101_v12 = vsel %vm1257_vm3, %v8075_v4, 0.0  ;;  %v9214_v8 = vsel %vm1257_vm3, %v9180_v27, 0.0  ;;  %v3816_v53 = vadd.f32 %v3815_v59, %v3814_v10  ;;  %v4830_v13 = vpop.xlane.xlu0 %4829 }
 0x555   : > { %v16162_v15 = vpop.eup %11805  ;;  %v8072_v5 = vmul.f32 %v11804_v50, %v17294_v17  ;;  %v8073_v16 = vmul.f32 %v11804_v50, %v17295_v28  ;;  %8102 = vadd.xlane.f32.xlu0 %v8101_v12  ;;  %9215 = vadd.xlane.f32.xlu1 %v9214_v8  ;;  %v4880_v43 = vrot.slane %v4879_v37, 2  ;;  %v4896_v61 = vrot.slane %v4895_v31, 4  ;;  %v5928_v27 = vpop.xlane.xlu1 %5927  ;;  %v17297_v17 = vld [vmem:[#allocation38_spill] sm:$0xff] }
 0x556   : > { %v9178_v60 = vmul.f32 %v16162_v15, %v17296_v44  ;;  %v4906_v58 = vadd.f32 %v4905_v49, %v4904_v23  ;;  %v5932_v4 = vmul.f32 %v5886_v21, %v17210_v45  ;;  %v4911_v50 = vsel %vm4847_vm14, %v4845_v54, 0.0  ;;  %v17298_v49 = vld [vmem:[#allocation37_spill] sm:$0xff] }
 0x557   : > { %v16175_v10 = vadd.f32 %v4889_v51, %v4888_v34  ;;  %v7027_v59 = vsel %vm1257_vm3, %v6983_v33, 0.0  ;;  %v4897_v12 = vadd.f32 %v4896_v61, %v4895_v31  ;;  %v16182_v44 = vmul.f32 %v5928_v27, %v17153_v11 }
 0x558   : > { %v9208_v8 = vsel %vm1257_vm3, %v9178_v60, 0.0  ;;  %v5933_v21 = vmul.f32 %v17247_v22, %v5889_v35  ;;  %v4881_v23 = vadd.f32 %v4880_v43, %v4879_v37  ;;  %v8078_v34 = vmul.f32 %v15986_v48, %v17298_v49  ;;  %v5901_v33 = vpop.xlane.xlu0 %5900 }
 0x559   : > { %v16172_v38 = vpop.eup %11807  ;;  %7028 = vadd.xlane.f32.xlu0 %v7027_v59  ;;  %9209 = vadd.xlane.f32.xlu1 %v9208_v8  ;;  %v4898_v54 = vrot.slane %v4897_v12, 2  ;;  %v3817_v51 = vrot.slane %v3816_v53, 1  ;;  %v8092_v61 = vsel %vm1257_vm3, %v8072_v5, 0.0  ;;  %v4907_v31 = vrot.slane %v4906_v58, 2 }
 0x55a   : > { %v9184_v28 = vmul.f32 %v16172_v38, %v17297_v17  ;;  %v5949_v60 = vsel %vm5948_vm15, %v5932_v4, 0.0  ;;  %v5950_v17 = vsel %vm5948_vm15, %v5933_v21, 0.0  ;;  %v17299_v37 = vrot.slane %v16018_v56, 1 }
 0x55b   : > { %v16191_v2 = vadd.f32 %v5950_v17, %v5949_v60  ;;  %v3828_v48 = vsel %vm1621_vm7, %v16003_v63, %v15893_v18  ;;  %v3818_v5 = vadd.f32 %v3817_v51, %v3816_v53  ;;  %v4846_v59 = vmul.f32 %v17151_v20, %v4830_v13 }
 0x55c   : > { %v9226_v27 = vsel %vm1257_vm3, %v9184_v28, 0.0  ;;  %v3809_v35 = vadd.f32 %v17299_v37, %v16018_v56  ;;  %v3829_v4 = vsel %vm1623_vm8, %v16061_v32, %v3828_v48  ;;  %v5937_v8 = vmul.f32 %v17156_v19, %v5901_v33  ;;  %v17304_v37 = vld [vmem:[#allocation28_spill] sm:$0xff] }
 0x55d   : > { %v5967_v28 = vsel %vm5948_vm15, %v16081_v25, 0.0  ;;  %8093 = vadd.xlane.f32.xlu0 %v8092_v61  ;;  %9227 = vadd.xlane.f32.xlu1 %v9226_v27  ;;  %v4899_v21 = vadd.f32 %v4898_v54, %v4897_v12  ;;  %v3830_v18 = vsel %vm1625_vm9, %v16007_v57, %v3829_v4  ;;  %v4882_v63 = vrot.slane %v4881_v23, 1  ;;  %v17300_v57 = vld [vmem:[#allocation77_spill] sm:$0xff]  ;;  %v17305_v4 = vld [vmem:[#allocation51_spill] sm:$0xff] }
 0x55e   : > { %v16199_v43 = vpop.eup %11809  ;;  %v3831_v32 = vsel %vm1627_vm10, %v16141_v26, %v3830_v18  ;;  %v4912_v53 = vsel %vm4847_vm14, %v4846_v59, 0.0  ;;  %v5968_v13 = vsel %vm5948_vm15, %v5937_v8, 0.0  ;;  %v8095_v49 = vsel %vm1257_vm3, %v8073_v16, 0.0  ;;  %v17301_v61 = vld [vmem:[#allocation29_spill] sm:$0xff] }
 0x55f   : > { %v9182_v56 = vmul.f32 %v16199_v43, %v15794_v36  ;;  %v4908_v51 = vadd.f32 %v4907_v31, %v4906_v58  ;;  %v3832_v33 = vsel %vm1629_vm11, %v3809_v35, %v3831_v32  ;;  %v4913_v12 = vadd.f32 %v4912_v53, %v4911_v50  ;;  %v17302_v26 = vld [vmem:[#allocation69_spill] sm:$0xff] }
 0x560   : > { %v3833_v36 = vsel %vm1631_vm12, %v3818_v5, %v3832_v33  ;;  %v5969_v54 = vadd.f32 %v5968_v13, %v5967_v28  ;;  %v2727_v60 = vsel %vm1621_vm7, %v17301_v61, %v17300_v57  ;;  %v9155_v17 = vsel %vm1257_vm3, %v17302_v26, 0.0  ;;  %v7002_v16 = vpop.xlane.xlu1 %7001  ;;  %v17308_v13 = vld [vmem:[#allocation75_spill] sm:$0xff] }
 0x561   : > { %v9220_v25 = vsel %vm1257_vm3, %v9182_v56, 0.0  ;;  %8096 = vadd.xlane.f32.xlu0 %v8095_v49  ;;  %v4900_v27 = vrot.slane %v4899_v21, 1  ;;  %v17303_v58 = vrot.slane %v15920_v52, 1  ;;  %v2728_v35 = vsel %vm1623_vm8, %v17304_v37, %v2727_v60  ;;  %v17309_v33 = vld [vmem:[#allocation27_spill] sm:$0xff] }
 0x562   : > { %9221 = vadd.xlane.f32.xlu1 %v9220_v25  ;;  %v4891_v50 = vrot.slane %v16175_v10, 1  ;;  %v16231_v48 = vmul.f32 %v17156_v19, %v7002_v16  ;;  %v4914_v5 = vrot.slane %v4913_v12, 4  ;;  %v2729_v59 = vsel %vm1625_vm9, %v17305_v4, %v2728_v35 }
 0x563   : > { %v2717_v31 = vadd.f32 %v17303_v58, %v15920_v52  ;;  %v17306_v8 = vrot.slane %v16152_v30, 1  ;;  %v4883_v56 = vadd.f32 %v4882_v63, %v4881_v23  ;;  %v8110_v18 = vsel %vm1257_vm3, %v8078_v34, 0.0  ;;  %v17307_v52 = vld [vmem:[#allocation68_spill] sm:$0xff]  ;;  %v17311_v58 = vld [vmem:[#allocation58_spill] sm:$0xff] }
 0x564   : > { %v2730_v32 = vsel %vm1627_vm10, %v17307_v52, %v2729_v59  ;;  %v4909_v53 = vrot.slane %v4908_v51, 1  ;;  %v8076_v49 = vmul.f32 %v16015_v41, %v17308_v13  ;;  %v4915_v25 = vadd.f32 %v4914_v5, %v4913_v12  ;;  %v7014_v60 = vpop.xlane.xlu1 %7013  ;;  %v17310_v12 = vld [vmem:[#allocation94_spill] sm:$0xff] }
 0x565   : > { %v4874_v28 = vadd.f32 %v17306_v8, %v16152_v30  ;;  %v2731_v57 = vsel %vm1629_vm11, %v17309_v33, %v2730_v32  ;;  %8111 = vadd.xlane.f32.xlu0 %v8110_v18  ;;  %v4901_v61 = vadd.f32 %v4900_v27, %v4899_v21  ;;  %v4892_v30 = vadd.f32 %v4891_v50, %v16175_v10  ;;  %v17312_v8 = vld [vmem:[#allocation34_spill] sm:$0xff]  ;;  %v17314_v33 = vld [vmem:[#allocation36_spill] sm:$0xff] }
 0x566   : > { %v16246_v16 = vsel %vm1631_vm12, %v2717_v31, %v2731_v57  ;;  %v4916_v23 = vrot.slane %v4915_v25, 2  ;;  %v16250_v34 = vmul.f32 %v17179_v3, %v7014_v60  ;;  %v9156_v41 = vadd.f32 %v9155_v17, %v15995_v7 }
 0x567   : > { %v4929_v63 = vsel %vm1621_vm7, %v4874_v28, %v16109_v24  ;;  %v8082_v37 = vmul.f32 %v17311_v58, %v17310_v12  ;;  %v8104_v27 = vsel %vm1257_vm3, %v8076_v49, 0.0  ;;  %v4910_v35 = vadd.f32 %v4909_v53, %v4908_v51  ;;  %v17313_v53 = vld [vmem:[#allocation20_spill] sm:$0xff] }
 0x568   : > { %v4930_v21 = vsel %vm1623_vm8, %v4883_v56, %v4929_v63  ;;  %v4917_v31 = vadd.f32 %v4916_v23, %v4915_v25  ;;  %v9157_v17 = vrot.slane %v9156_v41, 4  ;;  %v9171_v28 = vmul.f32 %v16050_v47, %v17312_v8 }
 0x569   : > { %v4931_v10 = vsel %vm1625_vm9, %v4892_v30, %v4930_v21  ;;  %8105 = vadd.xlane.f32.xlu0 %v8104_v27  ;;  %v7026_v50 = vpop.xlane.xlu1 %7025  ;;  %v8122_v59 = vsel %vm1257_vm3, %v8082_v37, 0.0  ;;  %v5952_v51 = vrot.slane %v16191_v2, 4  ;;  %v5970_v52 = vrot.slane %v5969_v54, 4  ;;  %v17315_v30 = vld [vmem:[#allocation19_spill] sm:$0xff] }
 0x56a   : > { %v4932_v5 = vsel %vm1627_vm10, %v4901_v61, %v4931_v10  ;;  %v4918_v4 = vrot.slane %v4917_v31, 1  ;;  %v16262_v24 = vmul.f32 %v17195_v39, %v7026_v50  ;;  %v9158_v49 = vadd.f32 %v9157_v17, %v9156_v41 }
 0x56b   : > { %v4933_v7 = vsel %vm1629_vm11, %v4910_v35, %v4932_v5  ;;  %v5892_v56 = vpop.xlane.xlu0 %5891  ;;  %v9187_v25 = vsel %vm1257_vm3, %v9171_v28, 0.0  ;;  %v8080_v57 = vmul.f32 %v16076_v62, %v17314_v33  ;;  %v5953_v61 = vadd.f32 %v5952_v51, %v16191_v2 }
 0x56c   : > { %v4919_v18 = vadd.f32 %v4918_v4, %v4917_v31  ;;  %v5934_v13 = vmul.f32 %v5892_v56, %v17313_v53  ;;  %v5971_v60 = vadd.f32 %v5970_v52, %v5969_v54  ;;  %v9159_v58 = vrot.slane %v9158_v49, 2 }
 0x56d   : > { %8123 = vadd.xlane.f32.xlu0 %v8122_v59  ;;  %v8116_v41 = vsel %vm1257_vm3, %v8080_v57, 0.0  ;;  %v5954_v37 = vrot.slane %v5953_v61, 2  ;;  %vm6039_vm13 = vcmask 162944  }
 0x56e   : > { %v16270_v32 = vsel %vm1631_vm12, %v4919_v18, %v4933_v7  ;;  %v5958_v63 = vsel %vm5948_vm15, %v5934_v13, 0.0  ;;  %v5972_v62 = vrot.slane %v5971_v60, 2  ;;  %v9160_v54 = vadd.f32 %v9159_v58, %v9158_v49 }
 0x56f   : > { %v5895_v47 = vpop.xlane.xlu0 %5894  ;;  %v5955_v2 = vadd.f32 %v5954_v37, %v5953_v61 }
 0x570   : > { %v5935_v23 = vmul.f32 %v17315_v30, %v5895_v47  ;;  %v5973_v10 = vadd.f32 %v5972_v62, %v5971_v60  ;;  %v9161_v17 = vrot.slane %v9160_v54, 1 }
 0x571   : > { %9188 = vadd.xlane.f32.xlu0 %v9187_v25  ;;  %v5956_v5 = vrot.slane %v5955_v2, 1 }
 0x572   : > { %v5959_v12 = vsel %vm5948_vm15, %v5935_v23, 0.0  ;;  %v5974_v59 = vrot.slane %v5973_v10, 1  ;;  %v9162_v25 = vadd.f32 %v9161_v17, %v9160_v54 }
 0x573   : > { %3834 = vrot.lane.b32.xlu1 %v3833_v36, %s12043_s13  ;;  %v5960_v21 = vadd.f32 %v5959_v12, %v5958_v63  ;;  %v5957_v18 = vadd.f32 %v5956_v5, %v5955_v2 }
 0x574   : > { %v5975_v33 = vadd.f32 %v5974_v59, %v5973_v10  ;;  %11811 = vrcp.f32 %v9162_v25 }
 0x575   : > { %8117 = vadd.xlane.f32.xlu0 %v8116_v41  ;;  %v5961_v27 = vrot.slane %v5960_v21, 4 }
 0x577   : > { %v5962_v31 = vadd.f32 %v5961_v27, %v5960_v21  ;;  %v5910_v35 = vpop.xlane.xlu0 %5909 }
 0x578   : > { %v5940_v36 = vmul.f32 %v5910_v35, %v17178_v9 }
 0x579   : > { %v5963_v50 = vrot.slane %v5962_v31, 2 }
 0x57a   : > { %v5985_v51 = vsel %vm5948_vm15, %v5940_v36, 0.0 }
 0x57b   : > { %v5964_v4 = vadd.f32 %v5963_v50, %v5962_v31  ;;  %v5913_v7 = vpop.xlane.xlu0 %5912 }
 0x57c   : > { %v5941_v8 = vmul.f32 %v17179_v3, %v5913_v7 }
 0x57d   : > { %v5965_v28 = vrot.slane %v5964_v4, 1 }
 0x57e   : > { %v5986_v56 = vsel %vm5948_vm15, %v5941_v8, 0.0  ;;  %v16298_v27 = vpop.eup %11811 }
 0x57f   : > { %v5966_v52 = vadd.f32 %v5965_v28, %v5964_v4  ;;  %v5987_v49 = vadd.f32 %v5986_v56, %v5985_v51  ;;  %v9186_v54 = vmul.f32 %v16298_v27, %v17302_v26 }
 0x581   : > { %v7020_v13 = vpop.xlane.xlu1 %7019  ;;  %v6029_v61 = vsel %vm1619_vm5, %v5966_v52, %v5957_v18  ;;  %v5988_v63 = vrot.slane %v5987_v49, 4 }
 0x582   : > { %v16287_v57 = vmul.f32 %v17200_v1, %v7020_v13  ;;  %v6030_v47 = vsel %vm1621_vm7, %v5975_v33, %v6029_v61 }
 0x583   : > { %v5989_v41 = vadd.f32 %v5988_v63, %v5987_v49 }
 0x585   : > { %v1634_v60 = vpop.permute.xlu1 %1633  ;;  %v5990_v31 = vrot.slane %v5989_v41, 2 }
 0x586   : > { %1636 = vst.msk [vmem:[#allocation2] sm:$0xff] %vm550_vm1, %v1634_v60  ;;  %v5904_v23 = vpop.xlane.xlu0 %5903  ;;  %v17316_v60 = vld [vmem:[#allocation66_spill] sm:$0xff]  ;;  %vm8150_vm1 = vcmask 753344  }
 0x587   : > { %v5938_v12 = vmul.f32 %v5904_v23, %v17184_v55  ;;  %v5991_v50 = vadd.f32 %v5990_v31, %v5989_v41  ;;  %v9175_v23 = vmul.f32 %v16094_v40, %v17316_v60 }
 0x589   : > { %v5976_v21 = vsel %vm5948_vm15, %v5938_v12, 0.0  ;;  %v5992_v7 = vrot.slane %v5991_v50, 1 }
 0x58a   : > { %v5907_v58 = vpop.xlane.xlu0 %5906 }
 0x58b   : > { %2733 = vrot.lane.b32.xlu0 %v16246_v16, %s12043_s13  ;;  %v5939_v37 = vmul.f32 %v17188_v29, %v5907_v58  ;;  %v9232_v16 = vsel %vm1257_vm3, %v9186_v54, 0.0  ;;  %v5993_v56 = vadd.f32 %v5992_v7, %v5991_v50  ;;  %v17318_v50 = vld [vmem:[#allocation25_spill] sm:$0xff] }
 0x58d   : > { %v5977_v62 = vsel %vm5948_vm15, %v5939_v37, 0.0  ;;  %v9199_v37 = vsel %vm1257_vm3, %v9175_v23, 0.0 }
 0x58e   : > { %v5978_v2 = vadd.f32 %v5977_v62, %v5976_v21  ;;  %v17317_v21 = vld [vmem:[#allocation44_spill] sm:$0xff] }
 0x58f   : > { %v8084_v62 = vmul.f32 %v16114_v42, %v17317_v21 }
 0x590   : > { %v5979_v35 = vrot.slane %v5978_v2, 4 }
 0x592   : > { %v5980_v10 = vadd.f32 %v5979_v35, %v5978_v2 }
 0x593   : > { %v5922_v5 = vpop.xlane.xlu0 %5921 }
 0x594   : > { %v5981_v36 = vrot.slane %v5980_v10, 2  ;;  %v5944_v17 = vmul.f32 %v5922_v5, %v17193_v0 }
 0x596   : > { %v5982_v4 = vadd.f32 %v5981_v36, %v5980_v10  ;;  %v6003_v18 = vsel %vm5948_vm15, %v5944_v17, 0.0  ;;  %v8128_v10 = vsel %vm1257_vm3, %v8084_v62, 0.0 }
 0x597   : > { %9233 = vadd.xlane.f32.xlu1 %v9232_v16  ;;  %v5925_v8 = vpop.xlane.xlu0 %5924 }
 0x598   : > { %v5983_v59 = vrot.slane %v5982_v4, 1  ;;  %v5945_v28 = vmul.f32 %v17195_v39, %v5925_v8  ;;  %v17319_v8 = vld [vmem:[#allocation71_spill] sm:$0xff] }
 0x59a   : > { %v5984_v51 = vadd.f32 %v5983_v59, %v5982_v4  ;;  %v6004_v26 = vsel %vm5948_vm15, %v5945_v28, 0.0  ;;  %v9179_v28 = vmul.f32 %v16147_v46, %v17319_v8 }
 0x59b   : > { %v6005_v52 = vadd.f32 %v6004_v26, %v6003_v18 }
 0x59c   : > { %v6031_v13 = vsel %vm1623_vm8, %v5984_v51, %v6030_v47 }
 0x59d   : > { %v6032_v49 = vsel %vm1625_vm9, %v5993_v56, %v6031_v13  ;;  %v6006_v33 = vrot.slane %v6005_v52, 4  ;;  %v6012_v13 = vsel %vm5948_vm15, %v16182_v44, 0.0 }
 0x59f   : > { %v6007_v12 = vadd.f32 %v6006_v33, %v6005_v52  ;;  %v9211_v33 = vsel %vm1257_vm3, %v9179_v28, 0.0 }
 0x5a1   : > { %v5916_v25 = vpop.xlane.xlu0 %5915  ;;  %v6008_v40 = vrot.slane %v6007_v12, 2 }
 0x5a2   : > { %v5942_v61 = vmul.f32 %v5916_v25, %v17199_v14 }
 0x5a3   : > { %v6009_v16 = vadd.f32 %v6008_v40, %v6007_v12 }
 0x5a4   : > { %v5994_v41 = vsel %vm5948_vm15, %v5942_v61, 0.0  ;;  %v17320_v61 = vld [vmem:[#allocation33_spill] sm:$0xff] }
 0x5a5   : > { %v5919_v63 = vpop.xlane.xlu0 %5918  ;;  %v6010_v18 = vrot.slane %v6009_v16, 1  ;;  %v9177_v60 = vmul.f32 %v16162_v15, %v17320_v61 }
 0x5a6   : > { %v5943_v58 = vmul.f32 %v17200_v1, %v5919_v63 }
 0x5a7   : > { %v6011_v12 = vadd.f32 %v6010_v18, %v6009_v16  ;;  %v9205_v62 = vsel %vm1257_vm3, %v9177_v60, 0.0 }
 0x5a8   : > { %4935 = vrot.lane.b32.xlu1 %v16270_v32, %s12043_s13  ;;  %v5995_v47 = vsel %vm5948_vm15, %v5943_v58, 0.0  ;;  %v9173_v32 = vmul.f32 %v16122_v6, %v17318_v50  ;;  %v17321_v58 = vld [vmem:[#allocation22_spill] sm:$0xff] }
 0x5a9   : > { %v5996_v2 = vadd.f32 %v5995_v47, %v5994_v41  ;;  %v6987_v31 = vpop.xlane.xlu0 %6986  ;;  %v7069_v47 = vsel %vm7049_vm0, %v16231_v48, 0.0 }
 0x5aa   : > { %9200 = vadd.xlane.f32.xlu0 %v9199_v37  ;;  %v7033_v54 = vmul.f32 %v6987_v31, %v17210_v45  ;;  %v9193_v59 = vsel %vm1257_vm3, %v9173_v32, 0.0 }
 0x5ab   : > { %v5997_v35 = vrot.slane %v5996_v2, 4 }
 0x5ac   : > { %v7050_v7 = vsel %vm7049_vm0, %v7033_v54, 0.0 }
 0x5ad   : > { %v5998_v36 = vadd.f32 %v5997_v35, %v5996_v2  ;;  %v6990_v5 = vpop.xlane.xlu0 %6989  ;;  %v17322_v2 = vld [vmem:[#allocation21_spill] sm:$0xff] }
 0x5ae   : > { %8129 = vadd.xlane.f32.xlu0 %v8128_v10  ;;  %v7034_v4 = vmul.f32 %v17247_v22, %v6990_v5  ;;  %v9183_v15 = vmul.f32 %v16172_v38, %v17322_v2 }
 0x5af   : > { %v5999_v42 = vrot.slane %v5998_v36, 2 }
 0x5b0   : > { %v7051_v17 = vsel %vm7049_vm0, %v7034_v4, 0.0 }
 0x5b1   : > { %v6000_v51 = vadd.f32 %v5999_v42, %v5998_v36  ;;  %v7052_v56 = vadd.f32 %v7051_v17, %v7050_v7  ;;  %v5931_v6 = vpop.xlane.xlu0 %5930  ;;  %v17323_v36 = vld [vmem:[#allocation30_spill] sm:$0xff] }
 0x5b2   : > { %9194 = vadd.xlane.f32.xlu0 %v9193_v59  ;;  %v5947_v26 = vmul.f32 %v17151_v20, %v5931_v6  ;;  %v9181_v5 = vmul.f32 %v16199_v43, %v17323_v36  ;;  %v17324_v6 = vld [vmem:[#allocation67_spill] sm:$0xff] }
 0x5b3   : > { %v6001_v52 = vrot.slane %v6000_v51, 1  ;;  %v7053_v40 = vrot.slane %v7052_v56, 4  ;;  %v9185_v18 = vmul.f32 %v16298_v27, %v17324_v6 }
 0x5b4   : > { %v6013_v25 = vsel %vm5948_vm15, %v5947_v26, 0.0 }
 0x5b5   : > { %v6002_v23 = vadd.f32 %v6001_v52, %v6000_v51  ;;  %v6014_v46 = vadd.f32 %v6013_v25, %v6012_v13  ;;  %v6999_v63 = vpop.xlane.xlu0 %6998  ;;  %v7054_v16 = vadd.f32 %v7053_v40, %v7052_v56  ;;  %v9217_v51 = vsel %vm1257_vm3, %v9181_v5, 0.0 }
 0x5b6   : > { %9212 = vadd.xlane.f32.xlu0 %v9211_v33  ;;  %v7037_v41 = vmul.f32 %v6999_v63, %v17321_v58  ;;  %v9229_v63 = vsel %vm1257_vm3, %v9185_v18, 0.0 }
 0x5b7   : > { %v6015_v37 = vrot.slane %v6014_v46, 4  ;;  %v6033_v44 = vsel %vm1627_vm10, %v6002_v23, %v6032_v49  ;;  %v9223_v49 = vsel %vm1257_vm3, %v9183_v15, 0.0  ;;  %v7055_v43 = vrot.slane %v7054_v16, 2 }
 0x5b8   : > { %v7068_v21 = vsel %vm7049_vm0, %v7037_v41, 0.0  ;;  %v6034_v31 = vsel %vm1629_vm11, %v6011_v12, %v6033_v44  ;;  %vm2736_vm3 = vcmask 64544  }
 0x5b9   : > { %v6016_v35 = vadd.f32 %v6015_v37, %v6014_v46  ;;  %v7070_v54 = vadd.f32 %v7069_v47, %v7068_v21  ;;  %v6993_v10 = vpop.xlane.xlu0 %6992  ;;  %v7087_v46 = vsel %vm7049_vm0, %v16250_v34, 0.0  ;;  %v7056_v12 = vadd.f32 %v7055_v43, %v7054_v16 }
 0x5ba   : > { %9206 = vadd.xlane.f32.xlu0 %v9205_v62  ;;  %v7035_v48 = vmul.f32 %v6993_v10, %v17313_v53  ;;  %v7105_v43 = vsel %vm7049_vm0, %v16262_v24, 0.0 }
 0x5bb   : > { %v6017_v50 = vrot.slane %v6016_v35, 2  ;;  %v7071_v32 = vrot.slane %v7070_v54, 4 }
 0x5bc   : > { %v7059_v8 = vsel %vm7049_vm0, %v7035_v48, 0.0 }
 0x5bd   : > { %v6018_v4 = vadd.f32 %v6017_v50, %v6016_v35  ;;  %v6996_v42 = vpop.xlane.xlu0 %6995  ;;  %v16350_v38 = vpop.xlane.xlu1 %7031  ;;  %v7072_v7 = vadd.f32 %v7071_v32, %v7070_v54 }
 0x5be   : > { %9224 = vadd.xlane.f32.xlu0 %v9223_v49  ;;  %v7036_v17 = vmul.f32 %v17315_v30, %v6996_v42 }
 0x5bf   : > { %v6019_v59 = vrot.slane %v6018_v4, 1  ;;  %v7073_v25 = vrot.slane %v7072_v7, 2 }
 0x5c0   : > { %v7060_v28 = vsel %vm7049_vm0, %v7036_v17, 0.0 }
 0x5c1   : > { %v7061_v56 = vadd.f32 %v7060_v28, %v7059_v8  ;;  %v7011_v26 = vpop.xlane.xlu0 %7010  ;;  %v6020_v52 = vadd.f32 %v6019_v59, %v6018_v4  ;;  %v8115_v13 = vpop.xlane.xlu1 %8114  ;;  %v7074_v21 = vadd.f32 %v7073_v25, %v7072_v7 }
 0x5c2   : > { %9218 = vadd.xlane.f32.xlu0 %v9217_v51  ;;  %v7041_v33 = vmul.f32 %v7011_v26, %v17178_v9  ;;  %v16360_v61 = vmul.f32 %v17179_v3, %v8115_v13 }
 0x5c3   : > { %v7062_v60 = vrot.slane %v7061_v56, 4  ;;  %v6035_v23 = vsel %vm1631_vm12, %v6020_v52, %v6034_v31  ;;  %v7057_v31 = vrot.slane %v7056_v12, 1  ;;  %v7075_v10 = vrot.slane %v7074_v21, 1 }
 0x5c4   : > { %v7086_v27 = vsel %vm7049_vm0, %v7041_v33, 0.0  ;;  %6036 = vrot.lane.b32.xlu1 %v6035_v23, %s12043_s13 }
 0x5c5   : > { %v7063_v41 = vadd.f32 %v7062_v60, %v7061_v56  ;;  %v7088_v47 = vadd.f32 %v7087_v46, %v7086_v27  ;;  %v7005_v37 = vpop.xlane.xlu0 %7004  ;;  %v8109_v44 = vpop.xlane.xlu1 %8108  ;;  %v7058_v16 = vadd.f32 %v7057_v31, %v7056_v12  ;;  %v7076_v59 = vadd.f32 %v7075_v10, %v7074_v21 }
 0x5c6   : > { %9230 = vadd.xlane.f32.xlu0 %v9229_v63  ;;  %v16369_v62 = vmul.f32 %v17188_v29, %v8109_v44  ;;  %v7039_v34 = vmul.f32 %v7005_v37, %v17184_v55 }
 0x5c7   : > { %v7064_v2 = vrot.slane %v7063_v41, 2  ;;  %v7089_v15 = vrot.slane %v7088_v47, 4 }
 0x5c8   : > { %v7077_v36 = vsel %vm7049_vm0, %v7039_v34, 0.0 }
 0x5c9   : > { %v7065_v40 = vadd.f32 %v7064_v2, %v7063_v41  ;;  %v7008_v35 = vpop.xlane.xlu0 %7007  ;;  %v8127_v54 = vpop.xlane.xlu1 %8126  ;;  %v7090_v50 = vadd.f32 %v7089_v15, %v7088_v47 }
 0x5ca   : > { %v7040_v32 = vmul.f32 %v17188_v29, %v7008_v35  ;;  %v16374_v48 = vmul.f32 %v17195_v39, %v8127_v54 }
 0x5cb   : > { %v7066_v49 = vrot.slane %v7065_v40, 1  ;;  %v7091_v8 = vrot.slane %v7090_v50, 2 }
 0x5cc   : > { %v7078_v5 = vsel %vm7049_vm0, %v7040_v32, 0.0 }
 0x5cd   : > { %v7067_v4 = vadd.f32 %v7066_v49, %v7065_v40  ;;  %v7079_v42 = vadd.f32 %v7078_v5, %v7077_v36  ;;  %v7023_v7 = vpop.xlane.xlu0 %7022  ;;  %v9192_v17 = vpop.xlane.xlu1 %9191  ;;  %v7092_v60 = vadd.f32 %v7091_v8, %v7090_v50  ;;  %v7096_v49 = vsel %vm7049_vm0, %v16287_v57, 0.0 }
 0x5ce   : > { %v7045_v28 = vmul.f32 %v7023_v7, %v17193_v0  ;;  %v16380_v51 = vmul.f32 %v17247_v22, %v9192_v17 }
 0x5cf   : > { %v7130_v6 = vsel %vm1619_vm5, %v7067_v4, %v7058_v16  ;;  %v7080_v18 = vrot.slane %v7079_v42, 4  ;;  %v7093_v47 = vrot.slane %v7092_v60, 1 }
 0x5d0   : > { %v7104_v56 = vsel %vm7049_vm0, %v7045_v28, 0.0  ;;  %v7131_v26 = vsel %vm1621_vm7, %v7076_v59, %v7130_v6 }
 0x5d1   : > { %v7081_v52 = vadd.f32 %v7080_v18, %v7079_v42  ;;  %v7106_v13 = vadd.f32 %v7105_v43, %v7104_v56  ;;  %v8088_v25 = vpop.xlane.xlu0 %8087  ;;  %v8121_v33 = vpop.xlane.xlu1 %8120  ;;  %v7094_v54 = vadd.f32 %v7093_v47, %v7092_v60 }
 0x5d2   : > { %v8134_v23 = vmul.f32 %v8088_v25, %v17210_v45  ;;  %v16389_v46 = vmul.f32 %v17200_v1, %v8121_v33 }
 0x5d3   : > { %v7082_v27 = vrot.slane %v7081_v52, 2  ;;  %v7107_v24 = vrot.slane %v7106_v13, 4 }
 0x5d4   : > { %v8151_v2 = vsel %vm8150_vm1, %v8134_v23, 0.0 }
 0x5d5   : > { %v7083_v63 = vadd.f32 %v7082_v27, %v7081_v52  ;;  %v8091_v12 = vpop.xlane.xlu0 %8090  ;;  %v9204_v41 = vpop.xlane.xlu1 %9203  ;;  %v7108_v10 = vadd.f32 %v7107_v24, %v7106_v13  ;;  %v7048_v52 = vmul.f32 %v17151_v20, %v16350_v38 }
 0x5d6   : > { %v8135_v37 = vmul.f32 %v17247_v22, %v8091_v12  ;;  %v16393_v44 = vmul.f32 %v17156_v19, %v9204_v41 }
 0x5d7   : > { %v7084_v21 = vrot.slane %v7083_v63, 1  ;;  %v7109_v7 = vrot.slane %v7108_v10, 2  ;;  %v7114_v41 = vsel %vm7049_vm0, %v7048_v52, 0.0 }
 0x5d8   : > { %v8152_v15 = vsel %vm8150_vm1, %v8135_v37, 0.0 }
 0x5d9   : > { %v7085_v34 = vadd.f32 %v7084_v21, %v7083_v63  ;;  %v8153_v31 = vadd.f32 %v8152_v15, %v8151_v2  ;;  %v7017_v40 = vpop.xlane.xlu0 %7016  ;;  %v7110_v43 = vadd.f32 %v7109_v7, %v7108_v10 }
 0x5da   : > { %v8133_v35 = vpop.xlane.xlu1 %8132  ;;  %v7043_v50 = vmul.f32 %v7017_v40, %v17199_v14 }
 0x5db   : > { %v16399_v32 = vmul.f32 %v17151_v20, %v8133_v35  ;;  %v7132_v22 = vsel %vm1623_vm8, %v7085_v34, %v7131_v26  ;;  %v7111_v63 = vrot.slane %v7110_v43, 1  ;;  %v8154_v38 = vrot.slane %v8153_v31, 4 }
 0x5dc   : > { %v7095_v36 = vsel %vm7049_vm0, %v7043_v50, 0.0  ;;  %v7133_v5 = vsel %vm1625_vm9, %v7094_v54, %v7132_v22 }
 0x5dd   : > { %v7097_v16 = vadd.f32 %v7096_v49, %v7095_v36  ;;  %v8100_v4 = vpop.xlane.xlu0 %8099  ;;  %v7112_v15 = vadd.f32 %v7111_v63, %v7110_v43  ;;  %v8155_v50 = vadd.f32 %v8154_v38, %v8153_v31 }
 0x5de   : > { %v9198_v42 = vpop.xlane.xlu1 %9197  ;;  %v8138_v17 = vmul.f32 %v8100_v4, %v17321_v58 }
 0x5df   : > { %v16408_v59 = vmul.f32 %v17315_v30, %v9198_v42  ;;  %v7098_v8 = vrot.slane %v7097_v16, 4 }
 0x5e0   : > { %v8169_v13 = vsel %vm8150_vm1, %v8138_v17, 0.0 }
 0x5e1   : > { %v7099_v28 = vadd.f32 %v7098_v8, %v7097_v16  ;;  %v8156_v8 = vrot.slane %v8155_v50, 2 }
 0x5e2   : > { %v8103_v6 = vpop.xlane.xlu0 %8102  ;;  %v9216_v18 = vpop.xlane.xlu1 %9215 }
 0x5e3   : > { %v8139_v57 = vmul.f32 %v17156_v19, %v8103_v6  ;;  %v16412_v56 = vmul.f32 %v17179_v3, %v9216_v18  ;;  %v7100_v26 = vrot.slane %v7099_v28, 2 }
 0x5e5   : > { %v8170_v25 = vsel %vm8150_vm1, %v8139_v57, 0.0  ;;  %v7101_v33 = vadd.f32 %v7100_v26, %v7099_v28  ;;  %v8157_v26 = vadd.f32 %v8156_v8, %v8155_v50  ;;  %v9253_v8 = vsel %vm9251_vm2, %v16380_v51, 0.0 }
 0x5e6   : > { %v8171_v60 = vadd.f32 %v8170_v25, %v8169_v13  ;;  %v7029_v23 = vpop.xlane.xlu0 %7028  ;;  %v9210_v27 = vpop.xlane.xlu1 %9209 }
 0x5e7   : > { %v7047_v12 = vmul.f32 %v7029_v23, %v17153_v11  ;;  %v16420_v19 = vmul.f32 %v17188_v29, %v9210_v27  ;;  %v7102_v3 = vrot.slane %v7101_v33, 1 }
 0x5e8   : > { %v8172_v34 = vrot.slane %v8171_v60, 4 }
 0x5e9   : > { %v7113_v47 = vsel %vm7049_vm0, %v7047_v12, 0.0  ;;  %v7103_v24 = vadd.f32 %v7102_v3, %v7101_v33  ;;  %v8179_v3 = vsel %vm8150_vm1, %v16369_v62, 0.0 }
 0x5ea   : > { %v7115_v37 = vadd.f32 %v7114_v41, %v7113_v47  ;;  %v8094_v21 = vpop.xlane.xlu0 %8093  ;;  %v9228_v2 = vpop.xlane.xlu1 %9227  ;;  %v8173_v16 = vadd.f32 %v8172_v34, %v8171_v60 }
 0x5eb   : > { %v8136_v40 = vmul.f32 %v8094_v21, %v17313_v53  ;;  %v16426_v35 = vmul.f32 %v17195_v39, %v9228_v2  ;;  %v7134_v29 = vsel %vm1627_vm10, %v7103_v24, %v7133_v5 }
 0x5ec   : > { %v7116_v54 = vrot.slane %v7115_v37, 4  ;;  %v7135_v10 = vsel %vm1629_vm11, %v7112_v15, %v7134_v29  ;;  %v8174_v18 = vrot.slane %v8173_v16, 2 }
 0x5ed   : > { %v8160_v17 = vsel %vm8150_vm1, %v8136_v40, 0.0 }
 0x5ee   : > { %v7117_v22 = vadd.f32 %v7116_v54, %v7115_v37  ;;  %v8097_v49 = vpop.xlane.xlu0 %8096  ;;  %v8175_v60 = vadd.f32 %v8174_v18, %v8173_v16  ;;  %v8206_v54 = vsel %vm8150_vm1, %v16374_v48, 0.0 }
 0x5ef   : > { %v9222_v36 = vpop.xlane.xlu1 %9221  ;;  %v8137_v4 = vmul.f32 %v17315_v30, %v8097_v49  ;;  %v8188_v30 = vsel %vm8150_vm1, %v16360_v61, 0.0  ;;  %v8158_v61 = vrot.slane %v8157_v26, 1 }
 0x5f0   : > { %v16432_v42 = vmul.f32 %v17200_v1, %v9222_v36  ;;  %v7118_v7 = vrot.slane %v7117_v22, 2  ;;  %v8176_v21 = vrot.slane %v8175_v60, 1 }
 0x5f1   : > { %v8161_v39 = vsel %vm8150_vm1, %v8137_v4, 0.0  ;;  %v8159_v29 = vadd.f32 %v8158_v61, %v8157_v26 }
 0x5f2   : > { %v7119_v28 = vadd.f32 %v7118_v7, %v7117_v22  ;;  %v8162_v5 = vadd.f32 %v8161_v39, %v8160_v17  ;;  %v8112_v6 = vpop.xlane.xlu0 %8111  ;;  %v8177_v36 = vadd.f32 %v8176_v21, %v8175_v60 }
 0x5f3   : > { %v8142_v31 = vmul.f32 %v8112_v6, %v17178_v9 }
 0x5f4   : > { %v7120_v43 = vrot.slane %v7119_v28, 1  ;;  %v8163_v57 = vrot.slane %v8162_v5, 4 }
 0x5f5   : > { %v8187_v1 = vsel %vm8150_vm1, %v8142_v31, 0.0 }
 0x5f6   : > { %v8164_v52 = vadd.f32 %v8163_v57, %v8162_v5  ;;  %v8189_v13 = vadd.f32 %v8188_v30, %v8187_v1  ;;  %v8106_v25 = vpop.xlane.xlu0 %8105  ;;  %v7121_v33 = vadd.f32 %v7120_v43, %v7119_v28 }
 0x5f7   : > { %v8140_v23 = vmul.f32 %v8106_v25, %v17184_v55  ;;  %v3835_v25 = vpop.permute.xlu1 %3834 }
 0x5f8   : > { %v8165_v27 = vrot.slane %v8164_v52, 2  ;;  %v8190_v63 = vrot.slane %v8189_v13, 4  ;;  %v7136_v12 = vsel %vm1631_vm12, %v7121_v33, %v7135_v10 }
 0x5f9   : > { %v8178_v41 = vsel %vm8150_vm1, %v8140_v23, 0.0  ;;  %7137 = vrot.lane.b32.xlu0 %v7136_v12, %s12043_s13 }
 0x5fa   : > { %v8166_v47 = vadd.f32 %v8165_v27, %v8164_v52  ;;  %v8191_v38 = vadd.f32 %v8190_v63, %v8189_v13  ;;  %v8180_v24 = vadd.f32 %v8179_v3, %v8178_v41  ;;  %v8124_v37 = vpop.xlane.xlu0 %8123 }
 0x5fb   : > { %v8146_v2 = vmul.f32 %v8124_v37, %v17193_v0 }
 0x5fc   : > { %v8167_v15 = vrot.slane %v8166_v47, 1  ;;  %v8192_v34 = vrot.slane %v8191_v38, 2  ;;  %v8181_v40 = vrot.slane %v8180_v24, 4 }
 0x5fd   : > { %v8205_v62 = vsel %vm8150_vm1, %v8146_v2, 0.0 }
 0x5fe   : > { %v8168_v10 = vadd.f32 %v8167_v15, %v8166_v47  ;;  %v8182_v50 = vadd.f32 %v8181_v40, %v8180_v24  ;;  %v8207_v22 = vadd.f32 %v8206_v54, %v8205_v62  ;;  %v9189_v49 = vpop.xlane.xlu0 %9188  ;;  %v8193_v16 = vadd.f32 %v8192_v34, %v8191_v38 }
 0x5ff   : > { %v9235_v4 = vmul.f32 %v9189_v49, %v17210_v45  ;;  %v8197_v45 = vsel %vm8150_vm1, %v16389_v46, 0.0  ;;  %v9271_v54 = vsel %vm9251_vm2, %v16393_v44, 0.0 }
 0x600   : > { %v8231_v7 = vsel %vm1619_vm5, %v8168_v10, %v8159_v29  ;;  %v8183_v17 = vrot.slane %v8182_v50, 2  ;;  %v8208_v39 = vrot.slane %v8207_v22, 4  ;;  %v8194_v31 = vrot.slane %v8193_v16, 1 }
 0x601   : > { %v9252_v48 = vsel %vm9251_vm2, %v9235_v4, 0.0  ;;  %v8232_v28 = vsel %vm1621_vm7, %v8177_v36, %v8231_v7  ;;  %v8215_v36 = vsel %vm8150_vm1, %v16399_v32, 0.0 }
 0x602   : > { %v8184_v5 = vadd.f32 %v8183_v17, %v8182_v50  ;;  %v9254_v6 = vadd.f32 %v9253_v8, %v9252_v48  ;;  %v8118_v18 = vpop.xlane.xlu0 %8117  ;;  %v8209_v43 = vadd.f32 %v8208_v39, %v8207_v22  ;;  %v8195_v13 = vadd.f32 %v8194_v31, %v8193_v16 }
 0x603   : > { %v8144_v57 = vmul.f32 %v8118_v18, %v17199_v14  ;;  %v9262_v8 = vsel %vm9251_vm2, %v16408_v59, 0.0 }
 0x604   : > { %v8185_v30 = vrot.slane %v8184_v5, 1  ;;  %v8210_v33 = vrot.slane %v8209_v43, 2  ;;  %v9255_v62 = vrot.slane %v9254_v6, 4 }
 0x605   : > { %v8196_v1 = vsel %vm8150_vm1, %v8144_v57, 0.0 }
 0x606   : > { %v8186_v51 = vadd.f32 %v8185_v30, %v8184_v5  ;;  %v8198_v26 = vadd.f32 %v8197_v45, %v8196_v1  ;;  %v2734_v52 = vpop.permute.xlu0 %2733  ;;  %v8211_v12 = vadd.f32 %v8210_v33, %v8209_v43  ;;  %v9256_v16 = vadd.f32 %v9255_v62, %v9254_v6 }
 0x607   : > { %2737 = vst.msk [vmem:[#allocation2] sm:$0xff] %vm2736_vm3, %v2734_v52  ;;  %v9289_v30 = vsel %vm9251_vm2, %v16412_v56, 0.0 }
 0x608   : > { %v8199_v60 = vrot.slane %v8198_v26, 4  ;;  %3838 = vst.msk [vmem:[#allocation2] sm:$0xff] %vm3837_vm4, %v3835_v25  ;;  %v8233_v23 = vsel %vm1623_vm8, %v8186_v51, %v8232_v28  ;;  %v8212_v41 = vrot.slane %v8211_v12, 1  ;;  %v9257_v48 = vrot.slane %v9256_v16, 2 }
 0x609   : > { %v8234_v27 = vsel %vm1625_vm9, %v8195_v13, %v8233_v23 }
 0x60a   : > { %v8200_v63 = vadd.f32 %v8199_v60, %v8198_v26  ;;  %v8213_v38 = vadd.f32 %v8212_v41, %v8211_v12  ;;  %v9258_v45 = vadd.f32 %v9257_v48, %v9256_v16 }
 0x60c   : > { %v8201_v3 = vrot.slane %v8200_v63, 2  ;;  %v9259_v23 = vrot.slane %v9258_v45, 1 }
 0x60e   : > { %v8202_v46 = vadd.f32 %v8201_v3, %v8200_v63 }
 0x610   : > { %v8203_v61 = vrot.slane %v8202_v46, 1 }
 0x612   : > { %v8204_v47 = vadd.f32 %v8203_v61, %v8202_v46 }
 0x614   : > { %v8235_v24 = vsel %vm1627_vm10, %v8204_v47, %v8234_v27 }
 0x615   : > { %v8236_v37 = vsel %vm1629_vm11, %v8213_v38, %v8235_v24 }
 0x624   : > { %v16464_v21 = vpop.xlane.xlu1 %9233 }
 0x628   : > { %v4936_v2 = vpop.permute.xlu1 %4935 }
 0x629   : > { %4939 = vst.msk [vmem:[#allocation2] sm:$0xff] %vm4938_vm6, %v4936_v2  ;;  %v9307_v2 = vsel %vm9251_vm2, %v16426_v35, 0.0  ;;  %v9298_v35 = vsel %vm9251_vm2, %v16432_v42, 0.0 }
 0x636   : > { %v6037_v34 = vpop.permute.xlu1 %6036 }
 0x637   : > { %v9201_v15 = vpop.xlane.xlu0 %9200  ;;  %6040 = vst.msk [vmem:[#allocation2] sm:$0xff] %vm6039_vm13, %v6037_v34 }
 0x638   : > { %v9239_v40 = vmul.f32 %v9201_v15, %v17321_v58  ;;  %v9260_v15 = vadd.f32 %v9259_v23, %v9258_v45 }
 0x63a   : > { %v9270_v29 = vsel %vm9251_vm2, %v9239_v40, 0.0 }
 0x63b   : > { %v9272_v10 = vadd.f32 %v9271_v54, %v9270_v29  ;;  %v8130_v50 = vpop.xlane.xlu0 %8129 }
 0x63c   : > { %v8148_v22 = vmul.f32 %v8130_v50, %v17153_v11 }
 0x63d   : > { %v9273_v49 = vrot.slane %v9272_v10, 4 }
 0x63e   : > { %v8214_v4 = vsel %vm8150_vm1, %v8148_v22, 0.0 }
 0x63f   : > { %v8216_v7 = vadd.f32 %v8215_v36, %v8214_v4  ;;  %v9195_v58 = vpop.xlane.xlu0 %9194  ;;  %v9274_v17 = vadd.f32 %v9273_v49, %v9272_v10  ;;  %v9250_v49 = vmul.f32 %v17151_v20, %v16464_v21 }
 0x640   : > { %v9237_v39 = vmul.f32 %v9195_v58, %v17313_v53 }
 0x641   : > { %v8217_v44 = vrot.slane %v8216_v7, 4  ;;  %v9275_v43 = vrot.slane %v9274_v17, 2 }
 0x642   : > { %v9261_v28 = vsel %vm9251_vm2, %v9237_v39, 0.0 }
 0x643   : > { %v8218_v5 = vadd.f32 %v8217_v44, %v8216_v7  ;;  %v9263_v18 = vadd.f32 %v9262_v8, %v9261_v28  ;;  %v9213_v31 = vpop.xlane.xlu0 %9212  ;;  %v9276_v52 = vadd.f32 %v9275_v43, %v9274_v17  ;;  %v9316_v28 = vsel %vm9251_vm2, %v9250_v49, 0.0 }
 0x644   : > { %v9243_v32 = vmul.f32 %v9213_v31, %v17178_v9  ;;  %v9280_v9 = vsel %vm9251_vm2, %v16420_v19, 0.0 }
 0x645   : > { %v8219_v6 = vrot.slane %v8218_v5, 2  ;;  %v9264_v57 = vrot.slane %v9263_v18, 4  ;;  %v9277_v41 = vrot.slane %v9276_v52, 1 }
 0x646   : > { %v9288_v53 = vsel %vm9251_vm2, %v9243_v32, 0.0 }
 0x647   : > { %v8220_v1 = vadd.f32 %v8219_v6, %v8218_v5  ;;  %v9265_v51 = vadd.f32 %v9264_v57, %v9263_v18  ;;  %v9290_v59 = vadd.f32 %v9289_v30, %v9288_v53  ;;  %v9207_v26 = vpop.xlane.xlu0 %9206  ;;  %v9278_v29 = vadd.f32 %v9277_v41, %v9276_v52 }
 0x648   : > { %v9241_v13 = vmul.f32 %v9207_v26, %v17184_v55 }
 0x649   : > { %v8221_v25 = vrot.slane %v8220_v1, 1  ;;  %v9266_v33 = vrot.slane %v9265_v51, 2  ;;  %v9291_v60 = vrot.slane %v9290_v59, 4 }
 0x64a   : > { %v9279_v27 = vsel %vm9251_vm2, %v9241_v13, 0.0 }
 0x64b   : > { %v9267_v56 = vadd.f32 %v9266_v33, %v9265_v51  ;;  %v9292_v63 = vadd.f32 %v9291_v60, %v9290_v59  ;;  %v9281_v12 = vadd.f32 %v9280_v9, %v9279_v27  ;;  %v9225_v3 = vpop.xlane.xlu0 %9224  ;;  %v8222_v46 = vadd.f32 %v8221_v25, %v8220_v1 }
 0x64c   : > { %v9247_v61 = vmul.f32 %v9225_v3, %v17193_v0 }
 0x64d   : > { %v9268_v47 = vrot.slane %v9267_v56, 1  ;;  %v9293_v38 = vrot.slane %v9292_v63, 2  ;;  %v9282_v55 = vrot.slane %v9281_v12, 4  ;;  %v8237_v24 = vsel %vm1631_vm12, %v8222_v46, %v8236_v37 }
 0x64e   : > { %v9306_v19 = vsel %vm9251_vm2, %v9247_v61, 0.0  ;;  %8238 = vrot.lane.b32.xlu1 %v8237_v24, %s12043_s13 }
 0x64f   : > { %v9269_v34 = vadd.f32 %v9268_v47, %v9267_v56  ;;  %v9283_v40 = vadd.f32 %v9282_v55, %v9281_v12  ;;  %v9308_v54 = vadd.f32 %v9307_v2, %v9306_v19  ;;  %v9219_v62 = vpop.xlane.xlu0 %9218  ;;  %v9294_v10 = vadd.f32 %v9293_v38, %v9292_v63 }
 0x650   : > { %v9245_v0 = vmul.f32 %v9219_v62, %v17199_v14 }
 0x651   : > { %v9332_v50 = vsel %vm1619_vm5, %v9269_v34, %v9260_v15  ;;  %v9284_v22 = vrot.slane %v9283_v40, 2  ;;  %v9309_v37 = vrot.slane %v9308_v54, 4  ;;  %v9295_v39 = vrot.slane %v9294_v10, 1 }
 0x652   : > { %v9297_v36 = vsel %vm9251_vm2, %v9245_v0, 0.0  ;;  %v9333_v16 = vsel %vm1621_vm7, %v9278_v29, %v9332_v50  ;;  %vm7140_vm5 = vcmask 195744   ;;  %vm8241_vm7 = vcmask 228544  }
 0x653   : > { %v9285_v4 = vadd.f32 %v9284_v22, %v9283_v40  ;;  %v9310_v7 = vadd.f32 %v9309_v37, %v9308_v54  ;;  %v9299_v58 = vadd.f32 %v9298_v35, %v9297_v36  ;;  %v9231_v17 = vpop.xlane.xlu0 %9230  ;;  %v9296_v18 = vadd.f32 %v9295_v39, %v9294_v10 }
 0x654   : > { %v9249_v14 = vmul.f32 %v9231_v17, %v17153_v11 }
 0x655   : > { %v9286_v44 = vrot.slane %v9285_v4, 1  ;;  %v9311_v8 = vrot.slane %v9310_v7, 2  ;;  %v9300_v48 = vrot.slane %v9299_v58, 4 }
 0x656   : > { %v9315_v42 = vsel %vm9251_vm2, %v9249_v14, 0.0 }
 0x657   : > { %v9287_v5 = vadd.f32 %v9286_v44, %v9285_v4  ;;  %v9301_v20 = vadd.f32 %v9300_v48, %v9299_v58  ;;  %v9317_v21 = vadd.f32 %v9316_v28, %v9315_v42  ;;  %v9312_v31 = vadd.f32 %v9311_v8, %v9310_v7 }
 0x659   : > { %v9302_v43 = vrot.slane %v9301_v20, 2  ;;  %v9318_v32 = vrot.slane %v9317_v21, 4  ;;  %v9334_v6 = vsel %vm1623_vm8, %v9287_v5, %v9333_v16  ;;  %v9313_v45 = vrot.slane %v9312_v31, 1 }
 0x65a   : > { %v9335_v57 = vsel %vm1625_vm9, %v9296_v18, %v9334_v6  ;;  %vm9342_vm8 = vcmask 261344  }
 0x65b   : > { %v9303_v30 = vadd.f32 %v9302_v43, %v9301_v20  ;;  %v9319_v11 = vadd.f32 %v9318_v32, %v9317_v21  ;;  %v9314_v26 = vadd.f32 %v9313_v45, %v9312_v31 }
 0x65d   : > { %v9304_v53 = vrot.slane %v9303_v30, 1  ;;  %v9320_v1 = vrot.slane %v9319_v11, 2 }
 0x65f   : > { %v9305_v51 = vadd.f32 %v9304_v53, %v9303_v30  ;;  %v9321_v59 = vadd.f32 %v9320_v1, %v9319_v11 }
 0x661   : > { %v9322_v52 = vrot.slane %v9321_v59, 1  ;;  %v9336_v13 = vsel %vm1627_vm10, %v9305_v51, %v9335_v57 }
 0x662   : > { %v9337_v25 = vsel %vm1629_vm11, %v9314_v26, %v9336_v13 }
 0x663   : > { %v9323_v33 = vadd.f32 %v9322_v52, %v9321_v59 }
 0x665   : > { %v9338_v60 = vsel %vm1631_vm12, %v9323_v33, %v9337_v25 }
 0x666   : > { %9339 = vrot.lane.b32.xlu1 %v9338_v60, %s12043_s13 }
 0x66b   : > { %v7138_v9 = vpop.permute.xlu0 %7137 }
 0x66c   : > { %7141 = vst.msk [vmem:[#allocation2] sm:$0xff] %vm7140_vm5, %v7138_v9 }
 0x6c0   : > { %v8239_v23 = vpop.permute.xlu1 %8238 }
 0x6c1   : > { %8242 = vst.msk [vmem:[#allocation2] sm:$0xff] %vm8241_vm7, %v8239_v23 }
 0x6d8   : > { %v9340_v27 = vpop.permute.xlu1 %9339 }
 0x6d9   : > { %9343 = vst.msk [vmem:[#allocation2] sm:$0xff] %vm9342_vm8, %v9340_v27 }
 0x6da PF: > { %v9345_v56 = vld [vmem:[%s12311_s11] sm:$0xff]  ;;  %v9346_v63 = vld [vmem:[%s12311_s11 + $0x8] sm:$0xff]  ;;  %v9347_v12 = vld [vmem:[%s12311_s11 + $0x10] sm:$0xff]  ;;  %v12044_v3 = vmov 0.0|0.0   ;;  %vm12045_vm9 = vmmov 0   ;;  %v12046_v61 = vmov 0.0  }
 0x6db   : > { %11033 = vmatprep.subr.bf16.mxu0 %v12044_v3  ;;  %v11034_v46 = vpack.c.bf16 %v9346_v63, %v9345_v56  ;;  %v9348_v41 = vld [vmem:[%s12311_s11 + $0x18] sm:$0xff]  ;;  %10638 = vmatprep.mubr.msk.f32.mxu0 %vm12045_vm9, %v12046_v61  ;;  %vm9356_vm10 = vcmask 261120   ;;  %s9866_s14 = sshll.u32 %s12011_s18, 7  ;;  %s9449_s21 = sshll.u32 %s12319_s5, 4  ;;  %s16522_s21 = int_to_ptr.vmem [resolvable:$true] %s9449_s21 }
 0x6dc   : > { %v11037_v47 = vpack.c.bf16 %v9348_v41, %v9347_v12  ;;  %v9863_v55 = vld [vmem:[%s290_s22] ss:$0 sm:$0xff]  ;;  %s17325_s30 = sld [smem:[#allocation98_spill]]  ;;  %s9432_s29 = scalar_lea.sflag [#allocation5], %s12308_s8 }
 0x6dd   : > { %11035 = vmatpush3.bf16.msra.mxu0 %v11034_v46  ;;  %s11929_s9 = scalar_lea.vmem %s16522_s21, 128  ;;  %p17326_p11 = scmp.ne.s32.totalorder %s16810_s26, 0 }
 0x6de   : > { %11036 = vmatprep.subr.bf16.mxu0 %v12044_v3  ;;  %p11930_p13 = scmp.ne.s32.totalorder %s16522_s21, %s11929_s9  ;;  %s12047_s18 = smov [#allocation10]  }
 0x6df   : > { %s11933_s22 = sshll.u32 %s12047_s18, 4  ;;  %s11934_s22 = int_to_ptr.vmem [resolvable:$false] %s11933_s22 }
 0x6e0   : > { %v9344_v38 = vld [vmem:[#allocation2] sm:$0xff]  ;;  %p11931_p4 = pnand %p11930_p13, %p17326_p11  ;;  %s11935_s24 = scalar_lea.vmem %s11934_s22, 256 }
 0x6e1   : > { %11038 = vmatpush3.bf16.msra.mxu0 %v11037_v47  ;;  %p11936_p1 = scmp.lt.s32.totalorder %s16522_s21, %s11934_s22  ;;  %p11937_p2 = scmp.lt.s32.totalorder %s11935_s24, %s11929_s9 }
 0x6e2   : > { %s16520_s12 = scalar_lea.hbm %s17325_s30, %s9866_s14  ;;  %p11932_p12 = pneg %p11931_p4 }
 0x6e3   : > { %p11938_p5 = por %p11937_p2, %p11936_p1 }
 0x6e4   : > { %10639 = vmatmul.mubr.msk.f32.vlgmr.msra.gmra.mrb[0].mxu0 %vm9356_vm10, %v9344_v38 }
 0x6e5   : > { %p11939_p10 = pnand %p11938_p5, %p11932_p12 }
 0x7b7   : > { %v9426_v24 = vpop.f32.mrb[0].mxu0 }
 0x7b8   : > { %v9427_v2 = vadd.f32 %v9863_v55, %v9426_v24  ;;  %v10640_v19 = vpop.f32.mrb[1].mxu0 }
 0x7ba   : > { %9430 = vst [vmem:[%s12319_s5] sm:$0xff] %v9427_v2 }
 0x7bb   : > { %11942 = shalt.err (!%p11939_p10)
}
 0x7bc   : > { %s11943_s8 = scalar_lea.hbm %s16520_s12, 128  ;;  %s11947_s15 = scalar_lea.hbm %s17325_s30, 256 }
 0x7bd   : > { %p11944_p3 = scmp.ne.s32.totalorder %s16520_s12, %s11943_s8  ;;  %p11948_p0 = scmp.lt.u32.totalorder %s16520_s12, %s17325_s30 }
 0x7be   : > { %p11949_p8 = scmp.lt.u32.totalorder %s11947_s15, %s11943_s8  ;;  %p11951_p13 = scmp.lt.u32.totalorder %s11943_s8, %s16520_s12 }
 0x7bf   : > { %p11945_p7 = pnand %p11944_p3, %p17326_p11 }
 0x7c0   : > { %p11950_p6 = por %p11949_p8, %p11948_p0 }
 0x7c1   : > { %p11946_p9 = pneg %p11945_p7 }
 0x7c2   : > { %p11952_p4 = por %p11951_p13, %p11950_p6 }
 0x7c4   : > { %p11953_p12 = pnand %p11952_p4, %p11946_p9 }
 0x7c6   : > { %11956 = shalt.err (!%p11953_p12)
}
 0x7c7   : > { %11051 = dma.vmem_to_hbm [thread:$0]  (%p17326_p11), %s16522_s21, 128, %s16520_s12, %s9432_s29  }
 0x7c8 PF: > { %s17327_s0 = sld [smem:[#allocation15_spill]]  ;;  %s17328_s2 = sld [smem:[#allocation16_spill]] }
 0x7c9   : > { %p17330_p2 = scmp.ge.s32.totalorder %s12019_s20, 2 }
 0x7ce   : > { %s9461_s6 = sand.u32 1, %s17327_s0   ;;  %p17329_p1 = scmp.ne.s32.totalorder %s17328_s2, 0 }
 0x7cf   : > { %s9462_s28 = scalar_lea.sflag [#allocation5], %s9461_s6 }
 0x7d0   : > { %p11068_p5 = pnand %p17330_p2, %p17329_p1 }
 0x7d2   : > { %11994 = dma.done.wait (!%p11068_p5), %s9462_s28, 128  }
 0x7d3   : > { %11996 = vsyncadd (!%p11068_p5), %s9462_s28, 4294967168  ;;  %s19_s20 = sadd.s32 1, %s12019_s20   ;;  %s17331_s15 = smov %s12003_s16 }
 0x7d4   : > { %p16_p10 = scmp.ge.s32.totalorder %s19_s20, 4   ;;  %s17332_s16 = smov %s12007_s17 }
 0x7d5   : > { %s17333_s17 = smov %s12206_s4  ;;  %s17334_s18 = smov %s12015_s19 }
 0x7d6   : > { %s17335_s19 = smov %s17337_s7  ;;  %18 = sbr.rel (!%p16_p10) target bundleno = 10 (0xa), region = 104 }
 0x7dd   :  { %9467 = vsyncpa [#allocation4], 1 }
 0x7de   :  { %9469 = vsyncpa [#allocation4 + $0x1], 1 }
 0x7df   :  { %9470 = vsyncpa [#allocation7], 1 }
 0x7e0   :  { %9471 = vsyncpa [#allocation5], 1 }
 0x7e1   :  { %9473 = vsyncpa [#allocation5 + $0x1], 1 }

</bundles_post_ra>
